<compile_context>
chip_gen: v7x
topology: tpu7x:2x2x1
jax: 0.10.0
libtpu: 0.0.40
codegen_flags: <defaults>
</compile_context>

<pallas_src>
import math

import jax
import jax.numpy as jnp
from jax.experimental import pallas as pl
from jax.experimental.pallas import tpu as pltpu

BN_EPS = 1e-5
REF_PREC = jax.lax.Precision.HIGHEST   # pure-JAX reference only
MATMUL_DTYPE = jnp.bfloat16            # MXU operand dtype (f32 accumulation)


# ------------------------------ Pallas kernel ------------------------------

def make_kernel(num_blocks, nb, block_dims):
    """Fused BearingCNN forward over one batch tile of `nb` samples.

    Activation layout: (channels, L*nb) float32, lane = position*nb + sample.

    Ref order:
      inputs : x (1, Cin0, L0*nb) f32
               per block: w1 (Cout, k1*Cin) bf16 (BN folded, im2col row order
                          tap-major/channel-minor), b1 (Cout, 1) f32,
                          w2 (Cout, k2*Cout) bf16, b2 (Cout, 1) f32
               fc      : w1p (fc_units, fc_in) bf16 (flatten permutation folded in),
                         b1 (fc_units, 1) f32, w2 (ncls, fc_units) bf16, b2 (ncls, 1) f32
      outputs: per block (1, Cout, (L//2)*nb) f32, logits (1, ncls, nb) f32
      scratch: padded f32 VMEM buffer reused by every conv.
    """
    def kernel(*refs):
        pos = 0
        x_ref = refs[pos]; pos += 1
        blk_refs = []
        for _ in range(num_blocks):
            blk_refs.append(refs[pos:pos + 4]); pos += 4
        fw1_ref, fb1_ref, fw2_ref, fb2_ref = refs[pos:pos + 4]; pos += 4
        out_refs = refs[pos:pos + num_blocks]; pos += num_blocks
        logits_ref = refs[pos]; pos += 1
        pad_ref = refs[pos]                                   # f32 padded scratch

        def conv_same(h, cin, k, l, w_ref, b_ref, relu):
            """'same' 1-D conv as a single im2col matmul (K = cin*k)."""
            left = (k - 1) // 2
            right = (k - 1) - left
            lanes = l * nb
            # Write the conv input once into the persistent padded scratch
            # (no per-tap zero-concatenates in the kernel).
            if left:
                pad_ref[0:cin, 0:left * nb] = jnp.zeros((cin, left * nb), jnp.float32)
            if right:
                pad_ref[0:cin, (left + l) * nb:(left + l + right) * nb] = (
                    jnp.zeros((cin, right * nb), jnp.float32))
            pad_ref[0:cin, left * nb:(left + l) * nb] = h
            # im2col operand: rows are (tap-major, channel-minor); static lane slices.
            taps = [pad_ref[0:cin, t * nb:t * nb + lanes] for t in range(k)]
            a = (jnp.concatenate(taps, axis=0) if k > 1 else taps[0]).astype(MATMUL_DTYPE)
            y = jnp.dot(w_ref[...], a, preferred_element_type=jnp.float32) + b_ref[...]
            return jnp.maximum(y, 0.0) if relu else y

        h = x_ref[0]                                          # (Cin0, L0*nb) f32
        for bi in range(num_blocks):
            cin, cout, k1, k2, l = block_dims[bi]
            w1_ref, b1_ref, w2_ref, b2_ref = blk_refs[bi]
            # Conv1 (+ folded eval-mode BatchNorm) + ReLU, then Conv2 (k=3, pad=1).
            h = conv_same(h, cin, k1, l, w1_ref, b1_ref, relu=True)
            y = conv_same(h, cout, k2, l, w2_ref, b2_ref, relu=False)
            # MaxPool1d(2), floor mode: pure f32 VPU max over adjacent position
            # blocks + static even-position lane slices (no MXU, no bf16 rounding).
            lo = l // 2
            pm = jnp.maximum(y[:, :(l - 1) * nb], y[:, nb:])  # max(pos p, pos p+1)
            pooled = jnp.concatenate(
                [pm[:, 2 * p * nb:(2 * p + 1) * nb] for p in range(lo)], axis=1)
            out_refs[bi][0] = pooled.astype(out_refs[bi].dtype)
            h = pooled                                        # (cout, lo*nb) f32
            # TODO(synk): training-mode Dropout(0.3) omitted (eval => identity).

        # FC head with batch kept in lanes; flatten permutation folded into fc_w1.
        l_last = block_dims[-1][4] // 2
        f = jnp.concatenate([h[:, p * nb:(p + 1) * nb] for p in range(l_last)], axis=0)
        z = jnp.dot(fw1_ref[...], f.astype(MATMUL_DTYPE),
                    preferred_element_type=jnp.float32) + fb1_ref[...]
        z = jnp.maximum(z, 0.0)
        # TODO(synk): training-mode Dropout(0.5) omitted (eval => identity).
        logits = jnp.dot(fw2_ref[...], z.astype(MATMUL_DTYPE),
                         preferred_element_type=jnp.float32) + fb2_ref[...]
        logits_ref[0] = logits.astype(logits_ref.dtype)       # (ncls, nb)

    return kernel


# ------------------------------ JAX glue / wrapper ------------------------------

def bearing_cnn_forward(x, params, batch_tile=32):
    """Matches BearingCNN.forward (eval mode): returns (logits, layer_outputs)."""
    N, cin0, L0 = x.shape
    # >= 2 grid steps so both v7x TensorCores get work; <= batch_tile samples/step
    # keeps the single-TC (v5e/v6e) step count low and the lane axis wide.
    nb = max(1, min(batch_tile, pl.cdiv(N, 2)))
    G = pl.cdiv(N, nb)
    Npad = G * nb
    if Npad != N:
        x = jnp.pad(x, ((0, Npad - N), (0, 0), (0, 0)))
    # Position-major lane layout: lane = position*nb + sample.
    x_tiles = (x.reshape(G, nb, cin0, L0).transpose(0, 2, 3, 1)
                .reshape(G, cin0, L0 * nb).astype(jnp.float32))

    inputs = [x_tiles]
    in_specs = [pl.BlockSpec((1, cin0, L0 * nb), lambda g: (g, 0, 0))]
    out_shapes, out_specs = [], []
    block_meta, block_dims = [], []

    cin, L = cin0, L0
    max_rows = cin0
    max_pad_lanes = 0
    flops = 0
    for blk in params["blocks"]:
        w1, b1 = blk["w1"], blk["b1"]                 # (Cout, Cin, k1), (Cout,)
        w2, b2 = blk["w2"], blk["b2"]                 # (Cout, Cout, k2), (Cout,)
        cout, _, k1 = w1.shape
        k2 = w2.shape[2]

        # Fold eval-mode BatchNorm into conv1 (exact, done in f32 at trace time).
        scale = blk["gamma"] / jnp.sqrt(blk["rvar"] + BN_EPS)
        w1f = w1 * scale[:, None, None]
        b1f = (b1 - blk["rmean"]) * scale + blk["beta"]

        # Dense im2col weights: column order = (tap-major, channel-minor).
        w1m = w1f.transpose(0, 2, 1).reshape(cout, k1 * cin)
        w2m = w2.transpose(0, 2, 1).reshape(cout, k2 * cout)

        inputs += [w1m.astype(MATMUL_DTYPE), b1f.reshape(cout, 1).astype(jnp.float32),
                   w2m.astype(MATMUL_DTYPE), b2.reshape(cout, 1).astype(jnp.float32)]
        in_specs += [
            pl.BlockSpec((cout, k1 * cin), lambda g: (0, 0)),
            pl.BlockSpec((cout, 1), lambda g: (0, 0)),
            pl.BlockSpec((cout, k2 * cout), lambda g: (0, 0)),
            pl.BlockSpec((cout, 1), lambda g: (0, 0)),
        ]

        lo = L // 2
        out_shapes.append(jax.ShapeDtypeStruct((G, cout, lo * nb), jnp.float32))
        out_specs.append(pl.BlockSpec((1, cout, lo * nb), lambda g: (g, 0, 0)))
        block_meta.append((cout, lo))
        block_dims.append((cin, cout, k1, k2, L))
        max_rows = max(max_rows, cout)
        max_pad_lanes = max(max_pad_lanes, (L + k1 - 1) * nb, (L + k2 - 1) * nb)
        flops += 2 * (cout * cin * k1 + cout * cout * k2) * L * Npad
        cin, L = cout, lo

    fc_w1, fc_b1 = params["fc_w1"], params["fc_b1"]
    fc_w2, fc_b2 = params["fc_w2"], params["fc_b2"]
    fc_units, fc_in = fc_w1.shape
    num_classes = fc_w2.shape[0]
    # Fold the torch flatten (channel-major, position-minor) into fc_w1's columns:
    # kernel FC operand rows are position-major / channel-minor.
    w1p = (fc_w1.reshape(fc_units, cin, L).transpose(0, 2, 1)
                 .reshape(fc_units, L * cin))
    inputs += [w1p.astype(MATMUL_DTYPE), fc_b1.reshape(fc_units, 1).astype(jnp.float32),
               fc_w2.astype(MATMUL_DTYPE), fc_b2.reshape(num_classes, 1).astype(jnp.float32)]
    in_specs += [
        pl.BlockSpec((fc_units, fc_in), lambda g: (0, 0)),
        pl.BlockSpec((fc_units, 1), lambda g: (0, 0)),
        pl.BlockSpec((num_classes, fc_units), lambda g: (0, 0)),
        pl.BlockSpec((num_classes, 1), lambda g: (0, 0)),
    ]
    flops += 2 * (fc_in * fc_units + fc_units * num_classes) * Npad

    out_shapes.append(jax.ShapeDtypeStruct((G, num_classes, nb), jnp.float32))
    out_specs.append(pl.BlockSpec((1, num_classes, nb), lambda g: (g, 0, 0)))

    bytes_accessed = sum(int(a.size) * a.dtype.itemsize for a in inputs)
    bytes_accessed += sum(int(math.prod(s.shape)) * jnp.dtype(s.dtype).itemsize
                          for s in out_shapes)

    outs = pl.pallas_call(
        make_kernel(len(params["blocks"]), nb, tuple(block_dims)),
        out_shape=tuple(out_shapes),
        grid=(G,),
        in_specs=in_specs,
        out_specs=tuple(out_specs),
        scratch_shapes=[pltpu.VMEM((max_rows, max_pad_lanes), jnp.float32)],
        compiler_params=pltpu.CompilerParams(dimension_semantics=("parallel",)),
        cost_estimate=pl.CostEstimate(flops=int(flops), transcendentals=0,
                                      bytes_accessed=int(bytes_accessed)),
    )(*inputs)

    # Undo the tile layout (small pure-JAX reshapes outside the kernel).
    layer_outputs = []
    for (cout, lo), o in zip(block_meta, outs[:len(block_meta)]):
        o = (o.reshape(G, cout, lo, nb).transpose(0, 3, 1, 2)
              .reshape(Npad, cout, lo)[:N])
        layer_outputs.append(o)
    logits = outs[-1].transpose(0, 2, 1).reshape(Npad, num_classes)[:N]
    # fc_input layer output reconstructed in the wrapper from block-4's output
    # (matches torch .view(N, -1) on NCL layout); no extra HBM write from the kernel.
    layer_outputs.append(layer_outputs[-1].reshape(N, -1))
    return logits, layer_outputs


# ------------------------------ Deterministic init ------------------------------

def xavier_normal(key, shape, fan_in, fan_out):
    std = math.sqrt(2.0 / (fan_in + fan_out))
    return (std * jax.random.normal(key, shape)).astype(jnp.float32)


def init_params(key, in_channels=1, num_classes=7,
                conv_filters=(10, 10, 10, 10), kernel_sizes=(10, 10, 10, 10),
                fc_units=256, window=100):
    n_blocks = len(conv_filters)
    keys = jax.random.split(key, 8 * n_blocks + 4)
    ki = 0
    blocks = []
    cin, L = in_channels, window
    for f, ks in zip(conv_filters, kernel_sizes):
        w1 = xavier_normal(keys[ki], (f, cin, ks), cin * ks, f * ks); ki += 1
        w2 = xavier_normal(keys[ki], (f, f, 3), f * 3, f * 3); ki += 1
        b1 = 0.1 * jax.random.normal(keys[ki], (f,)); ki += 1
        b2 = 0.1 * jax.random.normal(keys[ki], (f,)); ki += 1
        gamma = 1.0 + 0.1 * jax.random.normal(keys[ki], (f,)); ki += 1
        beta = 0.1 * jax.random.normal(keys[ki], (f,)); ki += 1
        rmean = 0.1 * jax.random.normal(keys[ki], (f,)); ki += 1
        rvar = jax.random.uniform(keys[ki], (f,), minval=0.5, maxval=1.5); ki += 1
        blocks.append(dict(
            w1=w1, b1=b1.astype(jnp.float32),
            gamma=gamma.astype(jnp.float32), beta=beta.astype(jnp.float32),
            rmean=rmean.astype(jnp.float32), rvar=rvar.astype(jnp.float32),
            w2=w2, b2=b2.astype(jnp.float32)))
        cin, L = f, L // 2
    fc_in = cin * L
    fc_w1 = xavier_normal(keys[ki], (fc_units, fc_in), fc_in, fc_units); ki += 1
    fc_b1 = 0.1 * jax.random.normal(keys[ki], (fc_units,)); ki += 1
    fc_w2 = xavier_normal(keys[ki], (num_classes, fc_units), fc_units, num_classes); ki += 1
    fc_b2 = 0.1 * jax.random.normal(keys[ki], (num_classes,)); ki += 1
    return dict(blocks=blocks,
                fc_w1=fc_w1, fc_b1=fc_b1.astype(jnp.float32),
                fc_w2=fc_w2, fc_b2=fc_b2.astype(jnp.float32))


# ------------------------------ Pure-JAX reference ------------------------------

def _ref_conv1d(x, w, b):
    K = w.shape[2]
    L = x.shape[2] - K + 1
    out = jnp.zeros((x.shape[0], w.shape[0], L), jnp.float32)
    for k in range(K):
        out = out + jnp.einsum("ncl,oc->nol", x[:, :, k:k + L], w[:, :, k],
                               precision=REF_PREC)
    return out + b[None, :, None]


def reference_forward(x, params):
    layer_outputs = []
    h = x
    for blk in params["blocks"]:
        k1 = blk["w1"].shape[2]
        left = (k1 - 1) // 2
        right = (k1 - 1) - left
        y = _ref_conv1d(jnp.pad(h, ((0, 0), (0, 0), (left, right))), blk["w1"], blk["b1"])
        scale = blk["gamma"] / jnp.sqrt(blk["rvar"] + BN_EPS)
        y = (y - blk["rmean"][None, :, None]) * scale[None, :, None] + blk["beta"][None, :, None]
        y = jnp.maximum(y, 0.0)
        y = _ref_conv1d(jnp.pad(y, ((0, 0), (0, 0), (1, 1))), blk["w2"], blk["b2"])
        lo = y.shape[2] // 2
        h = y[:, :, :2 * lo].reshape(y.shape[0], y.shape[1], lo, 2).max(axis=-1)
        layer_outputs.append(h)
    flat = h.reshape(h.shape[0], -1)
    z = jnp.maximum(jnp.dot(flat, params["fc_w1"].T, precision=REF_PREC) + params["fc_b1"], 0.0)
    logits = jnp.dot(z, params["fc_w2"].T, precision=REF_PREC) + params["fc_b2"]
    layer_outputs.append(flat)
    return logits, layer_outputs


# ------------------------------ main ------------------------------

if __name__ == "__main__":
    # Small stand-in for WINDOW_SIZE=500; same architecture, and L=25 at block 3
    # exercises the odd-length floor-mode MaxPool path.
    WINDOW = 100
    BATCH = 32
    key = jax.random.PRNGKey(0)
    kp, kx = jax.random.split(key)
    params = init_params(kp, window=WINDOW)
    x = jax.random.normal(kx, (BATCH, 1, WINDOW), dtype=jnp.float32)   # NCL like torch Conv1d

    logits, layer_outputs = bearing_cnn_forward(x, params, batch_tile=32)
    jax.block_until_ready(logits)

    ref_logits, ref_layers = reference_forward(x, params)
    assert logits.shape == (BATCH, 7), logits.shape
    assert len(layer_outputs) == len(ref_layers)
    # bf16 MXU operands (f32 accumulation, f32 elementwise/activations) -> tolerance
    # loose enough for bf16 rounding but tight enough to catch layout/semantic bugs.
    for a, b in zip(layer_outputs, ref_layers):
        assert a.shape == b.shape, (a.shape, b.shape)
        assert bool(jnp.allclose(a, b, atol=4e-2, rtol=4e-2)), \
            float(jnp.max(jnp.abs(a - b)))
    assert bool(jnp.allclose(logits, ref_logits, atol=4e-2, rtol=4e-2)), \
        float(jnp.max(jnp.abs(logits - ref_logits)))

    print("KERNEL_OK")
</pallas_src>

<mosaic_0001>
module attributes {stable_mosaic.version = 11 : i64} {
  func.func @kernel(%arg0: i32, %arg1: memref<1x1x1600xf32, #tpu.memory_space<vmem>>, %arg2: memref<10x10xbf16, #tpu.memory_space<vmem>>, %arg3: memref<10x1xf32, #tpu.memory_space<vmem>>, %arg4: memref<10x30xbf16, #tpu.memory_space<vmem>>, %arg5: memref<10x1xf32, #tpu.memory_space<vmem>>, %arg6: memref<10x100xbf16, #tpu.memory_space<vmem>>, %arg7: memref<10x1xf32, #tpu.memory_space<vmem>>, %arg8: memref<10x30xbf16, #tpu.memory_space<vmem>>, %arg9: memref<10x1xf32, #tpu.memory_space<vmem>>, %arg10: memref<10x100xbf16, #tpu.memory_space<vmem>>, %arg11: memref<10x1xf32, #tpu.memory_space<vmem>>, %arg12: memref<10x30xbf16, #tpu.memory_space<vmem>>, %arg13: memref<10x1xf32, #tpu.memory_space<vmem>>, %arg14: memref<10x100xbf16, #tpu.memory_space<vmem>>, %arg15: memref<10x1xf32, #tpu.memory_space<vmem>>, %arg16: memref<10x30xbf16, #tpu.memory_space<vmem>>, %arg17: memref<10x1xf32, #tpu.memory_space<vmem>>, %arg18: memref<256x60xbf16, #tpu.memory_space<vmem>>, %arg19: memref<256x1xf32, #tpu.memory_space<vmem>>, %arg20: memref<7x256xbf16, #tpu.memory_space<vmem>>, %arg21: memref<7x1xf32, #tpu.memory_space<vmem>>, %arg22: memref<1x10x800xf32, #tpu.memory_space<vmem>>, %arg23: memref<1x10x400xf32, #tpu.memory_space<vmem>>, %arg24: memref<1x10x192xf32, #tpu.memory_space<vmem>>, %arg25: memref<1x10x96xf32, #tpu.memory_space<vmem>>, %arg26: memref<1x7x16xf32, #tpu.memory_space<vmem>>, %arg27: memref<10x1744xf32, #tpu.memory_space<vmem>>) attributes {dimension_semantics = [#tpu.dimension_semantics<parallel>], iteration_bounds = array<i64: 2>, scalar_prefetch = 0 : i64, scratch_operands = 1 : i64, tpu.core_type = #tpu.core_type<tc>, window_params = [{transform_indices = @transform_0, window_bounds = array<i64: 1, 1, 1600>}, {pipeline_mode = #tpu.pipeline_mode<synchronous>, transform_indices = @transform_1, window_bounds = array<i64: 10, 10>}, {pipeline_mode = #tpu.pipeline_mode<synchronous>, transform_indices = @transform_2, window_bounds = array<i64: 10, 1>}, {pipeline_mode = #tpu.pipeline_mode<synchronous>, transform_indices = @transform_3, window_bounds = array<i64: 10, 30>}, {pipeline_mode = #tpu.pipeline_mode<synchronous>, transform_indices = @transform_4, window_bounds = array<i64: 10, 1>}, {pipeline_mode = #tpu.pipeline_mode<synchronous>, transform_indices = @transform_5, window_bounds = array<i64: 10, 100>}, {pipeline_mode = #tpu.pipeline_mode<synchronous>, transform_indices = @transform_6, window_bounds = array<i64: 10, 1>}, {pipeline_mode = #tpu.pipeline_mode<synchronous>, transform_indices = @transform_7, window_bounds = array<i64: 10, 30>}, {pipeline_mode = #tpu.pipeline_mode<synchronous>, transform_indices = @transform_8, window_bounds = array<i64: 10, 1>}, {pipeline_mode = #tpu.pipeline_mode<synchronous>, transform_indices = @transform_9, window_bounds = array<i64: 10, 100>}, {pipeline_mode = #tpu.pipeline_mode<synchronous>, transform_indices = @transform_10, window_bounds = array<i64: 10, 1>}, {pipeline_mode = #tpu.pipeline_mode<synchronous>, transform_indices = @transform_11, window_bounds = array<i64: 10, 30>}, {pipeline_mode = #tpu.pipeline_mode<synchronous>, transform_indices = @transform_12, window_bounds = array<i64: 10, 1>}, {pipeline_mode = #tpu.pipeline_mode<synchronous>, transform_indices = @transform_13, window_bounds = array<i64: 10, 100>}, {pipeline_mode = #tpu.pipeline_mode<synchronous>, transform_indices = @transform_14, window_bounds = array<i64: 10, 1>}, {pipeline_mode = #tpu.pipeline_mode<synchronous>, transform_indices = @transform_15, window_bounds = array<i64: 10, 30>}, {pipeline_mode = #tpu.pipeline_mode<synchronous>, transform_indices = @transform_16, window_bounds = array<i64: 10, 1>}, {pipeline_mode = #tpu.pipeline_mode<synchronous>, transform_indices = @transform_17, window_bounds = array<i64: 256, 60>}, {pipeline_mode = #tpu.pipeline_mode<synchronous>, transform_indices = @transform_18, window_bounds = array<i64: 256, 1>}, {pipeline_mode = #tpu.pipeline_mode<synchronous>, transform_indices = @transform_19, window_bounds = array<i64: 7, 256>}, {pipeline_mode = #tpu.pipeline_mode<synchronous>, transform_indices = @transform_20, window_bounds = array<i64: 7, 1>}, {transform_indices = @transform_21, window_bounds = array<i64: 1, 10, 800>}, {transform_indices = @transform_22, window_bounds = array<i64: 1, 10, 400>}, {transform_indices = @transform_23, window_bounds = array<i64: 1, 10, 192>}, {transform_indices = @transform_24, window_bounds = array<i64: 1, 10, 96>}, {transform_indices = @transform_25, window_bounds = array<i64: 1, 7, 16>}]} {
    %c0 = arith.constant 0 : index
    %c0_0 = arith.constant 0 : index
    %c0_1 = arith.constant 0 : index
    %0 = vector.load %arg1[%c0, %c0_0, %c0_1] : memref<1x1x1600xf32, #tpu.memory_space<vmem>>, vector<1x1x1600xf32>
    %1 = vector.shape_cast %0 : vector<1x1x1600xf32> to vector<1x1600xf32>
    %cst = arith.constant 0.000000e+00 : f32
    %2 = vector.broadcast %cst : f32 to vector<1x64xf32>
    %c0_2 = arith.constant 0 : index
    %c0_3 = arith.constant 0 : index
    %3 = vector.load %arg27[%c0_2, %c0_3] : memref<10x1744xf32, #tpu.memory_space<vmem>>, vector<1x64xf32>
    tpu.vector_store %arg27[%c0_2, %c0_3], %2 {strides = array<i32>} : memref<10x1744xf32, #tpu.memory_space<vmem>>, vector<1x64xf32>,
    %cst_4 = arith.constant 0.000000e+00 : f32
    %4 = vector.broadcast %cst_4 : f32 to vector<1x80xf32>
    %c0_5 = arith.constant 0 : index
    %c1664 = arith.constant 1664 : index
    %5 = vector.load %arg27[%c0_5, %c1664] : memref<10x1744xf32, #tpu.memory_space<vmem>>, vector<1x80xf32>
    tpu.vector_store %arg27[%c0_5, %c1664], %4 {strides = array<i32>} : memref<10x1744xf32, #tpu.memory_space<vmem>>, vector<1x80xf32>,
    %c0_6 = arith.constant 0 : index
    %c64 = arith.constant 64 : index
    %6 = vector.load %arg27[%c0_6, %c64] : memref<10x1744xf32, #tpu.memory_space<vmem>>, vector<1x1600xf32>
    tpu.vector_store %arg27[%c0_6, %c64], %1 {strides = array<i32>} : memref<10x1744xf32, #tpu.memory_space<vmem>>, vector<1x1600xf32>,
    %c0_7 = arith.constant 0 : index
    %c0_8 = arith.constant 0 : index
    %7 = vector.load %arg27[%c0_7, %c0_8] : memref<10x1744xf32, #tpu.memory_space<vmem>>, vector<1x1600xf32>
    %c0_9 = arith.constant 0 : index
    %c16 = arith.constant 16 : index
    %8 = vector.load %arg27[%c0_9, %c16] : memref<10x1744xf32, #tpu.memory_space<vmem>>, vector<1x1600xf32>
    %c0_10 = arith.constant 0 : index
    %c32 = arith.constant 32 : index
    %9 = vector.load %arg27[%c0_10, %c32] : memref<10x1744xf32, #tpu.memory_space<vmem>>, vector<1x1600xf32>
    %c0_11 = arith.constant 0 : index
    %c48 = arith.constant 48 : index
    %10 = vector.load %arg27[%c0_11, %c48] : memref<10x1744xf32, #tpu.memory_space<vmem>>, vector<1x1600xf32>
    %c0_12 = arith.constant 0 : index
    %c64_13 = arith.constant 64 : index
    %11 = vector.load %arg27[%c0_12, %c64_13] : memref<10x1744xf32, #tpu.memory_space<vmem>>, vector<1x1600xf32>
    %c0_14 = arith.constant 0 : index
    %c80 = arith.constant 80 : index
    %12 = vector.load %arg27[%c0_14, %c80] : memref<10x1744xf32, #tpu.memory_space<vmem>>, vector<1x1600xf32>
    %c0_15 = arith.constant 0 : index
    %c96 = arith.constant 96 : index
    %13 = vector.load %arg27[%c0_15, %c96] : memref<10x1744xf32, #tpu.memory_space<vmem>>, vector<1x1600xf32>
    %c0_16 = arith.constant 0 : index
    %c112 = arith.constant 112 : index
    %14 = vector.load %arg27[%c0_16, %c112] : memref<10x1744xf32, #tpu.memory_space<vmem>>, vector<1x1600xf32>
    %c0_17 = arith.constant 0 : index
    %c128 = arith.constant 128 : index
    %15 = vector.load %arg27[%c0_17, %c128] : memref<10x1744xf32, #tpu.memory_space<vmem>>, vector<1x1600xf32>
    %c0_18 = arith.constant 0 : index
    %c144 = arith.constant 144 : index
    %16 = vector.load %arg27[%c0_18, %c144] : memref<10x1744xf32, #tpu.memory_space<vmem>>, vector<1x1600xf32>
    %17 = tpu.concatenate %7, %8, %9, %10, %11, %12, %13, %14, %15, %16 in 0 : vector<1x1600xf32>, vector<1x1600xf32>, vector<1x1600xf32>, vector<1x1600xf32>, vector<1x1600xf32>, vector<1x1600xf32>, vector<1x1600xf32>, vector<1x1600xf32>, vector<1x1600xf32>, vector<1x1600xf32> -> vector<10x1600xf32>
    %18 = arith.truncf %17 : vector<10x1600xf32> to vector<10x1600xbf16>
    %c0_19 = arith.constant 0 : index
    %c0_20 = arith.constant 0 : index
    %19 = vector.load %arg2[%c0_19, %c0_20] : memref<10x10xbf16, #tpu.memory_space<vmem>>, vector<10x10xbf16>
    %cst_21 = arith.constant dense<0.000000e+00> : vector<10x1600xf32>
    %20 = tpu.matmul %19, %18, %cst_21 {dimension_numbers = #tpu.dot_dimension_numbers<[1], [0], [0], [1], [0, 0, 1, 1], [], []>} : vector<10x10xbf16>, vector<10x1600xbf16>, vector<10x1600xf32> -> vector<10x1600xf32>
    %c0_22 = arith.constant 0 : index
    %c0_23 = arith.constant 0 : index
    %21 = vector.load %arg3[%c0_22, %c0_23] : memref<10x1xf32, #tpu.memory_space<vmem>>, vector<10x1xf32>
    %22 = vector.broadcast %21 : vector<10x1xf32> to vector<10x1600xf32>
    %23 = arith.addf %20, %22 : vector<10x1600xf32>
    %cst_24 = arith.constant 0.000000e+00 : f32
    %24 = vector.broadcast %cst_24 : f32 to vector<10x1600xf32>
    %25 = arith.maximumf %23, %24 : vector<10x1600xf32>
    %cst_25 = arith.constant 0.000000e+00 : f32
    %26 = vector.broadcast %cst_25 : f32 to vector<10x16xf32>
    %c0_26 = arith.constant 0 : index
    %c0_27 = arith.constant 0 : index
    %27 = vector.load %arg27[%c0_26, %c0_27] : memref<10x1744xf32, #tpu.memory_space<vmem>>, vector<10x16xf32>
    tpu.vector_store %arg27[%c0_26, %c0_27], %26 {strides = array<i32>} : memref<10x1744xf32, #tpu.memory_space<vmem>>, vector<10x16xf32>,
    %cst_28 = arith.constant 0.000000e+00 : f32
    %28 = vector.broadcast %cst_28 : f32 to vector<10x16xf32>
    %c0_29 = arith.constant 0 : index
    %c1616 = arith.constant 1616 : index
    %29 = vector.load %arg27[%c0_29, %c1616] : memref<10x1744xf32, #tpu.memory_space<vmem>>, vector<10x16xf32>
    tpu.vector_store %arg27[%c0_29, %c1616], %28 {strides = array<i32>} : memref<10x1744xf32, #tpu.memory_space<vmem>>, vector<10x16xf32>,
    %c0_30 = arith.constant 0 : index
    %c16_31 = arith.constant 16 : index
    %30 = vector.load %arg27[%c0_30, %c16_31] : memref<10x1744xf32, #tpu.memory_space<vmem>>, vector<10x1600xf32>
    tpu.vector_store %arg27[%c0_30, %c16_31], %25 {strides = array<i32>} : memref<10x1744xf32, #tpu.memory_space<vmem>>, vector<10x1600xf32>,
    %c0_32 = arith.constant 0 : index
    %c0_33 = arith.constant 0 : index
    %31 = vector.load %arg27[%c0_32, %c0_33] : memref<10x1744xf32, #tpu.memory_space<vmem>>, vector<10x1600xf32>
    %c0_34 = arith.constant 0 : index
    %c16_35 = arith.constant 16 : index
    %32 = vector.load %arg27[%c0_34, %c16_35] : memref<10x1744xf32, #tpu.memory_space<vmem>>, vector<10x1600xf32>
    %c0_36 = arith.constant 0 : index
    %c32_37 = arith.constant 32 : index
    %33 = vector.load %arg27[%c0_36, %c32_37] : memref<10x1744xf32, #tpu.memory_space<vmem>>, vector<10x1600xf32>
    %34 = tpu.concatenate %31, %32, %33 in 0 : vector<10x1600xf32>, vector<10x1600xf32>, vector<10x1600xf32> -> vector<30x1600xf32>
    %35 = arith.truncf %34 : vector<30x1600xf32> to vector<30x1600xbf16>
    %c0_38 = arith.constant 0 : index
    %c0_39 = arith.constant 0 : index
    %36 = vector.load %arg4[%c0_38, %c0_39] : memref<10x30xbf16, #tpu.memory_space<vmem>>, vector<10x30xbf16>
    %cst_40 = arith.constant dense<0.000000e+00> : vector<10x1600xf32>
    %37 = tpu.matmul %36, %35, %cst_40 {dimension_numbers = #tpu.dot_dimension_numbers<[1], [0], [0], [1], [0, 0, 1, 1], [], []>} : vector<10x30xbf16>, vector<30x1600xbf16>, vector<10x1600xf32> -> vector<10x1600xf32>
    %c0_41 = arith.constant 0 : index
    %c0_42 = arith.constant 0 : index
    %38 = vector.load %arg5[%c0_41, %c0_42] : memref<10x1xf32, #tpu.memory_space<vmem>>, vector<10x1xf32>
    %39 = vector.broadcast %38 : vector<10x1xf32> to vector<10x1600xf32>
    %40 = arith.addf %37, %39 : vector<10x1600xf32>
    %41 = vector.extract_strided_slice %40 {offsets = [0, 0], sizes = [10, 1584], strides = [1, 1]} : vector<10x1600xf32> to vector<10x1584xf32>
    %42 = vector.extract_strided_slice %40 {offsets = [0, 16], sizes = [10, 1584], strides = [1, 1]} : vector<10x1600xf32> to vector<10x1584xf32>
    %43 = arith.maximumf %41, %42 : vector<10x1584xf32>
    %44 = vector.extract_strided_slice %43 {offsets = [0, 0], sizes = [10, 16], strides = [1, 1]} : vector<10x1584xf32> to vector<10x16xf32>
    %45 = vector.extract_strided_slice %43 {offsets = [0, 32], sizes = [10, 16], strides = [1, 1]} : vector<10x1584xf32> to vector<10x16xf32>
    %46 = vector.extract_strided_slice %43 {offsets = [0, 64], sizes = [10, 16], strides = [1, 1]} : vector<10x1584xf32> to vector<10x16xf32>
    %47 = vector.extract_strided_slice %43 {offsets = [0, 96], sizes = [10, 16], strides = [1, 1]} : vector<10x1584xf32> to vector<10x16xf32>
    %48 = vector.extract_strided_slice %43 {offsets = [0, 128], sizes = [10, 16], strides = [1, 1]} : vector<10x1584xf32> to vector<10x16xf32>
    %49 = vector.extract_strided_slice %43 {offsets = [0, 160], sizes = [10, 16], strides = [1, 1]} : vector<10x1584xf32> to vector<10x16xf32>
    %50 = vector.extract_strided_slice %43 {offsets = [0, 192], sizes = [10, 16], strides = [1, 1]} : vector<10x1584xf32> to vector<10x16xf32>
    %51 = vector.extract_strided_slice %43 {offsets = [0, 224], sizes = [10, 16], strides = [1, 1]} : vector<10x1584xf32> to vector<10x16xf32>
    %52 = vector.extract_strided_slice %43 {offsets = [0, 256], sizes = [10, 16], strides = [1, 1]} : vector<10x1584xf32> to vector<10x16xf32>
    %53 = vector.extract_strided_slice %43 {offsets = [0, 288], sizes = [10, 16], strides = [1, 1]} : vector<10x1584xf32> to vector<10x16xf32>
    %54 = vector.extract_strided_slice %43 {offsets = [0, 320], sizes = [10, 16], strides = [1, 1]} : vector<10x1584xf32> to vector<10x16xf32>
    %55 = vector.extract_strided_slice %43 {offsets = [0, 352], sizes = [10, 16], strides = [1, 1]} : vector<10x1584xf32> to vector<10x16xf32>
    %56 = vector.extract_strided_slice %43 {offsets = [0, 384], sizes = [10, 16], strides = [1, 1]} : vector<10x1584xf32> to vector<10x16xf32>
    %57 = vector.extract_strided_slice %43 {offsets = [0, 416], sizes = [10, 16], strides = [1, 1]} : vector<10x1584xf32> to vector<10x16xf32>
    %58 = vector.extract_strided_slice %43 {offsets = [0, 448], sizes = [10, 16], strides = [1, 1]} : vector<10x1584xf32> to vector<10x16xf32>
    %59 = vector.extract_strided_slice %43 {offsets = [0, 480], sizes = [10, 16], strides = [1, 1]} : vector<10x1584xf32> to vector<10x16xf32>
    %60 = vector.extract_strided_slice %43 {offsets = [0, 512], sizes = [10, 16], strides = [1, 1]} : vector<10x1584xf32> to vector<10x16xf32>
    %61 = vector.extract_strided_slice %43 {offsets = [0, 544], sizes = [10, 16], strides = [1, 1]} : vector<10x1584xf32> to vector<10x16xf32>
    %62 = vector.extract_strided_slice %43 {offsets = [0, 576], sizes = [10, 16], strides = [1, 1]} : vector<10x1584xf32> to vector<10x16xf32>
    %63 = vector.extract_strided_slice %43 {offsets = [0, 608], sizes = [10, 16], strides = [1, 1]} : vector<10x1584xf32> to vector<10x16xf32>
    %64 = vector.extract_strided_slice %43 {offsets = [0, 640], sizes = [10, 16], strides = [1, 1]} : vector<10x1584xf32> to vector<10x16xf32>
    %65 = vector.extract_strided_slice %43 {offsets = [0, 672], sizes = [10, 16], strides = [1, 1]} : vector<10x1584xf32> to vector<10x16xf32>
    %66 = vector.extract_strided_slice %43 {offsets = [0, 704], sizes = [10, 16], strides = [1, 1]} : vector<10x1584xf32> to vector<10x16xf32>
    %67 = vector.extract_strided_slice %43 {offsets = [0, 736], sizes = [10, 16], strides = [1, 1]} : vector<10x1584xf32> to vector<10x16xf32>
    %68 = vector.extract_strided_slice %43 {offsets = [0, 768], sizes = [10, 16], strides = [1, 1]} : vector<10x1584xf32> to vector<10x16xf32>
    %69 = vector.extract_strided_slice %43 {offsets = [0, 800], sizes = [10, 16], strides = [1, 1]} : vector<10x1584xf32> to vector<10x16xf32>
    %70 = vector.extract_strided_slice %43 {offsets = [0, 832], sizes = [10, 16], strides = [1, 1]} : vector<10x1584xf32> to vector<10x16xf32>
    %71 = vector.extract_strided_slice %43 {offsets = [0, 864], sizes = [10, 16], strides = [1, 1]} : vector<10x1584xf32> to vector<10x16xf32>
    %72 = vector.extract_strided_slice %43 {offsets = [0, 896], sizes = [10, 16], strides = [1, 1]} : vector<10x1584xf32> to vector<10x16xf32>
    %73 = vector.extract_strided_slice %43 {offsets = [0, 928], sizes = [10, 16], strides = [1, 1]} : vector<10x1584xf32> to vector<10x16xf32>
    %74 = vector.extract_strided_slice %43 {offsets = [0, 960], sizes = [10, 16], strides = [1, 1]} : vector<10x1584xf32> to vector<10x16xf32>
    %75 = vector.extract_strided_slice %43 {offsets = [0, 992], sizes = [10, 16], strides = [1, 1]} : vector<10x1584xf32> to vector<10x16xf32>
    %76 = vector.extract_strided_slice %43 {offsets = [0, 1024], sizes = [10, 16], strides = [1, 1]} : vector<10x1584xf32> to vector<10x16xf32>
    %77 = vector.extract_strided_slice %43 {offsets = [0, 1056], sizes = [10, 16], strides = [1, 1]} : vector<10x1584xf32> to vector<10x16xf32>
    %78 = vector.extract_strided_slice %43 {offsets = [0, 1088], sizes = [10, 16], strides = [1, 1]} : vector<10x1584xf32> to vector<10x16xf32>
    %79 = vector.extract_strided_slice %43 {offsets = [0, 1120], sizes = [10, 16], strides = [1, 1]} : vector<10x1584xf32> to vector<10x16xf32>
    %80 = vector.extract_strided_slice %43 {offsets = [0, 1152], sizes = [10, 16], strides = [1, 1]} : vector<10x1584xf32> to vector<10x16xf32>
    %81 = vector.extract_strided_slice %43 {offsets = [0, 1184], sizes = [10, 16], strides = [1, 1]} : vector<10x1584xf32> to vector<10x16xf32>
    %82 = vector.extract_strided_slice %43 {offsets = [0, 1216], sizes = [10, 16], strides = [1, 1]} : vector<10x1584xf32> to vector<10x16xf32>
    %83 = vector.extract_strided_slice %43 {offsets = [0, 1248], sizes = [10, 16], strides = [1, 1]} : vector<10x1584xf32> to vector<10x16xf32>
    %84 = vector.extract_strided_slice %43 {offsets = [0, 1280], sizes = [10, 16], strides = [1, 1]} : vector<10x1584xf32> to vector<10x16xf32>
    %85 = vector.extract_strided_slice %43 {offsets = [0, 1312], sizes = [10, 16], strides = [1, 1]} : vector<10x1584xf32> to vector<10x16xf32>
    %86 = vector.extract_strided_slice %43 {offsets = [0, 1344], sizes = [10, 16], strides = [1, 1]} : vector<10x1584xf32> to vector<10x16xf32>
    %87 = vector.extract_strided_slice %43 {offsets = [0, 1376], sizes = [10, 16], strides = [1, 1]} : vector<10x1584xf32> to vector<10x16xf32>
    %88 = vector.extract_strided_slice %43 {offsets = [0, 1408], sizes = [10, 16], strides = [1, 1]} : vector<10x1584xf32> to vector<10x16xf32>
    %89 = vector.extract_strided_slice %43 {offsets = [0, 1440], sizes = [10, 16], strides = [1, 1]} : vector<10x1584xf32> to vector<10x16xf32>
    %90 = vector.extract_strided_slice %43 {offsets = [0, 1472], sizes = [10, 16], strides = [1, 1]} : vector<10x1584xf32> to vector<10x16xf32>
    %91 = vector.extract_strided_slice %43 {offsets = [0, 1504], sizes = [10, 16], strides = [1, 1]} : vector<10x1584xf32> to vector<10x16xf32>
    %92 = vector.extract_strided_slice %43 {offsets = [0, 1536], sizes = [10, 16], strides = [1, 1]} : vector<10x1584xf32> to vector<10x16xf32>
    %93 = vector.extract_strided_slice %43 {offsets = [0, 1568], sizes = [10, 16], strides = [1, 1]} : vector<10x1584xf32> to vector<10x16xf32>
    %94 = tpu.concatenate %44, %45, %46, %47, %48, %49, %50, %51, %52, %53, %54, %55, %56, %57, %58, %59 in 1 : vector<10x16xf32>, vector<10x16xf32>, vector<10x16xf32>, vector<10x16xf32>, vector<10x16xf32>, vector<10x16xf32>, vector<10x16xf32>, vector<10x16xf32>, vector<10x16xf32>, vector<10x16xf32>, vector<10x16xf32>, vector<10x16xf32>, vector<10x16xf32>, vector<10x16xf32>, vector<10x16xf32>, vector<10x16xf32> -> vector<10x256xf32>
    %95 = tpu.concatenate %60, %61, %62, %63, %64, %65, %66, %67, %68, %69, %70, %71, %72, %73, %74, %75 in 1 : vector<10x16xf32>, vector<10x16xf32>, vector<10x16xf32>, vector<10x16xf32>, vector<10x16xf32>, vector<10x16xf32>, vector<10x16xf32>, vector<10x16xf32>, vector<10x16xf32>, vector<10x16xf32>, vector<10x16xf32>, vector<10x16xf32>, vector<10x16xf32>, vector<10x16xf32>, vector<10x16xf32>, vector<10x16xf32> -> vector<10x256xf32>
    %96 = tpu.concatenate %76, %77, %78, %79, %80, %81, %82, %83, %84, %85, %86, %87, %88, %89, %90, %91 in 1 : vector<10x16xf32>, vector<10x16xf32>, vector<10x16xf32>, vector<10x16xf32>, vector<10x16xf32>, vector<10x16xf32>, vector<10x16xf32>, vector<10x16xf32>, vector<10x16xf32>, vector<10x16xf32>, vector<10x16xf32>, vector<10x16xf32>, vector<10x16xf32>, vector<10x16xf32>, vector<10x16xf32>, vector<10x16xf32> -> vector<10x256xf32>
    %97 = tpu.concatenate %92, %93 in 1 : vector<10x16xf32>, vector<10x16xf32> -> vector<10x32xf32>
    %98 = tpu.concatenate %94, %95, %96, %97 in 1 : vector<10x256xf32>, vector<10x256xf32>, vector<10x256xf32>, vector<10x32xf32> -> vector<10x800xf32>
    %c0_43 = arith.constant 0 : index
    %c0_44 = arith.constant 0 : index
    %c0_45 = arith.constant 0 : index
    %99 = vector.load %arg22[%c0_43, %c0_44, %c0_45] : memref<1x10x800xf32, #tpu.memory_space<vmem>>, vector<1x10x800xf32>
    %100 = vector.shape_cast %99 : vector<1x10x800xf32> to vector<10x800xf32>
    %101 = vector.shape_cast %98 : vector<10x800xf32> to vector<1x10x800xf32>
    tpu.vector_store %arg22[%c0_43, %c0_44, %c0_45], %101 {strides = array<i32>} : memref<1x10x800xf32, #tpu.memory_space<vmem>>, vector<1x10x800xf32>,
    %cst_46 = arith.constant 0.000000e+00 : f32
    %102 = vector.broadcast %cst_46 : f32 to vector<10x64xf32>
    %c0_47 = arith.constant 0 : index
    %c0_48 = arith.constant 0 : index
    %103 = vector.load %arg27[%c0_47, %c0_48] : memref<10x1744xf32, #tpu.memory_space<vmem>>, vector<10x64xf32>
    tpu.vector_store %arg27[%c0_47, %c0_48], %102 {strides = array<i32>} : memref<10x1744xf32, #tpu.memory_space<vmem>>, vector<10x64xf32>,
    %cst_49 = arith.constant 0.000000e+00 : f32
    %104 = vector.broadcast %cst_49 : f32 to vector<10x80xf32>
    %c0_50 = arith.constant 0 : index
    %c864 = arith.constant 864 : index
    %105 = vector.load %arg27[%c0_50, %c864] : memref<10x1744xf32, #tpu.memory_space<vmem>>, vector<10x80xf32>
    tpu.vector_store %arg27[%c0_50, %c864], %104 {strides = array<i32>} : memref<10x1744xf32, #tpu.memory_space<vmem>>, vector<10x80xf32>,
    %c0_51 = arith.constant 0 : index
    %c64_52 = arith.constant 64 : index
    %106 = vector.load %arg27[%c0_51, %c64_52] : memref<10x1744xf32, #tpu.memory_space<vmem>>, vector<10x800xf32>
    tpu.vector_store %arg27[%c0_51, %c64_52], %98 {strides = array<i32>} : memref<10x1744xf32, #tpu.memory_space<vmem>>, vector<10x800xf32>,
    %c0_53 = arith.constant 0 : index
    %c0_54 = arith.constant 0 : index
    %107 = vector.load %arg27[%c0_53, %c0_54] : memref<10x1744xf32, #tpu.memory_space<vmem>>, vector<10x800xf32>
    %c0_55 = arith.constant 0 : index
    %c16_56 = arith.constant 16 : index
    %108 = vector.load %arg27[%c0_55, %c16_56] : memref<10x1744xf32, #tpu.memory_space<vmem>>, vector<10x800xf32>
    %c0_57 = arith.constant 0 : index
    %c32_58 = arith.constant 32 : index
    %109 = vector.load %arg27[%c0_57, %c32_58] : memref<10x1744xf32, #tpu.memory_space<vmem>>, vector<10x800xf32>
    %c0_59 = arith.constant 0 : index
    %c48_60 = arith.constant 48 : index
    %110 = vector.load %arg27[%c0_59, %c48_60] : memref<10x1744xf32, #tpu.memory_space<vmem>>, vector<10x800xf32>
    %c0_61 = arith.constant 0 : index
    %c64_62 = arith.constant 64 : index
    %111 = vector.load %arg27[%c0_61, %c64_62] : memref<10x1744xf32, #tpu.memory_space<vmem>>, vector<10x800xf32>
    %c0_63 = arith.constant 0 : index
    %c80_64 = arith.constant 80 : index
    %112 = vector.load %arg27[%c0_63, %c80_64] : memref<10x1744xf32, #tpu.memory_space<vmem>>, vector<10x800xf32>
    %c0_65 = arith.constant 0 : index
    %c96_66 = arith.constant 96 : index
    %113 = vector.load %arg27[%c0_65, %c96_66] : memref<10x1744xf32, #tpu.memory_space<vmem>>, vector<10x800xf32>
    %c0_67 = arith.constant 0 : index
    %c112_68 = arith.constant 112 : index
    %114 = vector.load %arg27[%c0_67, %c112_68] : memref<10x1744xf32, #tpu.memory_space<vmem>>, vector<10x800xf32>
    %c0_69 = arith.constant 0 : index
    %c128_70 = arith.constant 128 : index
    %115 = vector.load %arg27[%c0_69, %c128_70] : memref<10x1744xf32, #tpu.memory_space<vmem>>, vector<10x800xf32>
    %c0_71 = arith.constant 0 : index
    %c144_72 = arith.constant 144 : index
    %116 = vector.load %arg27[%c0_71, %c144_72] : memref<10x1744xf32, #tpu.memory_space<vmem>>, vector<10x800xf32>
    %117 = tpu.concatenate %107, %108, %109, %110, %111, %112, %113, %114, %115, %116 in 0 : vector<10x800xf32>, vector<10x800xf32>, vector<10x800xf32>, vector<10x800xf32>, vector<10x800xf32>, vector<10x800xf32>, vector<10x800xf32>, vector<10x800xf32>, vector<10x800xf32>, vector<10x800xf32> -> vector<100x800xf32>
    %118 = arith.truncf %117 : vector<100x800xf32> to vector<100x800xbf16>
    %c0_73 = arith.constant 0 : index
    %c0_74 = arith.constant 0 : index
    %119 = vector.load %arg6[%c0_73, %c0_74] : memref<10x100xbf16, #tpu.memory_space<vmem>>, vector<10x100xbf16>
    %cst_75 = arith.constant dense<0.000000e+00> : vector<10x800xf32>
    %120 = tpu.matmul %119, %118, %cst_75 {dimension_numbers = #tpu.dot_dimension_numbers<[1], [0], [0], [1], [0, 0, 1, 1], [], []>} : vector<10x100xbf16>, vector<100x800xbf16>, vector<10x800xf32> -> vector<10x800xf32>
    %c0_76 = arith.constant 0 : index
    %c0_77 = arith.constant 0 : index
    %121 = vector.load %arg7[%c0_76, %c0_77] : memref<10x1xf32, #tpu.memory_space<vmem>>, vector<10x1xf32>
    %122 = vector.broadcast %121 : vector<10x1xf32> to vector<10x800xf32>
    %123 = arith.addf %120, %122 : vector<10x800xf32>
    %cst_78 = arith.constant 0.000000e+00 : f32
    %124 = vector.broadcast %cst_78 : f32 to vector<10x800xf32>
    %125 = arith.maximumf %123, %124 : vector<10x800xf32>
    %cst_79 = arith.constant 0.000000e+00 : f32
    %126 = vector.broadcast %cst_79 : f32 to vector<10x16xf32>
    %c0_80 = arith.constant 0 : index
    %c0_81 = arith.constant 0 : index
    %127 = vector.load %arg27[%c0_80, %c0_81] : memref<10x1744xf32, #tpu.memory_space<vmem>>, vector<10x16xf32>
    tpu.vector_store %arg27[%c0_80, %c0_81], %126 {strides = array<i32>} : memref<10x1744xf32, #tpu.memory_space<vmem>>, vector<10x16xf32>,
    %cst_82 = arith.constant 0.000000e+00 : f32
    %128 = vector.broadcast %cst_82 : f32 to vector<10x16xf32>
    %c0_83 = arith.constant 0 : index
    %c816 = arith.constant 816 : index
    %129 = vector.load %arg27[%c0_83, %c816] : memref<10x1744xf32, #tpu.memory_space<vmem>>, vector<10x16xf32>
    tpu.vector_store %arg27[%c0_83, %c816], %128 {strides = array<i32>} : memref<10x1744xf32, #tpu.memory_space<vmem>>, vector<10x16xf32>,
    %c0_84 = arith.constant 0 : index
    %c16_85 = arith.constant 16 : index
    %130 = vector.load %arg27[%c0_84, %c16_85] : memref<10x1744xf32, #tpu.memory_space<vmem>>, vector<10x800xf32>
    tpu.vector_store %arg27[%c0_84, %c16_85], %125 {strides = array<i32>} : memref<10x1744xf32, #tpu.memory_space<vmem>>, vector<10x800xf32>,
    %c0_86 = arith.constant 0 : index
    %c0_87 = arith.constant 0 : index
    %131 = vector.load %arg27[%c0_86, %c0_87] : memref<10x1744xf32, #tpu.memory_space<vmem>>, vector<10x800xf32>
    %c0_88 = arith.constant 0 : index
    %c16_89 = arith.constant 16 : index
    %132 = vector.load %arg27[%c0_88, %c16_89] : memref<10x1744xf32, #tpu.memory_space<vmem>>, vector<10x800xf32>
    %c0_90 = arith.constant 0 : index
    %c32_91 = arith.constant 32 : index
    %133 = vector.load %arg27[%c0_90, %c32_91] : memref<10x1744xf32, #tpu.memory_space<vmem>>, vector<10x800xf32>
    %134 = tpu.concatenate %131, %132, %133 in 0 : vector<10x800xf32>, vector<10x800xf32>, vector<10x800xf32> -> vector<30x800xf32>
    %135 = arith.truncf %134 : vector<30x800xf32> to vector<30x800xbf16>
    %c0_92 = arith.constant 0 : index
    %c0_93 = arith.constant 0 : index
    %136 = vector.load %arg8[%c0_92, %c0_93] : memref<10x30xbf16, #tpu.memory_space<vmem>>, vector<10x30xbf16>
    %cst_94 = arith.constant dense<0.000000e+00> : vector<10x800xf32>
    %137 = tpu.matmul %136, %135, %cst_94 {dimension_numbers = #tpu.dot_dimension_numbers<[1], [0], [0], [1], [0, 0, 1, 1], [], []>} : vector<10x30xbf16>, vector<30x800xbf16>, vector<10x800xf32> -> vector<10x800xf32>
    %c0_95 = arith.constant 0 : index
    %c0_96 = arith.constant 0 : index
    %138 = vector.load %arg9[%c0_95, %c0_96] : memref<10x1xf32, #tpu.memory_space<vmem>>, vector<10x1xf32>
    %139 = vector.broadcast %138 : vector<10x1xf32> to vector<10x800xf32>
    %140 = arith.addf %137, %139 : vector<10x800xf32>
    %141 = vector.extract_strided_slice %140 {offsets = [0, 0], sizes = [10, 784], strides = [1, 1]} : vector<10x800xf32> to vector<10x784xf32>
    %142 = vector.extract_strided_slice %140 {offsets = [0, 16], sizes = [10, 784], strides = [1, 1]} : vector<10x800xf32> to vector<10x784xf32>
    %143 = arith.maximumf %141, %142 : vector<10x784xf32>
    %144 = vector.extract_strided_slice %143 {offsets = [0, 0], sizes = [10, 16], strides = [1, 1]} : vector<10x784xf32> to vector<10x16xf32>
    %145 = vector.extract_strided_slice %143 {offsets = [0, 32], sizes = [10, 16], strides = [1, 1]} : vector<10x784xf32> to vector<10x16xf32>
    %146 = vector.extract_strided_slice %143 {offsets = [0, 64], sizes = [10, 16], strides = [1, 1]} : vector<10x784xf32> to vector<10x16xf32>
    %147 = vector.extract_strided_slice %143 {offsets = [0, 96], sizes = [10, 16], strides = [1, 1]} : vector<10x784xf32> to vector<10x16xf32>
    %148 = vector.extract_strided_slice %143 {offsets = [0, 128], sizes = [10, 16], strides = [1, 1]} : vector<10x784xf32> to vector<10x16xf32>
    %149 = vector.extract_strided_slice %143 {offsets = [0, 160], sizes = [10, 16], strides = [1, 1]} : vector<10x784xf32> to vector<10x16xf32>
    %150 = vector.extract_strided_slice %143 {offsets = [0, 192], sizes = [10, 16], strides = [1, 1]} : vector<10x784xf32> to vector<10x16xf32>
    %151 = vector.extract_strided_slice %143 {offsets = [0, 224], sizes = [10, 16], strides = [1, 1]} : vector<10x784xf32> to vector<10x16xf32>
    %152 = vector.extract_strided_slice %143 {offsets = [0, 256], sizes = [10, 16], strides = [1, 1]} : vector<10x784xf32> to vector<10x16xf32>
    %153 = vector.extract_strided_slice %143 {offsets = [0, 288], sizes = [10, 16], strides = [1, 1]} : vector<10x784xf32> to vector<10x16xf32>
    %154 = vector.extract_strided_slice %143 {offsets = [0, 320], sizes = [10, 16], strides = [1, 1]} : vector<10x784xf32> to vector<10x16xf32>
    %155 = vector.extract_strided_slice %143 {offsets = [0, 352], sizes = [10, 16], strides = [1, 1]} : vector<10x784xf32> to vector<10x16xf32>
    %156 = vector.extract_strided_slice %143 {offsets = [0, 384], sizes = [10, 16], strides = [1, 1]} : vector<10x784xf32> to vector<10x16xf32>
    %157 = vector.extract_strided_slice %143 {offsets = [0, 416], sizes = [10, 16], strides = [1, 1]} : vector<10x784xf32> to vector<10x16xf32>
    %158 = vector.extract_strided_slice %143 {offsets = [0, 448], sizes = [10, 16], strides = [1, 1]} : vector<10x784xf32> to vector<10x16xf32>
    %159 = vector.extract_strided_slice %143 {offsets = [0, 480], sizes = [10, 16], strides = [1, 1]} : vector<10x784xf32> to vector<10x16xf32>
    %160 = vector.extract_strided_slice %143 {offsets = [0, 512], sizes = [10, 16], strides = [1, 1]} : vector<10x784xf32> to vector<10x16xf32>
    %161 = vector.extract_strided_slice %143 {offsets = [0, 544], sizes = [10, 16], strides = [1, 1]} : vector<10x784xf32> to vector<10x16xf32>
    %162 = vector.extract_strided_slice %143 {offsets = [0, 576], sizes = [10, 16], strides = [1, 1]} : vector<10x784xf32> to vector<10x16xf32>
    %163 = vector.extract_strided_slice %143 {offsets = [0, 608], sizes = [10, 16], strides = [1, 1]} : vector<10x784xf32> to vector<10x16xf32>
    %164 = vector.extract_strided_slice %143 {offsets = [0, 640], sizes = [10, 16], strides = [1, 1]} : vector<10x784xf32> to vector<10x16xf32>
    %165 = vector.extract_strided_slice %143 {offsets = [0, 672], sizes = [10, 16], strides = [1, 1]} : vector<10x784xf32> to vector<10x16xf32>
    %166 = vector.extract_strided_slice %143 {offsets = [0, 704], sizes = [10, 16], strides = [1, 1]} : vector<10x784xf32> to vector<10x16xf32>
    %167 = vector.extract_strided_slice %143 {offsets = [0, 736], sizes = [10, 16], strides = [1, 1]} : vector<10x784xf32> to vector<10x16xf32>
    %168 = vector.extract_strided_slice %143 {offsets = [0, 768], sizes = [10, 16], strides = [1, 1]} : vector<10x784xf32> to vector<10x16xf32>
    %169 = tpu.concatenate %144, %145, %146, %147, %148, %149, %150, %151, %152, %153, %154, %155, %156, %157, %158, %159 in 1 : vector<10x16xf32>, vector<10x16xf32>, vector<10x16xf32>, vector<10x16xf32>, vector<10x16xf32>, vector<10x16xf32>, vector<10x16xf32>, vector<10x16xf32>, vector<10x16xf32>, vector<10x16xf32>, vector<10x16xf32>, vector<10x16xf32>, vector<10x16xf32>, vector<10x16xf32>, vector<10x16xf32>, vector<10x16xf32> -> vector<10x256xf32>
    %170 = tpu.concatenate %160, %161, %162, %163, %164, %165, %166, %167, %168 in 1 : vector<10x16xf32>, vector<10x16xf32>, vector<10x16xf32>, vector<10x16xf32>, vector<10x16xf32>, vector<10x16xf32>, vector<10x16xf32>, vector<10x16xf32>, vector<10x16xf32> -> vector<10x144xf32>
    %171 = tpu.concatenate %169, %170 in 1 : vector<10x256xf32>, vector<10x144xf32> -> vector<10x400xf32>
    %c0_97 = arith.constant 0 : index
    %c0_98 = arith.constant 0 : index
    %c0_99 = arith.constant 0 : index
    %172 = vector.load %arg23[%c0_97, %c0_98, %c0_99] : memref<1x10x400xf32, #tpu.memory_space<vmem>>, vector<1x10x400xf32>
    %173 = vector.shape_cast %172 : vector<1x10x400xf32> to vector<10x400xf32>
    %174 = vector.shape_cast %171 : vector<10x400xf32> to vector<1x10x400xf32>
    tpu.vector_store %arg23[%c0_97, %c0_98, %c0_99], %174 {strides = array<i32>} : memref<1x10x400xf32, #tpu.memory_space<vmem>>, vector<1x10x400xf32>,
    %cst_100 = arith.constant 0.000000e+00 : f32
    %175 = vector.broadcast %cst_100 : f32 to vector<10x64xf32>
    %c0_101 = arith.constant 0 : index
    %c0_102 = arith.constant 0 : index
    %176 = vector.load %arg27[%c0_101, %c0_102] : memref<10x1744xf32, #tpu.memory_space<vmem>>, vector<10x64xf32>
    tpu.vector_store %arg27[%c0_101, %c0_102], %175 {strides = array<i32>} : memref<10x1744xf32, #tpu.memory_space<vmem>>, vector<10x64xf32>,
    %cst_103 = arith.constant 0.000000e+00 : f32
    %177 = vector.broadcast %cst_103 : f32 to vector<10x80xf32>
    %c0_104 = arith.constant 0 : index
    %c464 = arith.constant 464 : index
    %178 = vector.load %arg27[%c0_104, %c464] : memref<10x1744xf32, #tpu.memory_space<vmem>>, vector<10x80xf32>
    tpu.vector_store %arg27[%c0_104, %c464], %177 {strides = array<i32>} : memref<10x1744xf32, #tpu.memory_space<vmem>>, vector<10x80xf32>,
    %c0_105 = arith.constant 0 : index
    %c64_106 = arith.constant 64 : index
    %179 = vector.load %arg27[%c0_105, %c64_106] : memref<10x1744xf32, #tpu.memory_space<vmem>>, vector<10x400xf32>
    tpu.vector_store %arg27[%c0_105, %c64_106], %171 {strides = array<i32>} : memref<10x1744xf32, #tpu.memory_space<vmem>>, vector<10x400xf32>,
    %c0_107 = arith.constant 0 : index
    %c0_108 = arith.constant 0 : index
    %180 = vector.load %arg27[%c0_107, %c0_108] : memref<10x1744xf32, #tpu.memory_space<vmem>>, vector<10x400xf32>
    %c0_109 = arith.constant 0 : index
    %c16_110 = arith.constant 16 : index
    %181 = vector.load %arg27[%c0_109, %c16_110] : memref<10x1744xf32, #tpu.memory_space<vmem>>, vector<10x400xf32>
    %c0_111 = arith.constant 0 : index
    %c32_112 = arith.constant 32 : index
    %182 = vector.load %arg27[%c0_111, %c32_112] : memref<10x1744xf32, #tpu.memory_space<vmem>>, vector<10x400xf32>
    %c0_113 = arith.constant 0 : index
    %c48_114 = arith.constant 48 : index
    %183 = vector.load %arg27[%c0_113, %c48_114] : memref<10x1744xf32, #tpu.memory_space<vmem>>, vector<10x400xf32>
    %c0_115 = arith.constant 0 : index
    %c64_116 = arith.constant 64 : index
    %184 = vector.load %arg27[%c0_115, %c64_116] : memref<10x1744xf32, #tpu.memory_space<vmem>>, vector<10x400xf32>
    %c0_117 = arith.constant 0 : index
    %c80_118 = arith.constant 80 : index
    %185 = vector.load %arg27[%c0_117, %c80_118] : memref<10x1744xf32, #tpu.memory_space<vmem>>, vector<10x400xf32>
    %c0_119 = arith.constant 0 : index
    %c96_120 = arith.constant 96 : index
    %186 = vector.load %arg27[%c0_119, %c96_120] : memref<10x1744xf32, #tpu.memory_space<vmem>>, vector<10x400xf32>
    %c0_121 = arith.constant 0 : index
    %c112_122 = arith.constant 112 : index
    %187 = vector.load %arg27[%c0_121, %c112_122] : memref<10x1744xf32, #tpu.memory_space<vmem>>, vector<10x400xf32>
    %c0_123 = arith.constant 0 : index
    %c128_124 = arith.constant 128 : index
    %188 = vector.load %arg27[%c0_123, %c128_124] : memref<10x1744xf32, #tpu.memory_space<vmem>>, vector<10x400xf32>
    %c0_125 = arith.constant 0 : index
    %c144_126 = arith.constant 144 : index
    %189 = vector.load %arg27[%c0_125, %c144_126] : memref<10x1744xf32, #tpu.memory_space<vmem>>, vector<10x400xf32>
    %190 = tpu.concatenate %180, %181, %182, %183, %184, %185, %186, %187, %188, %189 in 0 : vector<10x400xf32>, vector<10x400xf32>, vector<10x400xf32>, vector<10x400xf32>, vector<10x400xf32>, vector<10x400xf32>, vector<10x400xf32>, vector<10x400xf32>, vector<10x400xf32>, vector<10x400xf32> -> vector<100x400xf32>
    %191 = arith.truncf %190 : vector<100x400xf32> to vector<100x400xbf16>
    %c0_127 = arith.constant 0 : index
    %c0_128 = arith.constant 0 : index
    %192 = vector.load %arg10[%c0_127, %c0_128] : memref<10x100xbf16, #tpu.memory_space<vmem>>, vector<10x100xbf16>
    %cst_129 = arith.constant dense<0.000000e+00> : vector<10x400xf32>
    %193 = tpu.matmul %192, %191, %cst_129 {dimension_numbers = #tpu.dot_dimension_numbers<[1], [0], [0], [1], [0, 0, 1, 1], [], []>} : vector<10x100xbf16>, vector<100x400xbf16>, vector<10x400xf32> -> vector<10x400xf32>
    %c0_130 = arith.constant 0 : index
    %c0_131 = arith.constant 0 : index
    %194 = vector.load %arg11[%c0_130, %c0_131] : memref<10x1xf32, #tpu.memory_space<vmem>>, vector<10x1xf32>
    %195 = vector.broadcast %194 : vector<10x1xf32> to vector<10x400xf32>
    %196 = arith.addf %193, %195 : vector<10x400xf32>
    %cst_132 = arith.constant 0.000000e+00 : f32
    %197 = vector.broadcast %cst_132 : f32 to vector<10x400xf32>
    %198 = arith.maximumf %196, %197 : vector<10x400xf32>
    %cst_133 = arith.constant 0.000000e+00 : f32
    %199 = vector.broadcast %cst_133 : f32 to vector<10x16xf32>
    %c0_134 = arith.constant 0 : index
    %c0_135 = arith.constant 0 : index
    %200 = vector.load %arg27[%c0_134, %c0_135] : memref<10x1744xf32, #tpu.memory_space<vmem>>, vector<10x16xf32>
    tpu.vector_store %arg27[%c0_134, %c0_135], %199 {strides = array<i32>} : memref<10x1744xf32, #tpu.memory_space<vmem>>, vector<10x16xf32>,
    %cst_136 = arith.constant 0.000000e+00 : f32
    %201 = vector.broadcast %cst_136 : f32 to vector<10x16xf32>
    %c0_137 = arith.constant 0 : index
    %c416 = arith.constant 416 : index
    %202 = vector.load %arg27[%c0_137, %c416] : memref<10x1744xf32, #tpu.memory_space<vmem>>, vector<10x16xf32>
    tpu.vector_store %arg27[%c0_137, %c416], %201 {strides = array<i32>} : memref<10x1744xf32, #tpu.memory_space<vmem>>, vector<10x16xf32>,
    %c0_138 = arith.constant 0 : index
    %c16_139 = arith.constant 16 : index
    %203 = vector.load %arg27[%c0_138, %c16_139] : memref<10x1744xf32, #tpu.memory_space<vmem>>, vector<10x400xf32>
    tpu.vector_store %arg27[%c0_138, %c16_139], %198 {strides = array<i32>} : memref<10x1744xf32, #tpu.memory_space<vmem>>, vector<10x400xf32>,
    %c0_140 = arith.constant 0 : index
    %c0_141 = arith.constant 0 : index
    %204 = vector.load %arg27[%c0_140, %c0_141] : memref<10x1744xf32, #tpu.memory_space<vmem>>, vector<10x400xf32>
    %c0_142 = arith.constant 0 : index
    %c16_143 = arith.constant 16 : index
    %205 = vector.load %arg27[%c0_142, %c16_143] : memref<10x1744xf32, #tpu.memory_space<vmem>>, vector<10x400xf32>
    %c0_144 = arith.constant 0 : index
    %c32_145 = arith.constant 32 : index
    %206 = vector.load %arg27[%c0_144, %c32_145] : memref<10x1744xf32, #tpu.memory_space<vmem>>, vector<10x400xf32>
    %207 = tpu.concatenate %204, %205, %206 in 0 : vector<10x400xf32>, vector<10x400xf32>, vector<10x400xf32> -> vector<30x400xf32>
    %208 = arith.truncf %207 : vector<30x400xf32> to vector<30x400xbf16>
    %c0_146 = arith.constant 0 : index
    %c0_147 = arith.constant 0 : index
    %209 = vector.load %arg12[%c0_146, %c0_147] : memref<10x30xbf16, #tpu.memory_space<vmem>>, vector<10x30xbf16>
    %cst_148 = arith.constant dense<0.000000e+00> : vector<10x400xf32>
    %210 = tpu.matmul %209, %208, %cst_148 {dimension_numbers = #tpu.dot_dimension_numbers<[1], [0], [0], [1], [0, 0, 1, 1], [], []>} : vector<10x30xbf16>, vector<30x400xbf16>, vector<10x400xf32> -> vector<10x400xf32>
    %c0_149 = arith.constant 0 : index
    %c0_150 = arith.constant 0 : index
    %211 = vector.load %arg13[%c0_149, %c0_150] : memref<10x1xf32, #tpu.memory_space<vmem>>, vector<10x1xf32>
    %212 = vector.broadcast %211 : vector<10x1xf32> to vector<10x400xf32>
    %213 = arith.addf %210, %212 : vector<10x400xf32>
    %214 = vector.extract_strided_slice %213 {offsets = [0, 0], sizes = [10, 384], strides = [1, 1]} : vector<10x400xf32> to vector<10x384xf32>
    %215 = vector.extract_strided_slice %213 {offsets = [0, 16], sizes = [10, 384], strides = [1, 1]} : vector<10x400xf32> to vector<10x384xf32>
    %216 = arith.maximumf %214, %215 : vector<10x384xf32>
    %217 = vector.extract_strided_slice %216 {offsets = [0, 0], sizes = [10, 16], strides = [1, 1]} : vector<10x384xf32> to vector<10x16xf32>
    %218 = vector.extract_strided_slice %216 {offsets = [0, 32], sizes = [10, 16], strides = [1, 1]} : vector<10x384xf32> to vector<10x16xf32>
    %219 = vector.extract_strided_slice %216 {offsets = [0, 64], sizes = [10, 16], strides = [1, 1]} : vector<10x384xf32> to vector<10x16xf32>
    %220 = vector.extract_strided_slice %216 {offsets = [0, 96], sizes = [10, 16], strides = [1, 1]} : vector<10x384xf32> to vector<10x16xf32>
    %221 = vector.extract_strided_slice %216 {offsets = [0, 128], sizes = [10, 16], strides = [1, 1]} : vector<10x384xf32> to vector<10x16xf32>
    %222 = vector.extract_strided_slice %216 {offsets = [0, 160], sizes = [10, 16], strides = [1, 1]} : vector<10x384xf32> to vector<10x16xf32>
    %223 = vector.extract_strided_slice %216 {offsets = [0, 192], sizes = [10, 16], strides = [1, 1]} : vector<10x384xf32> to vector<10x16xf32>
    %224 = vector.extract_strided_slice %216 {offsets = [0, 224], sizes = [10, 16], strides = [1, 1]} : vector<10x384xf32> to vector<10x16xf32>
    %225 = vector.extract_strided_slice %216 {offsets = [0, 256], sizes = [10, 16], strides = [1, 1]} : vector<10x384xf32> to vector<10x16xf32>
    %226 = vector.extract_strided_slice %216 {offsets = [0, 288], sizes = [10, 16], strides = [1, 1]} : vector<10x384xf32> to vector<10x16xf32>
    %227 = vector.extract_strided_slice %216 {offsets = [0, 320], sizes = [10, 16], strides = [1, 1]} : vector<10x384xf32> to vector<10x16xf32>
    %228 = vector.extract_strided_slice %216 {offsets = [0, 352], sizes = [10, 16], strides = [1, 1]} : vector<10x384xf32> to vector<10x16xf32>
    %229 = tpu.concatenate %217, %218, %219, %220, %221, %222, %223, %224, %225, %226, %227, %228 in 1 : vector<10x16xf32>, vector<10x16xf32>, vector<10x16xf32>, vector<10x16xf32>, vector<10x16xf32>, vector<10x16xf32>, vector<10x16xf32>, vector<10x16xf32>, vector<10x16xf32>, vector<10x16xf32>, vector<10x16xf32>, vector<10x16xf32> -> vector<10x192xf32>
    %c0_151 = arith.constant 0 : index
    %c0_152 = arith.constant 0 : index
    %c0_153 = arith.constant 0 : index
    %230 = vector.load %arg24[%c0_151, %c0_152, %c0_153] : memref<1x10x192xf32, #tpu.memory_space<vmem>>, vector<1x10x192xf32>
    %231 = vector.shape_cast %230 : vector<1x10x192xf32> to vector<10x192xf32>
    %232 = vector.shape_cast %229 : vector<10x192xf32> to vector<1x10x192xf32>
    tpu.vector_store %arg24[%c0_151, %c0_152, %c0_153], %232 {strides = array<i32>} : memref<1x10x192xf32, #tpu.memory_space<vmem>>, vector<1x10x192xf32>,
    %cst_154 = arith.constant 0.000000e+00 : f32
    %233 = vector.broadcast %cst_154 : f32 to vector<10x64xf32>
    %c0_155 = arith.constant 0 : index
    %c0_156 = arith.constant 0 : index
    %234 = vector.load %arg27[%c0_155, %c0_156] : memref<10x1744xf32, #tpu.memory_space<vmem>>, vector<10x64xf32>
    tpu.vector_store %arg27[%c0_155, %c0_156], %233 {strides = array<i32>} : memref<10x1744xf32, #tpu.memory_space<vmem>>, vector<10x64xf32>,
    %cst_157 = arith.constant 0.000000e+00 : f32
    %235 = vector.broadcast %cst_157 : f32 to vector<10x80xf32>
    %c0_158 = arith.constant 0 : index
    %c256 = arith.constant 256 : index
    %236 = vector.load %arg27[%c0_158, %c256] : memref<10x1744xf32, #tpu.memory_space<vmem>>, vector<10x80xf32>
    tpu.vector_store %arg27[%c0_158, %c256], %235 {strides = array<i32>} : memref<10x1744xf32, #tpu.memory_space<vmem>>, vector<10x80xf32>,
    %c0_159 = arith.constant 0 : index
    %c64_160 = arith.constant 64 : index
    %237 = vector.load %arg27[%c0_159, %c64_160] : memref<10x1744xf32, #tpu.memory_space<vmem>>, vector<10x192xf32>
    tpu.vector_store %arg27[%c0_159, %c64_160], %229 {strides = array<i32>} : memref<10x1744xf32, #tpu.memory_space<vmem>>, vector<10x192xf32>,
    %c0_161 = arith.constant 0 : index
    %c0_162 = arith.constant 0 : index
    %238 = vector.load %arg27[%c0_161, %c0_162] : memref<10x1744xf32, #tpu.memory_space<vmem>>, vector<10x192xf32>
    %c0_163 = arith.constant 0 : index
    %c16_164 = arith.constant 16 : index
    %239 = vector.load %arg27[%c0_163, %c16_164] : memref<10x1744xf32, #tpu.memory_space<vmem>>, vector<10x192xf32>
    %c0_165 = arith.constant 0 : index
    %c32_166 = arith.constant 32 : index
    %240 = vector.load %arg27[%c0_165, %c32_166] : memref<10x1744xf32, #tpu.memory_space<vmem>>, vector<10x192xf32>
    %c0_167 = arith.constant 0 : index
    %c48_168 = arith.constant 48 : index
    %241 = vector.load %arg27[%c0_167, %c48_168] : memref<10x1744xf32, #tpu.memory_space<vmem>>, vector<10x192xf32>
    %c0_169 = arith.constant 0 : index
    %c64_170 = arith.constant 64 : index
    %242 = vector.load %arg27[%c0_169, %c64_170] : memref<10x1744xf32, #tpu.memory_space<vmem>>, vector<10x192xf32>
    %c0_171 = arith.constant 0 : index
    %c80_172 = arith.constant 80 : index
    %243 = vector.load %arg27[%c0_171, %c80_172] : memref<10x1744xf32, #tpu.memory_space<vmem>>, vector<10x192xf32>
    %c0_173 = arith.constant 0 : index
    %c96_174 = arith.constant 96 : index
    %244 = vector.load %arg27[%c0_173, %c96_174] : memref<10x1744xf32, #tpu.memory_space<vmem>>, vector<10x192xf32>
    %c0_175 = arith.constant 0 : index
    %c112_176 = arith.constant 112 : index
    %245 = vector.load %arg27[%c0_175, %c112_176] : memref<10x1744xf32, #tpu.memory_space<vmem>>, vector<10x192xf32>
    %c0_177 = arith.constant 0 : index
    %c128_178 = arith.constant 128 : index
    %246 = vector.load %arg27[%c0_177, %c128_178] : memref<10x1744xf32, #tpu.memory_space<vmem>>, vector<10x192xf32>
    %c0_179 = arith.constant 0 : index
    %c144_180 = arith.constant 144 : index
    %247 = vector.load %arg27[%c0_179, %c144_180] : memref<10x1744xf32, #tpu.memory_space<vmem>>, vector<10x192xf32>
    %248 = tpu.concatenate %238, %239, %240, %241, %242, %243, %244, %245, %246, %247 in 0 : vector<10x192xf32>, vector<10x192xf32>, vector<10x192xf32>, vector<10x192xf32>, vector<10x192xf32>, vector<10x192xf32>, vector<10x192xf32>, vector<10x192xf32>, vector<10x192xf32>, vector<10x192xf32> -> vector<100x192xf32>
    %249 = arith.truncf %248 : vector<100x192xf32> to vector<100x192xbf16>
    %c0_181 = arith.constant 0 : index
    %c0_182 = arith.constant 0 : index
    %250 = vector.load %arg14[%c0_181, %c0_182] : memref<10x100xbf16, #tpu.memory_space<vmem>>, vector<10x100xbf16>
    %cst_183 = arith.constant dense<0.000000e+00> : vector<10x192xf32>
    %251 = tpu.matmul %250, %249, %cst_183 {dimension_numbers = #tpu.dot_dimension_numbers<[1], [0], [0], [1], [0, 0, 1, 1], [], []>} : vector<10x100xbf16>, vector<100x192xbf16>, vector<10x192xf32> -> vector<10x192xf32>
    %c0_184 = arith.constant 0 : index
    %c0_185 = arith.constant 0 : index
    %252 = vector.load %arg15[%c0_184, %c0_185] : memref<10x1xf32, #tpu.memory_space<vmem>>, vector<10x1xf32>
    %253 = vector.broadcast %252 : vector<10x1xf32> to vector<10x192xf32>
    %254 = arith.addf %251, %253 : vector<10x192xf32>
    %cst_186 = arith.constant 0.000000e+00 : f32
    %255 = vector.broadcast %cst_186 : f32 to vector<10x192xf32>
    %256 = arith.maximumf %254, %255 : vector<10x192xf32>
    %cst_187 = arith.constant 0.000000e+00 : f32
    %257 = vector.broadcast %cst_187 : f32 to vector<10x16xf32>
    %c0_188 = arith.constant 0 : index
    %c0_189 = arith.constant 0 : index
    %258 = vector.load %arg27[%c0_188, %c0_189] : memref<10x1744xf32, #tpu.memory_space<vmem>>, vector<10x16xf32>
    tpu.vector_store %arg27[%c0_188, %c0_189], %257 {strides = array<i32>} : memref<10x1744xf32, #tpu.memory_space<vmem>>, vector<10x16xf32>,
    %cst_190 = arith.constant 0.000000e+00 : f32
    %259 = vector.broadcast %cst_190 : f32 to vector<10x16xf32>
    %c0_191 = arith.constant 0 : index
    %c208 = arith.constant 208 : index
    %260 = vector.load %arg27[%c0_191, %c208] : memref<10x1744xf32, #tpu.memory_space<vmem>>, vector<10x16xf32>
    tpu.vector_store %arg27[%c0_191, %c208], %259 {strides = array<i32>} : memref<10x1744xf32, #tpu.memory_space<vmem>>, vector<10x16xf32>,
    %c0_192 = arith.constant 0 : index
    %c16_193 = arith.constant 16 : index
    %261 = vector.load %arg27[%c0_192, %c16_193] : memref<10x1744xf32, #tpu.memory_space<vmem>>, vector<10x192xf32>
    tpu.vector_store %arg27[%c0_192, %c16_193], %256 {strides = array<i32>} : memref<10x1744xf32, #tpu.memory_space<vmem>>, vector<10x192xf32>,
    %c0_194 = arith.constant 0 : index
    %c0_195 = arith.constant 0 : index
    %262 = vector.load %arg27[%c0_194, %c0_195] : memref<10x1744xf32, #tpu.memory_space<vmem>>, vector<10x192xf32>
    %c0_196 = arith.constant 0 : index
    %c16_197 = arith.constant 16 : index
    %263 = vector.load %arg27[%c0_196, %c16_197] : memref<10x1744xf32, #tpu.memory_space<vmem>>, vector<10x192xf32>
    %c0_198 = arith.constant 0 : index
    %c32_199 = arith.constant 32 : index
    %264 = vector.load %arg27[%c0_198, %c32_199] : memref<10x1744xf32, #tpu.memory_space<vmem>>, vector<10x192xf32>
    %265 = tpu.concatenate %262, %263, %264 in 0 : vector<10x192xf32>, vector<10x192xf32>, vector<10x192xf32> -> vector<30x192xf32>
    %266 = arith.truncf %265 : vector<30x192xf32> to vector<30x192xbf16>
    %c0_200 = arith.constant 0 : index
    %c0_201 = arith.constant 0 : index
    %267 = vector.load %arg16[%c0_200, %c0_201] : memref<10x30xbf16, #tpu.memory_space<vmem>>, vector<10x30xbf16>
    %cst_202 = arith.constant dense<0.000000e+00> : vector<10x192xf32>
    %268 = tpu.matmul %267, %266, %cst_202 {dimension_numbers = #tpu.dot_dimension_numbers<[1], [0], [0], [1], [0, 0, 1, 1], [], []>} : vector<10x30xbf16>, vector<30x192xbf16>, vector<10x192xf32> -> vector<10x192xf32>
    %c0_203 = arith.constant 0 : index
    %c0_204 = arith.constant 0 : index
    %269 = vector.load %arg17[%c0_203, %c0_204] : memref<10x1xf32, #tpu.memory_space<vmem>>, vector<10x1xf32>
    %270 = vector.broadcast %269 : vector<10x1xf32> to vector<10x192xf32>
    %271 = arith.addf %268, %270 : vector<10x192xf32>
    %272 = vector.extract_strided_slice %271 {offsets = [0, 0], sizes = [10, 176], strides = [1, 1]} : vector<10x192xf32> to vector<10x176xf32>
    %273 = vector.extract_strided_slice %271 {offsets = [0, 16], sizes = [10, 176], strides = [1, 1]} : vector<10x192xf32> to vector<10x176xf32>
    %274 = arith.maximumf %272, %273 : vector<10x176xf32>
    %275 = vector.extract_strided_slice %274 {offsets = [0, 0], sizes = [10, 16], strides = [1, 1]} : vector<10x176xf32> to vector<10x16xf32>
    %276 = vector.extract_strided_slice %274 {offsets = [0, 32], sizes = [10, 16], strides = [1, 1]} : vector<10x176xf32> to vector<10x16xf32>
    %277 = vector.extract_strided_slice %274 {offsets = [0, 64], sizes = [10, 16], strides = [1, 1]} : vector<10x176xf32> to vector<10x16xf32>
    %278 = vector.extract_strided_slice %274 {offsets = [0, 96], sizes = [10, 16], strides = [1, 1]} : vector<10x176xf32> to vector<10x16xf32>
    %279 = vector.extract_strided_slice %274 {offsets = [0, 128], sizes = [10, 16], strides = [1, 1]} : vector<10x176xf32> to vector<10x16xf32>
    %280 = vector.extract_strided_slice %274 {offsets = [0, 160], sizes = [10, 16], strides = [1, 1]} : vector<10x176xf32> to vector<10x16xf32>
    %281 = tpu.concatenate %275, %276, %277, %278, %279, %280 in 1 : vector<10x16xf32>, vector<10x16xf32>, vector<10x16xf32>, vector<10x16xf32>, vector<10x16xf32>, vector<10x16xf32> -> vector<10x96xf32>
    %c0_205 = arith.constant 0 : index
    %c0_206 = arith.constant 0 : index
    %c0_207 = arith.constant 0 : index
    %282 = vector.load %arg25[%c0_205, %c0_206, %c0_207] : memref<1x10x96xf32, #tpu.memory_space<vmem>>, vector<1x10x96xf32>
    %283 = vector.shape_cast %282 : vector<1x10x96xf32> to vector<10x96xf32>
    %284 = vector.shape_cast %281 : vector<10x96xf32> to vector<1x10x96xf32>
    tpu.vector_store %arg25[%c0_205, %c0_206, %c0_207], %284 {strides = array<i32>} : memref<1x10x96xf32, #tpu.memory_space<vmem>>, vector<1x10x96xf32>,
    %285 = vector.extract_strided_slice %281 {offsets = [0, 0], sizes = [10, 16], strides = [1, 1]} : vector<10x96xf32> to vector<10x16xf32>
    %286 = vector.extract_strided_slice %281 {offsets = [0, 16], sizes = [10, 16], strides = [1, 1]} : vector<10x96xf32> to vector<10x16xf32>
    %287 = vector.extract_strided_slice %281 {offsets = [0, 32], sizes = [10, 16], strides = [1, 1]} : vector<10x96xf32> to vector<10x16xf32>
    %288 = vector.extract_strided_slice %281 {offsets = [0, 48], sizes = [10, 16], strides = [1, 1]} : vector<10x96xf32> to vector<10x16xf32>
    %289 = vector.extract_strided_slice %281 {offsets = [0, 64], sizes = [10, 16], strides = [1, 1]} : vector<10x96xf32> to vector<10x16xf32>
    %290 = vector.extract_strided_slice %281 {offsets = [0, 80], sizes = [10, 16], strides = [1, 1]} : vector<10x96xf32> to vector<10x16xf32>
    %291 = tpu.concatenate %285, %286, %287, %288, %289, %290 in 0 : vector<10x16xf32>, vector<10x16xf32>, vector<10x16xf32>, vector<10x16xf32>, vector<10x16xf32>, vector<10x16xf32> -> vector<60x16xf32>
    %c0_208 = arith.constant 0 : index
    %c0_209 = arith.constant 0 : index
    %292 = vector.load %arg18[%c0_208, %c0_209] : memref<256x60xbf16, #tpu.memory_space<vmem>>, vector<256x60xbf16>
    %293 = arith.truncf %291 : vector<60x16xf32> to vector<60x16xbf16>
    %cst_210 = arith.constant dense<0.000000e+00> : vector<256x16xf32>
    %294 = tpu.matmul %292, %293, %cst_210 {dimension_numbers = #tpu.dot_dimension_numbers<[1], [0], [0], [1], [0, 0, 1, 1], [], []>} : vector<256x60xbf16>, vector<60x16xbf16>, vector<256x16xf32> -> vector<256x16xf32>
    %c0_211 = arith.constant 0 : index
    %c0_212 = arith.constant 0 : index
    %295 = vector.load %arg19[%c0_211, %c0_212] : memref<256x1xf32, #tpu.memory_space<vmem>>, vector<256x1xf32>
    %296 = vector.broadcast %295 : vector<256x1xf32> to vector<256x16xf32>
    %297 = arith.addf %294, %296 : vector<256x16xf32>
    %cst_213 = arith.constant 0.000000e+00 : f32
    %298 = vector.broadcast %cst_213 : f32 to vector<256x16xf32>
    %299 = arith.maximumf %297, %298 : vector<256x16xf32>
    %c0_214 = arith.constant 0 : index
    %c0_215 = arith.constant 0 : index
    %300 = vector.load %arg20[%c0_214, %c0_215] : memref<7x256xbf16, #tpu.memory_space<vmem>>, vector<7x256xbf16>
    %301 = arith.truncf %299 : vector<256x16xf32> to vector<256x16xbf16>
    %cst_216 = arith.constant dense<0.000000e+00> : vector<7x16xf32>
    %302 = tpu.matmul %300, %301, %cst_216 {dimension_numbers = #tpu.dot_dimension_numbers<[1], [0], [0], [1], [0, 0, 1, 1], [], []>} : vector<7x256xbf16>, vector<256x16xbf16>, vector<7x16xf32> -> vector<7x16xf32>
    %c0_217 = arith.constant 0 : index
    %c0_218 = arith.constant 0 : index
    %303 = vector.load %arg21[%c0_217, %c0_218] : memref<7x1xf32, #tpu.memory_space<vmem>>, vector<7x1xf32>
    %304 = vector.broadcast %303 : vector<7x1xf32> to vector<7x16xf32>
    %305 = arith.addf %302, %304 : vector<7x16xf32>
    %c0_219 = arith.constant 0 : index
    %c0_220 = arith.constant 0 : index
    %c0_221 = arith.constant 0 : index
    %306 = vector.load %arg26[%c0_219, %c0_220, %c0_221] : memref<1x7x16xf32, #tpu.memory_space<vmem>>, vector<1x7x16xf32>
    %307 = vector.shape_cast %306 : vector<1x7x16xf32> to vector<7x16xf32>
    %308 = vector.shape_cast %305 : vector<7x16xf32> to vector<1x7x16xf32>
    tpu.vector_store %arg26[%c0_219, %c0_220, %c0_221], %308 {strides = array<i32>} : memref<1x7x16xf32, #tpu.memory_space<vmem>>, vector<1x7x16xf32>,
    return
  }
  func.func @transform_0(%arg0: i32) -> (i32, i32, i32) {
    %c0_i32 = arith.constant 0 : i32
    %c0_i32_0 = arith.constant 0 : i32
    %c0_i32_1 = arith.constant 0 : i32
    return %arg0, %c0_i32, %c0_i32_0 : i32, i32, i32
  }
  func.func @transform_1(%arg0: i32) -> (i32, i32) {
    %c0_i32 = arith.constant 0 : i32
    %c0_i32_0 = arith.constant 0 : i32
    %c0_i32_1 = arith.constant 0 : i32
    return %c0_i32, %c0_i32_0 : i32, i32
  }
  func.func @transform_2(%arg0: i32) -> (i32, i32) {
    %c0_i32 = arith.constant 0 : i32
    %c0_i32_0 = arith.constant 0 : i32
    %c0_i32_1 = arith.constant 0 : i32
    return %c0_i32, %c0_i32_0 : i32, i32
  }
  func.func @transform_3(%arg0: i32) -> (i32, i32) {
    %c0_i32 = arith.constant 0 : i32
    %c0_i32_0 = arith.constant 0 : i32
    %c0_i32_1 = arith.constant 0 : i32
    return %c0_i32, %c0_i32_0 : i32, i32
  }
  func.func @transform_4(%arg0: i32) -> (i32, i32) {
    %c0_i32 = arith.constant 0 : i32
    %c0_i32_0 = arith.constant 0 : i32
    %c0_i32_1 = arith.constant 0 : i32
    return %c0_i32, %c0_i32_0 : i32, i32
  }
  func.func @transform_5(%arg0: i32) -> (i32, i32) {
    %c0_i32 = arith.constant 0 : i32
    %c0_i32_0 = arith.constant 0 : i32
    %c0_i32_1 = arith.constant 0 : i32
    return %c0_i32, %c0_i32_0 : i32, i32
  }
  func.func @transform_6(%arg0: i32) -> (i32, i32) {
    %c0_i32 = arith.constant 0 : i32
    %c0_i32_0 = arith.constant 0 : i32
    %c0_i32_1 = arith.constant 0 : i32
    return %c0_i32, %c0_i32_0 : i32, i32
  }
  func.func @transform_7(%arg0: i32) -> (i32, i32) {
    %c0_i32 = arith.constant 0 : i32
    %c0_i32_0 = arith.constant 0 : i32
    %c0_i32_1 = arith.constant 0 : i32
    return %c0_i32, %c0_i32_0 : i32, i32
  }
  func.func @transform_8(%arg0: i32) -> (i32, i32) {
    %c0_i32 = arith.constant 0 : i32
    %c0_i32_0 = arith.constant 0 : i32
    %c0_i32_1 = arith.constant 0 : i32
    return %c0_i32, %c0_i32_0 : i32, i32
  }
  func.func @transform_9(%arg0: i32) -> (i32, i32) {
    %c0_i32 = arith.constant 0 : i32
    %c0_i32_0 = arith.constant 0 : i32
    %c0_i32_1 = arith.constant 0 : i32
    return %c0_i32, %c0_i32_0 : i32, i32
  }
  func.func @transform_10(%arg0: i32) -> (i32, i32) {
    %c0_i32 = arith.constant 0 : i32
    %c0_i32_0 = arith.constant 0 : i32
    %c0_i32_1 = arith.constant 0 : i32
    return %c0_i32, %c0_i32_0 : i32, i32
  }
  func.func @transform_11(%arg0: i32) -> (i32, i32) {
    %c0_i32 = arith.constant 0 : i32
    %c0_i32_0 = arith.constant 0 : i32
    %c0_i32_1 = arith.constant 0 : i32
    return %c0_i32, %c0_i32_0 : i32, i32
  }
  func.func @transform_12(%arg0: i32) -> (i32, i32) {
    %c0_i32 = arith.constant 0 : i32
    %c0_i32_0 = arith.constant 0 : i32
    %c0_i32_1 = arith.constant 0 : i32
    return %c0_i32, %c0_i32_0 : i32, i32
  }
  func.func @transform_13(%arg0: i32) -> (i32, i32) {
    %c0_i32 = arith.constant 0 : i32
    %c0_i32_0 = arith.constant 0 : i32
    %c0_i32_1 = arith.constant 0 : i32
    return %c0_i32, %c0_i32_0 : i32, i32
  }
  func.func @transform_14(%arg0: i32) -> (i32, i32) {
    %c0_i32 = arith.constant 0 : i32
    %c0_i32_0 = arith.constant 0 : i32
    %c0_i32_1 = arith.constant 0 : i32
    return %c0_i32, %c0_i32_0 : i32, i32
  }
  func.func @transform_15(%arg0: i32) -> (i32, i32) {
    %c0_i32 = arith.constant 0 : i32
    %c0_i32_0 = arith.constant 0 : i32
    %c0_i32_1 = arith.constant 0 : i32
    return %c0_i32, %c0_i32_0 : i32, i32
  }
  func.func @transform_16(%arg0: i32) -> (i32, i32) {
    %c0_i32 = arith.constant 0 : i32
    %c0_i32_0 = arith.constant 0 : i32
    %c0_i32_1 = arith.constant 0 : i32
    return %c0_i32, %c0_i32_0 : i32, i32
  }
  func.func @transform_17(%arg0: i32) -> (i32, i32) {
    %c0_i32 = arith.constant 0 : i32
    %c0_i32_0 = arith.constant 0 : i32
    %c0_i32_1 = arith.constant 0 : i32
    return %c0_i32, %c0_i32_0 : i32, i32
  }
  func.func @transform_18(%arg0: i32) -> (i32, i32) {
    %c0_i32 = arith.constant 0 : i32
    %c0_i32_0 = arith.constant 0 : i32
    %c0_i32_1 = arith.constant 0 : i32
    return %c0_i32, %c0_i32_0 : i32, i32
  }
  func.func @transform_19(%arg0: i32) -> (i32, i32) {
    %c0_i32 = arith.constant 0 : i32
    %c0_i32_0 = arith.constant 0 : i32
    %c0_i32_1 = arith.constant 0 : i32
    return %c0_i32, %c0_i32_0 : i32, i32
  }
  func.func @transform_20(%arg0: i32) -> (i32, i32) {
    %c0_i32 = arith.constant 0 : i32
    %c0_i32_0 = arith.constant 0 : i32
    %c0_i32_1 = arith.constant 0 : i32
    return %c0_i32, %c0_i32_0 : i32, i32
  }
  func.func @transform_21(%arg0: i32) -> (i32, i32, i32) {
    %c0_i32 = arith.constant 0 : i32
    %c0_i32_0 = arith.constant 0 : i32
    %c0_i32_1 = arith.constant 0 : i32
    return %arg0, %c0_i32, %c0_i32_0 : i32, i32, i32
  }
  func.func @transform_22(%arg0: i32) -> (i32, i32, i32) {
    %c0_i32 = arith.constant 0 : i32
    %c0_i32_0 = arith.constant 0 : i32
    %c0_i32_1 = arith.constant 0 : i32
    return %arg0, %c0_i32, %c0_i32_0 : i32, i32, i32
  }
  func.func @transform_23(%arg0: i32) -> (i32, i32, i32) {
    %c0_i32 = arith.constant 0 : i32
    %c0_i32_0 = arith.constant 0 : i32
    %c0_i32_1 = arith.constant 0 : i32
    return %arg0, %c0_i32, %c0_i32_0 : i32, i32, i32
  }
  func.func @transform_24(%arg0: i32) -> (i32, i32, i32) {
    %c0_i32 = arith.constant 0 : i32
    %c0_i32_0 = arith.constant 0 : i32
    %c0_i32_1 = arith.constant 0 : i32
    return %arg0, %c0_i32, %c0_i32_0 : i32, i32, i32
  }
  func.func @transform_25(%arg0: i32) -> (i32, i32, i32) {
    %c0_i32 = arith.constant 0 : i32
    %c0_i32_0 = arith.constant 0 : i32
    %c0_i32_1 = arith.constant 0 : i32
    return %arg0, %c0_i32, %c0_i32_0 : i32, i32, i32
  }
}

</mosaic_0001>

<bundles_post_ra>
// kernel: tpu_custom_call.1
= control target key start
LH: loop header
LB: loop body
LE: loop exit
PB: predicated region body
PF: predicated region fallthrough
CT: control target
= control target key end

     0   :  { %s8840_s29 = smov 0   ;;  %s12817_s0 = inlined_call_operand.vmem [shape: f32[2,1,1600], index: 0, kind: input, shape index: {}]   ;;  %s12818_s1 = inlined_call_operand.vmem [shape: bf16[10,10], index: 1, kind: input, shape index: {}]   ;;  %s12819_s2 = inlined_call_operand.vmem [shape: f32[10,1], index: 2, kind: input, shape index: {}]   ;;  %s12820_s3 = inlined_call_operand.vmem [shape: bf16[10,30], index: 3, kind: input, shape index: {}]   ;;  %s12821_s4 = inlined_call_operand.vmem [shape: f32[10,1], index: 4, kind: input, shape index: {}]   ;;  %s12822_s5 = inlined_call_operand.vmem [shape: bf16[10,100], index: 5, kind: input, shape index: {}]   ;;  %s12823_s6 = inlined_call_operand.vmem [shape: f32[10,1], index: 6, kind: input, shape index: {}]   ;;  %s12824_s7 = inlined_call_operand.vmem [shape: bf16[10,30], index: 7, kind: input, shape index: {}]   ;;  %s12825_s8 = inlined_call_operand.vmem [shape: f32[10,1], index: 8, kind: input, shape index: {}]   ;;  %s12826_s9 = inlined_call_operand.vmem [shape: bf16[10,100], index: 9, kind: input, shape index: {}]   ;;  %s12827_s10 = inlined_call_operand.vmem [shape: f32[10,1], index: 10, kind: input, shape index: {}]   ;;  %s12828_s11 = inlined_call_operand.vmem [shape: bf16[10,30], index: 11, kind: input, shape index: {}]   ;;  %s12829_s12 = inlined_call_operand.vmem [shape: f32[10,1], index: 12, kind: input, shape index: {}]   ;;  %s12830_s13 = inlined_call_operand.vmem [shape: bf16[10,100], index: 13, kind: input, shape index: {}]   ;;  %s12831_s14 = inlined_call_operand.vmem [shape: f32[10,1], index: 14, kind: input, shape index: {}]   ;;  %s12832_s15 = inlined_call_operand.vmem [shape: bf16[10,30], index: 15, kind: input, shape index: {}]   ;;  %s12833_s16 = inlined_call_operand.vmem [shape: f32[10,1], index: 16, kind: input, shape index: {}]   ;;  %s12834_s17 = inlined_call_operand.vmem [shape: bf16[256,60], index: 17, kind: input, shape index: {}]   ;;  %s12835_s18 = inlined_call_operand.vmem [shape: f32[256,1], index: 18, kind: input, shape index: {}]   ;;  %s12836_s19 = inlined_call_operand.vmem [shape: bf16[7,256], index: 19, kind: input, shape index: {}]   ;;  %s12837_s20 = inlined_call_operand.vmem [shape: f32[7,1], index: 20, kind: input, shape index: {}]   ;;  %s12838_s21 = inlined_call_operand.vmem [shape: f32[2,10,800], index: 21, kind: output, shape index: {0}]   ;;  %s12839_s22 = inlined_call_operand.vmem [shape: f32[2,10,400], index: 22, kind: output, shape index: {1}]   ;;  %s12840_s23 = inlined_call_operand.vmem [shape: f32[2,10,192], index: 23, kind: output, shape index: {2}]   ;;  %s12841_s24 = inlined_call_operand.vmem [shape: f32[2,10,96], index: 24, kind: output, shape index: {3}]   ;;  %s12842_s25 = inlined_call_operand.vmem [shape: f32[2,7,16], index: 25, kind: output, shape index: {4}]  }
   0x1   :  { %12906 = sst [smem:[#allocation15_spill]] %s12817_s0 }
   0x2   :  { %12907 = sst [smem:[#allocation16_spill]] %s12818_s1 }
   0x3   :  { %12908 = sst [smem:[#allocation17_spill]] %s12819_s2 }
   0x4   :  { %12909 = sst [smem:[#allocation18_spill]] %s12820_s3 }
   0x5   :  { %12910 = sst [smem:[#allocation19_spill]] %s12821_s4 }
   0x6   :  { %12911 = sst [smem:[#allocation20_spill]] %s12822_s5 }
   0x7   :  { %12912 = sst [smem:[#allocation21_spill]] %s12823_s6 }
   0x8   :  { %12913 = sst [smem:[#allocation22_spill]] %s12824_s7 }
   0x9   :  { %12914 = sst [smem:[#allocation23_spill]] %s12825_s8 }
   0xa   :  { %12915 = sst [smem:[#allocation24_spill]] %s12826_s9 }
   0xb LB: > { %s7388_s2 = sadd.s32 4294967295, %s8698_s29   ;;  %p7392_p0 = scmp.ge.s32.totalorder %s8698_s29, 1  ;;  %s8698_s29 = sphi %s8840_s29, %s36_s29  }
   0xc   : > { %p695_p1 = scmp.lt.s32.totalorder %s8698_s29, 3 }
   0xe   : > { %p696_p2 = pnand %p7392_p0, %p695_p1 }
  0x10   : > { %699 = sbr.rel (%p696_p2) target bundleno = 5916 (0x171c), region = 104 }
  0x17   : > { %p781_p3 = scmp.lt.s32.totalorder %s7388_s2, 1  ;;  %vm812_vm0 = vcmask 516096   ;;  %v12847_v0 = vmov 0.0   ;;  %s12916_s3 = sld [smem:[#allocation15_spill]]  ;;  %vm814_vm1 = vcmask 647168   ;;  %v831_v3 = vlaneseq }
  0x18   : > { %813 = vst.msk [vmem:[#allocation2] sm:$0x1] %vm812_vm0, %v12847_v0  ;;  %s12902_s1 = smov 64   ;;  %vm824_vm2 = vcmask 523264   ;;  %vm826_vm4 = vcmask 1040384   ;;  %s12898_s8 = smov 96  }
  0x19   : > { %s13056_s2 = smov (!%p781_p3, %s7388_s2), 1  ;;  %815 = vst.msk [vmem:[#allocation2 + $0x68] sm:$0x1] %vm814_vm1, %v12847_v0  ;;  %vm832_vm3 = vcmp.ge.s32.totalorder %v831_v3, 64  ;;  %v8859_v9 = vshrl.u32 %v831_v3, 7  ;;  %vm838_vm5 = vcmp.lt.s32.totalorder %v831_v3, 640 }
  0x1a   : > { %s7639_s6 = smul.u32 13, %s13056_s2  ;;  %s12896_s27 = smov 112   ;;  %vm1297_vm6 = vcmask 130048   ;;  %v12849_v62 = vmov 0   ;;  %vm953_vm7 = vcmask 916480   ;;  %vm1005_vm8 = vcmask 785408  }
  0x1b   : > { %v8864_v12 = vsub.s32 0, %v8859_v9  ;;  %v8867_v13 = vsub.s32 1, %v8859_v9  ;;  %v8870_v16 = vsub.s32 2, %v8859_v9  ;;  %v8873_v17 = vsub.s32 3, %v8859_v9  ;;  %s8704_s4 = smov 80   ;;  %s12900_s28 = smov 48   ;;  %1659 = vmatprep.mubr.bf16.mxu0 %v12849_v62  ;;  %1788 = vmatprep.mubr.bf16.mxu1 %v12849_v62 }
  0x1c   : > { %v8910_v32 = vsub.s32 4, %v8859_v9  ;;  %v8917_v34 = vsub.s32 5, %v8859_v9  ;;  %s12874_s9 = smov 32   ;;  %s12890_s5 = smov 16   ;;  %v888_v40 = vsub.s32 6, %v8859_v9  ;;  %v892_v41 = vsub.s32 7, %v8859_v9  ;;  %7904 = vset.pattern.permute.xlu0 %v12849_v62  ;;  %7905 = vset.pattern.permute.xlu1 %v12849_v62 }
  0x1d   : > { %s784_s26 = scalar_lea.vmem %s12916_s3, %s7639_s6  ;;  %s12929_s30 = sld [smem:[#allocation17_spill]]  ;;  %vm1455_vm9 = vcmask 1041408   ;;  %vm1057_vm10 = vcmask 654336   ;;  %vm1469_vm11 = vcmask 1042432   ;;  %vm1187_vm12 = vcmask 392192  }
  0x1e   : > { %v810_v1 = vld [vmem:[%s784_s26] sm:$0xff]  ;;  %v811_v2 = vld [vmem:[%s784_s26 + $0x8] sm:$0x1f]  ;;  %vm1242_vm13 = vcmask 261120   ;;  %vm1483_vm14 = vcmask 1043456   ;;  %vm1497_vm15 = vcmask 1044480  }
  0x1f   : > { %818 = vrot.lane.b32.xlu0 %v810_v1, %s12902_s1  ;;  %vm12895_vm0 = vcmask 1045504   ;;  %vm12869_vm1 = vcmask 1046528   ;;  %s12941_s6 = sld [smem:[#allocation16_spill]]  ;;  %s12960_s26 = sld [smem:[#allocation19_spill]] }
  0x20   : > { %s12961_s0 = sld [smem:[#allocation18_spill]]  ;;  %s12962_s3 = sld [smem:[#allocation21_spill]] }
  0x21   : > { %s12973_s7 = sld [smem:[#allocation20_spill]] }
  0x23   : > { %820 = vrot.lane.b32.xlu0 %v811_v2, %s12902_s1 }
  0x91   : > { %v819_v4 = vpop.permute.xlu0 %818 }
  0x92   : > { %v822_v5 = vrot.slane %v819_v4, 7 }
  0x94   : > { %v825_v6 = vsel %vm824_vm2, %v822_v5, %v819_v4 }
  0x95   : > { %835 = vst.msk [vmem:[#allocation2] ss:$8 sm:$0xf] %vm832_vm3, %v825_v6  ;;  %836 = vst.msk [vmem:[#allocation2] ss:$8 sm:$0xf0] %vm832_vm3, %v825_v6  ;;  %v821_v7 = vpop.permute.xlu0 %820 }
  0x96   : > { %v823_v8 = vrot.slane %v821_v7, 7  ;;  %vm1584_vm3 = vcmask 80896  }
  0x98   : > { %v827_v10 = vsel %vm826_vm4, %v822_v5, %v823_v8 }
  0x99   : > { %v828_v11 = vsel %vm824_vm2, %v827_v10, %v821_v7  ;;  %v858_v10 = vld [vmem:[#allocation2 + $0x48] ss:$8 sm:$0x10] }
  0x9a   : > { %841 = vst.msk [vmem:[#allocation2 + $0x40] ss:$8 sm:$0xf] %vm838_vm5, %v828_v11  ;;  %842 = vst.msk [vmem:[#allocation2 + $0x40] ss:$8 sm:$0x10] %vm838_vm5, %v828_v11 }
  0x9b   : > { %vm8709_vm5 = vmmov 0  }
  0x9c   : > { %v843_v14 = vld [vmem:[#allocation2] ss:$8 sm:$0xf] }
  0x9d   : > { %v844_v15 = vld [vmem:[#allocation2] ss:$8 sm:$0xf0]  ;;  %1952 = vst.msk [vmem:[#allocation2] sm:$0xff] %vm1297_vm6, %v12847_v0 }
  0x9e   : > { %v845_v18 = vor.u32 %v844_v15, %v843_v14  ;;  %v853_v46 = vld [vmem:[#allocation2 + $0x8] ss:$8 sm:$0xf] }
  0xa0   : > { %v8876_v19 = vrot.slane %v845_v18, %v8864_v12  ;;  %v8879_v20 = vrot.slane %v845_v18, %v8867_v13  ;;  %v8884_v22 = vrot.slane %v845_v18, %v8870_v16  ;;  %v8887_v23 = vrot.slane %v845_v18, %v8873_v17 }
  0xa1   : > { %v849_v25 = vld [vmem:[#allocation2 + $0x40] ss:$8 sm:$0xf]  ;;  %v8924_v36 = vrot.slane %v845_v18, %v8910_v32  ;;  %v8927_v37 = vrot.slane %v845_v18, %v8917_v34  ;;  %v8941_v42 = vrot.slane %v845_v18, %v888_v40  ;;  %v8945_v43 = vrot.slane %v845_v18, %v892_v41 }
  0xa2   : > { %v7664_v21 = vpack.i.bf16 %v8879_v20, %v8876_v19  ;;  %v7669_v24 = vpack.i.bf16 %v8887_v23, %v8884_v22  ;;  %v850_v26 = vld [vmem:[#allocation2 + $0x40] ss:$8 sm:$0x30] }
  0xa3   : > { %v8895_v27 = vor.u32 %v850_v26, %v849_v25  ;;  %v7729_v38 = vpack.i.bf16 %v8927_v37, %v8924_v36  ;;  %v7724_v39 = vpack.i.bf16 %v8924_v36, %v8887_v23  ;;  %v7764_v44 = vpack.i.bf16 %v8945_v43, %v8941_v42  ;;  %v854_v45 = vld [vmem:[#allocation2 + $0x8] ss:$8 sm:$0xf0] }
  0xa4   : > { %7665 = vrot.lane.b32.xlu0 %v7664_v21, %s12898_s8  ;;  %7660 = vrot.lane.b32.xlu1 %v7664_v21, %s12896_s27  ;;  %v7759_v47 = vpack.i.bf16 %v8941_v42, %v8927_v37  ;;  %v855_v48 = vor.u32 %v854_v45, %v853_v46  ;;  %v846_v49 = vld [vmem:[#allocation2 + $0x40] ss:$8 sm:$0xf] }
  0xa5   : > { %v1138_v28 = vrot.slane %v8895_v27, %v8864_v12  ;;  %v1142_v29 = vrot.slane %v8895_v27, %v8867_v13  ;;  %v1146_v30 = vrot.slane %v8895_v27, %v8870_v16  ;;  %v1150_v31 = vrot.slane %v8895_v27, %v8873_v17  ;;  %v847_v50 = vld [vmem:[#allocation2 + $0x40] ss:$8 sm:$0x10] }
  0xa6   : > { %v8960_v51 = vrot.slane %v855_v48, %v8864_v12  ;;  %v848_v52 = vor.u32 %v847_v50, %v846_v49  ;;  %v8967_v54 = vrot.slane %v855_v48, %v8867_v13  ;;  %v8970_v55 = vrot.slane %v855_v48, %v8870_v16  ;;  %v857_v8 = vld [vmem:[#allocation2 + $0x48] ss:$8 sm:$0xf] }
  0xa7   : > { %v8912_v33 = vpack.i.bf16 %v1142_v29, %v1138_v28  ;;  %v8919_v35 = vpack.i.bf16 %v1150_v31, %v1146_v30  ;;  %v8978_v57 = vrot.slane %v855_v48, %v8873_v17  ;;  %v8985_v60 = vrot.slane %v855_v48, %v8910_v32 }
  0xa8   : > { %7675 = vrot.lane.b32.xlu0 %v7664_v21, %s8704_s4  ;;  %7670 = vrot.lane.b32.xlu1 %v7669_v24, %s12898_s8  ;;  %v7794_v53 = vpack.i.bf16 %v8960_v51, %v8884_v22  ;;  %v8973_v56 = vrot.slane %v848_v52, %v8864_v12  ;;  %v7799_v58 = vpack.i.bf16 %v8970_v55, %v8967_v54 }
  0xa9   : > { %v8988_v61 = vrot.slane %v848_v52, %v8867_v13  ;;  %v7804_v63 = vpack.i.bf16 %v8985_v60, %v8978_v57  ;;  %v9003_v2 = vrot.slane %v855_v48, %v8917_v34  ;;  %v9005_v3 = vrot.slane %v855_v48, %v888_v40 }
  0xaa   : > { %12917 = vst [vmem:[#allocation3_spill] sm:$0xff] %v8973_v56  ;;  %v7809_v59 = vpack.i.bf16 %v8973_v56, %v8945_v43  ;;  %v9012_v5 = vrot.slane %v848_v52, %v8870_v16  ;;  %v9020_v7 = vrot.slane %v848_v52, %v8873_v17  ;;  %v859_v14 = vor.u32 %v858_v10, %v857_v8 }
  0xab   : > { %12918 = vst [vmem:[#allocation4_spill] sm:$0xff] %v8988_v61  ;;  %v7814_v1 = vpack.i.bf16 %v8988_v61, %v8973_v56  ;;  %12919 = vst [vmem:[#allocation5_spill] sm:$0xff] %v9005_v3  ;;  %v7824_v4 = vpack.i.bf16 %v9005_v3, %v9003_v2  ;;  %v9032_v15 = vrot.slane %v855_v48, %v892_v41 }
  0xac   : > { %7685 = vrot.lane.b32.xlu0 %v7664_v21, %s12902_s1  ;;  %7680 = vrot.lane.b32.xlu1 %v7669_v24, %s8704_s4  ;;  %12920 = vst [vmem:[#allocation6_spill] sm:$0xff] %v9012_v5  ;;  %v7834_v6 = vpack.i.bf16 %v9012_v5, %v8988_v61  ;;  %12921 = vst [vmem:[#allocation7_spill] sm:$0xff] %v9020_v7  ;;  %v7844_v11 = vpack.i.bf16 %v9020_v7, %v9012_v5 }
  0xad   : > { %12922 = vst [vmem:[#allocation8_spill] sm:$0xff] %v9032_v15  ;;  %v9035_v18 = vrot.slane %v859_v14, %v8864_v12  ;;  %v9057_v12 = vrot.slane %v859_v14, %v8867_v13  ;;  %v9060_v25 = vrot.slane %v859_v14, %v8870_v16  ;;  %v1154_v26 = vrot.slane %v8895_v27, %v8910_v32 }
  0xae   : > { %v9071_v29 = vrot.slane %v859_v14, %v8873_v17  ;;  %v9074_v13 = vrot.slane %v859_v14, %v8910_v32  ;;  %v1158_v30 = vrot.slane %v8895_v27, %v8917_v34  ;;  %v1567_v17 = vld [vmem:[%s12929_s30] sm:$0xff]  ;;  %v1568_v27 = vld [vmem:[%s12929_s30 + $0x8] sm:$0x3] }
  0xaf   : > { %12923 = vst [vmem:[#allocation9_spill] sm:$0xff] %v9035_v18  ;;  %12925 = vst [vmem:[#allocation11_spill] sm:$0xff] %v9057_v12  ;;  %v7894_v28 = vpack.i.bf16 %v9060_v25, %v9057_v12 }
  0xb0   : > { %7695 = vrot.lane.b32.xlu0 %v7664_v21, %s12900_s28  ;;  %7690 = vrot.lane.b32.xlu1 %v7669_v24, %s12902_s1  ;;  %12926 = vst [vmem:[#allocation12_spill] sm:$0xff] %v9060_v25  ;;  %12927 = vst [vmem:[#allocation13_spill] sm:$0xff] %v9071_v29  ;;  %v7899_v16 = vpack.i.bf16 %v9074_v13, %v9071_v29 }
  0xb1   : > { %12928 = vst [vmem:[#allocation14_spill] sm:$0xff] %v9074_v13 }
  0xb4   : > { %7705 = vrot.lane.b32.xlu0 %v7664_v21, %s12874_s9  ;;  %7700 = vrot.lane.b32.xlu1 %v7669_v24, %s12900_s28 }
  0xb8   : > { %7715 = vrot.lane.b32.xlu0 %v7664_v21, %s12890_s5  ;;  %7710 = vrot.lane.b32.xlu1 %v7669_v24, %s12874_s9  ;;  %v7864_v21 = vpack.i.bf16 %v9035_v18, %v9032_v15 }
  0xbc   : > { %7730 = vrot.lane.b32.xlu0 %v7729_v38, %s12898_s8  ;;  %7720 = vrot.lane.b32.xlu1 %v7669_v24, %s12890_s5  ;;  %v9042_v24 = vrot.slane %v848_v52, %v8910_v32 }
  0xbe   : > { %12924 = vst [vmem:[#allocation10_spill] sm:$0xff] %v9042_v24  ;;  %v7874_v9 = vpack.i.bf16 %v9042_v24, %v9020_v7 }
  0xc0   : > { %7740 = vrot.lane.b32.xlu0 %v7729_v38, %s12902_s1  ;;  %7725 = vrot.lane.b32.xlu1 %v7724_v39, %s12896_s27 }
  0xc4   : > { %7750 = vrot.lane.b32.xlu0 %v7729_v38, %s12874_s9  ;;  %7735 = vrot.lane.b32.xlu1 %v7729_v38, %s8704_s4 }
  0xc8   : > { %7765 = vrot.lane.b32.xlu0 %v7764_v44, %s12898_s8  ;;  %7745 = vrot.lane.b32.xlu1 %v7729_v38, %s12900_s28 }
  0xcc   : > { %7775 = vrot.lane.b32.xlu0 %v7764_v44, %s12902_s1  ;;  %7755 = vrot.lane.b32.xlu1 %v7729_v38, %s12890_s5 }
  0xd0   : > { %7780 = vrot.lane.b32.xlu0 %v7764_v44, %s12900_s28  ;;  %7760 = vrot.lane.b32.xlu1 %v7759_v47, %s12896_s27 }
  0xd4   : > { %7785 = vrot.lane.b32.xlu0 %v7764_v44, %s12874_s9  ;;  %7770 = vrot.lane.b32.xlu1 %v7764_v44, %s8704_s4 }
  0xd8   : > { %7790 = vrot.lane.b32.xlu0 %v7764_v44, %s12890_s5  ;;  %7795 = vrot.lane.b32.xlu1 %v7794_v53, %s12896_s27 }
  0xdc   : > { %7800 = vrot.lane.b32.xlu0 %v7799_v58, %s12896_s27  ;;  %7810 = vrot.lane.b32.xlu1 %v7809_v59, %s12896_s27 }
  0xe0   : > { %7805 = vrot.lane.b32.xlu0 %v7804_v63, %s12896_s27  ;;  %7815 = vrot.lane.b32.xlu1 %v7814_v1, %s12898_s8 }
  0xe4   : > { %7830 = vrot.lane.b32.xlu0 %v7814_v1, %s12902_s1  ;;  %7820 = vrot.lane.b32.xlu1 %v7814_v1, %s8704_s4 }
  0xe8   : > { %7840 = vrot.lane.b32.xlu0 %v8912_v33, %s12900_s28  ;;  %7825 = vrot.lane.b32.xlu1 %v7824_v4, %s12896_s27 }
  0xec   : > { %7850 = vrot.lane.b32.xlu0 %v8912_v33, %s12874_s9  ;;  %7835 = vrot.lane.b32.xlu1 %v7834_v6, %s12896_s27 }
  0xf0   : > { %7860 = vrot.lane.b32.xlu0 %v8912_v33, %s12890_s5  ;;  %7845 = vrot.lane.b32.xlu1 %v7844_v11, %s12898_s8 }
  0xf4   : > { %7870 = vrot.lane.b32.xlu0 %v7844_v11, %s12902_s1  ;;  %7855 = vrot.lane.b32.xlu1 %v7844_v11, %s8704_s4 }
  0xf8   : > { %7880 = vrot.lane.b32.xlu0 %v8919_v35, %s12900_s28  ;;  %7865 = vrot.lane.b32.xlu1 %v7864_v21, %s12896_s27 }
  0xfc   : > { %7885 = vrot.lane.b32.xlu0 %v8919_v35, %s12874_s9  ;;  %7875 = vrot.lane.b32.xlu1 %v7874_v9, %s12896_s27 }
 0x100   : > { %7890 = vrot.lane.b32.xlu0 %v8919_v35, %s12890_s5  ;;  %1003 = vrot.lane.b32.xlu1 %v9042_v24, %s12898_s8 }
 0x104   : > { %1107 = vrot.lane.b32.xlu0 %v9042_v24, %s12902_s1  ;;  %1055 = vrot.lane.b32.xlu1 %v9042_v24, %s8704_s4 }
 0x108   : > { %1238 = vrot.lane.b32.xlu0 %v1154_v26, %s12874_s9  ;;  %7895 = vrot.lane.b32.xlu1 %v7894_v28, %s12896_s27 }
 0x10c   : > { %7900 = vrot.lane.b32.xlu0 %v7899_v16, %s12896_s27  ;;  %1183 = vrot.lane.b32.xlu1 %v1154_v26, %s12900_s28 }
 0x110   : > { %1240 = vrot.lane.b32.xlu0 %v1158_v30, %s12874_s9  ;;  %1293 = vrot.lane.b32.xlu1 %v1154_v26, %s12890_s5 }
 0x114   : > { %1185 = vrot.lane.b32.xlu1 %v1158_v30, %s12900_s28  ;;  %1571 = vperm.xlu0 %7904, %v1567_v17  }
 0x116   : > { %v9090_v31 = vpop.permute.xlu1 %7660  ;;  %v7666_v32 = vpop.permute.xlu0 %7665 }
 0x117   : > { %v12851_v49 = vunpack.i.h.bf16 %v9090_v31  ;;  %v7662_v50 = vunpack.i.l.bf16 %v9090_v31  ;;  %v7668_v58 = vunpack.i.h.bf16 %v7666_v32  ;;  %v7667_v59 = vunpack.i.l.bf16 %v7666_v32 }
 0x118   : > { %1295 = vrot.lane.b32.xlu1 %v1158_v30, %s12890_s5 }
 0x119   : > { %v954_v63 = vsel %vm953_vm7, %v7662_v50, %v12851_v49  ;;  %v1006_v14 = vsel %vm1005_vm8, %v7667_v59, %v7668_v58 }
 0x11a   : > { %v9096_v33 = vpop.permute.xlu1 %7670  ;;  %v9098_v34 = vpop.permute.xlu0 %7675  ;;  %v1442_v11 = vsel %vm826_vm4, %v8876_v19, %v954_v63 }
 0x11b   : > { %v7672_v1 = vunpack.i.l.bf16 %v9096_v33  ;;  %v7678_v4 = vunpack.i.h.bf16 %v9098_v34  ;;  %v7677_v6 = vunpack.i.l.bf16 %v9098_v34  ;;  %v7673_v21 = vunpack.i.h.bf16 %v9096_v33 }
 0x11c   : > { %1576 = vperm.xlu1 %7905, %v1568_v27   ;;  %v1456_v30 = vsel %vm1455_vm9, %v1442_v11, %v1006_v14 }
 0x11d   : > { %v9146_v19 = vsel %vm1005_vm8, %v7668_v58, %v7672_v1  ;;  %v1058_v17 = vsel %vm1057_vm10, %v7677_v6, %v7678_v4  ;;  %v9158_v50 = vsel %vm1005_vm8, %v7672_v1, %v7673_v21 }
 0x11e   : > { %v9100_v35 = vpop.permute.xlu1 %7680  ;;  %v9102_v38 = vpop.permute.xlu0 %7685  ;;  %v1470_v6 = vsel %vm1469_vm11, %v1456_v30, %v1058_v17 }
 0x11f   : > { %v7688_v9 = vunpack.i.h.bf16 %v9102_v38  ;;  %v7687_v26 = vunpack.i.l.bf16 %v9102_v38  ;;  %v7683_v33 = vunpack.i.h.bf16 %v9100_v35  ;;  %v7682_v34 = vunpack.i.l.bf16 %v9100_v35 }
 0x121   : > { %v1109_v58 = vsel %vm824_vm2, %v7687_v26, %v7688_v9  ;;  %v9176_v30 = vsel %vm1057_vm10, %v7678_v4, %v7682_v34  ;;  %v9179_v17 = vsel %vm1057_vm10, %v7682_v34, %v7683_v33 }
 0x122   : > { %v9104_v39 = vpop.permute.xlu1 %7690  ;;  %v9106_v40 = vpop.permute.xlu0 %7695 }
 0x123   : > { %v7698_v28 = vunpack.i.h.bf16 %v9106_v40  ;;  %v7697_v16 = vunpack.i.l.bf16 %v9106_v40  ;;  %v7693_v11 = vunpack.i.h.bf16 %v9104_v39  ;;  %v7692_v35 = vunpack.i.l.bf16 %v9104_v39 }
 0x125   : > { %v1188_v14 = vsel %vm1187_vm12, %v7697_v16, %v7698_v28  ;;  %v1484_v16 = vsel %vm1483_vm14, %v1470_v6, %v1109_v58  ;;  %v9190_v4 = vsel %vm824_vm2, %v7688_v9, %v7692_v35  ;;  %v9193_v34 = vsel %vm824_vm2, %v7692_v35, %v7693_v11 }
 0x126   : > { %v9108_v41 = vpop.permute.xlu1 %7700  ;;  %v9110_v44 = vpop.permute.xlu0 %7705  ;;  %v1498_v58 = vsel %vm1497_vm15, %v1484_v16, %v1188_v14 }
 0x127   : > { %v7708_v38 = vunpack.i.h.bf16 %v9110_v44  ;;  %v7707_v40 = vunpack.i.l.bf16 %v9110_v44  ;;  %v7703_v44 = vunpack.i.h.bf16 %v9108_v41  ;;  %v7702_v1 = vunpack.i.l.bf16 %v9108_v41 }
 0x129   : > { %v1243_v39 = vsel %vm1242_vm13, %v7707_v40, %v7708_v38  ;;  %v9198_v6 = vsel %vm1187_vm12, %v7698_v28, %v7702_v1 }
 0x12a   : > { %v9112_v45 = vpop.permute.xlu1 %7710  ;;  %v9114_v46 = vpop.permute.xlu0 %7715  ;;  %v1512_v35 = vsel %vm12895_vm0, %v1498_v58, %v1243_v39 }
 0x12b   : > { %v7713_v0 = vunpack.i.h.bf16 %v9112_v45  ;;  %v7712_v26 = vunpack.i.l.bf16 %v9112_v45  ;;  %v7718_v41 = vunpack.i.h.bf16 %v9114_v46  ;;  %v7717_v63 = vunpack.i.l.bf16 %v9114_v46 }
 0x12c   : > { %v9201_v46 = vsel %vm1187_vm12, %v7702_v1, %v7703_v44 }
 0x12d   : > { %v9216_v14 = vsel %vm1242_vm13, %v7708_v38, %v7712_v26  ;;  %v1298_v7 = vsel %vm1297_vm6, %v7717_v63, %v7718_v41 }
 0x12e   : > { %v9116_v47 = vpop.permute.xlu1 %7720  ;;  %v9118_v48 = vpop.permute.xlu0 %7730 }
 0x12f   : > { %v7732_v40 = vunpack.i.l.bf16 %v9118_v48  ;;  %v7722_v18 = vunpack.i.l.bf16 %v9116_v47  ;;  %v7733_v1 = vunpack.i.h.bf16 %v9118_v48 }
 0x131   : > { %v1009_v39 = vsel %vm1005_vm8, %v7673_v21, %v7732_v40  ;;  %v12931_v21 = vunpack.i.h.bf16 %v9116_v47 }
 0x132   : > { %v9122_v52 = vpop.permute.xlu1 %7725  ;;  %v9124_v53 = vpop.permute.xlu0 %7740 }
 0x133   : > { %v7728_v59 = vunpack.i.h.bf16 %v9122_v52  ;;  %v12930_v45 = vunpack.i.l.bf16 %v9122_v52  ;;  %v7742_v24 = vunpack.i.l.bf16 %v9124_v53  ;;  %v9237_v63 = vsel %vm1297_vm6, %v7722_v18, %v12931_v21 }
 0x134   : > { %v12932_v21 = vunpack.i.h.bf16 %v9124_v53 }
 0x135   : > { %v957_v13 = vsel %vm953_vm7, %v12930_v45, %v7728_v59  ;;  %v9204_v45 = vsel %vm1242_vm13, %v7712_v26, %v7713_v0  ;;  %v1112_v15 = vsel %vm824_vm2, %v7693_v11, %v7742_v24 }
 0x136   : > { %v9132_v8 = vpop.permute.xlu1 %7735  ;;  %v9134_v10 = vpop.permute.xlu0 %7750  ;;  %v1445_v28 = vsel %vm826_vm4, %v8887_v23, %v957_v13  ;;  %v1113_v56 = vsel %vm824_vm2, %v7742_v24, %v12932_v21  ;;  %v12937_v24 = vunpack.i.l.bf16 %v9122_v52 }
 0x137   : > { %v7737_v29 = vunpack.i.l.bf16 %v9132_v8  ;;  %v7738_v23 = vunpack.i.h.bf16 %v9132_v8  ;;  %v1459_v13 = vsel %vm1455_vm9, %v1445_v28, %v1009_v39  ;;  %v9242_v8 = vsel %vm12869_vm1, %v1512_v35, %v1298_v7 }
 0x138   : > { %v1010_v28 = vsel %vm1005_vm8, %v7732_v40, %v7733_v1  ;;  %v12933_v35 = vunpack.i.h.bf16 %v9134_v10 }
 0x139   : > { %v1061_v16 = vsel %vm1057_vm10, %v7683_v33, %v7737_v29  ;;  %v7752_v33 = vunpack.i.l.bf16 %v9134_v10  ;;  %v1062_v7 = vsel %vm1057_vm10, %v7737_v29, %v7738_v23 }
 0x13a   : > { %v9149_v32 = vpop.permute.xlu1 %7745  ;;  %v9151_v27 = vpop.permute.xlu0 %7765  ;;  %v1473_v58 = vsel %vm1469_vm11, %v1459_v13, %v1061_v16  ;;  %v1299_v13 = vsel %vm1297_vm6, %v7718_v41, %v7722_v18 }
 0x13b   : > { %v7747_v5 = vunpack.i.l.bf16 %v9149_v32  ;;  %v9256_v40 = vsel %vm1242_vm13, %v7713_v0, %v7752_v33  ;;  %v9261_v48 = vsel %vm1242_vm13, %v7752_v33, %v12933_v35 }
 0x13d   : > { %v1191_v16 = vsel %vm1187_vm12, %v7703_v44, %v7747_v5  ;;  %v12934_v44 = vunpack.i.h.bf16 %v9149_v32 }
 0x13e   : > { %v9171_v62 = vpop.permute.xlu1 %7755  ;;  %v9173_v49 = vpop.permute.xlu0 %7775 }
 0x13f   : > { %v9275_v41 = vsel %vm1187_vm12, %v7747_v5, %v12934_v44  ;;  %v7758_v35 = vunpack.i.h.bf16 %v9171_v62  ;;  %v7777_v52 = vunpack.i.l.bf16 %v9173_v49 }
 0x142   : > { %v9206_v25 = vpop.permute.xlu1 %7760  ;;  %v9208_v9 = vpop.permute.xlu0 %7780 }
 0x143   : > { %v7762_v12 = vunpack.i.l.bf16 %v9206_v25  ;;  %v7763_v61 = vunpack.i.h.bf16 %v9206_v25  ;;  %v12942_v25 = vunpack.i.h.bf16 %v9134_v10 }
 0x145   : > { %v958_v3 = vsel %vm953_vm7, %v7728_v59, %v7762_v12  ;;  %v1487_v59 = vsel %vm1483_vm14, %v1473_v58, %v1112_v15  ;;  %v959_v18 = vsel %vm953_vm7, %v7762_v12, %v7763_v61  ;;  %v12935_v58 = vunpack.i.l.bf16 %v9151_v27 }
 0x146   : > { %v9230_v38 = vpop.permute.xlu1 %7770  ;;  %v9232_v26 = vpop.permute.xlu0 %7785  ;;  %v1446_v0 = vsel %vm826_vm4, %v8924_v36, %v958_v3  ;;  %v1501_v15 = vsel %vm1497_vm15, %v1487_v59, %v1191_v16  ;;  %v7757_v12 = vunpack.i.l.bf16 %v9171_v62  ;;  %v12936_v36 = vunpack.i.h.bf16 %v9090_v31 }
 0x147   : > { %v1011_v33 = vsel %vm1005_vm8, %v7733_v1, %v12935_v58  ;;  %v7772_v21 = vunpack.i.l.bf16 %v9230_v38  ;;  %v1447_v16 = vsel %vm826_vm4, %v8927_v37, %v959_v18  ;;  %v1460_v59 = vsel %vm1455_vm9, %v1446_v0, %v1010_v28 }
 0x148   : > { %v12938_v0 = vunpack.i.h.bf16 %v9116_v47 }
 0x14a   : > { %v7796_v11 = vpop.permute.xlu1 %7795  ;;  %v9264_v39 = vpop.permute.xlu0 %7790 }
 0x14b   : > { %v7797_v29 = vunpack.i.l.bf16 %v7796_v11 }
 0x14d   : > { %v955_v3 = vsel %vm953_vm7, %v12936_v36, %v7797_v29  ;;  %v956_v5 = vsel %vm953_vm7, %v7797_v29, %v12937_v24  ;;  %v7778_v36 = vunpack.i.h.bf16 %v9173_v49  ;;  %v1301_v29 = vsel %vm1297_vm6, %v12938_v0, %v7757_v12 }
 0x14e   : > { %v1443_v1 = vsel %vm826_vm4, %v8879_v20, %v955_v3  ;;  %v1444_v44 = vsel %vm826_vm4, %v8884_v22, %v956_v5  ;;  %v9297_v58 = vpop.permute.xlu1 %7810  ;;  %v7801_v31 = vpop.permute.xlu0 %7800  ;;  %v1063_v20 = vsel %vm1057_vm10, %v7738_v23, %v7772_v21  ;;  %v1474_v3 = vsel %vm1469_vm11, %v1460_v59, %v1062_v7 }
 0x14f   : > { %v1457_v24 = vsel %vm1455_vm9, %v1443_v1, %v9146_v19  ;;  %v1458_v37 = vsel %vm1455_vm9, %v1444_v44, %v9158_v50  ;;  %v7803_v28 = vunpack.i.h.bf16 %v7801_v31  ;;  %v7802_v18 = vunpack.i.l.bf16 %v7801_v31 }
 0x150   : > { %v1471_v22 = vsel %vm1469_vm11, %v1457_v24, %v9176_v30  ;;  %v1461_v19 = vsel %vm1455_vm9, %v1447_v16, %v1011_v33  ;;  %v7798_v5 = vunpack.i.h.bf16 %v7796_v11  ;;  %v1472_v23 = vsel %vm1469_vm11, %v1458_v37, %v9179_v17 }
 0x151   : > { %v1485_v50 = vsel %vm1483_vm14, %v1471_v22, %v9190_v4  ;;  %v1418_v30 = vsel %vm953_vm7, %v7802_v18, %v7803_v28  ;;  %v12939_v7 = vunpack.i.h.bf16 %v9124_v53  ;;  %v7782_v4 = vunpack.i.l.bf16 %v9208_v9 }
 0x152   : > { %v9319_v1 = vpop.permute.xlu1 %7815  ;;  %v7806_v44 = vpop.permute.xlu0 %7805  ;;  %v1499_v47 = vsel %vm1497_vm15, %v1485_v50, %v9198_v6  ;;  %v1475_v11 = vsel %vm1469_vm11, %v1461_v19, %v1063_v20  ;;  %v1417_v31 = vsel %vm953_vm7, %v7798_v5, %v7802_v18  ;;  %v1488_v6 = vsel %vm1483_vm14, %v1474_v3, %v1113_v56 }
 0x153   : > { %v1114_v33 = vsel %vm824_vm2, %v12939_v7, %v7777_v52  ;;  %v7808_v16 = vunpack.i.h.bf16 %v7806_v44  ;;  %v7807_v17 = vunpack.i.l.bf16 %v7806_v44  ;;  %v1513_v59 = vsel %vm12895_vm0, %v1499_v47, %v9216_v14 }
 0x154   : > { %v1527_v24 = vsel %vm12869_vm1, %v1513_v59, %v1299_v13  ;;  %v1540_v53 = vsel %vm826_vm4, %v8967_v54, %v1418_v30  ;;  %v1539_v37 = vsel %vm826_vm4, %v8960_v51, %v1417_v31  ;;  %v1486_v20 = vsel %vm1483_vm14, %v1472_v23, %v9193_v34 }
 0x155   : > { %v1489_v22 = vsel %vm1483_vm14, %v1475_v11, %v1114_v33  ;;  %v7812_v0 = vunpack.i.l.bf16 %v9297_v58  ;;  %v1420_v14 = vsel %vm953_vm7, %v7807_v17, %v7808_v16  ;;  %v1553_v13 = vpack.c.bf16 %v1540_v53, %v1527_v24 }
 0x156   : > { %v9345_v18 = vpop.permute.xlu1 %7820  ;;  %v9347_v56 = vpop.permute.xlu0 %7830  ;;  %v12940_v54 = vunpack.i.h.bf16 %v9149_v32  ;;  %v7787_v3 = vunpack.i.l.bf16 %v9232_v26  ;;  %v7792_v34 = vunpack.i.l.bf16 %v9264_v39  ;;  %v1515_v19 = vsel %vm12895_vm0, %v1501_v15, %v9256_v40 }
 0x157   : > { %v1419_v50 = vsel %vm953_vm7, %v7803_v28, %v7807_v17  ;;  %7402 = vmatprep.subr.msk.bf16.mxu0 %vm1497_vm15, %v1553_v13  ;;  %v1552_v5 = vpack.c.bf16 %v1539_v37, %v9242_v8  ;;  %v1542_v23 = vsel %vm826_vm4, %v8978_v57, %v1420_v14  ;;  %v1500_v32 = vsel %vm1497_vm15, %v1486_v20, %v9201_v46 }
 0x158   : > { %v1193_v51 = vsel %vm1187_vm12, %v12940_v54, %v7782_v4  ;;  %v1302_v44 = vsel %vm1297_vm6, %v7757_v12, %v7758_v35  ;;  %v1529_v40 = vsel %vm12869_vm1, %v1515_v19, %v1301_v29  ;;  %v1502_v15 = vsel %vm1497_vm15, %v1488_v6, %v9275_v41  ;;  %v9383_v12 = vld [vmem:[%s12941_s6] sm:$0x1f]   ;;  %s7640_s6 = smul.u32 112, %s13056_s2 }
 0x159   : > { %v1503_v30 = vsel %vm1497_vm15, %v1489_v22, %v1193_v51  ;;  %v960_v8 = vsel %vm953_vm7, %v7763_v61, %v7812_v0  ;;  %v1589_v57 = vsel %vm1497_vm15, %v1552_v5, 0  ;;  %v1555_v28 = vpack.c.bf16 %v1542_v23, %v1529_v40 }
 0x15a   : > { %v9376_v47 = vpop.permute.xlu1 %7825  ;;  %v9378_v46 = vpop.permute.xlu0 %7840  ;;  %v1514_v29 = vsel %vm12895_vm0, %v1500_v32, %v9204_v45  ;;  %v1248_v61 = vsel %vm1242_vm13, %v12942_v25, %v7787_v3  ;;  %1628 = vmatpush1.bf16.msra.mxu0 %v1589_v57  ;;  %v1541_v33 = vsel %vm826_vm4, %v8970_v55, %v1419_v50  ;;  %v1303_v45 = vsel %vm1297_vm6, %v7758_v35, %v7792_v34 }
 0x15b   : > { %v7828_v41 = vunpack.i.h.bf16 %v9376_v47  ;;  %v7827_v7 = vunpack.i.l.bf16 %v9376_v47  ;;  %v1517_v11 = vsel %vm12895_vm0, %v1503_v30, %v1248_v61  ;;  %v7813_v10 = vunpack.i.h.bf16 %v9297_v58  ;;  %7404 = vmatprep.subr.msk.bf16.mxu0 %vm1497_vm15, %v1555_v28 }
 0x15c   : > { %v1516_v17 = vsel %vm12895_vm0, %v1502_v15, %v9261_v48  ;;  %v1448_v59 = vsel %vm826_vm4, %v8941_v42, %v960_v8  ;;  %v1528_v62 = vsel %vm12869_vm1, %v1514_v29, %v9237_v63  ;;  %v7817_v35 = vunpack.i.l.bf16 %v9319_v1 }
 0x15d   : > { %v1421_v55 = vsel %vm953_vm7, %v7808_v16, %v7827_v7  ;;  %v1422_v31 = vsel %vm953_vm7, %v7827_v7, %v7828_v41  ;;  %7403 = vmatmul.mubr.msk.bf16.vlgmr.msra.gmra.mrb[0].mxu0 %vm1584_vm3, %v9383_v12  ;;  %v1554_v58 = vpack.c.bf16 %v1541_v33, %v1528_v62  ;;  %v7773_v24 = vunpack.i.h.bf16 %v9230_v38 }
 0x15e   : > { %v9417_v6 = vpop.permute.xlu1 %7835  ;;  %v9419_v48 = vpop.permute.xlu0 %7850  ;;  %v1544_v42 = vsel %vm826_vm4, %v9003_v2, %v1422_v31  ;;  %v1543_v16 = vsel %vm826_vm4, %v8985_v60, %v1421_v55  ;;  %v7822_v63 = vunpack.i.l.bf16 %v9345_v18  ;;  %v1531_v53 = vsel %vm12869_vm1, %v1517_v11, %v1303_v45  ;;  %v12947_v31 = vld [vmem:[#allocation3_spill] sm:$0xff] }
 0x15f   : > { %v12943_v37 = vmov 0   ;;  %v1530_v20 = vsel %vm12869_vm1, %v1516_v17, %v1302_v44  ;;  %v12944_v22 = vunpack.i.h.bf16 %v9151_v27  ;;  %v12945_v14 = vunpack.i.l.bf16 %v9151_v27 }
 0x160   : > { %1702 = vmatprep.mubr.bf16.mxu0 %v12943_v37  ;;  %v1595_v2 = vsel %vm1497_vm15, %v1554_v58, 0  ;;  %v1557_v54 = vpack.c.bf16 %v1544_v42, %v1531_v53  ;;  %v1556_v60 = vpack.c.bf16 %v1543_v16, %v1530_v20  ;;  %v961_v51 = vsel %vm953_vm7, %v7812_v0, %v7813_v10 }
 0x161   : > { %v1012_v13 = vsel %vm1005_vm8, %v12945_v14, %v12944_v22  ;;  %1671 = vmatpush1.bf16.msra.mxu0 %v1595_v2  ;;  %v7837_v50 = vunpack.i.l.bf16 %v9417_v6  ;;  %v1115_v5 = vsel %vm824_vm2, %v7777_v52, %v7778_v36  ;;  %v7783_v23 = vunpack.i.h.bf16 %v9208_v9 }
 0x162   : > { %v1462_v19 = vsel %vm1455_vm9, %v1448_v59, %v1012_v13  ;;  %v12946_v32 = vmov %v12944_v22  ;;  %v7832_v30 = vunpack.i.l.bf16 %v9347_v56  ;;  %7406 = vmatprep.subr.msk.bf16.mxu0 %vm1497_vm15, %v1557_v54  ;;  %v9450_v0 = vpop.permute.xlu1 %7845  ;;  %v9452_v40 = vpop.permute.xlu0 %7860  ;;  %v1064_v15 = vsel %vm1057_vm10, %v7772_v21, %v7773_v24 }
 0x163   : > { %v1013_v44 = vsel %vm1005_vm8, %v12946_v32, %v7817_v35  ;;  %v7788_v52 = vunpack.i.h.bf16 %v9232_v26  ;;  %v1065_v8 = vsel %vm1057_vm10, %v7773_v24, %v7822_v63  ;;  %v7842_v27 = vunpack.i.l.bf16 %v9378_v46 }
 0x164   : > { %v7793_v57 = vunpack.i.h.bf16 %v9264_v39  ;;  %v1449_v28 = vsel %vm826_vm4, %v8945_v43, %v961_v51  ;;  %v1601_v29 = vsel %vm1497_vm15, %v1556_v60, 0  ;;  %v1476_v25 = vsel %vm1469_vm11, %v1462_v19, %v1064_v15  ;;  %v12949_v15 = vld [vmem:[#allocation5_spill] sm:$0xff] }
 0x165   : > { %v7818_v61 = vunpack.i.h.bf16 %v9319_v1  ;;  %v1463_v38 = vsel %vm1455_vm9, %v1449_v28, %v1013_v44  ;;  %v7823_v21 = vunpack.i.h.bf16 %v9345_v18  ;;  %v962_v7 = vsel %vm953_vm7, %v7813_v10, %v7837_v50  ;;  %7405 = vmatmul.mubr.msk.bf16.vlgmr.msra.gmra.mrb[4].mxu0 %vm1584_vm3, %v9383_v12 }
 0x166   : > { %v1477_v33 = vsel %vm1469_vm11, %v1463_v38, %v1065_v8  ;;  %v7833_v11 = vunpack.i.h.bf16 %v9347_v56  ;;  %v1116_v43 = vsel %vm824_vm2, %v7778_v36, %v7832_v30  ;;  %v7843_v45 = vunpack.i.h.bf16 %v9378_v46  ;;  %v9477_v1 = vpop.permute.xlu1 %7855  ;;  %v9479_v17 = vpop.permute.xlu0 %7870  ;;  %1714 = vmatpush1.bf16.msra.mxu0 %v1601_v29  ;;  %1745 = vmatprep.mubr.bf16.mxu0 %v12943_v37 }
 0x167   : > { %v1194_v10 = vsel %vm1187_vm12, %v7782_v4, %v7783_v23  ;;  %v1195_v59 = vsel %vm1187_vm12, %v7783_v23, %v7842_v27  ;;  %v7852_v55 = vunpack.i.l.bf16 %v9419_v48  ;;  %v1490_v49 = vsel %vm1483_vm14, %v1476_v25, %v1115_v5 }
 0x168   : > { %v7838_v36 = vunpack.i.h.bf16 %v9417_v6  ;;  %v1450_v62 = vsel %vm826_vm4, %v12947_v31, %v962_v7  ;;  %v7862_v58 = vunpack.i.l.bf16 %v9452_v40  ;;  %v1249_v9 = vsel %vm1242_vm13, %v7787_v3, %v7788_v52 }
 0x169   : > { %v1014_v4 = vsel %vm1005_vm8, %v7817_v35, %v7818_v61  ;;  %v1066_v42 = vsel %vm1057_vm10, %v7822_v63, %v7823_v21  ;;  %v1491_v16 = vsel %vm1483_vm14, %v1477_v33, %v1116_v43  ;;  %v1304_v6 = vsel %vm1297_vm6, %v7792_v34, %v7793_v57 }
 0x16a   : > { %v1117_v24 = vsel %vm824_vm2, %v7832_v30, %v7833_v11  ;;  %v1196_v26 = vsel %vm1187_vm12, %v7842_v27, %v7843_v45  ;;  %v9509_v3 = vpop.permute.xlu1 %7865  ;;  %v9511_v35 = vpop.permute.xlu0 %7880  ;;  %v1505_v63 = vsel %vm1497_vm15, %v1491_v16, %v1195_v59  ;;  %v1504_v53 = vsel %vm1497_vm15, %v1490_v49, %v1194_v10  ;;  %v12948_v30 = vld [vmem:[#allocation8_spill] sm:$0xff]  ;;  %v12951_v49 = vld [vmem:[#allocation6_spill] sm:$0xff] }
 0x16b   : > { %v1464_v39 = vsel %vm1455_vm9, %v1450_v62, %v1014_v4  ;;  %v7868_v34 = vunpack.i.h.bf16 %v9509_v3  ;;  %v7867_v20 = vunpack.i.l.bf16 %v9509_v3  ;;  %v1250_v22 = vsel %vm1242_vm13, %v7788_v52, %v7852_v55 }
 0x16c   : > { %v963_v14 = vsel %vm953_vm7, %v7837_v50, %v7838_v36  ;;  %v7853_v13 = vunpack.i.h.bf16 %v9419_v48  ;;  %v7848_v2 = vunpack.i.h.bf16 %v9450_v0  ;;  %v1305_v54 = vsel %vm1297_vm6, %v7793_v57, %v7862_v58  ;;  %v12950_v57 = vld [vmem:[#allocation4_spill] sm:$0xff] }
 0x16d   : > { %v7847_v60 = vunpack.i.l.bf16 %v9450_v0  ;;  %v1424_v51 = vsel %vm953_vm7, %v7867_v20, %v7868_v34  ;;  %v1423_v19 = vsel %vm953_vm7, %v7828_v41, %v7867_v20  ;;  %v1518_v50 = vsel %vm12895_vm0, %v1504_v53, %v1249_v9  ;;  %7407 = vmatmul.mubr.msk.bf16.vlgmr.msra.gmra.mrb[8].mxu0 %vm1584_vm3, %v9383_v12 }
 0x16e   : > { %v1478_v5 = vsel %vm1469_vm11, %v1464_v39, %v1066_v42  ;;  %v9536_v23 = vpop.permute.xlu1 %7875  ;;  %v9538_v32 = vpop.permute.xlu0 %7885  ;;  %v1519_v44 = vsel %vm12895_vm0, %v1505_v63, %v1250_v22  ;;  %v1546_v0 = vsel %vm826_vm4, %v12948_v30, %v1424_v51  ;;  %v1545_v52 = vsel %vm826_vm4, %v12949_v15, %v1423_v19  ;;  %1831 = vmatprep.mubr.bf16.mxu0 %v12943_v37  ;;  %v12952_v19 = vld [vmem:[#allocation7_spill] sm:$0xff] }
 0x16f   : > { %v7858_v47 = vunpack.i.h.bf16 %v9477_v1  ;;  %v7857_v41 = vunpack.i.l.bf16 %v9477_v1  ;;  %v7877_v8 = vunpack.i.l.bf16 %v9536_v23  ;;  %v1533_v27 = vsel %vm12869_vm1, %v1519_v44, %v1305_v54 }
 0x170   : > { %v1451_v28 = vsel %vm826_vm4, %v12950_v57, %v963_v14  ;;  %v7878_v29 = vunpack.i.h.bf16 %v9536_v23  ;;  %v1559_v25 = vpack.c.bf16 %v1546_v0, %v1533_v27  ;;  %v1532_v38 = vsel %vm12869_vm1, %v1518_v50, %v1304_v6 }
 0x171   : > { %v1015_v7 = vsel %vm1005_vm8, %v7818_v61, %v7847_v60  ;;  %v1016_v33 = vsel %vm1005_vm8, %v7847_v60, %v7848_v2  ;;  %v964_v43 = vsel %vm953_vm7, %v7838_v36, %v7877_v8  ;;  %v1558_v1 = vpack.c.bf16 %v1545_v52, %v1532_v38 }
 0x172   : > { %v7873_v10 = vunpack.i.h.bf16 %v9479_v17  ;;  %v7872_v59 = vunpack.i.l.bf16 %v9479_v17  ;;  %v1452_v31 = vsel %vm826_vm4, %v12951_v49, %v964_v43  ;;  %7408 = vmatprep.subr.msk.bf16.mxu1 %vm1497_vm15, %v1559_v25  ;;  %v9564_v62 = vpop.permute.xlu1 %1003  ;;  %v9566_v9 = vpop.permute.xlu0 %7890  ;;  %v1492_v61 = vsel %vm1483_vm14, %v1478_v5, %v1117_v24  ;;  %v12954_v49 = vld [vmem:[#allocation9_spill] sm:$0xff] }
 0x173   : > { %v1067_v36 = vsel %vm1057_vm10, %v7823_v21, %v7857_v41  ;;  %v1068_v4 = vsel %vm1057_vm10, %v7857_v41, %v7858_v47  ;;  %v7882_v42 = vunpack.i.l.bf16 %v9511_v35  ;;  %v1466_v17 = vsel %vm1455_vm9, %v1452_v31, %v1016_v33 }
 0x174   : > { %v1465_v16 = vsel %vm1455_vm9, %v1451_v28, %v1015_v7  ;;  %v7863_v6 = vunpack.i.h.bf16 %v9452_v40  ;;  %v965_v63 = vsel %vm953_vm7, %v7877_v8, %v7878_v29  ;;  %v1480_v24 = vsel %vm1469_vm11, %v1466_v17, %v1068_v4  ;;  %v12955_v4 = vld [vmem:[#allocation10_spill] sm:$0xff] }
 0x175   : > { %v7883_v18 = vunpack.i.h.bf16 %v9511_v35  ;;  %v7887_v21 = vunpack.i.l.bf16 %v9538_v32  ;;  %v1607_v53 = vsel %vm1497_vm15, %v1558_v1, 0  ;;  %v1506_v39 = vsel %vm1497_vm15, %v1492_v61, %v1196_v26 }
 0x176   : > { %v1479_v20 = vsel %vm1469_vm11, %v1465_v16, %v1067_v36  ;;  %v1118_v22 = vsel %vm824_vm2, %v7833_v11, %v7872_v59  ;;  %v1119_v14 = vsel %vm824_vm2, %v7872_v59, %v7873_v10  ;;  %v7892_v54 = vunpack.i.l.bf16 %v9566_v9  ;;  %1757 = vmatpush1.bf16.msra.mxu1 %v1607_v53  ;;  %v1056_v60 = vpop.permute.xlu1 %1055  ;;  %v9591_v51 = vpop.permute.xlu0 %1107 }
 0x177   : > { %v1197_v35 = vsel %vm1187_vm12, %v7843_v45, %v7882_v42  ;;  %v1017_v26 = vsel %vm1005_vm8, %v7848_v2, %v9564_v62  ;;  %v1453_v56 = vsel %vm826_vm4, %v12952_v19, %v965_v63  ;;  %v1494_v11 = vsel %vm1483_vm14, %v1480_v24, %v1119_v14  ;;  %v12957_v19 = vld [vmem:[#allocation13_spill] sm:$0xff] }
 0x178   : > { %v1251_v50 = vsel %vm1242_vm13, %v7852_v55, %v7853_v13  ;;  %v1306_v46 = vsel %vm1297_vm6, %v7862_v58, %v7863_v6  ;;  %v7888_v45 = vunpack.i.h.bf16 %v9538_v32  ;;  %v1069_v5 = vsel %vm1057_vm10, %v7858_v47, %v1056_v60 }
 0x179   : > { %v1493_v2 = vsel %vm1483_vm14, %v1479_v20, %v1118_v22  ;;  %v1198_v44 = vsel %vm1187_vm12, %v7882_v42, %v7883_v18  ;;  %v1252_v30 = vsel %vm1242_vm13, %v7853_v13, %v7887_v21  ;;  %7409 = vmatmul.mubr.msk.bf16.vlgmr.msra.gmra.mrb[0].mxu1 %vm1584_vm3, %v9383_v12  ;;  %v1520_v55 = vsel %vm12895_vm0, %v1506_v39, %v1251_v50  ;;  %v12956_v39 = vld [vmem:[#allocation12_spill] sm:$0xff] }
 0x17a   : > { %v1507_v40 = vsel %vm1497_vm15, %v1493_v2, %v1197_v35  ;;  %v1467_v58 = vsel %vm1455_vm9, %v1453_v56, %v1017_v26  ;;  %v1307_v32 = vsel %vm1297_vm6, %v7863_v6, %v7892_v54  ;;  %v7896_v0 = vpop.permute.xlu1 %7895  ;;  %v1239_v15 = vpop.permute.xlu0 %1238  ;;  %v1508_v52 = vsel %vm1497_vm15, %v1494_v11, %v1198_v44  ;;  %1874 = vmatprep.mubr.bf16.mxu1 %v12943_v37 }
 0x17b   : > { %v1481_v48 = vsel %vm1469_vm11, %v1467_v58, %v1069_v5  ;;  %v1120_v13 = vsel %vm824_vm2, %v7873_v10, %v9591_v51  ;;  %v7898_v47 = vunpack.i.h.bf16 %v7896_v0  ;;  %v7897_v41 = vunpack.i.l.bf16 %v7896_v0  ;;  %v12953_v10 = vld [vmem:[#allocation11_spill] sm:$0xff]  ;;  %v12959_v58 = vld [vmem:[#allocation14_spill] sm:$0xff] }
 0x17c   : > { %v1253_v8 = vsel %vm1242_vm13, %v7887_v21, %v7888_v45  ;;  %v1521_v27 = vsel %vm12895_vm0, %v1507_v40, %v1252_v30  ;;  %v1534_v57 = vsel %vm12869_vm1, %v1520_v55, %v1306_v46  ;;  %v7893_v28 = vunpack.i.h.bf16 %v9566_v9 }
 0x17d   : > { %v1425_v25 = vsel %vm953_vm7, %v7868_v34, %v7897_v41  ;;  %v1426_v38 = vsel %vm953_vm7, %v7897_v41, %v7898_v47  ;;  %v1535_v7 = vsel %vm12869_vm1, %v1521_v27, %v1307_v32  ;;  %v1495_v33 = vsel %vm1483_vm14, %v1481_v48, %v1120_v13 }
 0x17e   : > { %v1184_v43 = vpop.permute.xlu1 %1183  ;;  %v7901_v1 = vpop.permute.xlu0 %7900  ;;  %v1548_v59 = vsel %vm826_vm4, %v12953_v10, %v1426_v38  ;;  %v1547_v31 = vsel %vm826_vm4, %v12954_v49, %v1425_v25  ;;  %v1522_v9 = vsel %vm12895_vm0, %v1508_v52, %v1253_v8  ;;  %v1454_v42 = vsel %vm826_vm4, %v12955_v4, %v7878_v29 }
 0x17f   : > { %v1199_v3 = vsel %vm1187_vm12, %v7883_v18, %v1184_v43  ;;  %v7903_v61 = vunpack.i.h.bf16 %v7901_v1  ;;  %v7902_v34 = vunpack.i.l.bf16 %v7901_v1  ;;  %v1561_v36 = vpack.c.bf16 %v1548_v59, %v1535_v7 }
 0x180   : > { %v1509_v17 = vsel %vm1497_vm15, %v1495_v33, %v1199_v3  ;;  %v1560_v16 = vpack.c.bf16 %v1547_v31, %v1534_v57  ;;  %v1308_v6 = vsel %vm1297_vm6, %v7892_v54, %v7893_v28  ;;  %v1254_v18 = vsel %vm1242_vm13, %v7888_v45, %v1239_v15 }
 0x181   : > { %v1427_v63 = vsel %vm953_vm7, %v7898_v47, %v7902_v34  ;;  %v1428_v24 = vsel %vm953_vm7, %v7902_v34, %v7903_v61  ;;  %7410 = vmatprep.subr.msk.bf16.mxu0 %vm1497_vm15, %v1561_v36  ;;  %v1536_v23 = vsel %vm12869_vm1, %v1522_v9, %v1308_v6  ;;  %v1468_v20 = vsel %vm1455_vm9, %v1454_v42, %v9564_v62 }
 0x182   : > { %v1294_v21 = vpop.permute.xlu1 %1293  ;;  %v1613_v53 = vsel %vm1497_vm15, %v1560_v16, 0  ;;  %v1549_v29 = vsel %vm826_vm4, %v12956_v39, %v1427_v63  ;;  %v1523_v14 = vsel %vm12895_vm0, %v1509_v17, %v1254_v18  ;;  %v1482_v35 = vsel %vm1469_vm11, %v1468_v20, %v1056_v60  ;;  %v1241_v45 = vpop.permute.xlu0 %1240 }
 0x183   : > { %v1309_v22 = vsel %vm1297_vm6, %v7893_v28, %v1294_v21  ;;  %1800 = vmatpush1.bf16.msra.mxu0 %v1613_v53  ;;  %v1562_v54 = vpack.c.bf16 %v1549_v29, %v1536_v23  ;;  %v1550_v56 = vsel %vm826_vm4, %v12957_v19, %v1428_v24  ;;  %v12958_v11 = vmov 0.0  }
 0x184   : > { %v1537_v26 = vsel %vm12869_vm1, %v1523_v14, %v1309_v22  ;;  %7558 = vmatprep.subr.bf16.mxu0 %v12958_v11  ;;  %v1496_v46 = vsel %vm1483_vm14, %v1482_v35, %v9591_v51  ;;  %v1255_v44 = vsel %vm1242_vm13, %v1239_v15, %v1241_v45  ;;  %v1551_v32 = vsel %vm826_vm4, %v12959_v58, %v7903_v61 }
 0x185   : > { %v1563_v50 = vpack.c.bf16 %v1550_v56, %v1537_v26  ;;  %v1619_v60 = vsel %vm1497_vm15, %v1562_v54, 0  ;;  %vm1953_vm4 = vcmask 123904   ;;  %vm12865_vm11 = vcmask 786048  }
 0x186   : > { %7411 = vmatmul.mubr.msk.bf16.vlgmr.msra.gmra.mrb[12].mxu0 %vm1584_vm3, %v9383_v12  ;;  %v1186_v62 = vpop.permute.xlu1 %1185  ;;  %1954 = vst.msk [vmem:[#allocation2 + $0x70] sm:$0x3] %vm1953_vm4, %v12958_v11 }
 0x187   : > { %v1200_v5 = vsel %vm1187_vm12, %v1184_v43, %v1186_v62  ;;  %7412 = vmatprep.subr.msk.bf16.mxu1 %vm1497_vm15, %v1563_v50  ;;  %7560 = vmatprep.mubr.msk.bf16.mxu0 %vm8709_vm5, %v12958_v11  ;;  %1956 = vst.msk [vmem:[#allocation2 + $0x60] sm:$0xff] %vm12865_vm11, %v12958_v11  ;;  %vm12866_vm11 = vcmask 386048  }
 0x188   : > { %v1510_v2 = vsel %vm1497_vm15, %v1496_v46, %v1200_v5  ;;  %1843 = vmatpush1.bf16.msra.mxu1 %v1619_v60 }
 0x189   : > { %v1524_v51 = vsel %vm12895_vm0, %v1510_v2, %v1255_v44 }
 0x18a   : > { %v1296_v30 = vpop.permute.xlu1 %1295 }
 0x18b   : > { %v1310_v55 = vsel %vm1297_vm6, %v1294_v21, %v1296_v30  ;;  %7413 = vmatmul.mubr.msk.bf16.vlgmr.msra.gmra.mrb[4].mxu1 %vm1584_vm3, %v9383_v12 }
 0x18c   : > { %v1538_v40 = vsel %vm12869_vm1, %v1524_v51, %v1310_v55  ;;  %2596 = vmatprep.mubr.bf16.mxu1 %v12943_v37 }
 0x18d   : > { %v1564_v0 = vpack.c.bf16 %v1551_v32, %v1538_v40 }
 0x18f   : > { %v1625_v52 = vsel %vm1497_vm15, %v1564_v0, 0  ;;  %vm12864_vm15 = vcmask 779904  }
 0x190   : > { %7559 = vmatpush3.bf16.msra.mxu0 %v1625_v52  ;;  %1958 = vst.msk [vmem:[#allocation2 + $0xd0] sm:$0x3] %vm12864_vm15, %v12958_v11  ;;  %vm12871_vm15 = vcmask 1041536  }
 0x193   : > { %7561 = vmatmul.mubr.msk.bf16.vlgmr.msra.gmra.mrb[16].mxu0 %vm1584_vm3, %v9383_v12  ;;  %v9689_v15 = vpop.permute.xlu0 %1571  ;;  %vm12893_vm3 = vcmask 1047680  }
 0x194   : > { %2639 = vmatprep.mubr.bf16.mxu0 %v12943_v37 }
 0x19b   : > { %v9699_v59 = vpop.permute.xlu1 %1576 }
 0x230   : > { %v1661_v48 = vpop.f32.mrb[0].mxu0 }
 0x231   : > { %v1662_v13 = vadd.f32 %v1661_v48, %v9689_v15  ;;  %v1663_v47 = vpop.f32.mrb[1].mxu0 }
 0x232   : > { %v1664_v41 = vadd.f32 %v1663_v47, %v9689_v15  ;;  %v1665_v8 = vpop.f32.mrb[2].mxu0 }
 0x233   : > { %v1926_v27 = vmax.f32 %v1662_v13, 0.0  ;;  %v1667_v57 = vpop.f32.mrb[3].mxu0  ;;  %v1666_v3 = vadd.f32 %v1665_v8, %v9699_v59 }
 0x234   : > { %v1927_v28 = vmax.f32 %v1664_v41, 0.0  ;;  %v1668_v36 = vadd.f32 %v1667_v57, %v9699_v59 }
 0x235   : > { %1985 = vrot.lane.b32.xlu1 %v1926_v27, %s12890_s5  ;;  %v1939_v6 = vmax.f32 %v1666_v3, 0.0 }
 0x236   : > { %1987 = vrot.lane.b32.xlu0 %v1927_v28, %s12890_s5  ;;  %v1940_v24 = vmax.f32 %v1668_v36, 0.0 }
 0x238   : > { %v1704_v25 = vpop.f32.mrb[4].mxu0 }
 0x239   : > { %v1706_v12 = vpop.f32.mrb[5].mxu0  ;;  %v1705_v53 = vadd.f32 %v1704_v25, %v9689_v15 }
 0x23a   : > { %v1708_v38 = vpop.f32.mrb[6].mxu0  ;;  %v1707_v22 = vadd.f32 %v1706_v12, %v9689_v15 }
 0x23b   : > { %v1710_v7 = vpop.f32.mrb[7].mxu0  ;;  %v1928_v20 = vmax.f32 %v1705_v53, 0.0  ;;  %v1709_v62 = vadd.f32 %v1708_v38, %v9699_v59 }
 0x23c   : > { %v1929_v19 = vmax.f32 %v1707_v22, 0.0  ;;  %v1711_v60 = vadd.f32 %v1710_v7, %v9699_v59 }
 0x23d   : > { %v1941_v2 = vmax.f32 %v1709_v62, 0.0 }
 0x23e   : > { %v1942_v51 = vmax.f32 %v1711_v60, 0.0 }
 0x240   : > { %v1747_v33 = vpop.f32.mrb[8].mxu0 }
 0x241   : > { %v1749_v43 = vpop.f32.mrb[9].mxu0  ;;  %v1748_v32 = vadd.f32 %v1747_v33, %v9689_v15 }
 0x242   : > { %v9695_v1 = vpop.f32.mrb[10].mxu0  ;;  %v1750_v40 = vadd.f32 %v1749_v43, %v9689_v15 }
 0x243   : > { %v1753_v10 = vpop.f32.mrb[11].mxu0  ;;  %v1930_v47 = vmax.f32 %v1748_v32, 0.0  ;;  %v1752_v41 = vadd.f32 %v9695_v1, %v9699_v59 }
 0x244   : > { %v1931_v48 = vmax.f32 %v1750_v40, 0.0  ;;  %v1754_v13 = vadd.f32 %v1753_v10, %v9699_v59 }
 0x245   : > { %v1943_v57 = vmax.f32 %v1752_v41, 0.0 }
 0x246   : > { %v1944_v8 = vmax.f32 %v1754_v13, 0.0 }
 0x24c   : > { %v1790_v49 = vpop.f32.mrb[0].mxu1 }
 0x24d   : > { %v1791_v31 = vadd.f32 %v1790_v49, %v9689_v15  ;;  %v1792_v9 = vpop.f32.mrb[1].mxu1 }
 0x24e   : > { %v1793_v61 = vadd.f32 %v1792_v9, %v9689_v15  ;;  %v1794_v34 = vpop.f32.mrb[2].mxu1 }
 0x24f   : > { %v1932_v4 = vmax.f32 %v1791_v31, 0.0  ;;  %v1796_v42 = vpop.f32.mrb[3].mxu1  ;;  %v1795_v16 = vadd.f32 %v1794_v34, %v9699_v59 }
 0x250   : > { %v1933_v17 = vmax.f32 %v1793_v61, 0.0  ;;  %v1797_v63 = vadd.f32 %v1796_v42, %v9699_v59 }
 0x251   : > { %1997 = vrot.lane.b32.xlu0 %v1932_v4, %s12890_s5  ;;  %v1945_v18 = vmax.f32 %v1795_v16, 0.0 }
 0x252   : > { %1999 = vrot.lane.b32.xlu1 %v1933_v17, %s12890_s5  ;;  %v1946_v21 = vmax.f32 %v1797_v63, 0.0 }
 0x255   : > { %2011 = vrot.lane.b32.xlu0 %v1939_v6, %s12890_s5 }
 0x256   : > { %2013 = vrot.lane.b32.xlu1 %v1940_v24, %s12890_s5 }
 0x259   : > { %2023 = vrot.lane.b32.xlu0 %v1945_v18, %s12890_s5  ;;  %v1833_v23 = vpop.f32.mrb[12].mxu0 }
 0x25a   : > { %2025 = vrot.lane.b32.xlu1 %v1946_v21, %s12890_s5  ;;  %v1835_v39 = vpop.f32.mrb[13].mxu0  ;;  %v1834_v28 = vadd.f32 %v1833_v23, %v9689_v15 }
 0x25b   : > { %v1837_v29 = vpop.f32.mrb[14].mxu0  ;;  %v1836_v27 = vadd.f32 %v1835_v39, %v9689_v15 }
 0x25c   : > { %v1839_v14 = vpop.f32.mrb[15].mxu0  ;;  %v1934_v38 = vmax.f32 %v1834_v28, 0.0  ;;  %v1838_v7 = vadd.f32 %v1837_v29, %v9699_v59 }
 0x25d   : > { %v1935_v25 = vmax.f32 %v1836_v27, 0.0  ;;  %v1840_v12 = vadd.f32 %v1839_v14, %v9699_v59 }
 0x25e   : > { %1989 = vrot.lane.b32.xlu1 %v1928_v20, %s12890_s5  ;;  %v1876_v54 = vpop.f32.mrb[4].mxu1  ;;  %v1947_v1 = vmax.f32 %v1838_v7, 0.0 }
 0x25f   : > { %v1877_v35 = vadd.f32 %v1876_v54, %v9689_v15  ;;  %v1878_v26 = vpop.f32.mrb[5].mxu1  ;;  %v1948_v33 = vmax.f32 %v1840_v12, 0.0 }
 0x260   : > { %v1879_v56 = vadd.f32 %v1878_v26, %v9689_v15  ;;  %v1880_v50 = vpop.f32.mrb[6].mxu1 }
 0x261   : > { %v1936_v46 = vmax.f32 %v1877_v35, 0.0  ;;  %v1882_v45 = vpop.f32.mrb[7].mxu1  ;;  %v1881_v44 = vadd.f32 %v1880_v50, %v9699_v59 }
 0x262   : > { %1991 = vrot.lane.b32.xlu1 %v1929_v19, %s12890_s5  ;;  %v1937_v5 = vmax.f32 %v1879_v56, 0.0  ;;  %v1883_v43 = vadd.f32 %v1882_v45, %v9699_v59 }
 0x263   : > { %2005 = vrot.lane.b32.xlu0 %v1936_v46, %s12890_s5  ;;  %v1949_v0 = vmax.f32 %v1881_v44, 0.0 }
 0x264   : > { %v1950_v49 = vmax.f32 %v1883_v43, 0.0 }
 0x266   : > { %2007 = vrot.lane.b32.xlu1 %v1937_v5, %s12890_s5  ;;  %v1919_v30 = vpop.f32.mrb[16].mxu0 }
 0x267   : > { %v7562_v55 = vpop.f32.mrb[17].mxu0  ;;  %2015 = vrot.lane.b32.xlu0 %v1941_v2, %s12890_s5  ;;  %v1920_v10 = vadd.f32 %v1919_v30, %v9689_v15 }
 0x268   : > { %v1922_v58 = vpop.f32.mrb[18].mxu0 }
 0x269   : > { %v7563_v52 = vpop.f32.mrb[19].mxu0  ;;  %v1938_v31 = vmax.f32 %v1920_v10, 0.0  ;;  %v1923_v9 = vadd.f32 %v1922_v58, %v9699_v59 }
 0x26a   : > { %2017 = vrot.lane.b32.xlu1 %v1942_v51, %s12890_s5 }
 0x26b   : > { %2031 = vrot.lane.b32.xlu0 %v1949_v0, %s12890_s5  ;;  %v1951_v3 = vmax.f32 %v1923_v9, 0.0 }
 0x26e   : > { %1995 = vrot.lane.b32.xlu1 %v1931_v48, %s12890_s5 }
 0x26f   : > { %1993 = vrot.lane.b32.xlu0 %v1930_v47, %s12890_s5 }
 0x272   : > { %2021 = vrot.lane.b32.xlu1 %v1944_v8, %s12890_s5 }
 0x273   : > { %2019 = vrot.lane.b32.xlu0 %v1943_v57, %s12890_s5 }
 0x276   : > { %2003 = vrot.lane.b32.xlu1 %v1935_v25, %s12890_s5 }
 0x277   : > { %2001 = vrot.lane.b32.xlu0 %v1934_v38, %s12890_s5 }
 0x27a   : > { %2029 = vrot.lane.b32.xlu1 %v1948_v33, %s12890_s5 }
 0x27b   : > { %2027 = vrot.lane.b32.xlu0 %v1947_v1, %s12890_s5 }
 0x27e   : > { %2033 = vrot.lane.b32.xlu1 %v1950_v49, %s12890_s5 }
 0x27f   : > { %2009 = vrot.lane.b32.xlu0 %v1938_v31, %s12890_s5 }
 0x283   : > { %2035 = vrot.lane.b32.xlu0 %v1951_v3, %s12890_s5 }
 0x2a7   : > { %v1986_v61 = vpop.permute.xlu1 %1985 }
 0x2a8   : > { %2088 = vst.msk [vmem:[#allocation2] sm:$0xff] %vm12893_vm3, %v1986_v61  ;;  %v1988_v15 = vpop.permute.xlu0 %1987 }
 0x2a9   : > { %v9756_v34 = vsel %vm1297_vm6, %v1986_v61, %v1988_v15 }
 0x2aa   : > { %v2310_v36 = vrot.slane %v9756_v34, 4  ;;  %v2169_v35 = vrot.slane %v9756_v34, 6 }
 0x2af   : > { %v9759_v4 = vld [vmem:[#allocation2] sm:$0xff] }
 0x2b0   : > { %v2309_v59 = vrot.slane %v9759_v4, 4  ;;  %3402 = vst.msk [vmem:[#allocation2] sm:$0xff] %vm824_vm2, %v12958_v11  ;;  %v2168_v5 = vrot.slane %v9759_v4, 6 }
 0x2b2   : > { %v7906_v42 = vpack.i.bf16 %v2310_v36, %v2309_v59 }
 0x2b4   : > { %7907 = vrot.lane.b32.xlu1 %v7906_v42, %s12898_s8 }
 0x2c3   : > { %v1998_v17 = vpop.permute.xlu0 %1997 }
 0x2c4   : > { %v9767_v16 = vpop.permute.xlu1 %1999 }
 0x2c5   : > { %v9771_v6 = vsel %vm1297_vm6, %v1998_v17, %v9767_v16 }
 0x2c6   : > { %2095 = vst [vmem:[#allocation2 + $0x38] sm:$0xff] %v9771_v6 }
 0x2c7   : > { %3407 = vst.msk [vmem:[#allocation2 + $0x38] sm:$0xff] %vm1187_vm12, %v12958_v11  ;;  %v2012_v63 = vpop.permute.xlu0 %2011 }
 0x2c8   : > { %v2014_v24 = vpop.permute.xlu1 %2013  ;;  %2102 = vst.msk [vmem:[#allocation2 + $0x70] sm:$0x3] %vm12871_vm15, %v2012_v63  ;;  %vm12873_vm15 = vcmask 1048064  }
 0x2c9   : > { %v2049_v18 = vsel %vm1297_vm6, %v2012_v63, %v2014_v24 }
 0x2ca   : > { %2103 = vst [vmem:[#allocation2 + $0x78] sm:$0x3] %v2049_v18 }
 0x2cb   : > { %v2024_v21 = vpop.permute.xlu0 %2023 }
 0x2cc   : > { %v9778_v53 = vpop.permute.xlu1 %2025 }
 0x2cd   : > { %v2055_v23 = vsel %vm1297_vm6, %v2024_v21, %v9778_v53 }
 0x2ce   : > { %2109 = vst [vmem:[#allocation2 + $0xa8] sm:$0x3] %v2055_v23 }
 0x2cf   : > { %v9782_v39 = vld [vmem:[#allocation2 + $0x70] sm:$0x3] }
 0x2d0   : > { %v1990_v29 = vpop.permute.xlu1 %1989  ;;  %v2322_v20 = vrot.slane %v9782_v39, 4  ;;  %v2181_v25 = vrot.slane %v9782_v39, 6 }
 0x2d1   : > { %v9786_v22 = vsel %vm1297_vm6, %v1988_v15, %v1990_v29  ;;  %v9817_v0 = vld [vmem:[#allocation2 + $0x78] sm:$0x3] }
 0x2d2   : > { %v2311_v14 = vrot.slane %v9786_v22, 4  ;;  %v2323_v54 = vsel %vm1483_vm14, %v2309_v59, %v2322_v20  ;;  %v2170_v26 = vrot.slane %v9786_v22, 6  ;;  %v2324_v48 = vrot.slane %v9817_v0, 4 }
 0x2d3   : > { %v2183_v13 = vrot.slane %v9817_v0, 6 }
 0x2d4   : > { %v1992_v19 = vpop.permute.xlu1 %1991  ;;  %v7916_v56 = vpack.i.bf16 %v2323_v54, %v2311_v14  ;;  %v7911_v50 = vpack.i.bf16 %v2170_v26, %v2169_v35  ;;  %v2325_v7 = vsel %vm1483_vm14, %v2310_v36, %v2324_v48 }
 0x2d5   : > { %v9792_v62 = vld [vmem:[#allocation2 + $0xa8] sm:$0x3]  ;;  %v9795_v46 = vsel %vm1297_vm6, %v1990_v29, %v1992_v19  ;;  %v2006_v45 = vpop.permute.xlu0 %2005  ;;  %v2184_v33 = vsel %vm1455_vm9, %v2169_v35, %v2183_v13 }
 0x2d6   : > { %3411 = vst.msk [vmem:[#allocation2 + $0xa8] sm:$0x3] %vm12866_vm11, %v12958_v11  ;;  %7917 = vrot.lane.b32.xlu0 %v7916_v56, %s12898_s8  ;;  %7912 = vrot.lane.b32.xlu1 %v7911_v50, %s12896_s27  ;;  %v2171_v60 = vrot.slane %v9795_v46, 6  ;;  %v2312_v42 = vrot.slane %v9795_v46, 4  ;;  %vm3408_vm11 = vcmask 1042176  }
 0x2d8   : > { %v9803_v2 = vpop.permute.xlu1 %2007  ;;  %v7921_v44 = vpack.i.bf16 %v2171_v60, %v2168_v5 }
 0x2d9   : > { %v9809_v30 = vsel %vm1297_vm6, %v2006_v45, %v9803_v2  ;;  %v2016_v55 = vpop.permute.xlu0 %2015 }
 0x2da   : > { %2099 = vst [vmem:[#allocation2 + $0x58] sm:$0xff] %v9809_v30  ;;  %v2050_v51 = vsel %vm1297_vm6, %v2014_v24, %v2016_v55  ;;  %7922 = vrot.lane.b32.xlu0 %v7921_v44, %s12896_s27  ;;  %v2182_v24 = vsel %vm1455_vm9, %v2168_v5, %v2181_v25 }
 0x2db   : > { %2104 = vst [vmem:[#allocation2 + $0x80] sm:$0x3] %v2050_v51 }
 0x2dc   : > { %v2018_v40 = vpop.permute.xlu1 %2017 }
 0x2dd   : > { %v2051_v58 = vsel %vm1297_vm6, %v2016_v55, %v2018_v40  ;;  %v9815_v32 = vpop.permute.xlu0 %2031 }
 0x2de   : > { %2105 = vst [vmem:[#allocation2 + $0x88] sm:$0x3] %v2051_v58 }
 0x2e0   : > { %v1996_v52 = vpop.permute.xlu1 %1995 }
 0x2e1   : > { %v9822_v47 = vsel %vm1297_vm6, %v1996_v52, %v1998_v17  ;;  %v1994_v41 = vpop.permute.xlu0 %1993 }
 0x2e2   : > { %2094 = vst [vmem:[#allocation2 + $0x30] sm:$0xff] %v9822_v47  ;;  %v9826_v8 = vsel %vm1297_vm6, %v1992_v19, %v1994_v41  ;;  %v9828_v27 = vld [vmem:[#allocation2 + $0x80] sm:$0x3]  ;;  %v9834_v12 = vsel %vm1297_vm6, %v1994_v41, %v1996_v52  ;;  %v2315_v52 = vrot.slane %v9822_v47, 4 }
 0x2e3   : > { %v2326_v57 = vrot.slane %v9828_v27, 4  ;;  %v2185_v28 = vrot.slane %v9828_v27, 6  ;;  %v2172_v43 = vrot.slane %v9826_v8, 6  ;;  %v2313_v9 = vrot.slane %v9826_v8, 4 }
 0x2e4   : > { %v2022_v38 = vpop.permute.xlu1 %2021  ;;  %v2173_v18 = vrot.slane %v9834_v12, 6  ;;  %v2314_v55 = vrot.slane %v9834_v12, 4 }
 0x2e5   : > { %v2054_v1 = vsel %vm1297_vm6, %v2022_v38, %v2024_v21  ;;  %v2020_v10 = vpop.permute.xlu0 %2019  ;;  %v2327_v49 = vsel %vm1483_vm14, %v2311_v14, %v2326_v57  ;;  %v2186_v31 = vsel %vm1455_vm9, %v2170_v26, %v2185_v28  ;;  %v7936_v29 = vpack.i.bf16 %v2182_v24, %v2172_v43  ;;  %v9863_v14 = vld [vmem:[#allocation2 + $0x88] sm:$0x3] }
 0x2e6   : > { %2108 = vst [vmem:[#allocation2 + $0xa0] sm:$0x3] %v2054_v1  ;;  %v2052_v3 = vsel %vm1297_vm6, %v2018_v40, %v2020_v10  ;;  %v2053_v61 = vsel %vm1297_vm6, %v2020_v10, %v2022_v38  ;;  %v7931_v15 = vpack.i.bf16 %v2327_v49, %v2325_v7  ;;  %v7926_v36 = vpack.i.bf16 %v2186_v31, %v2184_v33 }
 0x2e7   : > { %2106 = vst [vmem:[#allocation2 + $0x90] sm:$0x3] %v2052_v3  ;;  %2107 = vst [vmem:[#allocation2 + $0x98] sm:$0x3] %v2053_v61  ;;  %v7941_v20 = vpack.i.bf16 %v2313_v9, %v2312_v42  ;;  %v2187_v56 = vrot.slane %v9863_v14, 6  ;;  %v2328_v28 = vrot.slane %v9863_v14, 4  ;;  %v7951_v7 = vpack.i.bf16 %v2315_v52, %v2314_v55 }
 0x2e8   : > { %v2004_v59 = vpop.permute.xlu1 %2003  ;;  %7932 = vrot.lane.b32.xlu1 %v7931_v15, %s12898_s8  ;;  %7927 = vrot.lane.b32.xlu0 %v7926_v36, %s12896_s27  ;;  %v2316_v36 = vrot.slane %v9771_v6, 4 }
 0x2e9   : > { %v9851_v17 = vsel %vm1297_vm6, %v2004_v59, %v2006_v45  ;;  %v2002_v63 = vpop.permute.xlu0 %2001  ;;  %v2188_v41 = vsel %vm1455_vm9, %v2171_v60, %v2187_v56  ;;  %v2175_v60 = vrot.slane %v9771_v6, 6 }
 0x2ea   : > { %2098 = vst [vmem:[#allocation2 + $0x50] sm:$0xff] %v9851_v17  ;;  %v9858_v21 = vsel %vm1297_vm6, %v9767_v16, %v2002_v63  ;;  %v9861_v23 = vsel %vm1297_vm6, %v2002_v63, %v2004_v59  ;;  %v2174_v16 = vrot.slane %v9822_v47, 6 }
 0x2eb   : > { %2096 = vst [vmem:[#allocation2 + $0x40] sm:$0xff] %v9858_v21  ;;  %2097 = vst [vmem:[#allocation2 + $0x48] sm:$0xff] %v9861_v23  ;;  %v2176_v33 = vrot.slane %v9858_v21, 6 }
 0x2ec   : > { %v2030_v54 = vpop.permute.xlu1 %2029  ;;  %7937 = vrot.lane.b32.xlu1 %v7936_v29, %s12896_s27  ;;  %7942 = vrot.lane.b32.xlu0 %v7941_v20, %s12898_s8  ;;  %v7946_v5 = vpack.i.bf16 %v2174_v16, %v2173_v18  ;;  %v2177_v20 = vrot.slane %v9861_v23, 6 }
 0x2ed   : > { %v9870_v35 = vld [vmem:[#allocation2 + $0xa0] sm:$0x3]  ;;  %v2058_v26 = vsel %vm1297_vm6, %v2030_v54, %v9815_v32  ;;  %v2028_v19 = vpop.permute.xlu0 %2027  ;;  %v7976_v3 = vpack.i.bf16 %v2176_v33, %v2175_v60 }
 0x2ee   : > { %3409 = vst.msk [vmem:[#allocation2 + $0xa0] sm:$0x3] %vm3408_vm11, %v12958_v11  ;;  %2112 = vst [vmem:[#allocation2 + $0xc0] sm:$0x3] %v2058_v26  ;;  %v2056_v50 = vsel %vm1297_vm6, %v9778_v53, %v2028_v19  ;;  %v2057_v45 = vsel %vm1297_vm6, %v2028_v19, %v2030_v54  ;;  %v9879_v44 = vld [vmem:[#allocation2 + $0x90] sm:$0x3] }
 0x2ef   : > { %2110 = vst [vmem:[#allocation2 + $0xb0] sm:$0x3] %v2056_v50  ;;  %2111 = vst [vmem:[#allocation2 + $0xb8] sm:$0x3] %v2057_v45  ;;  %v2189_v51 = vrot.slane %v9879_v44, 6  ;;  %v2330_v40 = vrot.slane %v9879_v44, 4 }
 0x2f0   : > { %v2034_v58 = vpop.permute.xlu1 %2033  ;;  %7947 = vrot.lane.b32.xlu0 %v7946_v5, %s12896_s27  ;;  %v9886_v48 = vld [vmem:[#allocation2 + $0x98] sm:$0x3]  ;;  %vm12867_vm11 = vcmask 648192   ;;  %v2193_v10 = vrot.slane %v9870_v35, 6  ;;  %v2334_v63 = vrot.slane %v9870_v35, 4  ;;  %v2178_v26 = vrot.slane %v9851_v17, 6 }
 0x2f1   : > { %v2059_v53 = vsel %vm1297_vm6, %v9815_v32, %v2034_v58  ;;  %v2010_v13 = vpop.permute.xlu0 %2009  ;;  %v2190_v57 = vsel %vm1455_vm9, %v2172_v43, %v2189_v51  ;;  %v2331_v32 = vsel %vm1483_vm14, %v2313_v9, %v2330_v40  ;;  %v2191_v1 = vrot.slane %v9886_v48, 6 }
 0x2f2   : > { %2113 = vst [vmem:[#allocation2 + $0xc8] sm:$0x3] %v2059_v53  ;;  %v2048_v25 = vsel %vm1297_vm6, %v9803_v2, %v2010_v13  ;;  %v7956_v38 = vpack.i.bf16 %v2190_v57, %v2188_v41  ;;  %v2329_v2 = vsel %vm1483_vm14, %v2312_v42, %v2328_v28  ;;  %v2317_v9 = vrot.slane %v9858_v21, 4 }
 0x2f3   : > { %2100 = vst.msk [vmem:[#allocation2 + $0x60] sm:$0xff] %vm1057_vm10, %v2048_v25  ;;  %v7961_v31 = vpack.i.bf16 %v2331_v32, %v2329_v2  ;;  %v2192_v61 = vsel %vm1455_vm9, %v2173_v18, %v2191_v1  ;;  %v2332_v15 = vrot.slane %v9886_v48, 4  ;;  %v2194_v42 = vsel %vm1455_vm9, %v2174_v16, %v2193_v10 }
 0x2f4   : > { %7957 = vrot.lane.b32.xlu1 %v7956_v38, %s12896_s27  ;;  %7952 = vrot.lane.b32.xlu0 %v7951_v7, %s12898_s8  ;;  %v7966_v24 = vpack.i.bf16 %v2194_v42, %v2192_v61  ;;  %v7981_v29 = vpack.i.bf16 %v2317_v9, %v2316_v36  ;;  %v2335_v19 = vsel %vm1483_vm14, %v2315_v52, %v2334_v63  ;;  %v2195_v16 = vrot.slane %v9792_v62, 6 }
 0x2f5   : > { %v2036_v43 = vpop.permute.xlu0 %2035  ;;  %v2333_v18 = vsel %vm1483_vm14, %v2314_v55, %v2332_v15  ;;  %v7986_v50 = vpack.i.bf16 %v2178_v26, %v2177_v20  ;;  %v2318_v45 = vrot.slane %v9861_v23, 4  ;;  %v2319_v40 = vrot.slane %v9851_v17, 4  ;;  %v9941_v25 = vld [vmem:[#allocation2 + $0xc0] sm:$0x3] }
 0x2f6   : > { %v2060_v49 = vsel %vm1297_vm6, %v2034_v58, %v2036_v43  ;;  %v9914_v59 = vld [vmem:[#allocation2 + $0xb0] sm:$0x3]  ;;  %v7971_v56 = vpack.i.bf16 %v2335_v19, %v2333_v18  ;;  %v9934_v58 = vld [vmem:[#allocation2 + $0xb8] sm:$0x3]  ;;  %v2196_v53 = vsel %vm1455_vm9, %v2175_v60, %v2195_v16  ;;  %v2336_v13 = vrot.slane %v9792_v62, 4 }
 0x2f7   : > { %2115 = vst.msk [vmem:[#allocation2 + $0xd0] sm:$0x3] %vm12867_vm11, %v2060_v49  ;;  %v2197_v54 = vrot.slane %v9914_v59, 6  ;;  %v2338_v55 = vrot.slane %v9914_v59, 4  ;;  %v7991_v57 = vpack.i.bf16 %v2319_v40, %v2318_v45  ;;  %v2179_v1 = vrot.slane %v9809_v30, 6 }
 0x2f8   : > { %7962 = vrot.lane.b32.xlu1 %v7961_v31, %s12898_s8  ;;  %7977 = vrot.lane.b32.xlu0 %v7976_v3, %s12896_s27  ;;  %v2337_v60 = vsel %vm1483_vm14, %v2316_v36, %v2336_v13  ;;  %v2201_v43 = vrot.slane %v9941_v25, 6  ;;  %v2342_v15 = vrot.slane %v9941_v25, 4  ;;  %vm12868_vm11 = vcmask 244736  }
 0x2f9   : > { %v2198_v5 = vsel %vm1455_vm9, %v2176_v33, %v2197_v54  ;;  %v9943_v38 = vld [vmem:[#allocation2 + $0xc8] sm:$0x3]  ;;  %v2339_v7 = vsel %vm1483_vm14, %v2317_v9, %v2338_v55  ;;  %v2199_v33 = vrot.slane %v9934_v58, 6  ;;  %v2340_v9 = vrot.slane %v9934_v58, 4  ;;  %v2504_v55 = vld [vmem:[%s12960_s26] sm:$0xff] }
 0x2fa   : > { %v9929_v51 = vld [vmem:[#allocation2 + $0x60] sm:$0xff]  ;;  %v7996_v41 = vpack.i.bf16 %v2198_v5, %v2196_v53  ;;  %v2203_v2 = vrot.slane %v9943_v38, 6  ;;  %v8001_v10 = vpack.i.bf16 %v2339_v7, %v2337_v60  ;;  %v2202_v36 = vsel %vm1455_vm9, %v2178_v26, %v2201_v43 }
 0x2fb   : > { %v2180_v28 = vrot.slane %v9929_v51, 6  ;;  %v2200_v31 = vsel %vm1455_vm9, %v2177_v20, %v2199_v33  ;;  %v2321_v63 = vrot.slane %v9929_v51, 4  ;;  %v2341_v18 = vsel %vm1483_vm14, %v2318_v45, %v2340_v9  ;;  %v2505_v45 = vld [vmem:[%s12960_s26 + $0x8] sm:$0x3] }
 0x2fc   : > { %7967 = vrot.lane.b32.xlu1 %v7966_v24, %s12896_s27  ;;  %7982 = vrot.lane.b32.xlu0 %v7981_v29, %s12898_s8  ;;  %v2204_v42 = vsel %vm1455_vm9, %v2179_v1, %v2203_v2  ;;  %v2344_v24 = vrot.slane %v9943_v38, 4  ;;  %v8006_v29 = vpack.i.bf16 %v2202_v36, %v2200_v31  ;;  %v2320_v54 = vrot.slane %v9809_v30, 4 }
 0x2fd   : > { %v8016_v49 = vpack.i.bf16 %v2180_v28, %v2179_v1  ;;  %v2343_v26 = vsel %vm1483_vm14, %v2319_v40, %v2342_v15 }
 0x2fe   : > { %v9936_v52 = vld [vmem:[#allocation2 + $0xd0] sm:$0x3]  ;;  %v2345_v16 = vsel %vm1483_vm14, %v2320_v54, %v2344_v24  ;;  %v8021_v5 = vpack.i.bf16 %v2321_v63, %v2320_v54 }
 0x2ff   : > { %v2205_v32 = vrot.slane %v9936_v52, 6  ;;  %v2346_v61 = vrot.slane %v9936_v52, 4 }
 0x300   : > { %7972 = vrot.lane.b32.xlu1 %v7971_v56, %s12898_s8  ;;  %7987 = vrot.lane.b32.xlu0 %v7986_v50, %s12896_s27  ;;  %v8011_v56 = vpack.i.bf16 %v2343_v26, %v2341_v18 }
 0x301   : > { %v2206_v3 = vsel %vm1455_vm9, %v2180_v28, %v2205_v32  ;;  %v2347_v19 = vsel %vm1483_vm14, %v2321_v63, %v2346_v61 }
 0x302   : > { %v8026_v20 = vpack.i.bf16 %v2206_v3, %v2204_v42  ;;  %v8031_v50 = vpack.i.bf16 %v2347_v19, %v2345_v16 }
 0x304   : > { %7997 = vrot.lane.b32.xlu1 %v7996_v41, %s12896_s27  ;;  %7992 = vrot.lane.b32.xlu0 %v7991_v57, %s12898_s8 }
 0x308   : > { %8002 = vrot.lane.b32.xlu1 %v8001_v10, %s12898_s8  ;;  %8017 = vrot.lane.b32.xlu0 %v8016_v49, %s12896_s27 }
 0x30c   : > { %8007 = vrot.lane.b32.xlu1 %v8006_v29, %s12896_s27  ;;  %8027 = vrot.lane.b32.xlu0 %v8026_v20, %s12896_s27 }
 0x310   : > { %8012 = vrot.lane.b32.xlu1 %v8011_v56, %s12898_s8  ;;  %8032 = vrot.lane.b32.xlu0 %v8031_v50, %s12898_s8 }
 0x314   : > { %8022 = vrot.lane.b32.xlu1 %v8021_v5, %s12898_s8  ;;  %2513 = vperm.xlu0 %7904, %v2505_v45  }
 0x318   : > { %2508 = vperm.xlu1 %7905, %v2504_v55  }
 0x326   : > { %v7908_v40 = vpop.permute.xlu1 %7907 }
 0x327   : > { %v7910_v49 = vunpack.i.h.bf16 %v7908_v40  ;;  %v7909_v36 = vunpack.i.l.bf16 %v7908_v40 }
 0x329   : > { %v2400_v16 = vsel %vm1005_vm8, %v7909_v36, %v7910_v49 }
 0x348   : > { %v9981_v53 = vpop.permute.xlu0 %7917  ;;  %v7913_v13 = vpop.permute.xlu1 %7912 }
 0x349   : > { %v7915_v41 = vunpack.i.h.bf16 %v7913_v13  ;;  %v7914_v57 = vunpack.i.l.bf16 %v7913_v13  ;;  %v7919_v10 = vunpack.i.l.bf16 %v9981_v53  ;;  %v7920_v19 = vunpack.i.h.bf16 %v9981_v53 }
 0x34b   : > { %v2260_v28 = vsel %vm953_vm7, %v7914_v57, %v7915_v41  ;;  %v2401_v42 = vsel %vm1005_vm8, %v7910_v49, %v7919_v10 }
 0x34c   : > { %v7923_v7 = vpop.permute.xlu0 %7922  ;;  %v2451_v33 = vsel %vm1455_vm9, %v9817_v0, %v2260_v28 }
 0x34d   : > { %v7924_v32 = vunpack.i.l.bf16 %v7923_v7  ;;  %v2477_v1 = vpack.c.bf16 %v2451_v33, %v9756_v34  ;;  %v7925_v31 = vunpack.i.h.bf16 %v7923_v7 }
 0x34f   : > { %v2259_v60 = vsel %vm953_vm7, %v7924_v32, %v7914_v57  ;;  %2564 = vmatprep.subr.bf16.mxu1 %v2477_v1  ;;  %v2261_v63 = vsel %vm953_vm7, %v7915_v41, %v7925_v31 }
 0x350   : > { %v2450_v43 = vsel %vm1455_vm9, %v9782_v39, %v2259_v60  ;;  %v2452_v45 = vsel %vm1455_vm9, %v9828_v27, %v2261_v63 }
 0x351   : > { %v2476_v2 = vpack.c.bf16 %v2450_v43, %v9759_v4  ;;  %v2478_v7 = vpack.c.bf16 %v2452_v45, %v9786_v22 }
 0x353   : > { %2565 = vmatpush1.bf16.msra.mxu1 %v2476_v2 }
 0x35a   : > { %v7928_v3 = vpop.permute.xlu0 %7927  ;;  %v9992_v9 = vpop.permute.xlu1 %7932 }
 0x35b   : > { %v7930_v0 = vunpack.i.h.bf16 %v7928_v3  ;;  %v7929_v61 = vunpack.i.l.bf16 %v7928_v3  ;;  %v7935_v34 = vunpack.i.h.bf16 %v9992_v9  ;;  %v7934_v15 = vunpack.i.l.bf16 %v9992_v9 }
 0x35d   : > { %v2272_v39 = vsel %vm953_vm7, %v7929_v61, %v7930_v0  ;;  %v2413_v4 = vsel %vm1005_vm8, %v7934_v15, %v7935_v34  ;;  %v2412_v40 = vsel %vm1005_vm8, %v7920_v19, %v7934_v15 }
 0x35e   : > { %v10002_v24 = vpop.permute.xlu0 %7942  ;;  %v7938_v29 = vpop.permute.xlu1 %7937  ;;  %v2464_v20 = vsel %vm1483_vm14, %v2272_v39, %v2401_v42 }
 0x35f   : > { %v7940_v18 = vunpack.i.h.bf16 %v7938_v29  ;;  %v7939_v54 = vunpack.i.l.bf16 %v7938_v29  ;;  %v2490_v26 = vpack.c.bf16 %v2413_v4, %v2464_v20  ;;  %v7945_v1 = vunpack.i.h.bf16 %v10002_v24 }
 0x361   : > { %v2271_v56 = vsel %vm953_vm7, %v7940_v18, %v7929_v61  ;;  %v2262_v50 = vsel %vm953_vm7, %v7925_v31, %v7939_v54  ;;  %7416 = vmatprep.subr.msk.bf16.mxu1 %vm12869_vm1, %v2490_v26 }
 0x362   : > { %v7948_v5 = vpop.permute.xlu0 %7947  ;;  %v2453_v55 = vsel %vm1455_vm9, %v9863_v14, %v2262_v50  ;;  %v2463_v53 = vsel %vm1483_vm14, %v2271_v56, %v2400_v16  ;;  %v10023_v14 = vld [vmem:[%s12961_s0] sm:$0x1f]   ;;  %s10483_s0 = scalar_lea.vmem %s12838_s21, %s7640_s6  ;;  %s12986_s6 = sld [smem:[#allocation23_spill]] }
 0x363   : > { %v7950_v13 = vunpack.i.h.bf16 %v7948_v5  ;;  %v7949_v41 = vunpack.i.l.bf16 %v7948_v5  ;;  %v2479_v57 = vpack.c.bf16 %v2453_v55, %v9795_v46  ;;  %v2489_v28 = vpack.c.bf16 %v2412_v40, %v2463_v53 }
 0x364   : > { %v7944_v46 = vunpack.i.l.bf16 %v10002_v24 }
 0x365   : > { %v2263_v33 = vsel %vm953_vm7, %v7939_v54, %v7949_v41  ;;  %2607 = vmatprep.subr.bf16.mxu0 %v2479_v57  ;;  %v2526_v27 = vsel %vm12869_vm1, %v2489_v28, 0  ;;  %v2264_v32 = vsel %vm953_vm7, %v7949_v41, %v7950_v13 }
 0x366   : > { %v7958_v60 = vpop.permute.xlu1 %7957  ;;  %v10028_v43 = vpop.permute.xlu0 %7952  ;;  %2567 = vmatpush1.bf16.msra.mxu1 %v2526_v27  ;;  %2608 = vmatpush1.bf16.msra.mxu0 %v2478_v7  ;;  %v2455_v22 = vsel %vm1455_vm9, %v9886_v48, %v2264_v32  ;;  %v2454_v2 = vsel %vm1455_vm9, %v9879_v44, %v2263_v33  ;;  %v2402_v42 = vsel %vm1005_vm8, %v7919_v10, %v7944_v46 }
 0x367   : > { %v7960_v49 = vunpack.i.h.bf16 %v7958_v60  ;;  %v7959_v31 = vunpack.i.l.bf16 %v7958_v60  ;;  %v2481_v3 = vpack.c.bf16 %v2455_v22, %v9834_v12  ;;  %v2480_v61 = vpack.c.bf16 %v2454_v2, %v9826_v8 }
 0x368   : > { %v2403_v48 = vsel %vm1005_vm8, %v7944_v46, %v7945_v1  ;;  %v7954_v19 = vunpack.i.l.bf16 %v10028_v43 }
 0x369   : > { %v2273_v15 = vsel %vm953_vm7, %v7930_v0, %v7959_v31  ;;  %v2274_v36 = vsel %vm953_vm7, %v7959_v31, %v7960_v49  ;;  %7417 = vmatmul.mubr.msk.bf16.vlgmr.msra.gmra.mrb[8].mxu1 %vm12868_vm11, %v10023_v14  ;;  %2650 = vmatprep.subr.bf16.mxu1 %v2481_v3  ;;  %v7955_v0 = vunpack.i.h.bf16 %v10028_v43 }
 0x36a   : > { %v7963_v39 = vpop.permute.xlu1 %7962  ;;  %v7978_v44 = vpop.permute.xlu0 %7977  ;;  %2682 = vmatprep.mubr.bf16.mxu1 %v12943_v37  ;;  %2651 = vmatpush1.bf16.msra.mxu1 %v2480_v61  ;;  %v2466_v24 = vsel %vm1483_vm14, %v2274_v36, %v2403_v48  ;;  %v2465_v29 = vsel %vm1483_vm14, %v2273_v15, %v2402_v42  ;;  %v2404_v41 = vsel %vm1005_vm8, %v7945_v1, %v7954_v19 }
 0x36b   : > { %v7965_v4 = vunpack.i.h.bf16 %v7963_v39  ;;  %v7964_v12 = vunpack.i.l.bf16 %v7963_v39  ;;  %v7980_v63 = vunpack.i.h.bf16 %v7978_v44  ;;  %v7979_v8 = vunpack.i.l.bf16 %v7978_v44 }
 0x36d   : > { %v2415_v10 = vsel %vm1005_vm8, %v7964_v12, %v7965_v4  ;;  %v2265_v20 = vsel %vm953_vm7, %v7950_v13, %v7979_v8  ;;  %v2414_v18 = vsel %vm1005_vm8, %v7935_v34, %v7964_v12  ;;  %v2266_v54 = vsel %vm953_vm7, %v7979_v8, %v7980_v63 }
 0x36e   : > { %v7968_v26 = vpop.permute.xlu1 %7967  ;;  %v2492_v16 = vpack.c.bf16 %v2415_v10, %v2466_v24  ;;  %v10053_v56 = vpop.permute.xlu0 %7982  ;;  %v2491_v50 = vpack.c.bf16 %v2414_v18, %v2465_v29  ;;  %v2457_v45 = vsel %vm1455_vm9, %v9792_v62, %v2266_v54  ;;  %v2456_v40 = vsel %vm1455_vm9, %v9870_v35, %v2265_v20 }
 0x36f   : > { %v7970_v5 = vunpack.i.h.bf16 %v7968_v26  ;;  %v7969_v55 = vunpack.i.l.bf16 %v7968_v26  ;;  %v2483_v34 = vpack.c.bf16 %v2457_v45, %v9771_v6  ;;  %v2405_v62 = vsel %vm1005_vm8, %v7954_v19, %v7955_v0 }
 0x370   : > { %7418 = vmatprep.subr.msk.bf16.mxu0 %vm12869_vm1, %v2492_v16  ;;  %v2532_v9 = vsel %vm12869_vm1, %v2491_v50, 0  ;;  %v2482_v28 = vpack.c.bf16 %v2456_v40, %v9822_v47  ;;  %v7985_v32 = vunpack.i.h.bf16 %v10053_v56 }
 0x371   : > { %v2275_v53 = vsel %vm953_vm7, %v7960_v49, %v7969_v55  ;;  %v2276_v13 = vsel %vm953_vm7, %v7969_v55, %v7970_v5  ;;  %2610 = vmatpush1.bf16.msra.mxu0 %v2532_v9  ;;  %v7984_v49 = vunpack.i.l.bf16 %v10053_v56 }
 0x372   : > { %v7973_v57 = vpop.permute.xlu1 %7972  ;;  %2693 = vmatprep.subr.bf16.mxu0 %v2483_v34  ;;  %v7988_v35 = vpop.permute.xlu0 %7987  ;;  %v2468_v1 = vsel %vm1483_vm14, %v2276_v13, %v2405_v62  ;;  %v2467_v46 = vsel %vm1483_vm14, %v2275_v53, %v2404_v41 }
 0x373   : > { %v7975_v7 = vunpack.i.h.bf16 %v7973_v57  ;;  %v7974_v33 = vunpack.i.l.bf16 %v7973_v57  ;;  %v7990_v27 = vunpack.i.h.bf16 %v7988_v35  ;;  %v7989_v6 = vunpack.i.l.bf16 %v7988_v35 }
 0x374   : > { %7419 = vmatmul.mubr.msk.bf16.vlgmr.msra.gmra.mrb[20].mxu0 %vm12868_vm11, %v10023_v14 }
 0x375   : > { %v2417_v60 = vsel %vm1005_vm8, %v7974_v33, %v7975_v7  ;;  %v2267_v22 = vsel %vm953_vm7, %v7980_v63, %v7989_v6  ;;  %2694 = vmatpush1.bf16.msra.mxu0 %v2482_v28  ;;  %v2416_v47 = vsel %vm1005_vm8, %v7965_v4, %v7974_v33  ;;  %v2268_v2 = vsel %vm953_vm7, %v7989_v6, %v7990_v27 }
 0x376   : > { %v7998_v31 = vpop.permute.xlu1 %7997  ;;  %v2494_v3 = vpack.c.bf16 %v2417_v60, %v2468_v1  ;;  %v10079_v61 = vpop.permute.xlu0 %7992  ;;  %v2493_v15 = vpack.c.bf16 %v2416_v47, %v2467_v46  ;;  %v2459_v36 = vsel %vm1455_vm9, %v9934_v58, %v2268_v2  ;;  %2725 = vmatprep.mubr.bf16.mxu0 %v12943_v37  ;;  %v2458_v39 = vsel %vm1455_vm9, %v9914_v59, %v2267_v22 }
 0x377   : > { %v8000_v42 = vunpack.i.h.bf16 %v7998_v31  ;;  %v7999_v48 = vunpack.i.l.bf16 %v7998_v31  ;;  %v2485_v4 = vpack.c.bf16 %v2459_v36, %v9861_v23  ;;  %v2407_v58 = vsel %vm1005_vm8, %v7984_v49, %v7985_v32 }
 0x378   : > { %7420 = vmatprep.subr.msk.bf16.mxu1 %vm12869_vm1, %v2494_v3  ;;  %v2538_v44 = vsel %vm12869_vm1, %v2493_v15, 0  ;;  %v2484_v59 = vpack.c.bf16 %v2458_v39, %v9858_v21  ;;  %v2406_v23 = vsel %vm1005_vm8, %v7955_v0, %v7984_v49  ;;  %v7995_v55 = vunpack.i.h.bf16 %v10079_v61 }
 0x379   : > { %v2278_v12 = vsel %vm953_vm7, %v7999_v48, %v8000_v42  ;;  %2653 = vmatpush1.bf16.msra.mxu1 %v2538_v44  ;;  %v2277_v63 = vsel %vm953_vm7, %v7970_v5, %v7999_v48  ;;  %v7994_v34 = vunpack.i.l.bf16 %v10079_v61 }
 0x37a   : > { %v8003_v8 = vpop.permute.xlu1 %8002  ;;  %2736 = vmatprep.subr.bf16.mxu1 %v2485_v4  ;;  %v8018_v24 = vpop.permute.xlu0 %8017  ;;  %v2470_v54 = vsel %vm1483_vm14, %v2278_v12, %v2407_v58  ;;  %v2469_v16 = vsel %vm1483_vm14, %v2277_v63, %v2406_v23 }
 0x37b   : > { %v8005_v29 = vunpack.i.h.bf16 %v8003_v8  ;;  %v8004_v10 = vunpack.i.l.bf16 %v8003_v8  ;;  %v8020_v20 = vunpack.i.h.bf16 %v8018_v24  ;;  %v8019_v18 = vunpack.i.l.bf16 %v8018_v24 }
 0x37c   : > { %7421 = vmatmul.mubr.msk.bf16.vlgmr.msra.gmra.mrb[12].mxu1 %vm12868_vm11, %v10023_v14  ;;  %v2409_v1 = vsel %vm1005_vm8, %v7994_v34, %v7995_v55 }
 0x37d   : > { %v2419_v19 = vsel %vm1005_vm8, %v8004_v10, %v8005_v29  ;;  %v2269_v26 = vsel %vm953_vm7, %v7990_v27, %v8019_v18  ;;  %2737 = vmatpush1.bf16.msra.mxu1 %v2484_v59  ;;  %v2418_v21 = vsel %vm1005_vm8, %v7975_v7, %v8004_v10  ;;  %v2270_v0 = vsel %vm953_vm7, %v8019_v18, %v8020_v20 }
 0x37e   : > { %v8008_v50 = vpop.permute.xlu1 %8007  ;;  %v2496_v45 = vpack.c.bf16 %v2419_v19, %v2470_v54  ;;  %v8028_v5 = vpop.permute.xlu0 %8027  ;;  %v2495_v43 = vpack.c.bf16 %v2418_v21, %v2469_v16  ;;  %2768 = vmatprep.mubr.bf16.mxu1 %v12943_v37  ;;  %v2461_v13 = vsel %vm1455_vm9, %v9943_v38, %v2270_v0  ;;  %v2460_v41 = vsel %vm1455_vm9, %v9941_v25, %v2269_v26 }
 0x37f   : > { %v8010_v40 = vunpack.i.h.bf16 %v8008_v50  ;;  %v8009_v9 = vunpack.i.l.bf16 %v8008_v50  ;;  %v2487_v28 = vpack.c.bf16 %v2461_v13, %v9809_v30  ;;  %v2486_v6 = vpack.c.bf16 %v2460_v41, %v9851_v17 }
 0x380   : > { %7422 = vmatprep.subr.msk.bf16.mxu0 %vm12869_vm1, %v2496_v45  ;;  %v2544_v53 = vsel %vm12869_vm1, %v2495_v43, 0  ;;  %v2408_v38 = vsel %vm1005_vm8, %v7985_v32, %v7994_v34  ;;  %v8030_v25 = vunpack.i.h.bf16 %v8028_v5  ;;  %v8029_v46 = vunpack.i.l.bf16 %v8028_v5 }
 0x381   : > { %2696 = vmatpush1.bf16.msra.mxu0 %v2544_v53  ;;  %v2279_v62 = vsel %vm953_vm7, %v8000_v42, %v8009_v9  ;;  %v2280_v57 = vsel %vm953_vm7, %v8009_v9, %v8010_v40  ;;  %v2462_v61 = vsel %vm1455_vm9, %v9936_v52, %v8020_v20 }
 0x382   : > { %v8013_v35 = vpop.permute.xlu1 %8012  ;;  %v8033_v27 = vpop.permute.xlu0 %8032  ;;  %2779 = vmatprep.subr.bf16.mxu0 %v2487_v28  ;;  %v2472_v30 = vsel %vm1483_vm14, %v2280_v57, %v2409_v1  ;;  %v2471_v17 = vsel %vm1483_vm14, %v2279_v62, %v2408_v38  ;;  %v2281_v15 = vsel %vm953_vm7, %v8010_v40, %v8029_v46  ;;  %v2282_v42 = vsel %vm953_vm7, %v8029_v46, %v8030_v25 }
 0x383   : > { %v8015_v7 = vunpack.i.h.bf16 %v8013_v35  ;;  %v8014_v33 = vunpack.i.l.bf16 %v8013_v35  ;;  %v8035_v56 = vunpack.i.h.bf16 %v8033_v27  ;;  %v8034_v47 = vunpack.i.l.bf16 %v8033_v27 }
 0x384   : > { %7423 = vmatmul.mubr.msk.bf16.vlgmr.msra.gmra.mrb[24].mxu0 %vm12868_vm11, %v10023_v14  ;;  %v2488_v8 = vpack.c.bf16 %v2462_v61, %v9929_v51 }
 0x385   : > { %v2421_v60 = vsel %vm1005_vm8, %v8014_v33, %v8015_v7  ;;  %2780 = vmatpush1.bf16.msra.mxu0 %v2486_v6  ;;  %v2420_v22 = vsel %vm1005_vm8, %v8005_v29, %v8014_v33  ;;  %2811 = vmatprep.mubr.bf16.mxu0 %v12943_v37  ;;  %v2423_v4 = vsel %vm1005_vm8, %v8034_v47, %v8035_v56 }
 0x386   : > { %v8023_v32 = vpop.permute.xlu1 %8022  ;;  %v2498_v2 = vpack.c.bf16 %v2421_v60, %v2472_v30  ;;  %v2497_v49 = vpack.c.bf16 %v2420_v22, %v2471_v17  ;;  %v2422_v12 = vsel %vm1005_vm8, %v8015_v7, %v8034_v47 }
 0x387   : > { %v8025_v31 = vunpack.i.h.bf16 %v8023_v32  ;;  %v8024_v3 = vunpack.i.l.bf16 %v8023_v32 }
 0x388   : > { %7424 = vmatprep.subr.msk.bf16.mxu1 %vm12869_vm1, %v2498_v2  ;;  %v2550_v36 = vsel %vm12869_vm1, %v2497_v49, 0 }
 0x389   : > { %v2410_v48 = vsel %vm1005_vm8, %v7995_v55, %v8024_v3  ;;  %v2411_v39 = vsel %vm1005_vm8, %v8024_v3, %v8025_v31  ;;  %2739 = vmatpush1.bf16.msra.mxu1 %v2550_v36  ;;  %v2475_v44 = vsel %vm1483_vm14, %v8030_v25, %v8025_v31 }
 0x38a   : > { %7564 = vmatprep.subr.bf16.mxu1 %v12958_v11  ;;  %v2474_v52 = vsel %vm1483_vm14, %v2282_v42, %v2411_v39  ;;  %v2473_v58 = vsel %vm1483_vm14, %v2281_v15, %v2410_v48  ;;  %v2501_v59 = vpack.c.bf16 %v8035_v56, %v2475_v44 }
 0x38b   : > { %v2500_v63 = vpack.c.bf16 %v2423_v4, %v2474_v52  ;;  %v2499_v24 = vpack.c.bf16 %v2422_v12, %v2473_v58 }
 0x38c   : > { %7425 = vmatmul.mubr.msk.bf16.vlgmr.msra.gmra.mrb[16].mxu1 %vm12868_vm11, %v10023_v14  ;;  %v2562_v10 = vsel %vm12869_vm1, %v2501_v59, 0 }
 0x38d   : > { %7426 = vmatprep.subr.msk.bf16.mxu0 %vm12869_vm1, %v2500_v63  ;;  %7565 = vmatpush3.bf16.msra.mxu1 %v2488_v8  ;;  %v2556_v29 = vsel %vm12869_vm1, %v2499_v24, 0  ;;  %vm3405_vm1 = vcmask 1048320  }
 0x38e   : > { %2782 = vmatpush1.bf16.msra.mxu0 %v2556_v29  ;;  %7566 = vmatprep.subr.bf16.mxu1 %v12958_v11  ;;  %3406 = vst.msk [vmem:[#allocation2 + $0x30] sm:$0xff] %vm3405_vm1, %v12958_v11  ;;  %vm12892_vm1 = vcmask 254976  }
 0x38f   : > { %7568 = vmatprep.mubr.msk.bf16.mxu1 %vm8709_vm5, %v12958_v11 }
 0x391   : > { %7427 = vmatmul.mubr.msk.bf16.vlgmr.msra.gmra.mrb[28].mxu0 %vm12868_vm11, %v10023_v14  ;;  %7567 = vmatpush3.bf16.msra.mxu1 %v2562_v10 }
 0x392   : > { %4156 = vmatprep.mubr.bf16.mxu0 %v12943_v37 }
 0x393   : > { %v10167_v26 = vpop.permute.xlu0 %2513 }
 0x394   : > { %7569 = vmatmul.mubr.msk.bf16.vlgmr.msra.gmra.mrb[20].mxu1 %vm12868_vm11, %v10023_v14  ;;  %vm12870_vm11 = vcmask 517120  }
 0x395   : > { %4199 = vmatprep.mubr.bf16.mxu1 %v12943_v37  ;;  %3404 = vst.msk [vmem:[#allocation2 + $0x70] sm:$0x3] %vm12870_vm11, %v12958_v11  ;;  %vm12872_vm11 = vcmask 1041920  }
 0x397   : > { %v10159_v51 = vpop.permute.xlu1 %2508 }
 0x43c   : > { %v2598_v20 = vpop.f32.mrb[8].mxu1 }
 0x43d   : > { %v10162_v18 = vadd.f32 %v2598_v20, %v10159_v51  ;;  %v2600_v23 = vpop.f32.mrb[9].mxu1 }
 0x43e   : > { %v10165_v54 = vadd.f32 %v2600_v23, %v10159_v51  ;;  %v2602_v19 = vpop.f32.mrb[10].mxu1 }
 0x43f   : > { %v2604_v21 = vpop.f32.mrb[11].mxu1  ;;  %2889 = vrot.lane.b32.xlu1 %v10162_v18, %s12896_s27  ;;  %v10177_v16 = vadd.f32 %v2602_v19, %v10167_v26 }
 0x440   : > { %v10172_v14 = vadd.f32 %v2604_v21, %v10167_v26  ;;  %2891 = vrot.lane.b32.xlu0 %v10165_v54, %s12896_s27 }
 0x443   : > { %2917 = vrot.lane.b32.xlu1 %v10172_v14, %s12896_s27 }
 0x444   : > { %2915 = vrot.lane.b32.xlu0 %v10177_v16, %s12896_s27 }
 0x447   : > { %v2641_v50 = vpop.f32.mrb[20].mxu0 }
 0x448   : > { %v10184_v45 = vadd.f32 %v2641_v50, %v10159_v51  ;;  %v2643_v5 = vpop.f32.mrb[21].mxu0 }
 0x449   : > { %v10187_v43 = vadd.f32 %v2643_v5, %v10159_v51  ;;  %v2645_v0 = vpop.f32.mrb[22].mxu0 }
 0x44a   : > { %v2647_v55 = vpop.f32.mrb[23].mxu0  ;;  %2893 = vrot.lane.b32.xlu1 %v10184_v45, %s12896_s27  ;;  %v10207_v57 = vadd.f32 %v2645_v0, %v10167_v26 }
 0x44b   : > { %2895 = vrot.lane.b32.xlu0 %v10187_v43, %s12896_s27  ;;  %v10204_v62 = vadd.f32 %v2647_v55, %v10167_v26 }
 0x44f   : > { %v2684_v40 = vpop.f32.mrb[12].mxu1 }
 0x450   : > { %v10194_v9 = vadd.f32 %v2684_v40, %v10159_v51  ;;  %v2686_v34 = vpop.f32.mrb[13].mxu1 }
 0x451   : > { %v10197_v53 = vadd.f32 %v2686_v34, %v10159_v51  ;;  %v2688_v13 = vpop.f32.mrb[14].mxu1 }
 0x452   : > { %v2690_v41 = vpop.f32.mrb[15].mxu1  ;;  %2897 = vrot.lane.b32.xlu1 %v10194_v9, %s12896_s27  ;;  %v10217_v33 = vadd.f32 %v2688_v13, %v10167_v26 }
 0x453   : > { %2899 = vrot.lane.b32.xlu0 %v10197_v53, %s12896_s27  ;;  %v10214_v28 = vadd.f32 %v2690_v41, %v10167_v26 }
 0x456   : > { %2921 = vrot.lane.b32.xlu1 %v10204_v62, %s12896_s27 }
 0x457   : > { %v2727_v35 = vpop.f32.mrb[24].mxu0  ;;  %2919 = vrot.lane.b32.xlu0 %v10207_v57, %s12896_s27 }
 0x458   : > { %v2729_v7 = vpop.f32.mrb[25].mxu0  ;;  %v10224_v38 = vadd.f32 %v2727_v35, %v10159_v51 }
 0x459   : > { %v2731_v27 = vpop.f32.mrb[26].mxu0  ;;  %v10227_v1 = vadd.f32 %v2729_v7, %v10159_v51 }
 0x45a   : > { %v2733_v6 = vpop.f32.mrb[27].mxu0  ;;  %2925 = vrot.lane.b32.xlu1 %v10214_v28, %s12896_s27  ;;  %v10244_v56 = vadd.f32 %v2731_v27, %v10167_v26 }
 0x45b   : > { %2923 = vrot.lane.b32.xlu0 %v10217_v33, %s12896_s27  ;;  %v10254_v61 = vadd.f32 %v2733_v6, %v10167_v26 }
 0x45e   : > { %2901 = vrot.lane.b32.xlu1 %v10224_v38, %s12896_s27 }
 0x45f   : > { %v2770_v25 = vpop.f32.mrb[16].mxu1  ;;  %2903 = vrot.lane.b32.xlu0 %v10227_v1, %s12896_s27 }
 0x460   : > { %v10234_v46 = vadd.f32 %v2770_v25, %v10159_v51  ;;  %v2772_v60 = vpop.f32.mrb[17].mxu1 }
 0x461   : > { %v10237_v30 = vadd.f32 %v2772_v60, %v10159_v51  ;;  %v2774_v22 = vpop.f32.mrb[18].mxu1 }
 0x462   : > { %v2776_v17 = vpop.f32.mrb[19].mxu1  ;;  %2905 = vrot.lane.b32.xlu1 %v10234_v46, %s12896_s27  ;;  %v10247_v32 = vadd.f32 %v2774_v22, %v10167_v26 }
 0x463   : > { %2907 = vrot.lane.b32.xlu0 %v10237_v30, %s12896_s27  ;;  %v10264_v39 = vadd.f32 %v2776_v17, %v10167_v26 }
 0x464   : > { %v2813_v47 = vpop.f32.mrb[28].mxu0 }
 0x465   : > { %v2815_v2 = vpop.f32.mrb[29].mxu0  ;;  %v10257_v36 = vadd.f32 %v2813_v47, %v10159_v51 }
 0x466   : > { %v2817_v49 = vpop.f32.mrb[30].mxu0  ;;  %2927 = vrot.lane.b32.xlu1 %v10244_v56, %s12896_s27  ;;  %v10274_v4 = vadd.f32 %v2815_v2, %v10159_v51 }
 0x467   : > { %v2819_v31 = vpop.f32.mrb[31].mxu0  ;;  %v2856_v3 = vpop.f32.mrb[20].mxu1  ;;  %2931 = vrot.lane.b32.xlu0 %v10247_v32, %s12896_s27  ;;  %v10277_v52 = vadd.f32 %v2817_v49, %v10167_v26 }
 0x468   : > { %v7570_v15 = vpop.f32.mrb[21].mxu1  ;;  %v10267_v44 = vadd.f32 %v2856_v3, %v10159_v51  ;;  %v10284_v12 = vadd.f32 %v2819_v31, %v10167_v26 }
 0x469   : > { %v2859_v42 = vpop.f32.mrb[22].mxu1 }
 0x46a   : > { %2929 = vrot.lane.b32.xlu1 %v10254_v61, %s12896_s27  ;;  %v7571_v48 = vpop.f32.mrb[23].mxu1  ;;  %v10287_v58 = vadd.f32 %v2859_v42, %v10167_v26 }
 0x46b   : > { %2909 = vrot.lane.b32.xlu0 %v10257_v36, %s12896_s27 }
 0x46e   : > { %2933 = vrot.lane.b32.xlu1 %v10264_v39, %s12896_s27 }
 0x46f   : > { %2913 = vrot.lane.b32.xlu0 %v10267_v44, %s12896_s27 }
 0x472   : > { %2911 = vrot.lane.b32.xlu1 %v10274_v4, %s12896_s27 }
 0x473   : > { %2935 = vrot.lane.b32.xlu0 %v10277_v52, %s12896_s27 }
 0x476   : > { %2937 = vrot.lane.b32.xlu1 %v10284_v12, %s12896_s27 }
 0x477   : > { %2939 = vrot.lane.b32.xlu0 %v10287_v58, %s12896_s27 }
 0x4b1   : > { %v2890_v63 = vpop.permute.xlu1 %2889 }
 0x4b2   : > { %v2892_v8 = vpop.permute.xlu0 %2891 }
 0x4b3   : > { %v2941_v24 = vsel %vm953_vm7, %v2890_v63, %v2892_v8 }
 0x4b4   : > { %v10295_v59 = vmax.f32 %v10162_v18, %v2941_v24 }
 0x4b5   : > { %v2918_v29 = vpop.permute.xlu1 %2917 }
 0x4b6   : > { %v2916_v10 = vpop.permute.xlu0 %2915  ;;  %3025 = vrot.lane.b32.xlu0 %v10295_v59, %s12898_s8  ;;  %3019 = vrot.lane.b32.xlu1 %v10295_v59, %s12896_s27 }
 0x4b7   : > { %v2953_v51 = vsel %vm953_vm7, %v2916_v10, %v2918_v29 }
 0x4b8   : > { %v10303_v20 = vmax.f32 %v10177_v16, %v2953_v51 }
 0x4ba   : > { %3031 = vrot.lane.b32.xlu1 %v10295_v59, %s8704_s4  ;;  %3021 = vrot.lane.b32.xlu0 %v10303_v20, %s12896_s27 }
 0x4bc   : > { %v2894_v18 = vpop.permute.xlu1 %2893 }
 0x4bd   : > { %v2942_v23 = vsel %vm953_vm7, %v2892_v8, %v2894_v18  ;;  %v2896_v26 = vpop.permute.xlu0 %2895 }
 0x4be   : > { %v2992_v19 = vmax.f32 %v10165_v54, %v2942_v23  ;;  %3027 = vrot.lane.b32.xlu0 %v10303_v20, %s12898_s8  ;;  %v2943_v21 = vsel %vm953_vm7, %v2894_v18, %v2896_v26 }
 0x4bf   : > { %v10318_v16 = vmax.f32 %v10184_v45, %v2943_v21 }
 0x4c0   : > { %3039 = vrot.lane.b32.xlu1 %v2992_v19, %s12902_s1 }
 0x4c2   : > { %3033 = vrot.lane.b32.xlu0 %v10303_v20, %s8704_s4 }
 0x4c4   : > { %3045 = vrot.lane.b32.xlu1 %v2992_v19, %s12900_s28  ;;  %v2898_v5 = vpop.permute.xlu1 %2897 }
 0x4c5   : > { %v2900_v50 = vpop.permute.xlu0 %2899  ;;  %v2944_v40 = vsel %vm953_vm7, %v2896_v26, %v2898_v5 }
 0x4c6   : > { %3065 = vrot.lane.b32.xlu0 %v10318_v16, %s12896_s27  ;;  %v2945_v54 = vsel %vm953_vm7, %v2898_v5, %v2900_v50  ;;  %v2994_v13 = vmax.f32 %v10187_v43, %v2944_v40 }
 0x4c7   : > { %v10328_v55 = vmax.f32 %v10194_v9, %v2945_v54 }
 0x4c8   : > { %3051 = vrot.lane.b32.xlu1 %v2992_v19, %s12874_s9  ;;  %v2922_v9 = vpop.permute.xlu1 %2921 }
 0x4c9   : > { %v2920_v0 = vpop.permute.xlu0 %2919 }
 0x4ca   : > { %3077 = vrot.lane.b32.xlu0 %v10318_v16, %s8704_s4  ;;  %v2954_v45 = vsel %vm953_vm7, %v2918_v29, %v2920_v0  ;;  %v2955_v41 = vsel %vm953_vm7, %v2920_v0, %v2922_v9 }
 0x4cb   : > { %v3005_v34 = vmax.f32 %v10172_v14, %v2954_v45  ;;  %v10346_v14 = vmax.f32 %v10207_v57, %v2955_v41 }
 0x4cc   : > { %3057 = vrot.lane.b32.xlu1 %v2992_v19, %s12890_s5  ;;  %v2926_v7 = vpop.permute.xlu1 %2925 }
 0x4cd   : > { %v2924_v43 = vpop.permute.xlu0 %2923 }
 0x4ce   : > { %3145 = vrot.lane.b32.xlu0 %v10328_v55, %s12898_s8  ;;  %v2956_v35 = vsel %vm953_vm7, %v2922_v9, %v2924_v43  ;;  %v2957_v27 = vsel %vm953_vm7, %v2924_v43, %v2926_v7 }
 0x4cf   : > { %v3007_v57 = vmax.f32 %v10204_v62, %v2956_v35  ;;  %v10367_v6 = vmax.f32 %v10217_v33, %v2957_v27 }
 0x4d0   : > { %3071 = vrot.lane.b32.xlu1 %v10318_v16, %s12898_s8  ;;  %v2902_v25 = vpop.permute.xlu1 %2901 }
 0x4d1   : > { %v2946_v62 = vsel %vm953_vm7, %v2900_v50, %v2902_v25  ;;  %v2904_v22 = vpop.permute.xlu0 %2903 }
 0x4d2   : > { %3041 = vrot.lane.b32.xlu0 %v3005_v34, %s12902_s1  ;;  %v2996_v60 = vmax.f32 %v10197_v53, %v2946_v62  ;;  %v2947_v33 = vsel %vm953_vm7, %v2902_v25, %v2904_v22 }
 0x4d3   : > { %v10382_v17 = vmax.f32 %v10224_v38, %v2947_v33 }
 0x4d4   : > { %3085 = vrot.lane.b32.xlu1 %v2994_v13, %s12902_s1  ;;  %v2906_v53 = vpop.permute.xlu1 %2905 }
 0x4d5   : > { %v2948_v47 = vsel %vm953_vm7, %v2904_v22, %v2906_v53  ;;  %v2908_v2 = vpop.permute.xlu0 %2907 }
 0x4d6   : > { %3047 = vrot.lane.b32.xlu0 %v3005_v34, %s12900_s28  ;;  %v2998_v49 = vmax.f32 %v10227_v1, %v2948_v47  ;;  %v2949_v38 = vsel %vm953_vm7, %v2906_v53, %v2908_v2 }
 0x4d7   : > { %v10398_v31 = vmax.f32 %v10234_v46, %v2949_v38 }
 0x4d8   : > { %3091 = vrot.lane.b32.xlu1 %v2994_v13, %s12900_s28  ;;  %v2928_v3 = vpop.permute.xlu1 %2927 }
 0x4d9   : > { %v2932_v15 = vpop.permute.xlu0 %2931  ;;  %v2958_v1 = vsel %vm953_vm7, %v2926_v7, %v2928_v3 }
 0x4da   : > { %3059 = vrot.lane.b32.xlu0 %v3005_v34, %s12890_s5  ;;  %v3009_v46 = vmax.f32 %v10214_v28, %v2958_v1 }
 0x4dc   : > { %3097 = vrot.lane.b32.xlu1 %v2994_v13, %s12874_s9  ;;  %v2930_v42 = vpop.permute.xlu1 %2929 }
 0x4dd   : > { %v2910_v48 = vpop.permute.xlu0 %2909  ;;  %v2959_v63 = vsel %vm953_vm7, %v2928_v3, %v2930_v42  ;;  %v2960_v51 = vsel %vm953_vm7, %v2930_v42, %v2932_v15 }
 0x4de   : > { %3067 = vrot.lane.b32.xlu0 %v10346_v14, %s12896_s27  ;;  %v10417_v29 = vmax.f32 %v10244_v56, %v2959_v63  ;;  %v3011_v56 = vmax.f32 %v10254_v61, %v2960_v51  ;;  %v2950_v21 = vsel %vm953_vm7, %v2908_v2, %v2910_v48 }
 0x4df   : > { %v3000_v50 = vmax.f32 %v10237_v30, %v2950_v21 }
 0x4e0   : > { %3103 = vrot.lane.b32.xlu1 %v2994_v13, %s12890_s5  ;;  %v2934_v8 = vpop.permute.xlu1 %2933 }
 0x4e1   : > { %v10413_v24 = vpop.permute.xlu0 %2913  ;;  %v2961_v18 = vsel %vm953_vm7, %v2932_v15, %v2934_v8 }
 0x4e2   : > { %3073 = vrot.lane.b32.xlu0 %v10346_v14, %s12898_s8  ;;  %v10433_v23 = vmax.f32 %v10247_v32, %v2961_v18 }
 0x4e4   : > { %3139 = vrot.lane.b32.xlu1 %v10328_v55, %s12896_s27  ;;  %v2912_v28 = vpop.permute.xlu1 %2911 }
 0x4e5   : > { %v10422_v10 = vpop.permute.xlu0 %2935  ;;  %v2951_v30 = vsel %vm953_vm7, %v2910_v48, %v2912_v28  ;;  %v2952_v13 = vsel %vm953_vm7, %v2912_v28, %v10413_v24 }
 0x4e6   : > { %3079 = vrot.lane.b32.xlu0 %v10346_v14, %s8704_s4  ;;  %v10456_v40 = vmax.f32 %v10257_v36, %v2951_v30  ;;  %v3002_v43 = vmax.f32 %v10274_v4, %v2952_v13  ;;  %v2962_v35 = vsel %vm953_vm7, %v2934_v8, %v10422_v10 }
 0x4e7   : > { %v3013_v25 = vmax.f32 %v10264_v39, %v2962_v35 }
 0x4e8   : > { %3151 = vrot.lane.b32.xlu1 %v10328_v55, %s8704_s4  ;;  %v10435_v19 = vpop.permute.xlu1 %2937 }
 0x4e9   : > { %v10437_v26 = vpop.permute.xlu0 %2939 }
 0x4ea   : > { %3087 = vrot.lane.b32.xlu0 %v3007_v57, %s12902_s1 }
 0x4ec   : > { %3053 = vrot.lane.b32.xlu1 %v3005_v34, %s12874_s9 }
 0x4ee   : > { %3099 = vrot.lane.b32.xlu0 %v3007_v57, %s12874_s9 }
 0x4f0   : > { %3093 = vrot.lane.b32.xlu1 %v3007_v57, %s12900_s28 }
 0x4f2   : > { %3141 = vrot.lane.b32.xlu0 %v10367_v6, %s12896_s27 }
 0x4f4   : > { %3105 = vrot.lane.b32.xlu1 %v3007_v57, %s12890_s5 }
 0x4f6   : > { %3147 = vrot.lane.b32.xlu0 %v10367_v6, %s12898_s8 }
 0x4f8   : > { %3159 = vrot.lane.b32.xlu1 %v2996_v60, %s12902_s1 }
 0x4fa   : > { %3153 = vrot.lane.b32.xlu0 %v10367_v6, %s8704_s4 }
 0x4fc   : > { %3165 = vrot.lane.b32.xlu1 %v2996_v60, %s12900_s28 }
 0x4fe   : > { %3185 = vrot.lane.b32.xlu0 %v10382_v17, %s12896_s27 }
 0x500   : > { %3171 = vrot.lane.b32.xlu1 %v2996_v60, %s12874_s9 }
 0x502   : > { %3191 = vrot.lane.b32.xlu0 %v10382_v17, %s12898_s8 }
 0x504   : > { %3177 = vrot.lane.b32.xlu1 %v2996_v60, %s12890_s5 }
 0x506   : > { %3197 = vrot.lane.b32.xlu0 %v10382_v17, %s8704_s4 }
 0x508   : > { %3211 = vrot.lane.b32.xlu1 %v2998_v49, %s12900_s28 }
 0x50a   : > { %3205 = vrot.lane.b32.xlu0 %v2998_v49, %s12902_s1 }
 0x50c   : > { %3259 = vrot.lane.b32.xlu1 %v10398_v31, %s12896_s27 }
 0x50e   : > { %3217 = vrot.lane.b32.xlu0 %v2998_v49, %s12874_s9 }
 0x510   : > { %3265 = vrot.lane.b32.xlu1 %v10398_v31, %s12898_s8 }
 0x512   : > { %3223 = vrot.lane.b32.xlu0 %v2998_v49, %s12890_s5  ;;  %v2963_v49 = vsel %vm953_vm7, %v10422_v10, %v10435_v19 }
 0x513   : > { %v10506_v3 = vmax.f32 %v10277_v52, %v2963_v49 }
 0x514   : > { %3271 = vrot.lane.b32.xlu1 %v10398_v31, %s8704_s4 }
 0x516   : > { %3161 = vrot.lane.b32.xlu0 %v3009_v46, %s12902_s1 }
 0x518   : > { %3173 = vrot.lane.b32.xlu1 %v3009_v46, %s12874_s9 }
 0x51a   : > { %3167 = vrot.lane.b32.xlu0 %v3009_v46, %s12900_s28 }
 0x51c   : > { %3187 = vrot.lane.b32.xlu1 %v10417_v29, %s12896_s27 }
 0x51e   : > { %3179 = vrot.lane.b32.xlu0 %v3009_v46, %s12890_s5 }
 0x520   : > { %3199 = vrot.lane.b32.xlu1 %v10417_v29, %s8704_s4 }
 0x522   : > { %3193 = vrot.lane.b32.xlu0 %v10417_v29, %s12898_s8 }
 0x524   : > { %3207 = vrot.lane.b32.xlu1 %v3011_v56, %s12902_s1 }
 0x526   : > { %3267 = vrot.lane.b32.xlu0 %v10433_v23, %s12898_s8 }
 0x528   : > { %3213 = vrot.lane.b32.xlu1 %v3011_v56, %s12900_s28  ;;  %v3026_v61 = vpop.permute.xlu0 %3025  ;;  %v3020_v5 = vpop.permute.xlu1 %3019 }
 0x529   : > { %v3109_v41 = vsel %vm1297_vm6, %v10295_v59, %v3020_v5 }
 0x52a   : > { %3279 = vrot.lane.b32.xlu0 %v3000_v50, %s12902_s1  ;;  %v3111_v57 = vsel %vm1242_vm13, %v3109_v41, %v3026_v61 }
 0x52c   : > { %3219 = vrot.lane.b32.xlu1 %v3011_v56, %s12874_s9  ;;  %v10447_v32 = vpop.permute.xlu0 %3021  ;;  %v3032_v54 = vpop.permute.xlu1 %3031 }
 0x52d   : > { %v3113_v27 = vsel %vm1187_vm12, %v3111_v57, %v3032_v54  ;;  %v3110_v61 = vsel %vm1297_vm6, %v10303_v20, %v10447_v32  ;;  %v10542_v54 = vmax.f32 %v10287_v58, %v10437_v26  ;;  %v10550_v20 = vmax.f32 %v10267_v44, %v10413_v24 }
 0x52e   : > { %3291 = vrot.lane.b32.xlu0 %v3000_v50, %s12874_s9 }
 0x530   : > { %3225 = vrot.lane.b32.xlu1 %v3011_v56, %s12890_s5  ;;  %v10451_v0 = vpop.permute.xlu0 %3027 }
 0x531   : > { %v3112_v5 = vsel %vm1242_vm13, %v3110_v61, %v10451_v0 }
 0x532   : > { %v3040_v45 = vpop.permute.xlu1 %3039  ;;  %3297 = vrot.lane.b32.xlu0 %v3000_v50, %s12890_s5 }
 0x533   : > { %v3115_v59 = vsel %vm824_vm2, %v3113_v27, %v3040_v45 }
 0x534   : > { %3261 = vrot.lane.b32.xlu1 %v10433_v23, %s12896_s27  ;;  %v10460_v34 = vpop.permute.xlu0 %3033 }
 0x535   : > { %v3114_v30 = vsel %vm1187_vm12, %v3112_v5, %v10460_v34 }
 0x536   : > { %v3046_v9 = vpop.permute.xlu1 %3045  ;;  %3311 = vrot.lane.b32.xlu0 %v10456_v40, %s12898_s8 }
 0x537   : > { %v3117_v62 = vsel %vm1057_vm10, %v3115_v59, %v3046_v9 }
 0x538   : > { %3273 = vrot.lane.b32.xlu1 %v10433_v23, %s8704_s4  ;;  %v3066_v36 = vpop.permute.xlu0 %3065 }
 0x539   : > { %v3123_v1 = vsel %vm1297_vm6, %v10318_v16, %v3066_v36  ;;  %v2964_v16 = vsel %vm953_vm7, %v10435_v19, %v10437_v26 }
 0x53a   : > { %v3052_v7 = vpop.permute.xlu1 %3051  ;;  %3325 = vrot.lane.b32.xlu0 %v3002_v43, %s12902_s1  ;;  %v3015_v56 = vmax.f32 %v10284_v12, %v2964_v16 }
 0x53b   : > { %v3119_v60 = vsel %vm1005_vm8, %v3117_v62, %v3052_v7 }
 0x53c   : > { %3285 = vrot.lane.b32.xlu1 %v3000_v50, %s12900_s28  ;;  %v3078_v4 = vpop.permute.xlu0 %3077 }
 0x53e   : > { %v3058_v22 = vpop.permute.xlu1 %3057  ;;  %3287 = vrot.lane.b32.xlu0 %v3013_v25, %s12900_s28 }
 0x53f   : > { %v10489_v39 = vsel %vm953_vm7, %v3119_v60, %v3058_v22 }
 0x540   : > { %3387 = vst [vmem:[%s10483_s0] sm:$0xff] %v10489_v39  ;;  %3305 = vrot.lane.b32.xlu1 %v10456_v40, %s12896_s27  ;;  %v10495_v33 = vpop.permute.xlu0 %3145 }
 0x542   : > { %v3072_v53 = vpop.permute.xlu1 %3071  ;;  %3293 = vrot.lane.b32.xlu0 %v3013_v25, %s12874_s9 }
 0x543   : > { %v3125_v42 = vsel %vm1242_vm13, %v3123_v1, %v3072_v53 }
 0x544   : > { %3317 = vrot.lane.b32.xlu1 %v10456_v40, %s8704_s4  ;;  %v3042_v47 = vpop.permute.xlu0 %3041  ;;  %v3127_v63 = vsel %vm1187_vm12, %v3125_v42, %v3078_v4 }
 0x545   : > { %v3116_v13 = vsel %vm824_vm2, %v3114_v30, %v3042_v47 }
 0x546   : > { %v3086_v2 = vpop.permute.xlu1 %3085  ;;  %3299 = vrot.lane.b32.xlu0 %v3013_v25, %s12890_s5 }
 0x547   : > { %v3129_v52 = vsel %vm824_vm2, %v3127_v63, %v3086_v2 }
 0x548   : > { %3281 = vrot.lane.b32.xlu1 %v3013_v25, %s12902_s1  ;;  %v3048_v38 = vpop.permute.xlu0 %3047 }
 0x549   : > { %v3118_v32 = vsel %vm1057_vm10, %v3116_v13, %v3048_v38 }
 0x54a   : > { %v3092_v15 = vpop.permute.xlu1 %3091  ;;  %3331 = vrot.lane.b32.xlu0 %v3002_v43, %s12900_s28 }
 0x54b   : > { %v3131_v28 = vsel %vm1057_vm10, %v3129_v52, %v3092_v15 }
 0x54c   : > { %3307 = vrot.lane.b32.xlu1 %v10506_v3, %s12896_s27  ;;  %v3060_v48 = vpop.permute.xlu0 %3059 }
 0x54e   : > { %v3098_v46 = vpop.permute.xlu1 %3097  ;;  %3337 = vrot.lane.b32.xlu0 %v3002_v43, %s12874_s9 }
 0x54f   : > { %v3133_v10 = vsel %vm1005_vm8, %v3131_v28, %v3098_v46 }
 0x550   : > { %3313 = vrot.lane.b32.xlu1 %v10506_v3, %s12898_s8  ;;  %v3068_v8 = vpop.permute.xlu0 %3067 }
 0x551   : > { %v3124_v58 = vsel %vm1297_vm6, %v10346_v14, %v3068_v8 }
 0x552   : > { %v3104_v51 = vpop.permute.xlu1 %3103  ;;  %3343 = vrot.lane.b32.xlu0 %v3002_v43, %s12890_s5 }
 0x553   : > { %v3135_v18 = vsel %vm953_vm7, %v3133_v10, %v3104_v51 }
 0x554   : > { %3388 = vst [vmem:[%s10483_s0 + $0x8] sm:$0xff] %v3135_v18  ;;  %3319 = vrot.lane.b32.xlu1 %v10506_v3, %s8704_s4  ;;  %v3074_v21 = vpop.permute.xlu0 %3073 }
 0x555   : > { %v3126_v34 = vsel %vm1242_vm13, %v3124_v58, %v3074_v21 }
 0x556   : > { %v3140_v19 = vpop.permute.xlu1 %3139  ;;  %3333 = vrot.lane.b32.xlu0 %v3015_v56, %s12900_s28 }
 0x557   : > { %v3229_v62 = vsel %vm1297_vm6, %v10328_v55, %v3140_v19 }
 0x558   : > { %3327 = vrot.lane.b32.xlu1 %v3015_v56, %s12902_s1  ;;  %v3080_v50 = vpop.permute.xlu0 %3079  ;;  %v3231_v22 = vsel %vm1242_vm13, %v3229_v62, %v10495_v33 }
 0x559   : > { %v3128_v24 = vsel %vm1187_vm12, %v3126_v34, %v3080_v50 }
 0x55a   : > { %v3152_v12 = vpop.permute.xlu1 %3151  ;;  %3345 = vrot.lane.b32.xlu0 %v3015_v56, %s12890_s5 }
 0x55b   : > { %v3233_v53 = vsel %vm1187_vm12, %v3231_v22, %v3152_v12 }
 0x55c   : > { %3339 = vrot.lane.b32.xlu1 %v3015_v56, %s12874_s9  ;;  %v3088_v45 = vpop.permute.xlu0 %3087 }
 0x55d   : > { %v3130_v41 = vsel %vm824_vm2, %v3128_v24, %v3088_v45 }
 0x55e   : > { %v3054_v0 = vpop.permute.xlu1 %3053  ;;  %3381 = vrot.lane.b32.xlu0 %v10542_v54, %s12896_s27 }
 0x55f   : > { %v3120_v26 = vsel %vm1005_vm8, %v3118_v32, %v3054_v0 }
 0x560   : > { %3379 = vrot.lane.b32.xlu1 %v10550_v20, %s12896_s27  ;;  %v3100_v9 = vpop.permute.xlu0 %3099  ;;  %v3122_v44 = vsel %vm953_vm7, %v3120_v26, %v3060_v48 }
 0x561   : > { %3394 = vst [vmem:[%s10483_s0 + $0x38] sm:$0x3] %v3122_v44 }
 0x562   : > { %v3094_v43 = vpop.permute.xlu1 %3093  ;;  %3440 = vrot.lane.b32.xlu0 %v3122_v44, %s12902_s1 }
 0x563   : > { %v3132_v14 = vsel %vm1057_vm10, %v3130_v41, %v3094_v43 }
 0x564   : > { %3426 = vrot.lane.b32.xlu1 %v10489_v39, %s12902_s1  ;;  %v3142_v36 = vpop.permute.xlu0 %3141  ;;  %v3134_v35 = vsel %vm1005_vm8, %v3132_v14, %v3100_v9 }
 0x565   : > { %v3230_v19 = vsel %vm1297_vm6, %v10367_v6, %v3142_v36 }
 0x566   : > { %v3106_v57 = vpop.permute.xlu1 %3105  ;;  %3428 = vrot.lane.b32.xlu0 %v3135_v18, %s12902_s1 }
 0x567   : > { %v3136_v7 = vsel %vm953_vm7, %v3134_v35, %v3106_v57 }
 0x568   : > { %3395 = vst [vmem:[%s10483_s0 + $0x40] sm:$0x3] %v3136_v7  ;;  %3442 = vrot.lane.b32.xlu1 %v3136_v7, %s12902_s1  ;;  %v3148_v27 = vpop.permute.xlu0 %3147 }
 0x569   : > { %v3232_v50 = vsel %vm1242_vm13, %v3230_v19, %v3148_v27 }
 0x56a   : > { %v3160_v25 = vpop.permute.xlu1 %3159 }
 0x56b   : > { %v3235_v47 = vsel %vm824_vm2, %v3233_v53, %v3160_v25 }
 0x56c   : > { %v3154_v59 = vpop.permute.xlu0 %3153 }
 0x56d   : > { %v3234_v12 = vsel %vm1187_vm12, %v3232_v50, %v3154_v59 }
 0x56e   : > { %v3166_v4 = vpop.permute.xlu1 %3165 }
 0x56f   : > { %v3237_v49 = vsel %vm1057_vm10, %v3235_v47, %v3166_v4 }
 0x570   : > { %v3186_v60 = vpop.permute.xlu0 %3185 }
 0x571   : > { %v3243_v48 = vsel %vm1297_vm6, %v10382_v17, %v3186_v60 }
 0x572   : > { %v3172_v39 = vpop.permute.xlu1 %3171 }
 0x573   : > { %v3239_v38 = vsel %vm1005_vm8, %v3237_v49, %v3172_v39 }
 0x574   : > { %v3192_v2 = vpop.permute.xlu0 %3191 }
 0x575   : > { %v3245_v46 = vsel %vm1242_vm13, %v3243_v48, %v3192_v2 }
 0x576   : > { %v3178_v15 = vpop.permute.xlu1 %3177 }
 0x577   : > { %v3241_v1 = vsel %vm953_vm7, %v3239_v38, %v3178_v15 }
 0x578   : > { %3389 = vst [vmem:[%s10483_s0 + $0x10] sm:$0xff] %v3241_v1  ;;  %3430 = vrot.lane.b32.xlu1 %v3241_v1, %s12902_s1  ;;  %v3198_v55 = vpop.permute.xlu0 %3197 }
 0x579   : > { %v3247_v52 = vsel %vm1187_vm12, %v3245_v46, %v3198_v55 }
 0x57a   : > { %v3212_v42 = vpop.permute.xlu1 %3211 }
 0x57c   : > { %v3206_v33 = vpop.permute.xlu0 %3205 }
 0x57d   : > { %v3249_v8 = vsel %vm824_vm2, %v3247_v52, %v3206_v33 }
 0x57e   : > { %v3260_v63 = vpop.permute.xlu1 %3259  ;;  %v3251_v10 = vsel %vm1057_vm10, %v3249_v8, %v3212_v42 }
 0x57f   : > { %v3349_v22 = vsel %vm1297_vm6, %v10398_v31, %v3260_v63 }
 0x580   : > { %v3218_v16 = vpop.permute.xlu0 %3217 }
 0x581   : > { %v3253_v51 = vsel %vm1005_vm8, %v3251_v10, %v3218_v16 }
 0x582   : > { %v3266_v28 = vpop.permute.xlu1 %3265 }
 0x583   : > { %v3351_v39 = vsel %vm1242_vm13, %v3349_v22, %v3266_v28 }
 0x584   : > { %v3224_v18 = vpop.permute.xlu0 %3223 }
 0x585   : > { %v3255_v56 = vsel %vm953_vm7, %v3253_v51, %v3224_v18 }
 0x586   : > { %3390 = vst [vmem:[%s10483_s0 + $0x18] sm:$0xff] %v3255_v56  ;;  %v3272_v21 = vpop.permute.xlu1 %3271  ;;  %3432 = vrot.lane.b32.xlu1 %v3255_v56, %s12902_s1 }
 0x587   : > { %v3353_v47 = vsel %vm1187_vm12, %v3351_v39, %v3272_v21 }
 0x588   : > { %v3162_v17 = vpop.permute.xlu0 %3161 }
 0x589   : > { %v3236_v5 = vsel %vm824_vm2, %v3234_v12, %v3162_v17 }
 0x58a   : > { %v3174_v61 = vpop.permute.xlu1 %3173 }
 0x58c   : > { %v3168_v30 = vpop.permute.xlu0 %3167 }
 0x58d   : > { %v3238_v45 = vsel %vm1057_vm10, %v3236_v5, %v3168_v30 }
 0x58e   : > { %v3188_v13 = vpop.permute.xlu1 %3187  ;;  %v3240_v0 = vsel %vm1005_vm8, %v3238_v45, %v3174_v61 }
 0x58f   : > { %v3244_v44 = vsel %vm1297_vm6, %v10417_v29, %v3188_v13 }
 0x590   : > { %v3180_v32 = vpop.permute.xlu0 %3179 }
 0x591   : > { %v3242_v58 = vsel %vm953_vm7, %v3240_v0, %v3180_v32 }
 0x592   : > { %3396 = vst [vmem:[%s10483_s0 + $0x48] sm:$0x3] %v3242_v58  ;;  %v3200_v26 = vpop.permute.xlu1 %3199  ;;  %3444 = vrot.lane.b32.xlu0 %v3242_v58, %s12902_s1 }
 0x594   : > { %v3194_v6 = vpop.permute.xlu0 %3193 }
 0x595   : > { %v3246_v24 = vsel %vm1242_vm13, %v3244_v44, %v3194_v6 }
 0x596   : > { %v3208_v34 = vpop.permute.xlu1 %3207  ;;  %v3248_v14 = vsel %vm1187_vm12, %v3246_v24, %v3200_v26 }
 0x597   : > { %v3250_v35 = vsel %vm824_vm2, %v3248_v14, %v3208_v34 }
 0x598   : > { %v3268_v9 = vpop.permute.xlu0 %3267 }
 0x59a   : > { %v3214_v41 = vpop.permute.xlu1 %3213 }
 0x59b   : > { %v3252_v7 = vsel %vm1057_vm10, %v3250_v35, %v3214_v41 }
 0x59c   : > { %v3280_v43 = vpop.permute.xlu0 %3279 }
 0x59d   : > { %v3355_v2 = vsel %vm824_vm2, %v3353_v47, %v3280_v43 }
 0x59e   : > { %v3220_v36 = vpop.permute.xlu1 %3219 }
 0x59f   : > { %v3254_v27 = vsel %vm1005_vm8, %v3252_v7, %v3220_v36 }
 0x5a0   : > { %v3292_v57 = vpop.permute.xlu0 %3291 }
 0x5a2   : > { %v3226_v25 = vpop.permute.xlu1 %3225 }
 0x5a3   : > { %v3256_v59 = vsel %vm953_vm7, %v3254_v27, %v3226_v25 }
 0x5a4   : > { %3397 = vst [vmem:[%s10483_s0 + $0x50] sm:$0x3] %v3256_v59  ;;  %3446 = vrot.lane.b32.xlu1 %v3256_v59, %s12902_s1  ;;  %v3298_v29 = vpop.permute.xlu0 %3297 }
 0x5a6   : > { %v3262_v4 = vpop.permute.xlu1 %3261 }
 0x5a7   : > { %v3350_v33 = vsel %vm1297_vm6, %v10433_v23, %v3262_v4 }
 0x5a8   : > { %v3312_v62 = vpop.permute.xlu0 %3311  ;;  %v3352_v63 = vsel %vm1242_vm13, %v3350_v33, %v3268_v9 }
 0x5aa   : > { %v3274_v60 = vpop.permute.xlu1 %3273 }
 0x5ab   : > { %v3354_v52 = vsel %vm1187_vm12, %v3352_v63, %v3274_v60 }
 0x5ac   : > { %v3326_v53 = vpop.permute.xlu0 %3325 }
 0x5ae   : > { %v3286_v49 = vpop.permute.xlu1 %3285 }
 0x5af   : > { %v3357_v38 = vsel %vm1057_vm10, %v3355_v2, %v3286_v49 }
 0x5b0   : > { %v3359_v15 = vsel %vm1005_vm8, %v3357_v38, %v3292_v57  ;;  %v3288_v1 = vpop.permute.xlu0 %3287 }
 0x5b1   : > { %v3361_v55 = vsel %vm953_vm7, %v3359_v15, %v3298_v29 }
 0x5b2   : > { %3434 = vrot.lane.b32.xlu0 %v3361_v55, %s12902_s1  ;;  %3391 = vst [vmem:[%s10483_s0 + $0x20] sm:$0xff] %v3361_v55  ;;  %v3306_v42 = vpop.permute.xlu1 %3305 }
 0x5b3   : > { %v3363_v16 = vsel %vm1297_vm6, %v10456_v40, %v3306_v42 }
 0x5b4   : > { %v3294_v31 = vpop.permute.xlu0 %3293  ;;  %v3365_v23 = vsel %vm1242_vm13, %v3363_v16, %v3312_v62 }
 0x5b6   : > { %v3318_v48 = vpop.permute.xlu1 %3317 }
 0x5b7   : > { %v3367_v17 = vsel %vm1187_vm12, %v3365_v23, %v3318_v48 }
 0x5b8   : > { %v3300_v46 = vpop.permute.xlu0 %3299  ;;  %v3369_v40 = vsel %vm824_vm2, %v3367_v17, %v3326_v53 }
 0x5ba   : > { %v3282_v8 = vpop.permute.xlu1 %3281 }
 0x5bb   : > { %v3356_v28 = vsel %vm824_vm2, %v3354_v52, %v3282_v8 }
 0x5bc   : > { %v3358_v10 = vsel %vm1057_vm10, %v3356_v28, %v3288_v1  ;;  %v3332_v51 = vpop.permute.xlu0 %3331 }
 0x5bd   : > { %v3360_v18 = vsel %vm1005_vm8, %v3358_v10, %v3294_v31  ;;  %v3371_v61 = vsel %vm1057_vm10, %v3369_v40, %v3332_v51 }
 0x5be   : > { %v3308_v56 = vpop.permute.xlu1 %3307  ;;  %v3362_v21 = vsel %vm953_vm7, %v3360_v18, %v3300_v46 }
 0x5bf   : > { %3448 = vrot.lane.b32.xlu0 %v3362_v21, %s12902_s1  ;;  %3398 = vst [vmem:[%s10483_s0 + $0x58] sm:$0x3] %v3362_v21  ;;  %v3364_v13 = vsel %vm1297_vm6, %v10506_v3, %v3308_v56 }
 0x5c0   : > { %v3338_v19 = vpop.permute.xlu0 %3337 }
 0x5c1   : > { %v3373_v12 = vsel %vm1005_vm8, %v3371_v61, %v3338_v19 }
 0x5c2   : > { %v3314_v50 = vpop.permute.xlu1 %3313 }
 0x5c3   : > { %v3366_v0 = vsel %vm1242_vm13, %v3364_v13, %v3314_v50 }
 0x5c4   : > { %v3344_v5 = vpop.permute.xlu0 %3343 }
 0x5c5   : > { %v3375_v30 = vsel %vm953_vm7, %v3373_v12, %v3344_v5 }
 0x5c6   : > { %3392 = vst [vmem:[%s10483_s0 + $0x28] sm:$0xff] %v3375_v30  ;;  %v3320_v45 = vpop.permute.xlu1 %3319  ;;  %3436 = vrot.lane.b32.xlu1 %v3375_v30, %s12902_s1 }
 0x5c7   : > { %v3368_v58 = vsel %vm1187_vm12, %v3366_v0, %v3320_v45 }
 0x5c8   : > { %v3334_v32 = vpop.permute.xlu0 %3333 }
 0x5ca   : > { %v3328_v26 = vpop.permute.xlu1 %3327 }
 0x5cb   : > { %v3370_v6 = vsel %vm824_vm2, %v3368_v58, %v3328_v26 }
 0x5cc   : > { %v3346_v34 = vpop.permute.xlu0 %3345  ;;  %v3372_v9 = vsel %vm1057_vm10, %v3370_v6, %v3334_v32 }
 0x5ce   : > { %v3340_v44 = vpop.permute.xlu1 %3339 }
 0x5cf   : > { %v3374_v24 = vsel %vm1005_vm8, %v3372_v9, %v3340_v44 }
 0x5d0   : > { %v3376_v41 = vsel %vm953_vm7, %v3374_v24, %v3346_v34  ;;  %v3382_v3 = vpop.permute.xlu0 %3381 }
 0x5d1   : > { %3450 = vrot.lane.b32.xlu1 %v3376_v41, %s12902_s1  ;;  %3399 = vst [vmem:[%s10483_s0 + $0x60] sm:$0x3] %v3376_v41  ;;  %v3386_v43 = vsel %vm1297_vm6, %v10542_v54, %v3382_v3 }
 0x5d2   : > { %3401 = vst.msk [vmem:[%s10483_s0 + $0x68] sm:$0x3] %vm12892_vm1, %v3386_v43  ;;  %v3380_v14 = vpop.permute.xlu1 %3379 }
 0x5d3   : > { %v3385_v36 = vsel %vm1297_vm6, %v10550_v20, %v3380_v14 }
 0x5d4   : > { %3393 = vst.msk [vmem:[%s10483_s0 + $0x30] sm:$0xff] %vm1242_vm13, %v3385_v36  ;;  %3438 = vrot.lane.b32.xlu0 %v3385_v36, %s12902_s1  ;;  %v3441_v35 = vpop.permute.xlu0 %3440  ;;  %s13015_s0 = sld [smem:[#allocation24_spill]] }
 0x5d5   : > { %3489 = vst.msk [vmem:[#allocation2 + $0x70] sm:$0x3] %vm12872_vm11, %v3441_v35  ;;  %vm12889_vm11 = vcmask 779264  }
 0x5d6   : > { %v3427_v57 = vpop.permute.xlu1 %3426 }
 0x5d7   : > { %3481 = vst.msk [vmem:[#allocation2] sm:$0xff] %vm12873_vm15, %v3427_v57  ;;  %vm4312_vm15 = vcmask 517504  }
 0x5d8   : > { %3452 = vrot.lane.b32.xlu0 %v3386_v43, %s12902_s1  ;;  %v3429_v47 = vpop.permute.xlu0 %3428 }
 0x5d9   : > { %v10701_v49 = vsel %vm824_vm2, %v3427_v57, %v3429_v47 }
 0x5da   : > { %v3443_v54 = vpop.permute.xlu1 %3442  ;;  %v3678_v55 = vrot.slane %v10701_v49, 2  ;;  %v3528_v31 = vrot.slane %v10701_v49, 6  ;;  %v3603_v16 = vrot.slane %v10701_v49, 4 }
 0x5db   : > { %v3460_v7 = vsel %vm824_vm2, %v3441_v35, %v3443_v54 }
 0x5dc   : > { %v10669_v27 = vld [vmem:[#allocation2 + $0x70] sm:$0x3]  ;;  %3490 = vst [vmem:[#allocation2 + $0x78] sm:$0x3] %v3460_v7 }
 0x5dd   : > { %4309 = vst.msk [vmem:[#allocation2 + $0x70] sm:$0x3] %vm1953_vm4, %v12958_v11  ;;  %v3609_v59 = vrot.slane %v10669_v27, 4  ;;  %v3534_v4 = vrot.slane %v10669_v27, 6  ;;  %v3684_v9 = vrot.slane %v10669_v27, 2 }
 0x5de   : > { %v10673_v20 = vld [vmem:[#allocation2] sm:$0xff] }
 0x5df   : > { %v10676_v25 = vrot.slane %v10673_v20, 4  ;;  %4308 = vst.msk [vmem:[#allocation2] sm:$0xff] %vm1297_vm6, %v12958_v11  ;;  %v10682_v29 = vrot.slane %v10673_v20, 6  ;;  %v3677_v63 = vrot.slane %v10673_v20, 2 }
 0x5e1   : > { %v10687_v62 = vsel %vm1483_vm14, %v10676_v25, %v3609_v59  ;;  %v3535_v60 = vsel %vm1455_vm9, %v10682_v29, %v3534_v4  ;;  %v3685_v3 = vsel %vm12895_vm0, %v3677_v63, %v3684_v9 }
 0x5e2   : > { %v8036_v22 = vpack.i.bf16 %v10687_v62, %v10676_v25  ;;  %v8041_v39 = vpack.i.bf16 %v3535_v60, %v10682_v29 }
 0x5e3   : > { %v10694_v53 = vld [vmem:[#allocation2 + $0x78] sm:$0x3] }
 0x5e4   : > { %8037 = vrot.lane.b32.xlu0 %v8036_v22, %s12898_s8  ;;  %8042 = vrot.lane.b32.xlu1 %v8041_v39, %s12900_s28  ;;  %v8046_v2 = vpack.i.bf16 %v10694_v53, %v10673_v20  ;;  %v3686_v38 = vrot.slane %v10694_v53, 2  ;;  %v3536_v21 = vrot.slane %v10694_v53, 6  ;;  %v3611_v30 = vrot.slane %v10694_v53, 4 }
 0x5e6   : > { %v10714_v48 = vsel %vm12895_vm0, %v3678_v55, %v3686_v38  ;;  %v3537_v5 = vsel %vm1455_vm9, %v3528_v31, %v3536_v21  ;;  %v3612_v58 = vsel %vm1483_vm14, %v3603_v16, %v3611_v30 }
 0x5e7   : > { %v8056_v8 = vpack.i.bf16 %v10714_v48, %v3677_v63 }
 0x5e8   : > { %8047 = vrot.lane.b32.xlu0 %v8046_v2, %s12902_s1 }
 0x5ea   : > { %v3431_v15 = vpop.permute.xlu1 %3430 }
 0x5eb   : > { %v10706_v1 = vsel %vm824_vm2, %v3429_v47, %v3431_v15 }
 0x5ec   : > { %v8051_v42 = vpack.i.bf16 %v10706_v1, %v10701_v49  ;;  %v3529_v33 = vrot.slane %v10706_v1, 6  ;;  %v3604_v52 = vrot.slane %v10706_v1, 4  ;;  %v3679_v10 = vrot.slane %v10706_v1, 2 }
 0x5ee   : > { %8052 = vrot.lane.b32.xlu1 %v8051_v42, %s12902_s1  ;;  %v8076_v46 = vpack.i.bf16 %v3529_v33, %v3528_v31  ;;  %v8081_v28 = vpack.i.bf16 %v3604_v52, %v3603_v16  ;;  %v8086_v51 = vpack.i.bf16 %v3679_v10, %v3678_v55 }
 0x5f0   : > { %8077 = vrot.lane.b32.xlu0 %v8076_v46, %s12900_s28 }
 0x5f2   : > { %8057 = vrot.lane.b32.xlu1 %v8056_v8, %s12890_s5 }
 0x5f4   : > { %8082 = vrot.lane.b32.xlu0 %v8081_v28, %s12874_s9 }
 0x5f6   : > { %8062 = vrot.lane.b32.xlu1 %v8076_v46, %s12896_s27 }
 0x5f8   : > { %8087 = vrot.lane.b32.xlu0 %v8086_v51, %s12890_s5  ;;  %v3433_v56 = vpop.permute.xlu1 %3432 }
 0x5f9   : > { %v10732_v17 = vsel %vm824_vm2, %v3431_v15, %v3433_v56 }
 0x5fa   : > { %8067 = vrot.lane.b32.xlu1 %v8081_v28, %s12898_s8  ;;  %v10753_v24 = vrot.slane %v10732_v17, 2  ;;  %v3530_v14 = vrot.slane %v10732_v17, 6  ;;  %v3605_v57 = vrot.slane %v10732_v17, 4 }
 0x5fc   : > { %v8126_v36 = vpack.i.bf16 %v10753_v24, %v3677_v63  ;;  %v8121_v35 = vpack.i.bf16 %v3530_v14, %v10682_v29 }
 0x5fe   : > { %8072 = vrot.lane.b32.xlu1 %v8086_v51, %s8704_s4 }
 0x604   : > { %v3445_v18 = vpop.permute.xlu0 %3444 }
 0x605   : > { %v3461_v23 = vsel %vm824_vm2, %v3443_v54, %v3445_v18  ;;  %v8131_v54 = vpack.i.bf16 %v3605_v57, %v10676_v25 }
 0x606   : > { %3491 = vst [vmem:[#allocation2 + $0x80] sm:$0x3] %v3461_v23 }
 0x60d   : > { %v10734_v19 = vld [vmem:[#allocation2 + $0x80] sm:$0x3] }
 0x60e   : > { %v8091_v40 = vpack.i.bf16 %v10732_v17, %v10734_v19  ;;  %v3538_v50 = vrot.slane %v10734_v19, 6  ;;  %v3613_v61 = vrot.slane %v10734_v19, 4  ;;  %v3688_v0 = vrot.slane %v10734_v19, 2 }
 0x610   : > { %8092 = vrot.lane.b32.xlu1 %v8091_v40, %s12902_s1  ;;  %v3539_v12 = vsel %vm1455_vm9, %v3529_v33, %v3538_v50  ;;  %v3614_v32 = vsel %vm1483_vm14, %v3604_v52, %v3613_v61  ;;  %v3689_v44 = vsel %vm12895_vm0, %v3679_v10, %v3688_v0 }
 0x611   : > { %v8096_v45 = vpack.i.bf16 %v3535_v60, %v3539_v12  ;;  %v8111_v13 = vpack.i.bf16 %v3539_v12, %v3537_v5  ;;  %v8101_v26 = vpack.i.bf16 %v3614_v32, %v3612_v58  ;;  %v8116_v34 = vpack.i.bf16 %v10687_v62, %v3614_v32 }
 0x612   : > { %v8106_v43 = vpack.i.bf16 %v3685_v3, %v3689_v44 }
 0x613   : > { %8097 = vrot.lane.b32.xlu0 %v8096_v45, %s12896_s27 }
 0x614   : > { %8112 = vrot.lane.b32.xlu1 %v8111_v13, %s12900_s28 }
 0x616   : > { %v3447_v6 = vpop.permute.xlu1 %3446 }
 0x617   : > { %v3462_v41 = vsel %vm824_vm2, %v3445_v18, %v3447_v6  ;;  %8102 = vrot.lane.b32.xlu0 %v8101_v26, %s12898_s8 }
 0x618   : > { %3492 = vst [vmem:[#allocation2 + $0x88] sm:$0x3] %v3462_v41  ;;  %8117 = vrot.lane.b32.xlu1 %v8116_v34, %s12874_s9 }
 0x61b   : > { %8107 = vrot.lane.b32.xlu0 %v8106_v43, %s8704_s4 }
 0x61c   : > { %8127 = vrot.lane.b32.xlu1 %v8126_v36, %s8704_s4 }
 0x61f   : > { %8122 = vrot.lane.b32.xlu0 %v8121_v35, %s12896_s27  ;;  %v10784_v55 = vld [vmem:[#allocation2 + $0x88] sm:$0x3] }
 0x620   : > { %v3540_v42 = vrot.slane %v10784_v55, 6  ;;  %v3690_v31 = vrot.slane %v10784_v55, 2  ;;  %v3615_v8 = vrot.slane %v10784_v55, 4 }
 0x622   : > { %v3541_v16 = vsel %vm1455_vm9, %v3530_v14, %v3540_v42  ;;  %v3691_v10 = vsel %vm12895_vm0, %v10753_v24, %v3690_v31  ;;  %v3616_v40 = vsel %vm1483_vm14, %v3605_v57, %v3615_v8  ;;  %v10867_v8 = vld [vmem:[#allocation2 + $0xa8] sm:$0x3] }
 0x623   : > { %8132 = vrot.lane.b32.xlu0 %v8131_v54, %s12874_s9 }
 0x624   : > { %v3435_v7 = vpop.permute.xlu0 %3434 }
 0x625   : > { %v10769_v59 = vsel %vm824_vm2, %v3433_v56, %v3435_v7 }
 0x626   : > { %v8136_v4 = vpack.i.bf16 %v10669_v27, %v10769_v59  ;;  %v3531_v62 = vrot.slane %v10769_v59, 6  ;;  %v3606_v60 = vrot.slane %v10769_v59, 4  ;;  %v3681_v39 = vrot.slane %v10769_v59, 2 }
 0x628   : > { %8137 = vrot.lane.b32.xlu0 %v8136_v4, %s12902_s1  ;;  %v8141_v29 = vpack.i.bf16 %v3537_v5, %v3531_v62  ;;  %v8161_v22 = vpack.i.bf16 %v3531_v62, %v3530_v14  ;;  %v8146_v25 = vpack.i.bf16 %v3606_v60, %v3605_v57  ;;  %v8166_v47 = vpack.i.bf16 %v3612_v58, %v3606_v60 }
 0x629   : > { %v8151_v2 = vpack.i.bf16 %v10714_v48, %v3681_v39  ;;  %v8186_v13 = vpack.i.bf16 %v3681_v39, %v10753_v24 }
 0x62a   : > { %8142 = vrot.lane.b32.xlu1 %v8141_v29, %s12896_s27 }
 0x62c   : > { %8162 = vrot.lane.b32.xlu0 %v8161_v22, %s12900_s28 }
 0x62e   : > { %8147 = vrot.lane.b32.xlu1 %v8146_v25, %s12898_s8 }
 0x630   : > { %8167 = vrot.lane.b32.xlu0 %v8166_v47, %s12874_s9 }
 0x631   : > { %v3449_v38 = vpop.permute.xlu0 %3448 }
 0x632   : > { %v3463_v15 = vsel %vm824_vm2, %v3447_v6, %v3449_v38  ;;  %8152 = vrot.lane.b32.xlu1 %v8151_v2, %s8704_s4 }
 0x633   : > { %3493 = vst [vmem:[#allocation2 + $0x90] sm:$0x3] %v3463_v15 }
 0x638   : > { %v3437_v56 = vpop.permute.xlu1 %3436 }
 0x639   : > { %v10819_v0 = vsel %vm824_vm2, %v3435_v7, %v3437_v56 }
 0x63a   : > { %v10788_v33 = vld [vmem:[#allocation2 + $0x90] sm:$0x3]  ;;  %v3532_v9 = vrot.slane %v10819_v0, 6  ;;  %v3607_v35 = vrot.slane %v10819_v0, 4  ;;  %v3682_v25 = vrot.slane %v10819_v0, 2 }
 0x63b   : > { %v8156_v46 = vpack.i.bf16 %v10788_v33, %v10784_v55  ;;  %v3542_v63 = vrot.slane %v10788_v33, 6  ;;  %v3692_v48 = vrot.slane %v10788_v33, 2  ;;  %v3617_v52 = vrot.slane %v10788_v33, 4 }
 0x63d   : > { %8157 = vrot.lane.b32.xlu1 %v8156_v46, %s12902_s1  ;;  %v3543_v28 = vsel %vm1455_vm9, %v3531_v62, %v3542_v63  ;;  %v3693_v51 = vsel %vm12895_vm0, %v3681_v39, %v3692_v48  ;;  %v3618_v21 = vsel %vm1483_vm14, %v3606_v60, %v3617_v52  ;;  %v10865_v52 = vld [vmem:[#allocation2 + $0x38] sm:$0xff] }
 0x63e   : > { %v8171_v18 = vpack.i.bf16 %v3543_v28, %v3541_v16  ;;  %v8196_v23 = vpack.i.bf16 %v3693_v51, %v3691_v10  ;;  %v8176_v50 = vpack.i.bf16 %v3618_v21, %v3616_v40  ;;  %v3917_v16 = vrot.slane %v10867_v8, 2 }
 0x63f   : > { %v3916_v28 = vrot.slane %v10865_v52, 2  ;;  %v3980_v21 = vrot.slane %v10867_v8, 6 }
 0x640   : > { %8172 = vrot.lane.b32.xlu0 %v8171_v18, %s12896_s27 }
 0x641   : > { %8197 = vrot.lane.b32.xlu1 %v8196_v23, %s8704_s4  ;;  %v3918_v40 = vsel %vm12895_vm0, %v3916_v28, %v3917_v16 }
 0x643   : > { %v3451_v61 = vpop.permute.xlu1 %3450 }
 0x644   : > { %v3464_v12 = vsel %vm824_vm2, %v3449_v38, %v3451_v61  ;;  %8177 = vrot.lane.b32.xlu0 %v8176_v50, %s12898_s8 }
 0x645   : > { %3494 = vst [vmem:[#allocation2 + $0x98] sm:$0x3] %v3464_v12  ;;  %8202 = vrot.lane.b32.xlu1 %v8171_v18, %s12900_s28 }
 0x646   : > { %v3439_v5 = vpop.permute.xlu0 %3438 }
 0x647   : > { %v3459_v30 = vsel %vm824_vm2, %v3437_v56, %v3439_v5  ;;  %v8281_v5 = vpack.i.bf16 %v3918_v40, %v3916_v28 }
 0x648   : > { %3487 = vst.msk [vmem:[#allocation2 + $0x30] sm:$0xff] %vm1005_vm8, %v3459_v30  ;;  %8182 = vrot.lane.b32.xlu0 %v8106_v43, %s12890_s5 }
 0x649   : > { %8207 = vrot.lane.b32.xlu1 %v8176_v50, %s12874_s9 }
 0x64a   : > { %v3453_v45 = vpop.permute.xlu0 %3452 }
 0x64b   : > { %v3465_v32 = vsel %vm824_vm2, %v3451_v61, %v3453_v45 }
 0x64c   : > { %3496 = vst.msk [vmem:[#allocation2 + $0xa0] sm:$0x3] %vm12889_vm11, %v3465_v32  ;;  %8187 = vrot.lane.b32.xlu0 %v8186_v13, %s12890_s5  ;;  %v10826_v34 = vld [vmem:[#allocation2 + $0x98] sm:$0x3]  ;;  %vm4310_vm11 = vcmask 523648  }
 0x64d   : > { %8212 = vrot.lane.b32.xlu1 %v8196_v23, %s12890_s5  ;;  %v3544_v24 = vrot.slane %v10826_v34, 6  ;;  %v3619_v7 = vrot.slane %v10826_v34, 4  ;;  %v3694_v47 = vrot.slane %v10826_v34, 2  ;;  %v3979_v23 = vrot.slane %v10865_v52, 6 }
 0x64f   : > { %v10821_v58 = vld [vmem:[#allocation2 + $0x30] sm:$0xff]  ;;  %v3545_v54 = vsel %vm1455_vm9, %v3532_v9, %v3544_v24  ;;  %v3620_v39 = vsel %vm1483_vm14, %v3607_v35, %v3619_v7  ;;  %v3695_v31 = vsel %vm12895_vm0, %v3682_v25, %v3694_v47  ;;  %v3981_v30 = vsel %vm1455_vm9, %v3979_v23, %v3980_v21 }
 0x650   : > { %v8191_v26 = vpack.i.bf16 %v10821_v58, %v10819_v0  ;;  %v3533_v6 = vrot.slane %v10821_v58, 6  ;;  %v3608_v43 = vrot.slane %v10821_v58, 4  ;;  %v3683_v29 = vrot.slane %v10821_v58, 2  ;;  %4311 = vst.msk [vmem:[#allocation2 + $0x30] sm:$0xff] %vm4310_vm11, %v12958_v11 }
 0x651   : > { %vm12983_vm11 = vcmask 1041536  }
 0x652   : > { %8192 = vrot.lane.b32.xlu0 %v8191_v26, %s12902_s1  ;;  %v8216_v41 = vpack.i.bf16 %v3533_v6, %v3532_v9  ;;  %v8221_v4 = vpack.i.bf16 %v3608_v43, %v3607_v35  ;;  %v8226_v38 = vpack.i.bf16 %v3683_v29, %v3682_v25 }
 0x653   : > { %v10830_v44 = vld [vmem:[#allocation2 + $0xa0] sm:$0x3] }
 0x654   : > { %4313 = vst.msk [vmem:[#allocation2 + $0xa0] sm:$0x3] %vm4312_vm15, %v12958_v11  ;;  %v8231_v3 = vpack.i.bf16 %v10830_v44, %v10826_v34  ;;  %v3546_v14 = vrot.slane %v10830_v44, 6  ;;  %v3621_v36 = vrot.slane %v10830_v44, 4  ;;  %v3696_v22 = vrot.slane %v10830_v44, 2 }
 0x655   : > { %vm12894_vm15 = vcmask 818176  }
 0x656   : > { %8217 = vrot.lane.b32.xlu0 %v8216_v41, %s12896_s27  ;;  %8232 = vrot.lane.b32.xlu1 %v8231_v3, %s12902_s1  ;;  %v3547_v57 = vsel %vm1455_vm9, %v3533_v6, %v3546_v14  ;;  %v3622_v60 = vsel %vm1483_vm14, %v3608_v43, %v3621_v36  ;;  %v10853_v2 = vpop.permute.xlu1 %8042  ;;  %v3697_v42 = vsel %vm12895_vm0, %v3683_v29, %v3696_v22  ;;  %v10880_v56 = vpop.permute.xlu0 %8037 }
 0x657   : > { %v8251_v62 = vpack.i.bf16 %v3547_v57, %v3545_v54  ;;  %v8256_v15 = vpack.i.bf16 %v3622_v60, %v3620_v39  ;;  %v8261_v46 = vpack.i.bf16 %v3697_v42, %v3695_v31  ;;  %v8039_v22 = vunpack.i.l.bf16 %v10880_v56 }
 0x658   : > { %v8040_v42 = vunpack.i.h.bf16 %v10880_v56  ;;  %v8044_v31 = vunpack.i.l.bf16 %v10853_v2 }
 0x65a   : > { %8222 = vrot.lane.b32.xlu0 %v8221_v4, %s12898_s8  ;;  %8252 = vrot.lane.b32.xlu1 %v8251_v62, %s12896_s27  ;;  %v10896_v45 = vpop.permute.xlu0 %8047 }
 0x65e   : > { %8227 = vrot.lane.b32.xlu0 %v8226_v38, %s8704_s4  ;;  %8257 = vrot.lane.b32.xlu1 %v8256_v15, %s12898_s8 }
 0x660   : > { %v10859_v63 = vpop.permute.xlu1 %8052 }
 0x661   : > { %v8054_v16 = vunpack.i.l.bf16 %v10859_v63 }
 0x662   : > { %8237 = vrot.lane.b32.xlu0 %v8216_v41, %s12900_s28  ;;  %8262 = vrot.lane.b32.xlu1 %v8261_v46, %s8704_s4  ;;  %v10906_v13 = vpop.permute.xlu0 %8077 }
 0x664   : > { %v10863_v48 = vpop.permute.xlu1 %8057 }
 0x666   : > { %8242 = vrot.lane.b32.xlu0 %v8221_v4, %s12874_s9  ;;  %8267 = vrot.lane.b32.xlu1 %v8251_v62, %s12900_s28  ;;  %v10908_v32 = vpop.permute.xlu0 %8082 }
 0x668   : > { %v10873_v10 = vpop.permute.xlu1 %8062 }
 0x669   : > { %v8065_v51 = vunpack.i.h.bf16 %v10873_v10  ;;  %v8064_v18 = vunpack.i.l.bf16 %v10873_v10 }
 0x66a   : > { %8247 = vrot.lane.b32.xlu0 %v8226_v38, %s12890_s5  ;;  %8272 = vrot.lane.b32.xlu1 %v8256_v15, %s12874_s9  ;;  %v10912_v6 = vpop.permute.xlu0 %8087  ;;  %s12988_s9 = sld [smem:[#allocation22_spill]] }
 0x66b   : > { %v3577_v50 = vsel %vm953_vm7, %v8064_v18, %v8065_v51 }
 0x66c   : > { %v3993_v61 = vsel %vm1455_vm9, %v10694_v53, %v3577_v50  ;;  %v4083_v53 = vld [vmem:[%s12962_s3 + $0x8] sm:$0x3]  ;;  %v10910_v26 = vpop.permute.xlu1 %8067 }
 0x66d   : > { %v10890_v12 = vpack.c.bf16 %v3993_v61, %v10701_v49  ;;  %v4082_v49 = vld [vmem:[%s12962_s3] sm:$0xff]  ;;  %v8070_v29 = vunpack.i.h.bf16 %v10910_v26  ;;  %v8069_v60 = vunpack.i.l.bf16 %v10910_v26 }
 0x66e   : > { %3982 = vrot.lane.b32.xlu0 %v3979_v23, %s12896_s27  ;;  %8277 = vrot.lane.b32.xlu1 %v8261_v46, %s12890_s5  ;;  %v8055_v46 = vunpack.i.h.bf16 %v10859_v63 }
 0x66f   : > { %4124 = vmatprep.subr.bf16.mxu0 %v10890_v12  ;;  %v3651_v28 = vsel %vm1005_vm8, %v8039_v22, %v8069_v60  ;;  %v3652_v21 = vsel %vm1005_vm8, %v8069_v60, %v8070_v29 }
 0x670   : > { %v10914_v9 = vpop.permute.xlu1 %8072 }
 0x671   : > { %v8075_v38 = vunpack.i.h.bf16 %v10914_v9 }
 0x672   : > { %3984 = vrot.lane.b32.xlu0 %v3981_v30, %s12896_s27  ;;  %8282 = vrot.lane.b32.xlu1 %v8281_v5, %s12890_s5 }
 0x676   : > { %4091 = vperm.xlu0 %7904, %v4083_v53   ;;  %4086 = vperm.xlu1 %7905, %v4082_v49  }
 0x682   : > { %v10916_v24 = vpop.permute.xlu1 %8092 }
 0x685   : > { %v10918_v41 = vpop.permute.xlu0 %8097 }
 0x686   : > { %v10922_v43 = vpop.permute.xlu1 %8112  ;;  %v8099_v40 = vunpack.i.l.bf16 %v10918_v41 }
 0x687   : > { %v12877_v5 = vunpack.i.h.bf16 %v10922_v43 }
 0x689   : > { %v10920_v3 = vpop.permute.xlu0 %8102 }
 0x68a   : > { %v10926_v36 = vpop.permute.xlu1 %8117  ;;  %v12879_v25 = vunpack.i.h.bf16 %v10920_v3  ;;  %v8104_v39 = vunpack.i.l.bf16 %v10920_v3 }
 0x68c   : > { %v3658_v61 = vsel %vm1005_vm8, %v8104_v39, %v12879_v25  ;;  %v8045_v25 = vunpack.i.h.bf16 %v10853_v2  ;;  %v12882_v2 = vunpack.i.h.bf16 %v10912_v6 }
 0x68d   : > { %v10924_v14 = vpop.permute.xlu0 %8107 }
 0x68e   : > { %v10932_v62 = vpop.permute.xlu1 %8127 }
 0x691   : > { %v8123_v35 = vpop.permute.xlu0 %8122 }
 0x692   : > { %v8124_v57 = vunpack.i.l.bf16 %v8123_v35  ;;  %v8125_v15 = vunpack.i.h.bf16 %v8123_v35  ;;  %v8114_v35 = vunpack.i.l.bf16 %v10922_v43 }
 0x694   : > { %v3576_v54 = vsel %vm953_vm7, %v8124_v57, %v8064_v18  ;;  %v8100_v18 = vunpack.i.h.bf16 %v10918_v41  ;;  %v3578_v53 = vsel %vm953_vm7, %v8065_v51, %v8125_v15  ;;  %v3657_v57 = vsel %vm1005_vm8, %v8040_v42, %v8104_v39 }
 0x695   : > { %v3992_v7 = vsel %vm1455_vm9, %v10669_v27, %v3576_v54  ;;  %v10939_v47 = vpop.permute.xlu0 %8132  ;;  %v8074_v27 = vunpack.i.l.bf16 %v10914_v9 }
 0x696   : > { %v4036_v4 = vpack.c.bf16 %v3992_v7, %v10673_v20  ;;  %v8129_v20 = vunpack.i.l.bf16 %v10932_v62 }
 0x697   : > { %v3727_v49 = vsel %vm1057_vm10, %v8074_v27, %v8075_v38 }
 0x698   : > { %4125 = vmatpush1.bf16.msra.mxu0 %v4036_v4  ;;  %v3726_v30 = vsel %vm1057_vm10, %v8129_v20, %v8074_v27  ;;  %v4007_v60 = vsel %vm12895_vm0, %v3658_v61, %v3727_v49  ;;  %v8085_v27 = vunpack.i.h.bf16 %v10908_v32 }
 0x699   : > { %v4006_v42 = vsel %vm12895_vm0, %v3657_v57, %v3726_v30 }
 0x69a   : > { %v10971_v54 = vpop.permute.xlu0 %8137 }
 0x69c   : > { %v10950_v23 = vpop.permute.xlu1 %8142 }
 0x69d   : > { %v8145_v56 = vunpack.i.h.bf16 %v10950_v23  ;;  %v12876_v50 = vunpack.i.l.bf16 %v10950_v23 }
 0x69f   : > { %v3582_v7 = vsel %vm953_vm7, %v8100_v18, %v8145_v56  ;;  %v10977_v4 = vsel %vm953_vm7, %v8145_v56, %v8099_v40  ;;  %v3579_v22 = vsel %vm953_vm7, %v8125_v15, %v12876_v50  ;;  %v3994_v18 = vsel %vm1455_vm9, %v10734_v19, %v3578_v53 }
 0x6a0   : > { %v10979_v10 = vpop.permute.xlu1 %8147  ;;  %v4000_v51 = vsel %vm1483_vm14, %v10977_v4, %v3652_v21  ;;  %v3999_v39 = vsel %vm1483_vm14, %v3582_v7, %v3651_v28  ;;  %v8084_v56 = vunpack.i.l.bf16 %v10908_v32  ;;  %v12878_v21 = vunpack.i.l.bf16 %v10916_v24 }
 0x6a1   : > { %v4044_v20 = vpack.c.bf16 %v4007_v60, %v4000_v51  ;;  %v3995_v61 = vsel %vm1455_vm9, %v10784_v55, %v3579_v22  ;;  %v4043_v49 = vpack.c.bf16 %v4006_v42, %v3999_v39  ;;  %v8050_v15 = vunpack.i.h.bf16 %v10896_v45  ;;  %v11015_v22 = vpop.permute.xlu0 %8162 }
 0x6a2   : > { %v8049_v28 = vunpack.i.l.bf16 %v10896_v45  ;;  %v8140_v7 = vunpack.i.h.bf16 %v10971_v54  ;;  %v11000_v30 = vpack.c.bf16 %v3995_v61, %v10732_v17  ;;  %v8080_v19 = vunpack.i.h.bf16 %v10906_v13 }
 0x6a3   : > { %4126 = vmatprep.subr.bf16.mxu0 %v4044_v20  ;;  %v8079_v53 = vunpack.i.l.bf16 %v10906_v13  ;;  %v11007_v55 = vpack.c.bf16 %v3994_v18, %v10706_v1  ;;  %v3841_v45 = vsel %vm1187_vm12, %v8114_v35, %v12877_v5  ;;  %v8110_v51 = vunpack.i.h.bf16 %v10924_v14 }
 0x6a4   : > { %v11004_v57 = vpop.permute.xlu1 %8152  ;;  %4127 = vmatpush1.bf16.msra.mxu0 %v4043_v49  ;;  %v8109_v60 = vunpack.i.l.bf16 %v10924_v14  ;;  %v8134_v17 = vunpack.i.l.bf16 %v10939_v47  ;;  %4167 = vmatprep.subr.bf16.mxu1 %v11000_v30  ;;  %v3780_v20 = vsel %vm824_vm2, %v8049_v28, %v8054_v16  ;;  %v3781_v1 = vsel %vm824_vm2, %v8054_v16, %v8055_v46 }
 0x6a5   : > { %v8155_v39 = vunpack.i.h.bf16 %v11004_v57  ;;  %4168 = vmatpush1.bf16.msra.mxu1 %v11007_v55  ;;  %v3787_v42 = vsel %vm824_vm2, %v8050_v15, %v12878_v21  ;;  %v3889_v18 = vsel %vm1242_vm13, %v8084_v56, %v8085_v27  ;;  %v3786_v61 = vsel %vm824_vm2, %v8140_v7, %v8050_v15 }
 0x6a6   : > { %v4021_v50 = vsel %vm1483_vm14, %v3841_v45, %v3889_v18  ;;  %v3835_v21 = vsel %vm1187_vm12, %v8079_v53, %v8080_v19  ;;  %v3834_v15 = vsel %vm1187_vm12, %v8044_v31, %v8079_v53  ;;  %v3888_v7 = vsel %vm1242_vm13, %v8134_v17, %v8084_v56 }
 0x6a7   : > { %v3732_v49 = vsel %vm1057_vm10, %v8110_v51, %v8155_v39  ;;  %v3733_v28 = vsel %vm1057_vm10, %v8155_v39, %v8109_v60  ;;  %v4014_v51 = vsel %vm1455_vm9, %v3787_v42, %v3835_v21  ;;  %v4013_v45 = vsel %vm1455_vm9, %v3786_v61, %v3834_v15 }
 0x6a8   : > { %v4051_v5 = vpack.c.bf16 %v3781_v1, %v3733_v28  ;;  %v4050_v16 = vpack.c.bf16 %v3780_v20, %v3732_v49  ;;  %v4058_v39 = vpack.c.bf16 %v4021_v50, %v4014_v51  ;;  %v3840_v20 = vsel %vm1187_vm12, %v8045_v25, %v8114_v35  ;;  %v11047_v1 = vpop.permute.xlu0 %8167 }
 0x6a9   : > { %v4020_v18 = vsel %vm1483_vm14, %v3840_v20, %v3888_v7  ;;  %v8089_v31 = vunpack.i.l.bf16 %v10912_v6  ;;  %v8095_v56 = vunpack.i.h.bf16 %v10916_v24  ;;  %v8170_v50 = vunpack.i.h.bf16 %v11047_v1 }
 0x6aa   : > { %4128 = vmatprep.subr.bf16.mxu0 %v4051_v5  ;;  %v4057_v53 = vpack.c.bf16 %v4020_v18, %v4013_v45  ;;  %v8130_v5 = vunpack.i.h.bf16 %v10932_v62  ;;  %v8059_v25 = vunpack.i.l.bf16 %v10863_v48  ;;  %v8120_v17 = vunpack.i.h.bf16 %v10926_v36 }
 0x6ab   : > { %4129 = vmatpush1.bf16.msra.mxu0 %v4050_v16  ;;  %v8135_v42 = vunpack.i.h.bf16 %v10939_v47  ;;  %v12881_v61 = vunpack.i.l.bf16 %v10971_v54  ;;  %v12883_v49 = vunpack.i.l.bf16 %v11015_v22  ;;  %v12880_v62 = vunpack.i.l.bf16 %v10926_v36 }
 0x6ac   : > { %4130 = vmatprep.subr.bf16.mxu0 %v4058_v39  ;;  %v3951_v28 = vsel %vm1297_vm6, %v8059_v25, %v8089_v31  ;;  %v8149_v16 = vunpack.i.l.bf16 %v10979_v10  ;;  %v3952_v15 = vsel %vm1297_vm6, %v8089_v31, %v12882_v2  ;;  %v11072_v7 = vsel %vm824_vm2, %v8055_v46, %v8095_v56 }
 0x6ad   : > { %v3728_v47 = vsel %vm1057_vm10, %v8075_v38, %v8130_v5  ;;  %v12886_v51 = vunpack.i.h.bf16 %v10979_v10  ;;  %v3894_v39 = vsel %vm1242_vm13, %v8120_v17, %v8170_v50  ;;  %v12885_v20 = vunpack.i.l.bf16 %v11004_v57 }
 0x6ae   : > { %v3895_v9 = vsel %vm1242_vm13, %v8170_v50, %v12880_v62  ;;  %v11092_v38 = vsel %vm1242_vm13, %v8085_v27, %v8135_v42  ;;  %v3783_v25 = vsel %vm824_vm2, %v8095_v56, %v12881_v61  ;;  %v3653_v32 = vsel %vm1005_vm8, %v8070_v29, %v8149_v16 }
 0x6af   : > { %v11057_v35 = vpop.permute.xlu1 %8157  ;;  %4131 = vmatpush1.bf16.msra.mxu0 %v4057_v53  ;;  %v11100_v53 = vsel %vm1187_vm12, %v8080_v19, %v12883_v49  ;;  %v3654_v19 = vsel %vm1005_vm8, %v8149_v16, %v12886_v51  ;;  %v4028_v26 = vsel %vm12895_vm0, %v3895_v9, %v3952_v15  ;;  %v4027_v29 = vsel %vm12895_vm0, %v3894_v39, %v3951_v28 }
 0x6b0   : > { %v8160_v16 = vunpack.i.h.bf16 %v11057_v35  ;;  %v8159_v15 = vunpack.i.l.bf16 %v11057_v35 }
 0x6b2   : > { %v11079_v45 = vpop.permute.xlu0 %8172 }
 0x6b3   : > { %v12884_v18 = vunpack.i.h.bf16 %v11079_v45  ;;  %v8174_v31 = vunpack.i.l.bf16 %v11079_v45  ;;  %v11084_v63 = vpop.permute.xlu1 %8197 }
 0x6b4   : > { %v12888_v50 = vunpack.i.h.bf16 %v11084_v63  ;;  %v8199_v17 = vunpack.i.l.bf16 %v11084_v63 }
 0x6b5   : > { %v11116_v13 = vsel %vm953_vm7, %v8174_v31, %v12884_v18  ;;  %v11126_v56 = vsel %vm953_vm7, %v8099_v40, %v8174_v31  ;;  %v3729_v18 = vsel %vm1057_vm10, %v8130_v5, %v12885_v20  ;;  %v12963_v40 = vunpack.i.h.bf16 %v10920_v3 }
 0x6b6   : > { %v11111_v62 = vpop.permute.xlu0 %8177  ;;  %v4002_v9 = vsel %vm1483_vm14, %v11116_v13, %v3654_v19  ;;  %v3735_v5 = vsel %vm1057_vm10, %v8199_v17, %v12888_v50  ;;  %v4001_v46 = vsel %vm1483_vm14, %v11126_v56, %v3653_v32  ;;  %v3734_v50 = vsel %vm1057_vm10, %v8109_v60, %v8199_v17 }
 0x6b7   : > { %v12887_v61 = vunpack.i.h.bf16 %v11111_v62  ;;  %v8179_v2 = vunpack.i.l.bf16 %v11111_v62  ;;  %v11130_v49 = vpop.permute.xlu1 %8202  ;;  %v3789_v32 = vsel %vm824_vm2, %v8159_v15, %v8160_v16 }
 0x6b8   : > { %v8205_v28 = vunpack.i.h.bf16 %v11130_v49  ;;  %v8204_v41 = vunpack.i.l.bf16 %v11130_v49 }
 0x6b9   : > { %v3659_v39 = vsel %vm1005_vm8, %v12963_v40, %v8179_v2  ;;  %v3660_v31 = vsel %vm1005_vm8, %v8179_v2, %v12887_v61 }
 0x6ba   : > { %v8183_v20 = vpop.permute.xlu0 %8182  ;;  %v4009_v51 = vsel %vm12895_vm0, %v3660_v31, %v3729_v18  ;;  %v4008_v3 = vsel %vm12895_vm0, %v3659_v39, %v3728_v47  ;;  %v3843_v40 = vsel %vm1187_vm12, %v8204_v41, %v8205_v28  ;;  %v4053_v18 = vpack.c.bf16 %v3783_v25, %v3735_v5 }
 0x6bb   : > { %v8185_v2 = vunpack.i.h.bf16 %v8183_v20  ;;  %v8184_v61 = vunpack.i.l.bf16 %v8183_v20  ;;  %v11157_v21 = vpop.permute.xlu1 %8207  ;;  %v4046_v19 = vpack.c.bf16 %v4009_v51, %v4002_v9  ;;  %v4045_v27 = vpack.c.bf16 %v4008_v3, %v4001_v46 }
 0x6bc   : > { %v12964_v47 = vunpack.i.l.bf16 %v11047_v1  ;;  %v12965_v31 = vunpack.i.h.bf16 %v10863_v48  ;;  %v8210_v51 = vunpack.i.h.bf16 %v11157_v21  ;;  %v8209_v46 = vunpack.i.l.bf16 %v11157_v21 }
 0x6bd   : > { %4169 = vmatprep.subr.bf16.mxu1 %v4046_v19  ;;  %v12967_v25 = vunpack.i.h.bf16 %v10922_v43  ;;  %v12969_v43 = vunpack.i.h.bf16 %v11015_v22 }
 0x6be   : > { %v3891_v39 = vsel %vm1242_vm13, %v8135_v42, %v12964_v47  ;;  %v3958_v20 = vsel %vm1297_vm6, %v8185_v2, %v12965_v31  ;;  %v12966_v14 = vmov %v12965_v31  ;;  %v11179_v9 = vpop.permute.xlu0 %8187  ;;  %4170 = vmatpush1.bf16.msra.mxu1 %v4045_v27  ;;  %v12968_v2 = vunpack.i.l.bf16 %v10916_v24 }
 0x6bf   : > { %v3959_v60 = vsel %vm1297_vm6, %v12966_v14, %v8184_v61  ;;  %v3842_v17 = vsel %vm1187_vm12, %v12967_v25, %v8204_v41  ;;  %v4064_v5 = vpack.c.bf16 %v3958_v20, %v4027_v29  ;;  %v4023_v3 = vsel %vm1483_vm14, %v3843_v40, %v3891_v39  ;;  %4171 = vmatprep.subr.bf16.mxu1 %v4053_v18  ;;  %v11187_v31 = vpop.permute.xlu1 %8212 }
 0x6c0   : > { %v4065_v42 = vpack.c.bf16 %v3959_v60, %v4028_v26  ;;  %v3788_v47 = vsel %vm824_vm2, %v12968_v2, %v8159_v15  ;;  %v8190_v19 = vunpack.i.h.bf16 %v11179_v9  ;;  %v8189_v48 = vunpack.i.l.bf16 %v11179_v9 }
 0x6c1   : > { %v12970_v41 = vunpack.i.l.bf16 %v11015_v22  ;;  %v8215_v26 = vunpack.i.h.bf16 %v11187_v31  ;;  %v8214_v29 = vunpack.i.l.bf16 %v11187_v31  ;;  %v4052_v24 = vpack.c.bf16 %v11072_v7, %v3734_v50 }
 0x6c2   : > { %4132 = vmatprep.subr.bf16.mxu0 %v4065_v42  ;;  %v4022_v18 = vsel %vm1483_vm14, %v3842_v17, %v11092_v38  ;;  %v3897_v39 = vsel %vm1242_vm13, %v8209_v46, %v8210_v51  ;;  %v3954_v20 = vsel %vm1297_vm6, %v8189_v48, %v8190_v19  ;;  %v12971_v14 = vunpack.i.h.bf16 %v10912_v6 }
 0x6c3   : > { %v3837_v27 = vsel %vm1187_vm12, %v12970_v41, %v12969_v43  ;;  %4133 = vmatpush1.bf16.msra.mxu0 %v4064_v5  ;;  %4172 = vmatpush1.bf16.msra.mxu1 %v4052_v24  ;;  %v3961_v7 = vsel %vm1297_vm6, %v8214_v29, %v8215_v26  ;;  %v4030_v38 = vsel %vm12895_vm0, %v3897_v39, %v3954_v20 }
 0x6c4   : > { %v4016_v15 = vsel %vm1455_vm9, %v3789_v32, %v3837_v27  ;;  %v3953_v60 = vsel %vm1297_vm6, %v12971_v14, %v8189_v48  ;;  %4134 = vmatprep.subr.bf16.mxu0 %v11007_v55  ;;  %v4015_v50 = vsel %vm1455_vm9, %v3788_v47, %v11100_v53  ;;  %v12972_v32 = vunpack.i.l.bf16 %v10926_v36  ;;  %v11219_v6 = vpop.permute.xlu0 %8192 }
 0x6c5   : > { %v4060_v40 = vpack.c.bf16 %v4023_v3, %v4016_v15  ;;  %v4074_v55 = vpack.c.bf16 %v11126_v56, %v11126_v56  ;;  %v4059_v17 = vpack.c.bf16 %v4022_v18, %v4015_v50  ;;  %v4073_v42 = vpack.c.bf16 %v10977_v4, %v10977_v4  ;;  %v11235_v4 = vld [vmem:[%s12973_s7] sm:$0x1f]   ;;  %s7497_s7 = sshll.u32 %s13056_s2, 6 }
 0x6c6   : > { %v3896_v25 = vsel %vm1242_vm13, %v12972_v32, %v8209_v46  ;;  %v3960_v5 = vsel %vm1297_vm6, %v8184_v61, %v8214_v29  ;;  %v4067_v3 = vpack.c.bf16 %v3961_v7, %v4030_v38  ;;  %v12974_v47 = vunpack.i.l.bf16 %v10950_v23 }
 0x6c7   : > { %4173 = vmatprep.subr.bf16.mxu1 %v4060_v40  ;;  %4135 = vmatpush1.bf16.msra.mxu0 %v10890_v12  ;;  %v4029_v53 = vsel %vm12895_vm0, %v3896_v25, %v3953_v60  ;;  %v4104_v56 = vsel %vm1455_vm9, %v4073_v42, 0  ;;  %v4075_v41 = vpack.c.bf16 %v11116_v13, %v11116_v13  ;;  %v8195_v40 = vunpack.i.h.bf16 %v11219_v6 }
 0x6c8   : > { %7430 = vmatprep.subr.msk.bf16.mxu0 %vm1455_vm9, %v4074_v55  ;;  %4174 = vmatpush1.bf16.msra.mxu1 %v4059_v17  ;;  %v8218_v36 = vpop.permute.xlu0 %8217  ;;  %v11229_v46 = vpop.permute.xlu1 %8232  ;;  %v4066_v2 = vpack.c.bf16 %v3960_v5, %v4029_v53  ;;  %v8194_v18 = vunpack.i.l.bf16 %v11219_v6  ;;  %v12975_v14 = vunpack.i.h.bf16 %v11079_v45  ;;  %v12976_v45 = vunpack.i.l.bf16 %v10971_v54 }
 0x6c9   : > { %4175 = vmatprep.subr.bf16.mxu1 %v4067_v3  ;;  %v11237_v61 = vunpack.i.h.bf16 %v8218_v36  ;;  %v8219_v12 = vunpack.i.l.bf16 %v8218_v36  ;;  %v4110_v60 = vsel %vm1455_vm9, %v4075_v41, 0  ;;  %v8235_v3 = vunpack.i.h.bf16 %v11229_v46 }
 0x6ca   : > { %v11271_v42 = vsel %vm824_vm2, %v12976_v45, %v8194_v18  ;;  %v3785_v53 = vsel %vm824_vm2, %v8194_v18, %v8195_v40  ;;  %v12978_v54 = vunpack.i.l.bf16 %v11004_v57 }
 0x6cb   : > { %4137 = vmatpush1.bf16.msra.mxu0 %v4104_v56  ;;  %v3580_v48 = vsel %vm953_vm7, %v12974_v47, %v8219_v12  ;;  %v3581_v43 = vsel %vm953_vm7, %v8219_v12, %v11237_v61  ;;  %v3998_v5 = vsel %vm1455_vm9, %v10830_v44, %v11237_v61 }
 0x6cc   : > { %4176 = vmatpush1.bf16.msra.mxu1 %v4066_v2  ;;  %v8223_v27 = vpop.permute.xlu0 %8222  ;;  %v8253_v29 = vpop.permute.xlu1 %8252  ;;  %v3996_v24 = vsel %vm1455_vm9, %v10788_v33, %v3580_v48  ;;  %v3997_v15 = vsel %vm1455_vm9, %v10826_v34, %v3581_v43  ;;  %v8234_v34 = vunpack.i.l.bf16 %v11229_v46  ;;  %v12979_v2 = vunpack.i.h.bf16 %v11111_v62 }
 0x6cd   : > { %v8254_v23 = vunpack.i.l.bf16 %v8253_v29  ;;  %v4040_v13 = vpack.c.bf16 %v3996_v24, %v10769_v59  ;;  %v11257_v39 = vpack.c.bf16 %v3997_v15, %v10819_v0  ;;  %v8224_v20 = vunpack.i.l.bf16 %v8223_v27 }
 0x6ce   : > { %7431 = vmatmul.mubr.msk.bf16.vlgmr.msra.gmra.mrb[32].mxu0 %vm12894_vm15, %v11235_v4  ;;  %v8225_v7 = vunpack.i.h.bf16 %v8223_v27  ;;  %v11264_v38 = vunpack.i.h.bf16 %v8253_v29  ;;  %v3790_v62 = vsel %vm824_vm2, %v8160_v16, %v8234_v34  ;;  %v4042_v15 = vpack.c.bf16 %v3998_v5, %v10821_v58 }
 0x6cf   : > { %4242 = vmatprep.mubr.bf16.mxu0 %v12943_v37  ;;  %v3586_v33 = vsel %vm953_vm7, %v12975_v14, %v8254_v23  ;;  %4177 = vmatprep.subr.bf16.mxu1 %v4040_v13 }
 0x6d0   : > { %4210 = vmatprep.subr.bf16.mxu0 %v11257_v39  ;;  %v8228_v50 = vpop.permute.xlu0 %8227  ;;  %v8258_v59 = vpop.permute.xlu1 %8257  ;;  %v4076_v32 = vpack.c.bf16 %v3586_v33, %v3586_v33  ;;  %4178 = vmatpush1.bf16.msra.mxu1 %v11000_v30  ;;  %v12977_v30 = vunpack.i.h.bf16 %v10979_v10  ;;  %v11295_v41 = vsel %vm953_vm7, %v8254_v23, %v11264_v38  ;;  %v3656_v10 = vsel %vm1005_vm8, %v8224_v20, %v8225_v7 }
 0x6d1   : > { %v8230_v0 = vunpack.i.h.bf16 %v8228_v50  ;;  %v8229_v25 = vunpack.i.l.bf16 %v8228_v50  ;;  %v8260_v55 = vunpack.i.h.bf16 %v8258_v59  ;;  %v8259_v17 = vunpack.i.l.bf16 %v8258_v59  ;;  %4211 = vmatpush1.bf16.msra.mxu0 %v4040_v13 }
 0x6d2   : > { %7432 = vmatprep.subr.msk.bf16.mxu1 %vm1455_vm9, %v4076_v32  ;;  %v3655_v36 = vsel %vm1005_vm8, %v12977_v30, %v8224_v20  ;;  %v3791_v20 = vsel %vm824_vm2, %v8234_v34, %v8235_v3  ;;  %v4004_v14 = vsel %vm1483_vm14, %v11295_v41, %v3656_v10  ;;  %v4005_v50 = vsel %vm1483_vm14, %v11264_v38, %v8225_v7 }
 0x6d3   : > { %v3730_v56 = vsel %vm1057_vm10, %v12978_v54, %v8229_v25  ;;  %v3661_v12 = vsel %vm1005_vm8, %v12979_v2, %v8259_v17  ;;  %v3662_v47 = vsel %vm1005_vm8, %v8259_v17, %v8260_v55  ;;  %v3731_v27 = vsel %vm1057_vm10, %v8229_v25, %v8230_v0 }
 0x6d4   : > { %v11291_v48 = vpop.permute.xlu0 %8237  ;;  %v8263_v43 = vpop.permute.xlu1 %8262  ;;  %v4010_v57 = vsel %vm12895_vm0, %v3661_v12, %v3730_v56  ;;  %4180 = vmatpush1.bf16.msra.mxu1 %v4110_v60  ;;  %v4011_v23 = vsel %vm12895_vm0, %v3662_v47, %v3731_v27  ;;  %v4003_v13 = vsel %vm1483_vm14, %v3586_v33, %v3655_v36  ;;  %v4012_v35 = vsel %vm12895_vm0, %v8260_v55, %v8230_v0 }
 0x6d5   : > { %v8265_v29 = vunpack.i.h.bf16 %v8263_v43  ;;  %v8264_v24 = vunpack.i.l.bf16 %v8263_v43  ;;  %v8239_v18 = vunpack.i.l.bf16 %v11291_v48  ;;  %7572 = vmatprep.subr.bf16.mxu1 %v12958_v11  ;;  %v8240_v16 = vunpack.i.h.bf16 %v11291_v48 }
 0x6d6   : > { %v4047_v60 = vpack.c.bf16 %v4010_v57, %v4003_v13  ;;  %v12980_v59 = vunpack.i.h.bf16 %v11084_v63  ;;  %v4048_v33 = vpack.c.bf16 %v4011_v23, %v4004_v14  ;;  %v12981_v63 = vunpack.i.h.bf16 %v11015_v22 }
 0x6d7   : > { %7433 = vmatmul.mubr.msk.bf16.vlgmr.msra.gmra.mrb[24].mxu1 %vm12894_vm15, %v11235_v4  ;;  %v3737_v0 = vsel %vm1057_vm10, %v8264_v24, %v8265_v29  ;;  %v4049_v36 = vpack.c.bf16 %v4012_v35, %v4005_v50  ;;  %v12982_v54 = vunpack.i.l.bf16 %v11047_v1  ;;  %v3839_v12 = vsel %vm1187_vm12, %v8239_v18, %v8240_v16 }
 0x6d8   : > { %v3736_v32 = vsel %vm1057_vm10, %v12980_v59, %v8264_v24  ;;  %v8243_v34 = vpop.permute.xlu0 %8242  ;;  %v8268_v25 = vpop.permute.xlu1 %8267  ;;  %7573 = vmatpush3.bf16.msra.mxu1 %v4042_v15  ;;  %7586 = vmatprep.mubr.msk.bf16.mxu1 %vm8709_vm5, %v12958_v11  ;;  %v3838_v7 = vsel %vm1187_vm12, %v12981_v63, %v8239_v18  ;;  %v4055_v30 = vpack.c.bf16 %v3785_v53, %v3737_v0 }
 0x6d9   : > { %v8245_v55 = vunpack.i.h.bf16 %v8243_v34  ;;  %v8244_v17 = vunpack.i.l.bf16 %v8243_v34  ;;  %v8270_v45 = vunpack.i.h.bf16 %v8268_v25  ;;  %v8269_v5 = vunpack.i.l.bf16 %v8268_v25  ;;  %4212 = vmatprep.subr.bf16.mxu0 %v4048_v33  ;;  %7574 = vmatprep.subr.bf16.mxu1 %v12958_v11 }
 0x6da   : > { %4213 = vmatpush1.bf16.msra.mxu0 %v4047_v60  ;;  %v4056_v47 = vpack.c.bf16 %v8195_v40, %v8265_v29  ;;  %v4054_v43 = vpack.c.bf16 %v11271_v42, %v3736_v32  ;;  %v4018_v15 = vsel %vm1455_vm9, %v3791_v20, %v3839_v12  ;;  %v4017_v40 = vsel %vm1455_vm9, %v3790_v62, %v3838_v7 }
 0x6db   : > { %v3892_v56 = vsel %vm1242_vm13, %v12982_v54, %v8244_v17  ;;  %v3844_v2 = vsel %vm1187_vm12, %v8205_v28, %v8269_v5  ;;  %v3845_v22 = vsel %vm1187_vm12, %v8269_v5, %v8270_v45  ;;  %4214 = vmatprep.subr.bf16.mxu0 %v4055_v30  ;;  %v3893_v1 = vsel %vm1242_vm13, %v8244_v17, %v8245_v55 }
 0x6dc   : > { %v8248_v53 = vpop.permute.xlu0 %8247  ;;  %v8273_v48 = vpop.permute.xlu1 %8272  ;;  %v4024_v10 = vsel %vm1483_vm14, %v3844_v2, %v3892_v56  ;;  %7575 = vmatpush3.bf16.msra.mxu1 %v4049_v36  ;;  %v4026_v24 = vsel %vm1483_vm14, %v8270_v45, %v8245_v55  ;;  %v4025_v6 = vsel %vm1483_vm14, %v3845_v22, %v3893_v1  ;;  %v4019_v62 = vsel %vm1455_vm9, %v8235_v3, %v8240_v16 }
 0x6dd   : > { %v8250_v49 = vunpack.i.h.bf16 %v8248_v53  ;;  %v8249_v27 = vunpack.i.l.bf16 %v8248_v53  ;;  %v8275_v28 = vunpack.i.h.bf16 %v8273_v48  ;;  %v8274_v57 = vunpack.i.l.bf16 %v8273_v48  ;;  %7576 = vmatprep.subr.bf16.mxu1 %v12958_v11 }
 0x6de   : > { %4215 = vmatpush1.bf16.msra.mxu0 %v4054_v43  ;;  %v4062_v18 = vpack.c.bf16 %v4025_v6, %v4018_v15  ;;  %v4061_v23 = vpack.c.bf16 %v4024_v10, %v4017_v40 }
 0x6df   : > { %v3955_v42 = vsel %vm1297_vm6, %v8190_v19, %v8249_v27  ;;  %v3898_v29 = vsel %vm1242_vm13, %v8210_v51, %v8274_v57  ;;  %v3899_v20 = vsel %vm1242_vm13, %v8274_v57, %v8275_v28  ;;  %v3956_v14 = vsel %vm1297_vm6, %v8249_v27, %v8250_v49 }
 0x6e0   : > { %v3983_v13 = vpop.permute.xlu0 %3982  ;;  %v8278_v35 = vpop.permute.xlu1 %8277  ;;  %4216 = vmatprep.subr.bf16.mxu0 %v4062_v18  ;;  %7577 = vmatpush3.bf16.msra.mxu1 %v4056_v47  ;;  %v4063_v51 = vpack.c.bf16 %v4026_v24, %v4019_v62  ;;  %v4031_v60 = vsel %vm12895_vm0, %v3898_v29, %v3955_v42  ;;  %v4032_v3 = vsel %vm12895_vm0, %v3899_v20, %v3956_v14 }
 0x6e1   : > { %v3986_v9 = vsel %vm953_vm7, %v11237_v61, %v3983_v13  ;;  %v8280_v21 = vunpack.i.h.bf16 %v8278_v35  ;;  %v8279_v19 = vunpack.i.l.bf16 %v8278_v35  ;;  %7578 = vmatprep.subr.bf16.mxu1 %v12958_v11  ;;  %v4035_v45 = vsel %vm1455_vm9, %v10867_v8, %v3983_v13 }
 0x6e2   : > { %4217 = vmatpush1.bf16.msra.mxu0 %v4061_v23  ;;  %v4034_v61 = vsel %vm1455_vm9, %v10830_v44, %v3986_v9 }
 0x6e3   : > { %v3962_v50 = vsel %vm1297_vm6, %v8215_v26, %v8279_v19  ;;  %v3963_v46 = vsel %vm1297_vm6, %v8279_v19, %v8280_v21  ;;  %v4071_v31 = vpack.c.bf16 %v4034_v61, %v10821_v58  ;;  %v4077_v58 = vpack.c.bf16 %v11295_v41, %v11295_v41 }
 0x6e4   : > { %v3985_v16 = vpop.permute.xlu0 %3984  ;;  %v8283_v59 = vpop.permute.xlu1 %8282  ;;  %v4069_v32 = vpack.c.bf16 %v3963_v46, %v4032_v3  ;;  %v4068_v33 = vpack.c.bf16 %v3962_v50, %v4031_v60  ;;  %7579 = vmatpush3.bf16.msra.mxu1 %v4063_v51 }
 0x6e5   : > { %v8285_v34 = vunpack.i.h.bf16 %v8283_v59  ;;  %v8284_v25 = vunpack.i.l.bf16 %v8283_v59  ;;  %7580 = vmatprep.subr.bf16.mxu1 %v12958_v11  ;;  %v3987_v26 = vsel %vm953_vm7, %v11264_v38, %v3985_v16  ;;  %v4072_v38 = vpack.c.bf16 %v4035_v45, %v10865_v52 }
 0x6e6   : > { %4218 = vmatprep.subr.bf16.mxu0 %v4069_v32  ;;  %v4078_v5 = vpack.c.bf16 %v3987_v26, %v3987_v26  ;;  %v4079_v63 = vpack.c.bf16 %v3985_v16, %v3985_v16  ;;  %v4116_v7 = vsel %vm1455_vm9, %v4077_v58, 0 }
 0x6e7   : > { %v3957_v0 = vsel %vm1297_vm6, %v8250_v49, %v8284_v25  ;;  %v3964_v55 = vsel %vm1297_vm6, %v8280_v21, %v8285_v34  ;;  %4219 = vmatpush1.bf16.msra.mxu0 %v4068_v33 }
 0x6e8   : > { %4220 = vmatprep.subr.bf16.mxu0 %v4071_v31  ;;  %v4033_v44 = vsel %vm12895_vm0, %v8275_v28, %v3957_v0  ;;  %v4122_v8 = vsel %vm1455_vm9, %v4079_v63, 0 }
 0x6e9   : > { %v4070_v17 = vpack.c.bf16 %v3964_v55, %v4033_v44 }
 0x6eb   : > { %4221 = vmatpush1.bf16.msra.mxu0 %v11257_v39  ;;  %7581 = vmatpush3.bf16.msra.mxu1 %v4070_v17 }
 0x6ec   : > { %7434 = vmatprep.subr.msk.bf16.mxu0 %vm1455_vm9, %v4078_v5  ;;  %7582 = vmatprep.subr.bf16.mxu1 %v12958_v11 }
 0x6ef   : > { %4223 = vmatpush1.bf16.msra.mxu0 %v4116_v7  ;;  %7583 = vmatpush3.bf16.msra.mxu1 %v4072_v38 }
 0x6f0   : > { %7584 = vmatprep.subr.bf16.mxu1 %v12958_v11 }
 0x6f2   : > { %7435 = vmatmul.mubr.msk.bf16.vlgmr.msra.gmra.mrb[36].mxu0 %vm12894_vm15, %v11235_v4 }
 0x6f3   : > { %7585 = vmatpush3.bf16.msra.mxu1 %v4122_v8  ;;  %4677 = vmatprep.mubr.bf16.mxu0 %v12943_v37 }
 0x6f5   : > { %v4087_v52 = vpop.permute.xlu1 %4086  ;;  %v4092_v56 = vpop.permute.xlu0 %4091 }
 0x6f6   : > { %7587 = vmatmul.mubr.msk.bf16.vlgmr.msra.gmra.mrb[28].mxu1 %vm12894_vm15, %v11235_v4  ;;  %vm12995_vm15 = vcmask 244736  }
 0x6f7   : > { %4720 = vmatprep.mubr.bf16.mxu1 %v12943_v37  ;;  %vm12996_vm0 = vmmov %vm12995_vm15 }
 0x7a1   : > { %v4158_v39 = vpop.f32.mrb[32].mxu0 }
 0x7a2   : > { %v4159_v41 = vadd.f32 %v4158_v39, %v4087_v52  ;;  %v4160_v30 = vpop.f32.mrb[33].mxu0 }
 0x7a3   : > { %v4161_v36 = vadd.f32 %v4160_v30, %v4087_v52  ;;  %v4162_v54 = vpop.f32.mrb[34].mxu0 }
 0x7a4   : > { %v4294_v2 = vmax.f32 %v4159_v41, 0.0  ;;  %v4164_v12 = vpop.f32.mrb[35].mxu0  ;;  %v4163_v47 = vadd.f32 %v4162_v54, %v4092_v56 }
 0x7a5   : > { %v4295_v22 = vmax.f32 %v4161_v36, 0.0  ;;  %v4165_v53 = vadd.f32 %v4164_v12, %v4092_v56 }
 0x7a6   : > { %4328 = vrot.lane.b32.xlu1 %v4294_v2, %s12890_s5  ;;  %v4301_v4 = vmax.f32 %v4163_v47, 0.0 }
 0x7a7   : > { %v4302_v48 = vmax.f32 %v4165_v53, 0.0  ;;  %4330 = vrot.lane.b32.xlu0 %v4295_v22, %s12890_s5 }
 0x7aa   : > { %4344 = vrot.lane.b32.xlu1 %v4302_v48, %s12890_s5  ;;  %v4201_v43 = vpop.f32.mrb[24].mxu1 }
 0x7ab   : > { %4342 = vrot.lane.b32.xlu0 %v4301_v4, %s12890_s5  ;;  %v4202_v1 = vadd.f32 %v4201_v43, %v4087_v52  ;;  %v4203_v10 = vpop.f32.mrb[25].mxu1 }
 0x7ac   : > { %v4205_v49 = vpop.f32.mrb[26].mxu1  ;;  %v4204_v28 = vadd.f32 %v4203_v10, %v4087_v52 }
 0x7ad   : > { %v4296_v27 = vmax.f32 %v4202_v1, 0.0  ;;  %v4206_v57 = vadd.f32 %v4205_v49, %v4092_v56  ;;  %v4207_v24 = vpop.f32.mrb[27].mxu1 }
 0x7ae   : > { %v4297_v6 = vmax.f32 %v4204_v28, 0.0  ;;  %v4208_v40 = vadd.f32 %v4207_v24, %v4092_v56 }
 0x7af   : > { %v4303_v15 = vmax.f32 %v4206_v57, 0.0  ;;  %4332 = vrot.lane.b32.xlu1 %v4296_v27, %s12890_s5 }
 0x7b0   : > { %v4304_v42 = vmax.f32 %v4208_v40, 0.0 }
 0x7b1   : > { %4346 = vrot.lane.b32.xlu0 %v4303_v15, %s12890_s5 }
 0x7b3   : > { %4334 = vrot.lane.b32.xlu1 %v4297_v6, %s12890_s5 }
 0x7b7   : > { %4348 = vrot.lane.b32.xlu1 %v4304_v42, %s12890_s5 }
 0x7c5   : > { %v4244_v29 = vpop.f32.mrb[36].mxu0 }
 0x7c6   : > { %v4245_v18 = vadd.f32 %v4244_v29, %v4087_v52  ;;  %v4246_v23 = vpop.f32.mrb[37].mxu0 }
 0x7c7   : > { %v4247_v13 = vadd.f32 %v4246_v23, %v4087_v52  ;;  %v4248_v35 = vpop.f32.mrb[38].mxu0 }
 0x7c8   : > { %v4298_v20 = vmax.f32 %v4245_v18, 0.0  ;;  %v4249_v14 = vadd.f32 %v4248_v35, %v4092_v56  ;;  %v4250_v62 = vpop.f32.mrb[39].mxu0 }
 0x7c9   : > { %v4299_v9 = vmax.f32 %v4247_v13, 0.0  ;;  %v4251_v21 = vadd.f32 %v4250_v62, %v4092_v56  ;;  %v4287_v19 = vpop.f32.mrb[28].mxu1 }
 0x7ca   : > { %v7588_v51 = vpop.f32.mrb[29].mxu1  ;;  %4336 = vrot.lane.b32.xlu0 %v4298_v20, %s12890_s5  ;;  %v4305_v50 = vmax.f32 %v4249_v14, 0.0  ;;  %v4288_v46 = vadd.f32 %v4287_v19, %v4087_v52 }
 0x7cb   : > { %v4290_v60 = vpop.f32.mrb[30].mxu1  ;;  %4338 = vrot.lane.b32.xlu1 %v4299_v9, %s12890_s5  ;;  %v4306_v61 = vmax.f32 %v4251_v21, 0.0 }
 0x7cc   : > { %v7589_v3 = vpop.f32.mrb[31].mxu1  ;;  %v4300_v16 = vmax.f32 %v4288_v46, 0.0  ;;  %v4291_v59 = vadd.f32 %v4290_v60, %v4092_v56 }
 0x7ce   : > { %4350 = vrot.lane.b32.xlu0 %v4305_v50, %s12890_s5  ;;  %v4307_v32 = vmax.f32 %v4291_v59, 0.0 }
 0x7cf   : > { %4352 = vrot.lane.b32.xlu1 %v4306_v61, %s12890_s5 }
 0x7d2   : > { %4340 = vrot.lane.b32.xlu0 %v4300_v16, %s12890_s5 }
 0x7d6   : > { %4354 = vrot.lane.b32.xlu0 %v4307_v32, %s12890_s5  ;;  %s13000_s5 = smov 112  }
 0x818   : > { %v4329_v33 = vpop.permute.xlu1 %4328 }
 0x819   : > { %4382 = vst.msk [vmem:[#allocation2] sm:$0xff] %vm12893_vm3, %v4329_v33  ;;  %v4331_v34 = vpop.permute.xlu0 %4330 }
 0x81a   : > { %v11410_v26 = vsel %vm1297_vm6, %v4329_v33, %v4331_v34 }
 0x81b   : > { %v4500_v17 = vrot.slane %v11410_v26, 4  ;;  %v4425_v8 = vrot.slane %v11410_v26, 6 }
 0x81c   : > { %v4345_v25 = vpop.permute.xlu1 %4344 }
 0x81d   : > { %v4343_v31 = vpop.permute.xlu0 %4342 }
 0x81e   : > { %v4362_v0 = vsel %vm1297_vm6, %v4343_v31, %v4345_v25  ;;  %4389 = vst.msk [vmem:[#allocation2 + $0x70] sm:$0x3] %vm12983_vm11, %v4343_v31  ;;  %vm12984_vm11 = vcmask 517120  }
 0x81f   : > { %4390 = vst [vmem:[#allocation2 + $0x78] sm:$0x3] %v4362_v0 }
 0x820   : > { %v11414_v55 = vld [vmem:[#allocation2] sm:$0xff] }
 0x821   : > { %v4499_v44 = vrot.slane %v11414_v55, 4  ;;  %5085 = vst.msk [vmem:[#allocation2] sm:$0xff] %vm824_vm2, %v12958_v11  ;;  %v4333_v5 = vpop.permute.xlu1 %4332  ;;  %v4424_v47 = vrot.slane %v11414_v55, 6 }
 0x822   : > { %v11423_v38 = vsel %vm1297_vm6, %v4331_v34, %v4333_v5 }
 0x823   : > { %v8286_v45 = vpack.i.bf16 %v4500_v17, %v4499_v44  ;;  %v4347_v63 = vpop.permute.xlu0 %4346  ;;  %v4426_v52 = vrot.slane %v11423_v38, 6  ;;  %v4501_v41 = vrot.slane %v11423_v38, 4 }
 0x824   : > { %v4363_v39 = vsel %vm1297_vm6, %v4345_v25, %v4347_v63 }
 0x825   : > { %v11420_v58 = vld [vmem:[#allocation2 + $0x70] sm:$0x3]  ;;  %8287 = vrot.lane.b32.xlu1 %v8286_v45, %s12898_s8  ;;  %4391 = vst [vmem:[#allocation2 + $0x80] sm:$0x3] %v4363_v39  ;;  %v4335_v30 = vpop.permute.xlu1 %4334  ;;  %v8291_v54 = vpack.i.bf16 %v4426_v52, %v4425_v8 }
 0x826   : > { %5086 = vst.msk [vmem:[#allocation2 + $0x70] sm:$0x3] %vm12984_vm11, %v12958_v11  ;;  %v4506_v7 = vrot.slane %v11420_v58, 4  ;;  %v11435_v56 = vsel %vm1297_vm6, %v4333_v5, %v4335_v30  ;;  %v11441_v22 = vld [vmem:[#allocation2 + $0x78] sm:$0x3]  ;;  %vm5090_vm11 = vcmask 1042048  }
 0x827   : > { %4385 = vst [vmem:[#allocation2 + $0x18] sm:$0xff] %v11435_v56  ;;  %v4427_v12 = vrot.slane %v11435_v56, 6  ;;  %v4508_v43 = vrot.slane %v11441_v22, 4  ;;  %v4433_v1 = vrot.slane %v11441_v22, 6  ;;  %v4431_v29 = vrot.slane %v11420_v58, 6 }
 0x828   : > { %v4507_v36 = vsel %vm1483_vm14, %v4499_v44, %v4506_v7  ;;  %v4502_v14 = vrot.slane %v11435_v56, 4 }
 0x829   : > { %v8296_v2 = vpack.i.bf16 %v4507_v36, %v4501_v41  ;;  %8292 = vrot.lane.b32.xlu1 %v8291_v54, %s12896_s27  ;;  %v4349_v53 = vpop.permute.xlu1 %4348  ;;  %v8301_v4 = vpack.i.bf16 %v4427_v12, %v4424_v47  ;;  %v4509_v28 = vsel %vm1483_vm14, %v4500_v17, %v4508_v43  ;;  %v4434_v24 = vsel %vm1455_vm9, %v4425_v8, %v4433_v1 }
 0x82a   : > { %v4364_v48 = vsel %vm1297_vm6, %v4347_v63, %v4349_v53  ;;  %v4432_v9 = vsel %vm1455_vm9, %v4424_v47, %v4431_v29 }
 0x82b   : > { %8297 = vrot.lane.b32.xlu0 %v8296_v2, %s12898_s8  ;;  %4392 = vst [vmem:[#allocation2 + $0x88] sm:$0x3] %v4364_v48 }
 0x82c   : > { %v11447_v10 = vld [vmem:[#allocation2 + $0x80] sm:$0x3] }
 0x82d   : > { %v4510_v49 = vrot.slane %v11447_v10, 4  ;;  %v4435_v27 = vrot.slane %v11447_v10, 6 }
 0x82f   : > { %8302 = vrot.lane.b32.xlu0 %v8301_v4, %s12896_s27  ;;  %v4511_v57 = vsel %vm1483_vm14, %v4501_v41, %v4510_v49  ;;  %v4436_v15 = vsel %vm1455_vm9, %v4426_v52, %v4435_v27  ;;  %v4604_v27 = vld [vmem:[%s12986_s6] sm:$0xff] }
 0x830   : > { %v8311_v6 = vpack.i.bf16 %v4511_v57, %v4509_v28  ;;  %v8306_v40 = vpack.i.bf16 %v4436_v15, %v4434_v24  ;;  %v4605_v24 = vld [vmem:[%s12986_s6 + $0x8] sm:$0x3] }
 0x832   : > { %v11456_v42 = vld [vmem:[#allocation2 + $0x88] sm:$0x3]  ;;  %8312 = vrot.lane.b32.xlu1 %v8311_v6, %s12898_s8 }
 0x833   : > { %8307 = vrot.lane.b32.xlu0 %v8306_v40, %s12896_s27  ;;  %5091 = vst.msk [vmem:[#allocation2 + $0x88] sm:$0x3] %vm5090_vm11, %v12958_v11  ;;  %v4437_v59 = vrot.slane %v11456_v42, 6  ;;  %vm12985_vm11 = vcmask 386048   ;;  %v4512_v44 = vrot.slane %v11456_v42, 4 }
 0x835   : > { %v4438_v31 = vsel %vm1455_vm9, %v4427_v12, %v4437_v59  ;;  %v4513_v39 = vsel %vm1483_vm14, %v4502_v14, %v4512_v44 }
 0x83c   : > { %v4337_v18 = vpop.permute.xlu0 %4336 }
 0x83d   : > { %v11463_v23 = vsel %vm1297_vm6, %v4335_v30, %v4337_v18  ;;  %v4339_v13 = vpop.permute.xlu1 %4338 }
 0x83e   : > { %4386 = vst [vmem:[#allocation2 + $0x20] sm:$0xff] %v11463_v23  ;;  %v11467_v35 = vsel %vm1297_vm6, %v4337_v18, %v4339_v13  ;;  %v4428_v20 = vrot.slane %v11463_v23, 6  ;;  %v4503_v62 = vrot.slane %v11463_v23, 4 }
 0x83f   : > { %5089 = vst.msk [vmem:[#allocation2 + $0x20] sm:$0xff] %vm1242_vm13, %v12958_v11  ;;  %4387 = vst [vmem:[#allocation2 + $0x28] sm:$0xff] %v11467_v35  ;;  %v4429_v63 = vrot.slane %v11467_v35, 6  ;;  %v4504_v47 = vrot.slane %v11467_v35, 4 }
 0x840   : > { %v4351_v21 = vpop.permute.xlu0 %4350  ;;  %v8316_v19 = vpack.i.bf16 %v4432_v9, %v4428_v20  ;;  %v8321_v51 = vpack.i.bf16 %v4503_v62, %v4502_v14 }
 0x841   : > { %v4365_v60 = vsel %vm1297_vm6, %v4349_v53, %v4351_v21  ;;  %v4353_v50 = vpop.permute.xlu1 %4352 }
 0x842   : > { %4393 = vst [vmem:[#allocation2 + $0x90] sm:$0x3] %v4365_v60  ;;  %v4366_v46 = vsel %vm1297_vm6, %v4351_v21, %v4353_v50  ;;  %8317 = vrot.lane.b32.xlu1 %v8316_v19, %s12896_s27  ;;  %8322 = vrot.lane.b32.xlu0 %v8321_v51, %s12898_s8 }
 0x843   : > { %4394 = vst [vmem:[#allocation2 + $0x98] sm:$0x3] %v4366_v46 }
 0x844   : > { %v4341_v3 = vpop.permute.xlu0 %4340 }
 0x845   : > { %v4361_v61 = vsel %vm1297_vm6, %v4339_v13, %v4341_v3 }
 0x846   : > { %4388 = vst.msk [vmem:[#allocation2 + $0x30] sm:$0xff] %vm1187_vm12, %v4361_v61 }
 0x848   : > { %v4355_v16 = vpop.permute.xlu0 %4354 }
 0x849   : > { %v11483_v32 = vld [vmem:[#allocation2 + $0x90] sm:$0x3]  ;;  %v4367_v33 = vsel %vm1297_vm6, %v4353_v50, %v4355_v16 }
 0x84a   : > { %5092 = vst.msk [vmem:[#allocation2 + $0x90] sm:$0x3] %vm12892_vm1, %v12958_v11  ;;  %v4439_v34 = vrot.slane %v11483_v32, 6  ;;  %v4514_v25 = vrot.slane %v11483_v32, 4  ;;  %v11496_v5 = vld [vmem:[#allocation2 + $0x98] sm:$0x3] }
 0x84b   : > { %4395 = vst.msk [vmem:[#allocation2 + $0xa0] sm:$0x3] %vm12985_vm11, %v4367_v33  ;;  %v4441_v41 = vrot.slane %v11496_v5, 6  ;;  %v4516_v4 = vrot.slane %v11496_v5, 4  ;;  %vm12987_vm11 = vcmask 1046528   ;;  %vm12989_vm1 = vcmask 244736  }
 0x84c   : > { %v4440_v0 = vsel %vm1455_vm9, %v4428_v20, %v4439_v34  ;;  %v4515_v8 = vsel %vm1483_vm14, %v4503_v62, %v4514_v25 }
 0x84d   : > { %v8326_v17 = vpack.i.bf16 %v4440_v0, %v4438_v31  ;;  %v11494_v45 = vld [vmem:[#allocation2 + $0x30] sm:$0xff]  ;;  %v8331_v30 = vpack.i.bf16 %v4515_v8, %v4513_v39  ;;  %v4442_v53 = vsel %vm1455_vm9, %v4429_v63, %v4441_v41  ;;  %v4517_v28 = vsel %vm1483_vm14, %v4504_v47, %v4516_v4  ;;  %v11559_v4 = vld [vmem:[%s12988_s9] sm:$0x1f]   ;;  %s11681_s9 = scalar_lea.vmem %s12839_s22, %s7497_s7  ;;  %s12999_s7 = smov 96  }
 0x84e   : > { %v4430_v7 = vrot.slane %v11494_v45, 6  ;;  %v4505_v36 = vrot.slane %v11494_v45, 4 }
 0x84f   : > { %8327 = vrot.lane.b32.xlu1 %v8326_v17, %s12896_s27 }
 0x850   : > { %v8336_v52 = vpack.i.bf16 %v4430_v7, %v4429_v63  ;;  %v8341_v43 = vpack.i.bf16 %v4505_v36, %v4504_v47 }
 0x852   : > { %v11505_v54 = vld [vmem:[#allocation2 + $0xa0] sm:$0x3]  ;;  %8337 = vrot.lane.b32.xlu0 %v8336_v52, %s12896_s27 }
 0x853   : > { %v4443_v2 = vrot.slane %v11505_v54, 6  ;;  %v4518_v12 = vrot.slane %v11505_v54, 4  ;;  %8332 = vrot.lane.b32.xlu1 %v8331_v30, %s12898_s8 }
 0x855   : > { %v4444_v48 = vsel %vm1455_vm9, %v4430_v7, %v4443_v2  ;;  %v4519_v49 = vsel %vm1483_vm14, %v4505_v36, %v4518_v12 }
 0x856   : > { %v8346_v1 = vpack.i.bf16 %v4444_v48, %v4442_v53  ;;  %v8351_v57 = vpack.i.bf16 %v4519_v49, %v4517_v28 }
 0x857   : > { %8342 = vrot.lane.b32.xlu1 %v8341_v43, %s12898_s8 }
 0x858   : > { %8347 = vrot.lane.b32.xlu0 %v8346_v1, %s12896_s27 }
 0x85b   : > { %4608 = vperm.xlu1 %7905, %v4604_v27  }
 0x85c   : > { %8352 = vrot.lane.b32.xlu0 %v8351_v57, %s12898_s8 }
 0x860   : > { %4613 = vperm.xlu0 %7904, %v4605_v24  }
 0x897   : > { %v8288_v15 = vpop.permute.xlu1 %8287 }
 0x898   : > { %v8290_v50 = vunpack.i.h.bf16 %v8288_v15  ;;  %v8289_v31 = vunpack.i.l.bf16 %v8288_v15 }
 0x89a   : > { %v4548_v8 = vsel %vm1005_vm8, %v8289_v31, %v8290_v50 }
 0x89b   : > { %v8293_v6 = vpop.permute.xlu1 %8292 }
 0x89c   : > { %v8295_v29 = vunpack.i.h.bf16 %v8293_v6  ;;  %v8294_v18 = vunpack.i.l.bf16 %v8293_v6 }
 0x89d   : > { %v11526_v40 = vpop.permute.xlu0 %8297 }
 0x89e   : > { %v4474_v13 = vsel %vm953_vm7, %v8294_v18, %v8295_v29  ;;  %v8299_v51 = vunpack.i.l.bf16 %v11526_v40  ;;  %v8300_v7 = vunpack.i.h.bf16 %v11526_v40 }
 0x89f   : > { %v4575_v20 = vsel %vm1455_vm9, %v11441_v22, %v4474_v13 }
 0x8a0   : > { %v4589_v62 = vpack.c.bf16 %v4575_v20, %v11410_v26  ;;  %v4549_v26 = vsel %vm1005_vm8, %v8290_v50, %v8299_v51 }
 0x8a1   : > { %v8303_v14 = vpop.permute.xlu0 %8302 }
 0x8a2   : > { %v8304_v9 = vunpack.i.l.bf16 %v8303_v14  ;;  %4645 = vmatprep.subr.bf16.mxu0 %v4589_v62 }
 0x8a4   : > { %v4473_v21 = vsel %vm953_vm7, %v8304_v9, %v8294_v18  ;;  %v8313_v46 = vpop.permute.xlu1 %8312 }
 0x8a5   : > { %v4574_v19 = vsel %vm1455_vm9, %v11420_v58, %v4473_v21  ;;  %v8308_v3 = vpop.permute.xlu0 %8307  ;;  %v8315_v61 = vunpack.i.h.bf16 %v8313_v46  ;;  %v8314_v16 = vunpack.i.l.bf16 %v8313_v46 }
 0x8a6   : > { %v4588_v60 = vpack.c.bf16 %v4574_v19, %v11414_v55  ;;  %v8310_v22 = vunpack.i.h.bf16 %v8308_v3  ;;  %v8309_v59 = vunpack.i.l.bf16 %v8308_v3  ;;  %v8305_v55 = vunpack.i.h.bf16 %v8303_v14 }
 0x8a7   : > { %v4555_v33 = vsel %vm1005_vm8, %v8314_v16, %v8315_v61  ;;  %v4554_v36 = vsel %vm1005_vm8, %v8300_v7, %v8314_v16 }
 0x8a8   : > { %4646 = vmatpush1.bf16.msra.mxu0 %v4588_v60  ;;  %v4480_v34 = vsel %vm953_vm7, %v8309_v59, %v8310_v22  ;;  %v4475_v0 = vsel %vm953_vm7, %v8295_v29, %v8305_v55 }
 0x8a9   : > { %v4582_v58 = vsel %vm1483_vm14, %v4480_v34, %v4549_v26  ;;  %v4576_v41 = vsel %vm1455_vm9, %v11447_v10, %v4475_v0 }
 0x8aa   : > { %v4596_v25 = vpack.c.bf16 %v4555_v33, %v4582_v58  ;;  %v4590_v53 = vpack.c.bf16 %v4576_v41, %v11423_v38 }
 0x8ac   : > { %7438 = vmatprep.subr.msk.bf16.mxu0 %vm12987_vm11, %v4596_v25 }
 0x8b4   : > { %v8318_v44 = vpop.permute.xlu1 %8317  ;;  %v8323_v10 = vpop.permute.xlu0 %8322 }
 0x8b5   : > { %v8320_v17 = vunpack.i.h.bf16 %v8318_v44  ;;  %v8319_v63 = vunpack.i.l.bf16 %v8318_v44  ;;  %v8324_v43 = vunpack.i.l.bf16 %v8323_v10 }
 0x8b7   : > { %v4479_v52 = vsel %vm953_vm7, %v8320_v17, %v8309_v59  ;;  %v4476_v39 = vsel %vm953_vm7, %v8305_v55, %v8319_v63  ;;  %v4550_v6 = vsel %vm1005_vm8, %v8299_v51, %v8324_v43 }
 0x8b8   : > { %v4577_v30 = vsel %vm1455_vm9, %v11456_v42, %v4476_v39  ;;  %v4581_v2 = vsel %vm1483_vm14, %v4479_v52, %v4548_v8  ;;  %v8325_v42 = vunpack.i.h.bf16 %v8323_v10 }
 0x8b9   : > { %v4591_v12 = vpack.c.bf16 %v4577_v30, %v11435_v56  ;;  %v4595_v47 = vpack.c.bf16 %v4554_v36, %v4581_v2 }
 0x8ba   : > { %v4551_v40 = vsel %vm1005_vm8, %v8324_v43, %v8325_v42 }
 0x8bb   : > { %4688 = vmatprep.subr.bf16.mxu1 %v4591_v12  ;;  %v4625_v48 = vsel %vm12987_vm11, %v4595_v47, 0 }
 0x8bc   : > { %4648 = vmatpush1.bf16.msra.mxu0 %v4625_v48  ;;  %4689 = vmatpush1.bf16.msra.mxu1 %v4590_v53 }
 0x8bf   : > { %7439 = vmatmul.mubr.msk.bf16.vlgmr.msra.gmra.mrb[40].mxu0 %vm12989_vm1, %v11559_v4  ;;  %vm12990_vm1 = vmmov %vm12987_vm11 }
 0x8c0   : > { %4763 = vmatprep.mubr.bf16.mxu0 %v12943_v37  ;;  %vm12991_vm11 = vmmov %vm12990_vm1 }
 0x8c1   : > { %v8328_v56 = vpop.permute.xlu1 %8327 }
 0x8c2   : > { %v8330_v38 = vunpack.i.h.bf16 %v8328_v56  ;;  %v8329_v1 = vunpack.i.l.bf16 %v8328_v56 }
 0x8c4   : > { %v4481_v49 = vsel %vm953_vm7, %v8310_v22, %v8329_v1  ;;  %v4482_v27 = vsel %vm953_vm7, %v8329_v1, %v8330_v38  ;;  %v8338_v28 = vpop.permute.xlu0 %8337 }
 0x8c5   : > { %v8340_v57 = vunpack.i.h.bf16 %v8338_v28  ;;  %v8339_v24 = vunpack.i.l.bf16 %v8338_v28  ;;  %v8333_v15 = vpop.permute.xlu1 %8332  ;;  %v4584_v20 = vsel %vm1483_vm14, %v4482_v27, %v4551_v40  ;;  %v4583_v62 = vsel %vm1483_vm14, %v4481_v49, %v4550_v6 }
 0x8c6   : > { %v8335_v29 = vunpack.i.h.bf16 %v8333_v15  ;;  %v8334_v18 = vunpack.i.l.bf16 %v8333_v15 }
 0x8c7   : > { %v4477_v13 = vsel %vm953_vm7, %v8319_v63, %v8339_v24  ;;  %v4478_v14 = vsel %vm953_vm7, %v8339_v24, %v8340_v57 }
 0x8c8   : > { %v4557_v9 = vsel %vm1005_vm8, %v8334_v18, %v8335_v29  ;;  %v4579_v21 = vsel %vm1455_vm9, %v11496_v5, %v4478_v14  ;;  %v4556_v19 = vsel %vm1005_vm8, %v8315_v61, %v8334_v18  ;;  %v4578_v51 = vsel %vm1455_vm9, %v11483_v32, %v4477_v13 }
 0x8c9   : > { %v8343_v50 = vpop.permute.xlu1 %8342  ;;  %v4598_v46 = vpack.c.bf16 %v4557_v9, %v4584_v20  ;;  %v4593_v3 = vpack.c.bf16 %v4579_v21, %v11467_v35  ;;  %v4597_v16 = vpack.c.bf16 %v4556_v19, %v4583_v62  ;;  %v4592_v22 = vpack.c.bf16 %v4578_v51, %v11463_v23 }
 0x8ca   : > { %v8348_v60 = vpop.permute.xlu0 %8347  ;;  %v8345_v33 = vunpack.i.h.bf16 %v8343_v50  ;;  %v8344_v34 = vunpack.i.l.bf16 %v8343_v50  ;;  %v4580_v5 = vsel %vm1455_vm9, %v11505_v54, %v8340_v57 }
 0x8cb   : > { %v8350_v59 = vunpack.i.h.bf16 %v8348_v60  ;;  %v8349_v26 = vunpack.i.l.bf16 %v8348_v60  ;;  %7440 = vmatprep.subr.msk.bf16.mxu1 %vm12990_vm1, %v4598_v46  ;;  %4731 = vmatprep.subr.bf16.mxu0 %v4593_v3  ;;  %v4631_v32 = vsel %vm12991_vm11, %v4597_v16, 0  ;;  %v4594_v31 = vpack.c.bf16 %v4580_v5, %v11494_v45 }
 0x8cc   : > { %v4552_v35 = vsel %vm1005_vm8, %v8325_v42, %v8344_v34  ;;  %v4553_v23 = vsel %vm1005_vm8, %v8344_v34, %v8345_v33  ;;  %4691 = vmatpush1.bf16.msra.mxu1 %v4631_v32  ;;  %4732 = vmatpush1.bf16.msra.mxu0 %v4592_v22  ;;  %vm12992_vm1 = vcmask 244736  }
 0x8cd   : > { %v4483_v61 = vsel %vm953_vm7, %v8330_v38, %v8349_v26  ;;  %v4484_v58 = vsel %vm953_vm7, %v8349_v26, %v8350_v59  ;;  %7590 = vmatprep.subr.bf16.mxu1 %v12958_v11  ;;  %v4587_v17 = vsel %vm1483_vm14, %v8350_v59, %v8345_v33 }
 0x8ce   : > { %v8353_v25 = vpop.permute.xlu0 %8352  ;;  %v4586_v0 = vsel %vm1483_vm14, %v4484_v58, %v4553_v23  ;;  %v4585_v44 = vsel %vm1483_vm14, %v4483_v61, %v4552_v35 }
 0x8cf   : > { %v8355_v55 = vunpack.i.h.bf16 %v8353_v25  ;;  %v8354_v54 = vunpack.i.l.bf16 %v8353_v25  ;;  %7441 = vmatmul.mubr.msk.bf16.vlgmr.msra.gmra.mrb[32].mxu1 %vm12992_vm1, %v11559_v4  ;;  %vm12993_vm1 = vmmov %vm12991_vm11 }
 0x8d0   : > { %7591 = vmatpush3.bf16.msra.mxu1 %v4594_v31  ;;  %7594 = vmatprep.mubr.msk.bf16.mxu1 %vm8709_vm5, %v12958_v11  ;;  %vm12994_vm3 = vmmov %vm12993_vm1  ;;  %vm13001_vm5 = vcmask 1048064  }
 0x8d1   : > { %v4559_v63 = vsel %vm1005_vm8, %v8354_v54, %v8355_v55  ;;  %v4558_v7 = vsel %vm1005_vm8, %v8335_v29, %v8354_v54  ;;  %v4601_v8 = vpack.c.bf16 %v8355_v55, %v4587_v17  ;;  %7592 = vmatprep.subr.bf16.mxu1 %v12958_v11 }
 0x8d2   : > { %v4600_v52 = vpack.c.bf16 %v4559_v63, %v4586_v0  ;;  %v4599_v45 = vpack.c.bf16 %v4558_v7, %v4585_v44 }
 0x8d3   : > { %v4643_v39 = vsel %vm12991_vm11, %v4601_v8, 0  ;;  %vm5602_vm11 = vcmask 386304  }
 0x8d4   : > { %7442 = vmatprep.subr.msk.bf16.mxu0 %vm12993_vm1, %v4600_v52  ;;  %v4637_v41 = vsel %vm12994_vm3, %v4599_v45, 0  ;;  %7593 = vmatpush3.bf16.msra.mxu1 %v4643_v39  ;;  %vm13002_vm3 = vcmask 1041920   ;;  %vm13004_vm1 = vcmask 1045504  }
 0x8d5   : > { %4734 = vmatpush1.bf16.msra.mxu0 %v4637_v41 }
 0x8d7   : > { %7595 = vmatmul.mubr.msk.bf16.vlgmr.msra.gmra.mrb[36].mxu1 %vm12996_vm0, %v11559_v4  ;;  %vm5087_vm0 = vcmask 1048192  }
 0x8d8   : > { %7443 = vmatmul.mubr.msk.bf16.vlgmr.msra.gmra.mrb[44].mxu0 %vm12995_vm15, %v11559_v4  ;;  %5579 = vmatprep.mubr.bf16.mxu1 %v12943_v37  ;;  %5088 = vst.msk [vmem:[#allocation2 + $0x18] sm:$0xff] %vm5087_vm0, %v12958_v11  ;;  %vm13003_vm15 = vcmask 648192   ;;  %vm13005_vm0 = vmmov %vm13004_vm1 }
 0x8d9   : > { %5536 = vmatprep.mubr.bf16.mxu0 %v12943_v37 }
 0x8da   : > { %v4609_v30 = vpop.permute.xlu1 %4608 }
 0x8df   : > { %v4614_v48 = vpop.permute.xlu0 %4613 }
 0x992   : > { %v4679_v36 = vpop.f32.mrb[40].mxu0 }
 0x993   : > { %v4680_v2 = vadd.f32 %v4679_v36, %v4609_v30  ;;  %v4681_v12 = vpop.f32.mrb[41].mxu0 }
 0x994   : > { %v4682_v47 = vadd.f32 %v4681_v12, %v4609_v30  ;;  %v4683_v53 = vpop.f32.mrb[42].mxu0 }
 0x995   : > { %v4685_v10 = vpop.f32.mrb[43].mxu0  ;;  %4829 = vrot.lane.b32.xlu1 %v4680_v2, %s12896_s27  ;;  %v4684_v42 = vadd.f32 %v4683_v53, %v4614_v48 }
 0x996   : > { %v11610_v56 = vadd.f32 %v4685_v10, %v4614_v48  ;;  %4831 = vrot.lane.b32.xlu0 %v4682_v47, %s12896_s27 }
 0x999   : > { %4845 = vrot.lane.b32.xlu1 %v11610_v56, %s12896_s27 }
 0x99a   : > { %4843 = vrot.lane.b32.xlu0 %v4684_v42, %s12896_s27 }
 0x9a2   : > { %v4722_v4 = vpop.f32.mrb[32].mxu1 }
 0x9a3   : > { %v4723_v43 = vadd.f32 %v4722_v4, %v4609_v30  ;;  %v4724_v38 = vpop.f32.mrb[33].mxu1 }
 0x9a4   : > { %v11616_v1 = vadd.f32 %v4724_v38, %v4609_v30  ;;  %v4726_v49 = vpop.f32.mrb[34].mxu1 }
 0x9a5   : > { %v4728_v27 = vpop.f32.mrb[35].mxu1  ;;  %4833 = vrot.lane.b32.xlu1 %v4723_v43, %s12896_s27  ;;  %v11623_v57 = vadd.f32 %v4726_v49, %v4614_v48 }
 0x9a6   : > { %v11619_v28 = vadd.f32 %v4728_v27, %v4614_v48  ;;  %4835 = vrot.lane.b32.xlu0 %v11616_v1, %s12896_s27 }
 0x9a9   : > { %4849 = vrot.lane.b32.xlu1 %v11619_v28, %s12896_s27 }
 0x9aa   : > { %v4808_v15 = vpop.f32.mrb[36].mxu1  ;;  %4847 = vrot.lane.b32.xlu0 %v11623_v57, %s12896_s27 }
 0x9ab   : > { %v4765_v24 = vpop.f32.mrb[44].mxu0  ;;  %v7596_v29 = vpop.f32.mrb[37].mxu1  ;;  %v4809_v9 = vadd.f32 %v4808_v15, %v4609_v30 }
 0x9ac   : > { %v11629_v6 = vadd.f32 %v4765_v24, %v4609_v30  ;;  %v4767_v40 = vpop.f32.mrb[45].mxu0  ;;  %v4811_v20 = vpop.f32.mrb[38].mxu1 }
 0x9ad   : > { %v11631_v18 = vadd.f32 %v4767_v40, %v4609_v30  ;;  %v4769_v13 = vpop.f32.mrb[46].mxu0  ;;  %v7597_v62 = vpop.f32.mrb[39].mxu1  ;;  %v4812_v51 = vadd.f32 %v4811_v20, %v4614_v48 }
 0x9ae   : > { %v4771_v14 = vpop.f32.mrb[47].mxu0  ;;  %4837 = vrot.lane.b32.xlu1 %v11629_v6, %s12896_s27  ;;  %v11637_v21 = vadd.f32 %v4769_v13, %v4614_v48 }
 0x9af   : > { %4839 = vrot.lane.b32.xlu0 %v11631_v18, %s12896_s27  ;;  %v11642_v19 = vadd.f32 %v4771_v14, %v4614_v48 }
 0x9b2   : > { %4841 = vrot.lane.b32.xlu1 %v4809_v9, %s12896_s27 }
 0x9b3   : > { %4851 = vrot.lane.b32.xlu0 %v11637_v21, %s12896_s27 }
 0x9b6   : > { %4853 = vrot.lane.b32.xlu1 %v11642_v19, %s12896_s27 }
 0x9b7   : > { %4855 = vrot.lane.b32.xlu0 %v4812_v51, %s12896_s27 }
 0xa07   : > { %v4830_v60 = vpop.permute.xlu1 %4829 }
 0xa08   : > { %v4832_v50 = vpop.permute.xlu0 %4831 }
 0xa09   : > { %v4857_v46 = vsel %vm953_vm7, %v4830_v60, %v4832_v50 }
 0xa0a   : > { %v11648_v3 = vmax.f32 %v4680_v2, %v4857_v46 }
 0xa0b   : > { %v4846_v16 = vpop.permute.xlu1 %4845 }
 0xa0c   : > { %v4844_v22 = vpop.permute.xlu0 %4843  ;;  %4905 = vrot.lane.b32.xlu0 %v11648_v3, %s12898_s8  ;;  %4899 = vrot.lane.b32.xlu1 %v11648_v3, %s12896_s27 }
 0xa0d   : > { %v4863_v59 = vsel %vm953_vm7, %v4844_v22, %v4846_v16 }
 0xa0e   : > { %v11655_v26 = vmax.f32 %v4684_v42, %v4863_v59 }
 0xa10   : > { %4911 = vrot.lane.b32.xlu1 %v11648_v3, %s8704_s4  ;;  %4901 = vrot.lane.b32.xlu0 %v11655_v26, %s12896_s27 }
 0xa14   : > { %4907 = vrot.lane.b32.xlu0 %v11655_v26, %s12898_s8  ;;  %s12998_s8 = smov 16  }
 0xa17   : > { %v4834_v33 = vpop.permute.xlu1 %4833 }
 0xa18   : > { %v4858_v34 = vsel %vm953_vm7, %v4832_v50, %v4834_v33  ;;  %v4836_v5 = vpop.permute.xlu0 %4835  ;;  %4913 = vrot.lane.b32.xlu0 %v11655_v26, %s8704_s4 }
 0xa19   : > { %v4884_v32 = vmax.f32 %v4682_v47, %v4858_v34  ;;  %v4859_v61 = vsel %vm953_vm7, %v4834_v33, %v4836_v5 }
 0xa1a   : > { %v11667_v58 = vmax.f32 %v4723_v43, %v4859_v61 }
 0xa1b   : > { %v4850_v35 = vpop.permute.xlu1 %4849  ;;  %4919 = vrot.lane.b32.xlu1 %v4884_v32, %s12902_s1 }
 0xa1c   : > { %v4848_v23 = vpop.permute.xlu0 %4847  ;;  %4945 = vrot.lane.b32.xlu0 %v11667_v58, %s12896_s27  ;;  %s12997_s27 = smov 32  }
 0xa1d   : > { %v4864_v25 = vsel %vm953_vm7, %v4846_v16, %v4848_v23  ;;  %v4865_v8 = vsel %vm953_vm7, %v4848_v23, %v4850_v35 }
 0xa1e   : > { %v4891_v31 = vmax.f32 %v11610_v56, %v4864_v25  ;;  %v11699_v52 = vmax.f32 %v11623_v57, %v4865_v8 }
 0xa1f   : > { %4925 = vrot.lane.b32.xlu1 %v4884_v32, %s12900_s28 }
 0xa20   : > { %v4838_v55 = vpop.permute.xlu1 %4837  ;;  %4957 = vrot.lane.b32.xlu0 %v11667_v58, %s8704_s4 }
 0xa21   : > { %v4840_v54 = vpop.permute.xlu0 %4839  ;;  %v4860_v45 = vsel %vm953_vm7, %v4836_v5, %v4838_v55 }
 0xa22   : > { %v4886_v39 = vmax.f32 %v11616_v1, %v4860_v45  ;;  %v4861_v41 = vsel %vm953_vm7, %v4838_v55, %v4840_v54 }
 0xa23   : > { %4931 = vrot.lane.b32.xlu1 %v4884_v32, %s12997_s27  ;;  %v11714_v30 = vmax.f32 %v11629_v6, %v4861_v41 }
 0xa24   : > { %v4842_v0 = vpop.permute.xlu1 %4841  ;;  %4921 = vrot.lane.b32.xlu0 %v4891_v31, %s12902_s1 }
 0xa25   : > { %v4889_v44 = vmax.f32 %v4809_v9, %v4842_v0  ;;  %v4852_v17 = vpop.permute.xlu0 %4851  ;;  %v4862_v53 = vsel %vm953_vm7, %v4840_v54, %v4842_v0 }
 0xa26   : > { %v4866_v36 = vsel %vm953_vm7, %v4850_v35, %v4852_v17  ;;  %v4888_v10 = vmax.f32 %v11631_v18, %v4862_v53 }
 0xa27   : > { %5080 = vst.msk [vmem:[%s11681_s9 + $0x18] sm:$0xff] %vm1297_vm6, %v4889_v44  ;;  %4937 = vrot.lane.b32.xlu1 %v4884_v32, %s12998_s8  ;;  %v4893_v2 = vmax.f32 %v11619_v28, %v4866_v36 }
 0xa28   : > { %4927 = vrot.lane.b32.xlu0 %v4891_v31, %s12900_s28  ;;  %v4854_v12 = vpop.permute.xlu1 %4853 }
 0xa29   : > { %v4856_v63 = vpop.permute.xlu0 %4855  ;;  %v4867_v47 = vsel %vm953_vm7, %v4852_v17, %v4854_v12 }
 0xa2a   : > { %v11689_v7 = vmax.f32 %v4812_v51, %v4856_v63  ;;  %v11729_v48 = vmax.f32 %v11637_v21, %v4867_v47  ;;  %v4868_v56 = vsel %vm953_vm7, %v4854_v12, %v4856_v63 }
 0xa2b   : > { %4951 = vrot.lane.b32.xlu1 %v11667_v58, %s12999_s7  ;;  %v4895_v42 = vmax.f32 %v11642_v19, %v4868_v56 }
 0xa2c   : > { %5084 = vst.msk [vmem:[%s11681_s9 + $0x38] sm:$0x3] %vm1953_vm4, %v11689_v7  ;;  %4939 = vrot.lane.b32.xlu0 %v4891_v31, %s12998_s8 }
 0xa2f   : > { %4933 = vrot.lane.b32.xlu1 %v4891_v31, %s12997_s27 }
 0xa30   : > { %4947 = vrot.lane.b32.xlu0 %v11699_v52, %s13000_s5 }
 0xa33   : > { %4965 = vrot.lane.b32.xlu1 %v4886_v39, %s12902_s1 }
 0xa34   : > { %4953 = vrot.lane.b32.xlu0 %v11699_v52, %s12999_s7 }
 0xa37   : > { %4971 = vrot.lane.b32.xlu1 %v4886_v39, %s12900_s28 }
 0xa38   : > { %4959 = vrot.lane.b32.xlu0 %v11699_v52, %s8704_s4 }
 0xa3b   : > { %4977 = vrot.lane.b32.xlu1 %v4886_v39, %s12997_s27 }
 0xa3c   : > { %5025 = vrot.lane.b32.xlu0 %v11714_v30, %s12999_s7 }
 0xa3f   : > { %4983 = vrot.lane.b32.xlu1 %v4886_v39, %s12998_s8 }
 0xa40   : > { %4967 = vrot.lane.b32.xlu0 %v4893_v2, %s12902_s1 }
 0xa43   : > { %5019 = vrot.lane.b32.xlu1 %v11714_v30, %s13000_s5 }
 0xa44   : > { %4979 = vrot.lane.b32.xlu0 %v4893_v2, %s12997_s27 }
 0xa47   : > { %5031 = vrot.lane.b32.xlu1 %v11714_v30, %s8704_s4 }
 0xa48   : > { %5021 = vrot.lane.b32.xlu0 %v11729_v48, %s13000_s5 }
 0xa4b   : > { %5039 = vrot.lane.b32.xlu1 %v4888_v10, %s12902_s1 }
 0xa4c   : > { %5027 = vrot.lane.b32.xlu0 %v11729_v48, %s12999_s7 }
 0xa4f   : > { %5045 = vrot.lane.b32.xlu1 %v4888_v10, %s12900_s28 }
 0xa50   : > { %5033 = vrot.lane.b32.xlu0 %v11729_v48, %s8704_s4 }
 0xa53   : > { %5051 = vrot.lane.b32.xlu1 %v4888_v10, %s12997_s27 }
 0xa54   : > { %5041 = vrot.lane.b32.xlu0 %v4895_v42, %s12902_s1 }
 0xa57   : > { %5057 = vrot.lane.b32.xlu1 %v4888_v10, %s12998_s8 }
 0xa58   : > { %5047 = vrot.lane.b32.xlu0 %v4895_v42, %s12900_s28 }
 0xa5b   : > { %4973 = vrot.lane.b32.xlu1 %v4893_v2, %s12900_s28 }
 0xa5c   : > { %5059 = vrot.lane.b32.xlu0 %v4895_v42, %s12998_s8 }
 0xa5f   : > { %5053 = vrot.lane.b32.xlu1 %v4895_v42, %s12997_s27 }
 0xa60   : > { %5107 = vrot.lane.b32.xlu0 %v4889_v44, %s12902_s1 }
 0xa63   : > { %4985 = vrot.lane.b32.xlu1 %v4893_v2, %s12998_s8 }
 0xa7e   : > { %v4906_v4 = vpop.permute.xlu0 %4905  ;;  %v4900_v38 = vpop.permute.xlu1 %4899 }
 0xa7f   : > { %v4989_v15 = vsel %vm1297_vm6, %v11648_v3, %v4900_v38 }
 0xa80   : > { %v4991_v40 = vsel %vm1242_vm13, %v4989_v15, %v4906_v4 }
 0xa82   : > { %v4902_v43 = vpop.permute.xlu0 %4901  ;;  %v4912_v49 = vpop.permute.xlu1 %4911 }
 0xa83   : > { %v4993_v18 = vsel %vm1187_vm12, %v4991_v40, %v4912_v49  ;;  %v4990_v51 = vsel %vm1297_vm6, %v11655_v26, %v4902_v43 }
 0xa86   : > { %v4908_v1 = vpop.permute.xlu0 %4907 }
 0xa87   : > { %v4992_v50 = vsel %vm1242_vm13, %v4990_v51, %v4908_v1 }
 0xa8a   : > { %v4914_v27 = vpop.permute.xlu0 %4913 }
 0xa8b   : > { %v4994_v3 = vsel %vm1187_vm12, %v4992_v50, %v4914_v27 }
 0xa8d   : > { %v4920_v28 = vpop.permute.xlu1 %4919 }
 0xa8e   : > { %v4946_v57 = vpop.permute.xlu0 %4945  ;;  %v4995_v20 = vsel %vm824_vm2, %v4993_v18, %v4920_v28 }
 0xa8f   : > { %v5003_v35 = vsel %vm1297_vm6, %v11667_v58, %v4946_v57 }
 0xa91   : > { %v4926_v24 = vpop.permute.xlu1 %4925 }
 0xa92   : > { %v4958_v6 = vpop.permute.xlu0 %4957  ;;  %v4997_v14 = vsel %vm1057_vm10, %v4995_v20, %v4926_v24 }
 0xa95   : > { %v4932_v29 = vpop.permute.xlu1 %4931 }
 0xa96   : > { %v4922_v13 = vpop.permute.xlu0 %4921  ;;  %v4999_v62 = vsel %vm1005_vm8, %v4997_v14, %v4932_v29 }
 0xa97   : > { %v4996_v16 = vsel %vm824_vm2, %v4994_v3, %v4922_v13 }
 0xa99   : > { %v4938_v9 = vpop.permute.xlu1 %4937 }
 0xa9a   : > { %v5001_v21 = vsel %vm953_vm7, %v4999_v62, %v4938_v9  ;;  %v4928_v19 = vpop.permute.xlu0 %4927 }
 0xa9b   : > { %5077 = vst [vmem:[%s11681_s9] sm:$0xff] %v5001_v21  ;;  %5101 = vrot.lane.b32.xlu1 %v5001_v21, %s12902_s1  ;;  %v4998_v22 = vsel %vm1057_vm10, %v4996_v16, %v4928_v19 }
 0xa9d   : > { %v4952_v60 = vpop.permute.xlu1 %4951 }
 0xa9e   : > { %v4940_v46 = vpop.permute.xlu0 %4939  ;;  %v5005_v25 = vsel %vm1242_vm13, %v5003_v35, %v4952_v60 }
 0xa9f   : > { %v5007_v54 = vsel %vm1187_vm12, %v5005_v25, %v4958_v6 }
 0xaa1   : > { %v4934_v59 = vpop.permute.xlu1 %4933 }
 0xaa2   : > { %v5000_v33 = vsel %vm1005_vm8, %v4998_v22, %v4934_v59  ;;  %v4948_v34 = vpop.permute.xlu0 %4947 }
 0xaa3   : > { %v5002_v5 = vsel %vm953_vm7, %v5000_v33, %v4940_v46  ;;  %v5004_v15 = vsel %vm1297_vm6, %v11699_v52, %v4948_v34 }
 0xaa4   : > { %5081 = vst [vmem:[%s11681_s9 + $0x20] sm:$0x3] %v5002_v5  ;;  %5109 = vrot.lane.b32.xlu1 %v5002_v5, %s12902_s1 }
 0xaa5   : > { %v4966_v26 = vpop.permute.xlu1 %4965 }
 0xaa6   : > { %v4954_v32 = vpop.permute.xlu0 %4953  ;;  %v5009_v0 = vsel %vm824_vm2, %v5007_v54, %v4966_v26 }
 0xaa7   : > { %v5006_v40 = vsel %vm1242_vm13, %v5004_v15, %v4954_v32 }
 0xaa9   : > { %v4972_v61 = vpop.permute.xlu1 %4971 }
 0xaaa   : > { %v4960_v23 = vpop.permute.xlu0 %4959  ;;  %v5011_v44 = vsel %vm1057_vm10, %v5009_v0, %v4972_v61 }
 0xaab   : > { %v5008_v18 = vsel %vm1187_vm12, %v5006_v40, %v4960_v23 }
 0xaad   : > { %v4978_v55 = vpop.permute.xlu1 %4977 }
 0xaae   : > { %v5026_v31 = vpop.permute.xlu0 %5025  ;;  %v5013_v17 = vsel %vm1005_vm8, %v5011_v44, %v4978_v55 }
 0xab1   : > { %v4984_v63 = vpop.permute.xlu1 %4983 }
 0xab2   : > { %v5015_v8 = vsel %vm953_vm7, %v5013_v17, %v4984_v63  ;;  %v4968_v45 = vpop.permute.xlu0 %4967 }
 0xab3   : > { %5078 = vst [vmem:[%s11681_s9 + $0x8] sm:$0xff] %v5015_v8  ;;  %5103 = vrot.lane.b32.xlu0 %v5015_v8, %s12902_s1  ;;  %v5010_v20 = vsel %vm824_vm2, %v5008_v18, %v4968_v45 }
 0xab5   : > { %v5020_v58 = vpop.permute.xlu1 %5019 }
 0xab6   : > { %v4980_v39 = vpop.permute.xlu0 %4979  ;;  %v5063_v53 = vsel %vm1297_vm6, %v11714_v30, %v5020_v58 }
 0xab7   : > { %v5065_v56 = vsel %vm1242_vm13, %v5063_v53, %v5026_v31 }
 0xab9   : > { %v5032_v41 = vpop.permute.xlu1 %5031 }
 0xaba   : > { %v5022_v36 = vpop.permute.xlu0 %5021  ;;  %v5067_v4 = vsel %vm1187_vm12, %v5065_v56, %v5032_v41 }
 0xabb   : > { %v5064_v57 = vsel %vm1297_vm6, %v11729_v48, %v5022_v36 }
 0xabd   : > { %v5040_v2 = vpop.permute.xlu1 %5039 }
 0xabe   : > { %v5028_v12 = vpop.permute.xlu0 %5027  ;;  %v5069_v38 = vsel %vm824_vm2, %v5067_v4, %v5040_v2 }
 0xabf   : > { %v5066_v6 = vsel %vm1242_vm13, %v5064_v57, %v5028_v12 }
 0xac1   : > { %v5046_v47 = vpop.permute.xlu1 %5045 }
 0xac2   : > { %v5034_v10 = vpop.permute.xlu0 %5033  ;;  %v5071_v1 = vsel %vm1057_vm10, %v5069_v38, %v5046_v47 }
 0xac3   : > { %v5068_v29 = vsel %vm1187_vm12, %v5066_v6, %v5034_v10 }
 0xac5   : > { %v5052_v42 = vpop.permute.xlu1 %5051 }
 0xac6   : > { %v5042_v43 = vpop.permute.xlu0 %5041  ;;  %v5073_v49 = vsel %vm1005_vm8, %v5071_v1, %v5052_v42 }
 0xac7   : > { %v5070_v13 = vsel %vm824_vm2, %v5068_v29, %v5042_v43 }
 0xac9   : > { %v5058_v27 = vpop.permute.xlu1 %5057 }
 0xaca   : > { %v5075_v28 = vsel %vm953_vm7, %v5073_v49, %v5058_v27  ;;  %v5048_v30 = vpop.permute.xlu0 %5047 }
 0xacb   : > { %5079 = vst [vmem:[%s11681_s9 + $0x10] sm:$0xff] %v5075_v28  ;;  %5105 = vrot.lane.b32.xlu1 %v5075_v28, %s12902_s1  ;;  %v5072_v14 = vsel %vm1057_vm10, %v5070_v13, %v5048_v30 }
 0xacd   : > { %v4974_v24 = vpop.permute.xlu1 %4973 }
 0xace   : > { %v5012_v62 = vsel %vm1057_vm10, %v5010_v20, %v4974_v24  ;;  %v5060_v9 = vpop.permute.xlu0 %5059 }
 0xacf   : > { %v5014_v19 = vsel %vm1005_vm8, %v5012_v62, %v4980_v39 }
 0xad1   : > { %v5054_v48 = vpop.permute.xlu1 %5053 }
 0xad2   : > { %v5074_v52 = vsel %vm1005_vm8, %v5072_v14, %v5054_v48  ;;  %v5108_v61 = vpop.permute.xlu0 %5107 }
 0xad3   : > { %v5076_v21 = vsel %vm953_vm7, %v5074_v52, %v5060_v9 }
 0xad4   : > { %5083 = vst [vmem:[%s11681_s9 + $0x30] sm:$0x3] %v5076_v21  ;;  %5113 = vrot.lane.b32.xlu1 %v5076_v21, %s12902_s1 }
 0xad5   : > { %v4986_v51 = vpop.permute.xlu1 %4985 }
 0xad6   : > { %v5016_v60 = vsel %vm953_vm7, %v5014_v19, %v4986_v51 }
 0xad7   : > { %5082 = vst [vmem:[%s11681_s9 + $0x28] sm:$0x3] %v5016_v60  ;;  %5111 = vrot.lane.b32.xlu0 %v5016_v60, %s12902_s1  ;;  %s7498_s9 = sshll.u32 %s13056_s2, 5 }
 0xad8   : > { %s12284_s6 = scalar_lea.vmem %s12840_s23, %s7498_s9 }
 0xadb   : > { %5115 = vrot.lane.b32.xlu0 %v11689_v7, %s12902_s1 }
 0xb0d   : > { %v5102_v50 = vpop.permute.xlu1 %5101 }
 0xb0e   : > { %5131 = vst.msk [vmem:[#allocation2] sm:$0xff] %vm13001_vm5, %v5102_v50  ;;  %vm13006_vm5 = vmmov %vm13005_vm0 }
 0xb15   : > { %v11817_v46 = vld [vmem:[#allocation2] sm:$0xff] }
 0xb16   : > { %v5110_v3 = vpop.permute.xlu1 %5109  ;;  %5598 = vst.msk [vmem:[#allocation2] sm:$0xff] %vm1297_vm6, %v12958_v11  ;;  %v11827_v22 = vrot.slane %v11817_v46, 4  ;;  %v5157_v34 = vrot.slane %v11817_v46, 6  ;;  %v11863_v45 = vrot.slane %v11817_v46, 2 }
 0xb17   : > { %5135 = vst.msk [vmem:[#allocation2 + $0x70] sm:$0x3] %vm13002_vm3, %v5110_v3  ;;  %vm13007_vm3 = vmmov %vm13005_vm0 }
 0xb1e   : > { %v11822_v16 = vld [vmem:[#allocation2 + $0x70] sm:$0x3] }
 0xb1f   : > { %5599 = vst.msk [vmem:[#allocation2 + $0x70] sm:$0x3] %vm1953_vm4, %v12958_v11  ;;  %v5203_v7 = vrot.slane %v11822_v16, 4  ;;  %v5161_v59 = vrot.slane %v11822_v16, 6 }
 0xb21   : > { %v11833_v33 = vsel %vm1483_vm14, %v11827_v22, %v5203_v7  ;;  %v11839_v26 = vsel %vm1455_vm9, %v5157_v34, %v5161_v59 }
 0xb22   : > { %v8356_v5 = vpack.i.bf16 %v11833_v33, %v11827_v22  ;;  %v8361_v32 = vpack.i.bf16 %v11839_v26, %v5157_v34 }
 0xb24   : > { %8357 = vrot.lane.b32.xlu0 %v8356_v5, %s12999_s7 }
 0xb25   : > { %v5104_v35 = vpop.permute.xlu0 %5103 }
 0xb26   : > { %v11845_v23 = vsel %vm824_vm2, %v5102_v50, %v5104_v35 }
 0xb27   : > { %v5158_v0 = vrot.slane %v11845_v23, 6  ;;  %v5200_v42 = vrot.slane %v11845_v23, 4  ;;  %v5242_v1 = vrot.slane %v11845_v23, 2 }
 0xb28   : > { %8362 = vrot.lane.b32.xlu0 %v8361_v32, %s12900_s28 }
 0xb3d   : > { %v5106_v25 = vpop.permute.xlu1 %5105 }
 0xb3e   : > { %v11848_v55 = vsel %vm824_vm2, %v5104_v35, %v5106_v25  ;;  %v5119_v54 = vsel %vm824_vm2, %v5106_v25, %v5108_v61  ;;  %v5245_v61 = vrot.slane %v11822_v16, 2 }
 0xb3f   : > { %5134 = vst.msk [vmem:[#allocation2 + $0x18] sm:$0xff] %vm1057_vm10, %v5119_v54  ;;  %v8366_v31 = vpack.i.bf16 %v11848_v55, %v11845_v23  ;;  %v5159_v44 = vrot.slane %v11848_v55, 6  ;;  %v5201_v10 = vrot.slane %v11848_v55, 4  ;;  %v5243_v38 = vrot.slane %v11848_v55, 2  ;;  %v11933_v54 = vld [vmem:[#allocation2 + $0x20] sm:$0xff] }
 0xb41   : > { %8367 = vrot.lane.b32.xlu0 %v8366_v31, %s12902_s1  ;;  %v8376_v17 = vpack.i.bf16 %v5159_v44, %v5158_v0  ;;  %v8386_v43 = vpack.i.bf16 %v5201_v10, %v5200_v42  ;;  %v8391_v30 = vpack.i.bf16 %v5243_v38, %v5242_v1  ;;  %v11935_v31 = vld [vmem:[#allocation2 + $0x90] sm:$0x3] }
 0xb43   : > { %8377 = vrot.lane.b32.xlu1 %v8376_v17, %s13000_s5 }
 0xb46   : > { %v11858_v63 = vld [vmem:[#allocation2 + $0x18] sm:$0xff]  ;;  %v5114_v36 = vpop.permute.xlu1 %5113 }
 0xb47   : > { %v8371_v8 = vpack.i.bf16 %v11858_v63, %v11817_v46  ;;  %v11866_v58 = vrot.slane %v11858_v63, 2  ;;  %v11869_v39 = vrot.slane %v11858_v63, 6  ;;  %v5202_v15 = vrot.slane %v11858_v63, 4 }
 0xb49   : > { %v5112_v41 = vpop.permute.xlu0 %5111  ;;  %8372 = vrot.lane.b32.xlu0 %v8371_v8, %s12902_s1  ;;  %v8396_v2 = vpack.i.bf16 %v11866_v58, %v11863_v45  ;;  %v8381_v53 = vpack.i.bf16 %v11869_v39, %v5157_v34  ;;  %v8421_v29 = vpack.i.bf16 %v5202_v15, %v11827_v22 }
 0xb4a   : > { %v5120_v12 = vsel %vm824_vm2, %v5110_v3, %v5112_v41  ;;  %v5121_v47 = vsel %vm824_vm2, %v5112_v41, %v5114_v36  ;;  %v5473_v41 = vld [vmem:[%s12827_s10 + $0x8] sm:$0x3] }
 0xb4b   : > { %5136 = vst [vmem:[#allocation2 + $0x78] sm:$0x3] %v5120_v12  ;;  %5137 = vst [vmem:[#allocation2 + $0x80] sm:$0x3] %v5121_v47  ;;  %8397 = vrot.lane.b32.xlu1 %v8396_v2, %s8704_s4  ;;  %v5472_v2 = vld [vmem:[%s12827_s10] sm:$0xff] }
 0xb4d   : > { %v5116_v56 = vpop.permute.xlu0 %5115  ;;  %8382 = vrot.lane.b32.xlu0 %v8381_v53, %s13000_s5 }
 0xb4e   : > { %v5122_v4 = vsel %vm824_vm2, %v5114_v36, %v5116_v56 }
 0xb4f   : > { %5138 = vst.msk [vmem:[#allocation2 + $0x88] sm:$0x3] %vm13003_vm15, %v5122_v4  ;;  %vm13008_vm15 = vmmov %vm13005_vm0 }
 0xb51   : > { %8387 = vrot.lane.b32.xlu0 %v8386_v43, %s12999_s7 }
 0xb52   : > { %v11886_v49 = vld [vmem:[#allocation2 + $0x78] sm:$0x3]  ;;  %v11888_v27 = vld [vmem:[#allocation2 + $0x80] sm:$0x3] }
 0xb53   : > { %v8401_v28 = vpack.i.bf16 %v11888_v27, %v11886_v49  ;;  %v5163_v6 = vrot.slane %v11886_v49, 6  ;;  %v5165_v40 = vrot.slane %v11888_v27, 6  ;;  %v5205_v18 = vrot.slane %v11886_v49, 4 }
 0xb54   : > { %v5207_v14 = vrot.slane %v11888_v27, 4  ;;  %v5247_v52 = vrot.slane %v11886_v49, 2  ;;  %v5249_v7 = vrot.slane %v11888_v27, 2 }
 0xb55   : > { %8402 = vrot.lane.b32.xlu1 %v8401_v28, %s12902_s1  ;;  %8392 = vrot.lane.b32.xlu0 %v8391_v30, %s8704_s4  ;;  %v5164_v13 = vsel %vm1455_vm9, %v5158_v0, %v5163_v6  ;;  %v5166_v20 = vsel %vm1455_vm9, %v5159_v44, %v5165_v40  ;;  %v5206_v9 = vsel %vm1483_vm14, %v5200_v42, %v5205_v18  ;;  %v5405_v44 = vrot.slane %v11933_v54, 6 }
 0xb56   : > { %v11894_v57 = vld [vmem:[#allocation2 + $0x88] sm:$0x3]  ;;  %v8431_v62 = vpack.i.bf16 %v5166_v20, %v5164_v13  ;;  %v5208_v21 = vsel %vm1483_vm14, %v5201_v10, %v5207_v14  ;;  %v5248_v22 = vsel %vm13004_vm1, %v5242_v1, %v5247_v52  ;;  %v5250_v5 = vsel %vm13005_vm0, %v5243_v38, %v5249_v7  ;;  %vm13010_vm1 = vmmov %vm13005_vm0 }
 0xb57   : > { %5603 = vst.msk [vmem:[#allocation2 + $0x88] sm:$0x3] %vm5602_vm11, %v12958_v11  ;;  %v8416_v24 = vpack.i.bf16 %v11894_v57, %v11822_v16  ;;  %v5209_v48 = vrot.slane %v11894_v57, 4  ;;  %v5167_v51 = vrot.slane %v11894_v57, 6  ;;  %v8436_v60 = vpack.i.bf16 %v5208_v21, %v5206_v9  ;;  %vm13009_vm11 = vmmov %vm13005_vm0 }
 0xb58   : > { %v8451_v34 = vpack.i.bf16 %v5248_v22, %v11863_v45  ;;  %v5251_v32 = vrot.slane %v11894_v57, 2  ;;  %v8456_v35 = vpack.i.bf16 %v5250_v5, %v5248_v22  ;;  %v5246_v0 = vsel %vm13007_vm3, %v11863_v45, %v5245_v61  ;;  %vm13012_vm3 = vmmov %vm13005_vm0 }
 0xb59   : > { %8417 = vrot.lane.b32.xlu1 %v8416_v24, %s12902_s1  ;;  %8407 = vrot.lane.b32.xlu0 %v8376_v17, %s12900_s28  ;;  %v5210_v19 = vsel %vm1483_vm14, %v5202_v15, %v5209_v48  ;;  %v5168_v3 = vsel %vm1455_vm9, %v11869_v39, %v5167_v51  ;;  %v5406_v17 = vrot.slane %v11935_v31, 6  ;;  %v8486_v36 = vpack.i.bf16 %v11866_v58, %v5250_v5 }
 0xb5a   : > { %v8446_v50 = vpack.i.bf16 %v5210_v19, %v5202_v15  ;;  %v8441_v59 = vpack.i.bf16 %v5168_v3, %v11839_v26  ;;  %v8471_v25 = vpack.i.bf16 %v5168_v3, %v11869_v39  ;;  %v5252_v26 = vsel %vm13006_vm5, %v11866_v58, %v5251_v32  ;;  %vm13011_vm5 = vmmov %vm13005_vm0 }
 0xb5b   : > { %v8461_v8 = vpack.i.bf16 %v5252_v26, %v5246_v0  ;;  %v5407_v39 = vsel %vm1455_vm9, %v5405_v44, %v5406_v17  ;;  %v8481_v45 = vpack.i.bf16 %v5210_v19, %v11833_v33 }
 0xb5d   : > { %8422 = vrot.lane.b32.xlu1 %v8421_v29, %s12997_s27  ;;  %8412 = vrot.lane.b32.xlu0 %v8386_v43, %s12997_s27 }
 0xb61   : > { %8432 = vrot.lane.b32.xlu1 %v8431_v62, %s13000_s5  ;;  %8427 = vrot.lane.b32.xlu0 %v8391_v30, %s12998_s8 }
 0xb65   : > { %8437 = vrot.lane.b32.xlu1 %v8436_v60, %s12999_s7  ;;  %8447 = vrot.lane.b32.xlu0 %v8446_v50, %s12999_s7 }
 0xb69   : > { %8442 = vrot.lane.b32.xlu1 %v8441_v59, %s13000_s5  ;;  %8452 = vrot.lane.b32.xlu0 %v8451_v34, %s12998_s8 }
 0xb6d   : > { %8457 = vrot.lane.b32.xlu1 %v8456_v35, %s8704_s4  ;;  %8472 = vrot.lane.b32.xlu0 %v8471_v25, %s12900_s28 }
 0xb71   : > { %8462 = vrot.lane.b32.xlu1 %v8461_v8, %s8704_s4  ;;  %8492 = vrot.lane.b32.xlu0 %v8461_v8, %s12998_s8 }
 0xb75   : > { %8467 = vrot.lane.b32.xlu1 %v8431_v62, %s12900_s28  ;;  %5410 = vrot.lane.b32.xlu0 %v5407_v39, %s13000_s5  ;;  %s13029_s28 = smov 64  }
 0xb79   : > { %8477 = vrot.lane.b32.xlu1 %v8436_v60, %s12997_s27  ;;  %5481 = vperm.xlu0 %7904, %v5473_v41  }
 0xb7d   : > { %8482 = vrot.lane.b32.xlu1 %v8481_v45, %s12997_s27 }
 0xb81   : > { %8487 = vrot.lane.b32.xlu1 %v8486_v36, %s12998_s8 }
 0xb85   : > { %5408 = vrot.lane.b32.xlu1 %v5405_v44, %s13000_s5 }
 0xb89   : > { %5476 = vperm.xlu1 %7905, %v5472_v2  }
 0xb96   : > { %v11962_v12 = vpop.permute.xlu0 %8357 }
 0xb97   : > { %v8359_v19 = vunpack.i.l.bf16 %v11962_v12 }
 0xb9a   : > { %v11964_v47 = vpop.permute.xlu0 %8362 }
 0xb9b   : > { %v8365_v51 = vunpack.i.h.bf16 %v11964_v47  ;;  %v8364_v3 = vunpack.i.l.bf16 %v11964_v47 }
 0xbb3   : > { %v11966_v56 = vpop.permute.xlu0 %8367 }
 0xbb4   : > { %v8370_v22 = vunpack.i.h.bf16 %v11966_v56  ;;  %v8369_v34 = vunpack.i.l.bf16 %v11966_v56 }
 0xbb5   : > { %v8378_v53 = vpop.permute.xlu1 %8377 }
 0xbb6   : > { %v8380_v10 = vunpack.i.h.bf16 %v8378_v53  ;;  %v8379_v33 = vunpack.i.l.bf16 %v8378_v53 }
 0xbb8   : > { %v5186_v58 = vsel %vm953_vm7, %v8379_v33, %v8380_v10 }
 0xbb9   : > { %v5419_v42 = vsel %vm1455_vm9, %v11886_v49, %v5186_v58 }
 0xbba   : > { %v11972_v4 = vpack.c.bf16 %v5419_v42, %v11845_v23 }
 0xbbb   : > { %v11974_v43 = vpop.permute.xlu0 %8372 }
 0xbbc   : > { %5504 = vmatprep.subr.bf16.mxu0 %v11972_v4  ;;  %v8375_v5 = vunpack.i.h.bf16 %v11974_v43  ;;  %v8374_v32 = vunpack.i.l.bf16 %v11974_v43 }
 0xbbd   : > { %v8398_v15 = vpop.permute.xlu1 %8397 }
 0xbbe   : > { %v8400_v61 = vunpack.i.h.bf16 %v8398_v15  ;;  %v8399_v8 = vunpack.i.l.bf16 %v8398_v15 }
 0xbbf   : > { %v8383_v38 = vpop.permute.xlu0 %8382 }
 0xbc0   : > { %v11977_v1 = vunpack.i.h.bf16 %v8383_v38  ;;  %v8384_v28 = vunpack.i.l.bf16 %v8383_v38 }
 0xbc2   : > { %v5185_v30 = vsel %vm953_vm7, %v8384_v28, %v8379_v33  ;;  %v5187_v24 = vsel %vm953_vm7, %v8380_v10, %v11977_v1  ;;  %v5421_v49 = vsel %vm1455_vm9, %v11894_v57, %v11977_v1 }
 0xbc3   : > { %v8388_v23 = vpop.permute.xlu0 %8387  ;;  %v5447_v6 = vpack.c.bf16 %v5421_v49, %v11858_v63  ;;  %v5418_v40 = vsel %vm1455_vm9, %v11822_v16, %v5185_v30  ;;  %v5420_v29 = vsel %vm1455_vm9, %v11888_v27, %v5187_v24 }
 0xbc4   : > { %v5444_v18 = vpack.c.bf16 %v5418_v40, %v11817_v46  ;;  %v11992_v13 = vpack.c.bf16 %v5420_v29, %v11848_v55  ;;  %v8360_v55 = vunpack.i.h.bf16 %v11962_v12  ;;  %v8390_v60 = vunpack.i.h.bf16 %v8388_v23 }
 0xbc5   : > { %5547 = vmatprep.subr.bf16.mxu1 %v5447_v6  ;;  %v8389_v50 = vunpack.i.l.bf16 %v8388_v23 }
 0xbc6   : > { %5505 = vmatpush1.bf16.msra.mxu0 %v5444_v18  ;;  %5548 = vmatpush1.bf16.msra.mxu1 %v11992_v13 }
 0xbc7   : > { %v11995_v20 = vpop.permute.xlu1 %8402  ;;  %v8393_v14 = vpop.permute.xlu0 %8392  ;;  %v5227_v39 = vsel %vm1005_vm8, %v8359_v19, %v8389_v50  ;;  %v5228_v45 = vsel %vm1005_vm8, %v8389_v50, %v8390_v60 }
 0xbc8   : > { %v8395_v7 = vunpack.i.h.bf16 %v8393_v14  ;;  %v8394_v59 = vunpack.i.l.bf16 %v8393_v14  ;;  %v8405_v36 = vunpack.i.h.bf16 %v11995_v20  ;;  %v8404_v2 = vunpack.i.l.bf16 %v11995_v20 }
 0xbca   : > { %v5270_v53 = vsel %vm1057_vm10, %v8394_v59, %v8395_v7  ;;  %v5269_v10 = vsel %vm1057_vm10, %v8399_v8, %v8394_v59  ;;  %v5271_v15 = vsel %vm1057_vm10, %v8395_v7, %v8400_v61  ;;  %v5301_v8 = vsel %vm824_vm2, %v8370_v22, %v8375_v5 }
 0xbcb   : > { %v11997_v48 = vpop.permute.xlu1 %8417  ;;  %v11999_v62 = vpop.permute.xlu0 %8407 }
 0xbcc   : > { %v8419_v23 = vunpack.i.l.bf16 %v11997_v48 }
 0xbcf   : > { %v12001_v16 = vpop.permute.xlu1 %8422  ;;  %v12003_v52 = vpop.permute.xlu0 %8412 }
 0xbd3   : > { %v8433_v27 = vpop.permute.xlu1 %8432  ;;  %v12005_v46 = vpop.permute.xlu0 %8427 }
 0xbd4   : > { %v8435_v9 = vunpack.i.h.bf16 %v8433_v27  ;;  %v8434_v21 = vunpack.i.l.bf16 %v8433_v27 }
 0xbd6   : > { %v12016_v17 = vsel %vm953_vm7, %v8434_v21, %v8435_v9 }
 0xbd7   : > { %v8438_v35 = vpop.permute.xlu1 %8437  ;;  %v8448_v25 = vpop.permute.xlu0 %8447  ;;  %v5423_v58 = vsel %vm1483_vm14, %v12016_v17, %v5228_v45 }
 0xbd8   : > { %v8440_v26 = vunpack.i.h.bf16 %v8438_v35  ;;  %v8439_v0 = vunpack.i.l.bf16 %v8438_v35  ;;  %v8450_v44 = vunpack.i.h.bf16 %v8448_v25  ;;  %v8449_v41 = vunpack.i.l.bf16 %v8448_v25 }
 0xbd9   : > { %v5299_v25 = vsel %vm824_vm2, %v8374_v32, %v8369_v34  ;;  %v8425_v32 = vunpack.i.h.bf16 %v12001_v16 }
 0xbda   : > { %v5231_v12 = vsel %vm1005_vm8, %v8439_v0, %v8440_v26  ;;  %v5230_v33 = vsel %vm1005_vm8, %v8360_v55, %v8439_v0  ;;  %v5232_v28 = vsel %vm1005_vm8, %v8440_v26, %v8450_v44  ;;  %v5229_v6 = vsel %vm1005_vm8, %v8390_v60, %v8449_v41 }
 0xbdb   : > { %v8443_v56 = vpop.permute.xlu1 %8442  ;;  %v5427_v42 = vsel %vm13008_vm15, %v5231_v12, %v5270_v53  ;;  %v12029_v38 = vpop.permute.xlu0 %8452  ;;  %v5429_v40 = vsel %vm13009_vm11, %v8450_v44, %v8400_v61  ;;  %v5426_v27 = vsel %vm13010_vm1, %v5230_v33, %v5269_v10  ;;  %v5428_v7 = vsel %vm13005_vm0, %v5232_v28, %v5271_v15  ;;  %vm13013_vm15 = vmmov %vm13005_vm0 }
 0xbdc   : > { %v12032_v30 = vunpack.i.h.bf16 %v8443_v56  ;;  %v8444_v24 = vunpack.i.l.bf16 %v8443_v56  ;;  %v5449_v49 = vpack.c.bf16 %v5427_v42, %v5423_v58  ;;  %v5300_v44 = vsel %vm824_vm2, %v8369_v34, %v8370_v22  ;;  %vm13014_vm11 = vmmov %vm13005_vm0 }
 0xbdd   : > { %v8420_v12 = vunpack.i.h.bf16 %v11997_v48  ;;  %v5303_v34 = vsel %vm824_vm2, %v8404_v2, %v8405_v36  ;;  %v5302_v22 = vsel %vm824_vm2, %v8419_v23, %v8404_v2  ;;  %v8424_v33 = vunpack.i.l.bf16 %v12001_v16 }
 0xbde   : > { %v5188_v29 = vsel %vm953_vm7, %v8444_v24, %v8434_v21  ;;  %v12041_v18 = vsel %vm953_vm7, %v8435_v9, %v12032_v30  ;;  %5506 = vmatprep.subr.bf16.mxu0 %v5449_v49  ;;  %v5425_v14 = vsel %vm1483_vm14, %v12032_v30, %v8449_v41  ;;  %v8409_v41 = vunpack.i.l.bf16 %v11999_v62 }
 0xbdf   : > { %v8458_v55 = vpop.permute.xlu1 %8457  ;;  %v5451_v19 = vpack.c.bf16 %v5429_v40, %v5425_v14  ;;  %v5422_v50 = vsel %vm1483_vm14, %v5188_v29, %v5227_v39  ;;  %v5424_v60 = vsel %vm1483_vm14, %v12041_v18, %v5229_v6  ;;  %v8473_v21 = vpop.permute.xlu0 %8472  ;;  %v8410_v39 = vunpack.i.h.bf16 %v11999_v62 }
 0xbe0   : > { %v8460_v59 = vunpack.i.h.bf16 %v8458_v55  ;;  %v8459_v61 = vunpack.i.l.bf16 %v8458_v55  ;;  %v5448_v9 = vpack.c.bf16 %v5426_v27, %v5422_v50  ;;  %v5450_v35 = vpack.c.bf16 %v5428_v7, %v5424_v60 }
 0xbe1   : > { %5549 = vmatprep.subr.bf16.mxu1 %v5451_v19  ;;  %v8475_v26 = vunpack.i.h.bf16 %v8473_v21  ;;  %v8474_v0 = vunpack.i.l.bf16 %v8473_v21  ;;  %v8415_v58 = vunpack.i.h.bf16 %v12003_v52  ;;  %v8414_v42 = vunpack.i.l.bf16 %v12003_v52 }
 0xbe2   : > { %5507 = vmatpush1.bf16.msra.mxu0 %v5448_v9  ;;  %5550 = vmatpush1.bf16.msra.mxu1 %v5450_v35  ;;  %v5273_v45 = vsel %vm1057_vm10, %v8459_v61, %v8460_v59  ;;  %v5330_v16 = vsel %vm1187_vm12, %v8409_v41, %v8410_v39  ;;  %v5304_v15 = vsel %vm824_vm2, %v8405_v36, %v8420_v12  ;;  %vm13016_vm1 = vcmask 818176  }
 0xbe3   : > { %v8463_v53 = vpop.permute.xlu1 %8462  ;;  %v5453_v10 = vpack.c.bf16 %v5300_v44, %v5273_v45  ;;  %v5433_v48 = vsel %vm1455_vm9, %v8420_v12, %v8474_v0  ;;  %v5437_v28 = vsel %vm1483_vm14, %v8475_v26, %v8425_v32  ;;  %v5329_v52 = vsel %vm1187_vm12, %v8364_v3, %v8409_v41  ;;  %v8493_v41 = vpop.permute.xlu0 %8492  ;;  %vm13017_vm0 = vmmov %vm13016_vm1 }
 0xbe4   : > { %v8465_v56 = vunpack.i.h.bf16 %v8463_v53  ;;  %v8464_v62 = vunpack.i.l.bf16 %v8463_v53  ;;  %v5331_v29 = vsel %vm1187_vm12, %v8410_v39, %v8474_v0  ;;  %v5459_v43 = vpack.c.bf16 %v5437_v28, %v5433_v48 }
 0xbe5   : > { %5508 = vmatprep.subr.bf16.mxu0 %v5453_v10  ;;  %v5361_v55 = vsel %vm1242_vm13, %v8415_v58, %v8425_v32  ;;  %v5431_v20 = vsel %vm1455_vm9, %v5303_v34, %v5330_v16  ;;  %v5360_v50 = vsel %vm1242_vm13, %v8414_v42, %v8415_v58  ;;  %v5432_v21 = vsel %vm1455_vm9, %v5304_v15, %v5331_v29 }
 0xbe6   : > { %v5272_v24 = vsel %vm1057_vm10, %v8464_v62, %v8459_v61  ;;  %v5274_v49 = vsel %vm1057_vm10, %v8460_v59, %v8465_v56  ;;  %v5455_v2 = vpack.c.bf16 %v8375_v5, %v8465_v56  ;;  %v5359_v5 = vsel %vm1242_vm13, %v8424_v33, %v8414_v42 }
 0xbe7   : > { %v8468_v23 = vpop.permute.xlu1 %8467  ;;  %v5452_v6 = vpack.c.bf16 %v5299_v25, %v5272_v24  ;;  %v5454_v40 = vpack.c.bf16 %v5301_v8, %v5274_v49  ;;  %v5430_v47 = vsel %vm1455_vm9, %v5302_v22, %v5329_v52  ;;  %v8430_v0 = vunpack.i.h.bf16 %v12005_v46  ;;  %v5411_v15 = vpop.permute.xlu0 %5410 }
 0xbe8   : > { %v8470_v14 = vunpack.i.h.bf16 %v8468_v23  ;;  %v8469_v27 = vunpack.i.l.bf16 %v8468_v23  ;;  %5551 = vmatprep.subr.bf16.mxu1 %v5455_v2  ;;  %v8429_v44 = vunpack.i.l.bf16 %v12005_v46  ;;  %v8454_v39 = vunpack.i.l.bf16 %v12029_v38 }
 0xbe9   : > { %5509 = vmatpush1.bf16.msra.mxu0 %v5452_v6  ;;  %5552 = vmatpush1.bf16.msra.mxu1 %v5454_v40  ;;  %v8455_v10 = vunpack.i.h.bf16 %v12029_v38  ;;  %v8494_v34 = vunpack.i.l.bf16 %v8493_v41  ;;  %v8495_v46 = vunpack.i.h.bf16 %v8493_v41 }
 0xbea   : > { %v5334_v36 = vsel %vm1187_vm12, %v8470_v14, %v8475_v26  ;;  %v5332_v3 = vsel %vm1187_vm12, %v8365_v51, %v8469_v27  ;;  %5553 = vmatprep.subr.bf16.mxu1 %v5459_v43  ;;  %v5333_v19 = vsel %vm1187_vm12, %v8469_v27, %v8470_v14  ;;  %v5390_v33 = vsel %vm1297_vm6, %v8429_v44, %v8430_v0 }
 0xbeb   : > { %v8478_v60 = vpop.permute.xlu1 %8477  ;;  %v5435_v7 = vsel %vm1483_vm14, %v5333_v19, %v5360_v50  ;;  %v5436_v59 = vsel %vm1483_vm14, %v5334_v36, %v5361_v55  ;;  %v5434_v61 = vsel %vm1483_vm14, %v5332_v3, %v5359_v5  ;;  %v5389_v56 = vsel %vm1297_vm6, %v8454_v39, %v8429_v44 }
 0xbec   : > { %v5457_v9 = vpack.c.bf16 %v5435_v7, %v5431_v20  ;;  %v5458_v35 = vpack.c.bf16 %v5436_v59, %v5432_v21  ;;  %v5456_v25 = vpack.c.bf16 %v5434_v61, %v5430_v47  ;;  %v8480_v51 = vunpack.i.h.bf16 %v8478_v60 }
 0xbed   : > { %v8479_v26 = vunpack.i.l.bf16 %v8478_v60  ;;  %v5392_v16 = vsel %vm1297_vm6, %v8494_v34, %v8455_v10  ;;  %v5413_v20 = vsel %vm953_vm7, %v12032_v30, %v5411_v15  ;;  %v5469_v36 = vpack.c.bf16 %v5411_v15, %v5411_v15 }
 0xbee   : > { %5510 = vmatprep.subr.bf16.mxu0 %v5457_v9  ;;  %5554 = vmatpush1.bf16.msra.mxu1 %v5458_v35  ;;  %v5467_v3 = vpack.c.bf16 %v12041_v18, %v12041_v18 }
 0xbef   : > { %v8483_v8 = vpop.permute.xlu1 %8482  ;;  %5511 = vmatpush1.bf16.msra.mxu0 %v5456_v25  ;;  %v5363_v53 = vsel %vm1242_vm13, %v8479_v26, %v8480_v51 }
 0xbf0   : > { %v8484_v45 = vunpack.i.l.bf16 %v8483_v8  ;;  %v8485_v12 = vunpack.i.h.bf16 %v8483_v8  ;;  %v5439_v48 = vsel %vm13011_vm5, %v5363_v53, %v5390_v33  ;;  %vm5600_vm5 = vcmask 392448  }
 0xbf1   : > { %5601 = vst.msk [vmem:[#allocation2 + $0x18] sm:$0xff] %vm5600_vm5, %v12958_v11  ;;  %vm13023_vm5 = vcmask 1046528  }
 0xbf2   : > { %v5362_v32 = vsel %vm1242_vm13, %v8484_v45, %v8479_v26  ;;  %v5364_v42 = vsel %vm1242_vm13, %v8480_v51, %v8485_v12 }
 0xbf3   : > { %v8488_v22 = vpop.permute.xlu1 %8487  ;;  %v5438_v28 = vsel %vm13012_vm3, %v5362_v32, %v5389_v56  ;;  %vm13018_vm3 = vcmask 1047680  }
 0xbf4   : > { %v8490_v62 = vunpack.i.h.bf16 %v8488_v22  ;;  %v8489_v58 = vunpack.i.l.bf16 %v8488_v22  ;;  %v5460_v27 = vpack.c.bf16 %v5392_v16, %v5438_v28 }
 0xbf6   : > { %v5391_v24 = vsel %vm1297_vm6, %v8430_v0, %v8490_v62  ;;  %v5394_v49 = vsel %vm1297_vm6, %v8489_v58, %v8495_v46  ;;  %v5393_v38 = vsel %vm1297_vm6, %v8455_v10, %v8489_v58  ;;  %v5441_v2 = vsel %vm13013_vm15, %v8485_v12, %v8490_v62 }
 0xbf7   : > { %v5409_v52 = vpop.permute.xlu1 %5408  ;;  %v5461_v23 = vpack.c.bf16 %v5393_v38, %v5439_v48  ;;  %v5463_v6 = vpack.c.bf16 %v8495_v46, %v5441_v2  ;;  %v5440_v40 = vsel %vm13014_vm11, %v5364_v42, %v5391_v24  ;;  %vm13019_vm15 = vcmask 1041536  }
 0xbf8   : > { %v5412_v29 = vsel %vm953_vm7, %v11977_v1, %v5409_v52  ;;  %v5443_v14 = vsel %vm1455_vm9, %v11935_v31, %v5409_v52  ;;  %v5462_v43 = vpack.c.bf16 %v5394_v49, %v5440_v40  ;;  %v5468_v1 = vpack.c.bf16 %v5413_v20, %v5413_v20 }
 0xbf9   : > { %v5442_v5 = vsel %vm1455_vm9, %v11894_v57, %v5412_v29  ;;  %5512 = vmatprep.subr.bf16.mxu0 %v5461_v23  ;;  %5555 = vmatprep.subr.bf16.mxu1 %v5463_v6  ;;  %v5465_v55 = vpack.c.bf16 %v5443_v14, %v11933_v54  ;;  %v5466_v57 = vpack.c.bf16 %v12016_v17, %v12016_v17  ;;  %vm13020_vm11 = vcmask 254976  }
 0xbfa   : > { %5513 = vmatpush1.bf16.msra.mxu0 %v5460_v27  ;;  %5556 = vmatpush1.bf16.msra.mxu1 %v5462_v43  ;;  %v5464_v31 = vpack.c.bf16 %v5442_v5, %v11858_v63  ;;  %v8670_v63 = vld [vmem:[%s13015_s0] sm:$0x1f]   ;;  %s13030_s0 = smov 48  }
 0xbfb   : > { %5514 = vmatprep.subr.bf16.mxu0 %v11992_v13  ;;  %5557 = vmatprep.subr.bf16.mxu1 %v5465_v55  ;;  %v5493_v54 = vsel %vm1455_vm9, %v5466_v57, 0  ;;  %v5499_v13 = vsel %vm1455_vm9, %v5468_v1, 0 }
 0xbfe   : > { %5515 = vmatpush1.bf16.msra.mxu0 %v11972_v4  ;;  %5558 = vmatpush1.bf16.msra.mxu1 %v5464_v31  ;;  %v5482_v4 = vpop.permute.xlu0 %5481 }
 0xbff   : > { %7446 = vmatprep.subr.msk.bf16.mxu0 %vm1455_vm9, %v5467_v3  ;;  %7448 = vmatprep.subr.msk.bf16.mxu1 %vm1455_vm9, %v5469_v36 }
 0xc02   : > { %5517 = vmatpush1.bf16.msra.mxu0 %v5493_v54  ;;  %5560 = vmatpush1.bf16.msra.mxu1 %v5499_v13 }
 0xc05   : > { %7447 = vmatmul.mubr.msk.bf16.vlgmr.msra.gmra.mrb[48].mxu0 %vm13016_vm1, %v8670_v63  ;;  %7449 = vmatmul.mubr.msk.bf16.vlgmr.msra.gmra.mrb[40].mxu1 %vm13017_vm0, %v8670_v63  ;;  %vm13021_vm1 = vcmask 517120   ;;  %vm13022_vm0 = vcmask 648192  }
 0xc06   : > { %5832 = vmatprep.mubr.bf16.mxu0 %v12943_v37  ;;  %5875 = vmatprep.mubr.bf16.mxu1 %v12943_v37 }
 0xc08   : > { %v5477_v17 = vpop.permute.xlu1 %5476 }
 0xcd8   : > { %v5538_v30 = vpop.f32.mrb[48].mxu0  ;;  %v5581_v18 = vpop.f32.mrb[40].mxu1 }
 0xcd9   : > { %v5582_v19 = vadd.f32 %v5581_v18, %v5477_v17  ;;  %v5540_v50 = vpop.f32.mrb[49].mxu0  ;;  %v5583_v60 = vpop.f32.mrb[41].mxu1  ;;  %v5539_v61 = vadd.f32 %v5538_v30, %v5477_v17 }
 0xcda   : > { %v5541_v7 = vadd.f32 %v5540_v50, %v5477_v17  ;;  %v5542_v21 = vpop.f32.mrb[50].mxu0  ;;  %v5585_v59 = vpop.f32.mrb[42].mxu1  ;;  %v5584_v39 = vadd.f32 %v5583_v60, %v5477_v17 }
 0xcdb   : > { %v5592_v9 = vmax.f32 %v5582_v19, 0.0  ;;  %v5544_v35 = vpop.f32.mrb[51].mxu0  ;;  %v5587_v47 = vpop.f32.mrb[43].mxu1  ;;  %v5586_v51 = vadd.f32 %v5585_v59, %v5482_v4  ;;  %v5590_v26 = vmax.f32 %v5539_v61, 0.0  ;;  %v5543_v44 = vadd.f32 %v5542_v21, %v5482_v4 }
 0xcdc   : > { %v5591_v25 = vmax.f32 %v5541_v7, 0.0  ;;  %v5545_v0 = vadd.f32 %v5544_v35, %v5482_v4  ;;  %v5588_v12 = vadd.f32 %v5587_v47, %v5482_v4  ;;  %v5593_v32 = vmax.f32 %v5584_v39, 0.0 }
 0xcdd   : > { %5616 = vrot.lane.b32.xlu1 %v5592_v9, %s12998_s8  ;;  %v5596_v8 = vmax.f32 %v5586_v51, 0.0  ;;  %v5594_v45 = vmax.f32 %v5543_v44, 0.0 }
 0xcde   : > { %5614 = vrot.lane.b32.xlu0 %v5591_v25, %s12998_s8  ;;  %v5595_v41 = vmax.f32 %v5545_v0, 0.0  ;;  %v5597_v53 = vmax.f32 %v5588_v12, 0.0  ;;  %v5769_v0 = vld [vmem:[%s12829_s12 + $0x8] sm:$0x3] }
 0xce1   : > { %5612 = vrot.lane.b32.xlu1 %v5590_v26, %s12998_s8  ;;  %v5768_v26 = vld [vmem:[%s12829_s12] sm:$0xff] }
 0xce2   : > { %5624 = vrot.lane.b32.xlu0 %v5596_v8, %s12998_s8 }
 0xce5   : > { %5622 = vrot.lane.b32.xlu1 %v5595_v41, %s12998_s8 }
 0xce6   : > { %5620 = vrot.lane.b32.xlu0 %v5594_v45, %s12998_s8 }
 0xce9   : > { %5618 = vrot.lane.b32.xlu1 %v5593_v32, %s12998_s8 }
 0xcea   : > { %5626 = vrot.lane.b32.xlu0 %v5597_v53, %s12998_s8 }
 0xd4f   : > { %v5617_v10 = vpop.permute.xlu1 %5616 }
 0xd50   : > { %v5615_v34 = vpop.permute.xlu0 %5614 }
 0xd51   : > { %v12149_v22 = vsel %vm1297_vm6, %v5615_v34, %v5617_v10 }
 0xd52   : > { %5644 = vst [vmem:[#allocation2 + $0x10] sm:$0xff] %v12149_v22  ;;  %v5668_v58 = vrot.slane %v12149_v22, 6  ;;  %v5710_v36 = vrot.slane %v12149_v22, 4 }
 0xd53   : > { %6020 = vst.msk [vmem:[#allocation2 + $0x10] sm:$0xff] %vm1057_vm10, %v12958_v11  ;;  %v5613_v33 = vpop.permute.xlu1 %5612 }
 0xd54   : > { %v12155_v56 = vsel %vm1297_vm6, %v5613_v33, %v5615_v34  ;;  %5642 = vst.msk [vmem:[#allocation2] sm:$0xff] %vm13018_vm3, %v5613_v33  ;;  %v5625_v46 = vpop.permute.xlu0 %5624  ;;  %vm13024_vm3 = vmmov %vm13023_vm5 }
 0xd55   : > { %v5667_v62 = vrot.slane %v12155_v56, 6  ;;  %v5709_v23 = vrot.slane %v12155_v56, 4 }
 0xd57   : > { %v5623_v42 = vpop.permute.xlu1 %5622  ;;  %v8496_v48 = vpack.i.bf16 %v5668_v58, %v5667_v62 }
 0xd58   : > { %v5632_v28 = vsel %vm1297_vm6, %v5623_v42, %v5625_v46  ;;  %v5621_v24 = vpop.permute.xlu0 %5620 }
 0xd59   : > { %5648 = vst [vmem:[#allocation2 + $0x80] sm:$0x3] %v5632_v28  ;;  %v5631_v49 = vsel %vm1297_vm6, %v5621_v24, %v5623_v42  ;;  %5646 = vst.msk [vmem:[#allocation2 + $0x70] sm:$0x3] %vm13019_vm15, %v5621_v24  ;;  %8497 = vrot.lane.b32.xlu1 %v8496_v48, %s13000_s5 }
 0xd5a   : > { %5647 = vst [vmem:[#allocation2 + $0x78] sm:$0x3] %v5631_v49  ;;  %vm13025_vm15 = vmmov %vm13024_vm3 }
 0xd5b   : > { %v5619_v38 = vpop.permute.xlu1 %5618  ;;  %v12164_v2 = vld [vmem:[#allocation2] sm:$0xff] }
 0xd5c   : > { %v5630_v16 = vsel %vm1297_vm6, %v5617_v10, %v5619_v38  ;;  %v5627_v15 = vpop.permute.xlu0 %5626  ;;  %v5708_v52 = vrot.slane %v12164_v2, 4  ;;  %6018 = vst.msk [vmem:[#allocation2] sm:$0xff] %vm824_vm2, %v12958_v11  ;;  %v5666_v27 = vrot.slane %v12164_v2, 6 }
 0xd5d   : > { %5645 = vst.msk [vmem:[#allocation2 + $0x18] sm:$0xff] %vm1242_vm13, %v5630_v16  ;;  %v5633_v6 = vsel %vm1297_vm6, %v5625_v46, %v5627_v15 }
 0xd5e   : > { %5649 = vst.msk [vmem:[#allocation2 + $0x88] sm:$0x3] %vm13020_vm11, %v5633_v6  ;;  %v8501_v40 = vpack.i.bf16 %v5709_v23, %v5708_v52  ;;  %vm13026_vm11 = vmmov %vm13024_vm3 }
 0xd60   : > { %8502 = vrot.lane.b32.xlu0 %v8501_v40, %s12999_s7  ;;  %v5654_v29 = vld [vmem:[#allocation2 + $0x70] sm:$0x3]  ;;  %v12175_v14 = vld [vmem:[#allocation2 + $0x80] sm:$0x3] }
 0xd61   : > { %v5670_v43 = vrot.slane %v5654_v29, 6  ;;  %6019 = vst.msk [vmem:[#allocation2 + $0x70] sm:$0x3] %vm13021_vm1, %v12958_v11  ;;  %v5712_v5 = vrot.slane %v5654_v29, 4  ;;  %v5655_v55 = vld [vmem:[#allocation2 + $0x78] sm:$0x3] }
 0xd62   : > { %v5674_v20 = vrot.slane %v12175_v14, 6  ;;  %6021 = vst.msk [vmem:[#allocation2 + $0x80] sm:$0x3] %vm13022_vm0, %v12958_v11  ;;  %v5672_v31 = vrot.slane %v5655_v55, 6  ;;  %v5716_v63 = vrot.slane %v12175_v14, 4  ;;  %v5714_v19 = vrot.slane %v5655_v55, 4 }
 0xd63   : > { %v5671_v1 = vsel %vm1455_vm9, %v5666_v27, %v5670_v43  ;;  %v5713_v3 = vsel %vm1483_vm14, %v5708_v52, %v5712_v5  ;;  %vm13027_vm1 = vcmask 244736  }
 0xd64   : > { %v8506_v57 = vpack.i.bf16 %v5671_v1, %v5666_v27  ;;  %v8511_v54 = vpack.i.bf16 %v5713_v3, %v5710_v36  ;;  %v12186_v13 = vld [vmem:[#allocation2 + $0x18] sm:$0xff]  ;;  %v5673_v4 = vsel %vm1455_vm9, %v5667_v62, %v5672_v31  ;;  %v5675_v17 = vsel %vm1455_vm9, %v5668_v58, %v5674_v20  ;;  %vm13028_vm0 = vmmov %vm13027_vm1 }
 0xd65   : > { %v5657_v30 = vld [vmem:[#allocation2 + $0x88] sm:$0x3]  ;;  %v5669_v18 = vrot.slane %v12186_v13, 6  ;;  %v5711_v60 = vrot.slane %v12186_v13, 4  ;;  %v8521_v21 = vpack.i.bf16 %v5675_v17, %v5673_v4  ;;  %v5715_v9 = vsel %vm1483_vm14, %v5709_v23, %v5714_v19 }
 0xd66   : > { %8507 = vrot.lane.b32.xlu0 %v8506_v57, %s13000_s5  ;;  %8512 = vrot.lane.b32.xlu1 %v8511_v54, %s12999_s7  ;;  %v5676_v50 = vrot.slane %v5657_v30, 6  ;;  %v5718_v7 = vrot.slane %v5657_v30, 4  ;;  %v5717_v35 = vsel %vm1483_vm14, %v5710_v36, %v5716_v63 }
 0xd67   : > { %v8526_v25 = vpack.i.bf16 %v5717_v35, %v5715_v9 }
 0xd68   : > { %v5677_v59 = vsel %vm1455_vm9, %v5669_v18, %v5676_v50  ;;  %v5719_v47 = vsel %vm1483_vm14, %v5711_v60, %v5718_v7 }
 0xd69   : > { %v8516_v61 = vpack.i.bf16 %v5677_v59, %v5669_v18  ;;  %v8531_v51 = vpack.i.bf16 %v5719_v47, %v5711_v60  ;;  %v8671_v59 = vld [vmem:[%s12828_s11] sm:$0x1f]  }
 0xd6a   : > { %8522 = vrot.lane.b32.xlu1 %v8521_v21, %s13000_s5 }
 0xd6b   : > { %8517 = vrot.lane.b32.xlu0 %v8516_v61, %s13000_s5 }
 0xd6e   : > { %8527 = vrot.lane.b32.xlu1 %v8526_v25, %s12999_s7 }
 0xd6f   : > { %8532 = vrot.lane.b32.xlu0 %v8531_v51, %s12999_s7 }
 0xd72   : > { %5772 = vperm.xlu1 %7905, %v5768_v26  }
 0xd73   : > { %5777 = vperm.xlu0 %7904, %v5769_v0  }
 0xdcb   : > { %v8498_v44 = vpop.permute.xlu1 %8497 }
 0xdcc   : > { %v8500_v8 = vunpack.i.h.bf16 %v8498_v44  ;;  %v8499_v39 = vunpack.i.l.bf16 %v8498_v44 }
 0xdce   : > { %v5695_v41 = vsel %vm953_vm7, %v8499_v39, %v8500_v8 }
 0xdcf   : > { %v5751_v45 = vsel %vm1455_vm9, %v5655_v55, %v5695_v41 }
 0xdd0   : > { %v5759_v12 = vpack.c.bf16 %v5751_v45, %v12155_v56 }
 0xdd2   : > { %5800 = vmatprep.subr.bf16.mxu0 %v5759_v12  ;;  %v8503_v32 = vpop.permute.xlu0 %8502 }
 0xdd3   : > { %v8505_v33 = vunpack.i.h.bf16 %v8503_v32  ;;  %v8504_v46 = vunpack.i.l.bf16 %v8503_v32 }
 0xdd5   : > { %v5736_v52 = vsel %vm1005_vm8, %v8504_v46, %v8505_v33 }
 0xdd8   : > { %v8508_v53 = vpop.permute.xlu0 %8507  ;;  %v8513_v10 = vpop.permute.xlu1 %8512 }
 0xdd9   : > { %v8509_v34 = vunpack.i.l.bf16 %v8508_v53  ;;  %v8514_v58 = vunpack.i.l.bf16 %v8513_v10  ;;  %v8510_v16 = vunpack.i.h.bf16 %v8508_v53  ;;  %v8515_v23 = vunpack.i.h.bf16 %v8513_v10 }
 0xddb   : > { %v5694_v62 = vsel %vm953_vm7, %v8509_v34, %v8499_v39  ;;  %v5737_v6 = vsel %vm1005_vm8, %v8505_v33, %v8514_v58 }
 0xddc   : > { %v8523_v42 = vpop.permute.xlu1 %8522  ;;  %v5750_v48 = vsel %vm1455_vm9, %v5654_v29, %v5694_v62 }
 0xddd   : > { %v8525_v28 = vunpack.i.h.bf16 %v8523_v42  ;;  %v8524_v24 = vunpack.i.l.bf16 %v8523_v42  ;;  %v8518_v49 = vpop.permute.xlu0 %8517  ;;  %v5758_v38 = vpack.c.bf16 %v5750_v48, %v12164_v2 }
 0xdde   : > { %v8520_v56 = vunpack.i.h.bf16 %v8518_v49  ;;  %v8519_v15 = vunpack.i.l.bf16 %v8518_v49 }
 0xddf   : > { %5801 = vmatpush1.bf16.msra.mxu0 %v5758_v38  ;;  %v5697_v40 = vsel %vm953_vm7, %v8510_v16, %v8524_v24  ;;  %v5698_v27 = vsel %vm953_vm7, %v8524_v24, %v8525_v28 }
 0xde0   : > { %v5696_v29 = vsel %vm953_vm7, %v8500_v8, %v8519_v15  ;;  %v8528_v43 = vpop.permute.xlu1 %8527  ;;  %v5753_v5 = vsel %vm1455_vm9, %v5657_v30, %v8519_v15  ;;  %v5699_v1 = vsel %vm953_vm7, %v8525_v28, %v8520_v56  ;;  %v5755_v4 = vsel %vm1483_vm14, %v5698_v27, %v5737_v6 }
 0xde1   : > { %v8530_v55 = vunpack.i.h.bf16 %v8528_v43  ;;  %v8529_v2 = vunpack.i.l.bf16 %v8528_v43  ;;  %v8533_v20 = vpop.permute.xlu0 %8532  ;;  %v5761_v36 = vpack.c.bf16 %v5753_v5, %v12186_v13  ;;  %v5752_v31 = vsel %vm1455_vm9, %v12175_v14, %v5696_v29 }
 0xde2   : > { %v8535_v3 = vunpack.i.h.bf16 %v8533_v20  ;;  %v8534_v57 = vunpack.i.l.bf16 %v8533_v20  ;;  %v5760_v54 = vpack.c.bf16 %v5752_v31, %v12149_v22  ;;  %v5754_v30 = vsel %vm1483_vm14, %v5697_v40, %v5736_v52 }
 0xde3   : > { %v5740_v63 = vsel %vm1005_vm8, %v8529_v2, %v8530_v55  ;;  %5843 = vmatprep.subr.bf16.mxu1 %v5761_v36  ;;  %v5739_v17 = vsel %vm1005_vm8, %v8515_v23, %v8529_v2 }
 0xde4   : > { %v5738_v13 = vsel %vm1005_vm8, %v8514_v58, %v8534_v57  ;;  %v5757_v18 = vsel %vm1483_vm14, %v8520_v56, %v8534_v57  ;;  %5844 = vmatpush1.bf16.msra.mxu1 %v5760_v54  ;;  %v5763_v14 = vpack.c.bf16 %v5740_v63, %v5755_v4  ;;  %v5762_v19 = vpack.c.bf16 %v5739_v17, %v5754_v30 }
 0xde5   : > { %v5765_v50 = vpack.c.bf16 %v8535_v3, %v5757_v18  ;;  %v5741_v60 = vsel %vm1005_vm8, %v8530_v55, %v8535_v3  ;;  %v5756_v22 = vsel %vm1483_vm14, %v5699_v1, %v5738_v13 }
 0xde6   : > { %7451 = vmatprep.subr.msk.bf16.mxu0 %vm13023_vm5, %v5763_v14  ;;  %v5789_v7 = vsel %vm13024_vm3, %v5762_v19, 0  ;;  %v5764_v21 = vpack.c.bf16 %v5741_v60, %v5756_v22  ;;  %vm13031_vm5 = vcmask 517120   ;;  %vm13032_vm3 = vcmask 1048064  }
 0xde7   : > { %5803 = vmatpush1.bf16.msra.mxu0 %v5789_v7  ;;  %7453 = vmatprep.subr.msk.bf16.mxu1 %vm13025_vm15, %v5765_v50  ;;  %vm13033_vm15 = vcmask 786048  }
 0xde8   : > { %v5795_v61 = vsel %vm13026_vm11, %v5764_v21, 0  ;;  %vm13034_vm11 = vcmask 1041920  }
 0xde9   : > { %5846 = vmatpush1.bf16.msra.mxu1 %v5795_v61 }
 0xdea   : > { %7452 = vmatmul.mubr.msk.bf16.vlgmr.msra.gmra.mrb[52].mxu0 %vm13027_vm1, %v8671_v59  ;;  %vm13035_vm1 = vcmask 779904  }
 0xdeb   : > { %6297 = vmatprep.mubr.bf16.mxu0 %v12943_v37 }
 0xdec   : > { %7454 = vmatmul.mubr.msk.bf16.vlgmr.msra.gmra.mrb[44].mxu1 %vm13028_vm0, %v8671_v59 }
 0xded   : > { %6454 = vmatprep.mubr.bf16.mxu1 %v12943_v37 }
 0xdf1   : > { %v5773_v35 = vpop.permute.xlu1 %5772 }
 0xdf2   : > { %v5778_v37 = vpop.permute.xlu0 %5777 }
 0xebd   : > { %v5834_v9 = vpop.f32.mrb[52].mxu0 }
 0xebe   : > { %v5836_v47 = vpop.f32.mrb[53].mxu0  ;;  %v5835_v45 = vadd.f32 %v5834_v9, %v5773_v35 }
 0xebf   : > { %v5838_v25 = vpop.f32.mrb[54].mxu0  ;;  %v5877_v51 = vpop.f32.mrb[44].mxu1  ;;  %v5837_v12 = vadd.f32 %v5836_v47, %v5773_v35 }
 0xec0   : > { %v5878_v26 = vadd.f32 %v5877_v51, %v5773_v35  ;;  %v5840_v0 = vpop.f32.mrb[55].mxu0  ;;  %v5879_v44 = vpop.f32.mrb[45].mxu1  ;;  %v5839_v53 = vadd.f32 %v5838_v25, %v5778_v37 }
 0xec1   : > { %v5880_v8 = vadd.f32 %v5879_v44, %v5773_v35  ;;  %v5881_v39 = vpop.f32.mrb[46].mxu1  ;;  %v5841_v32 = vadd.f32 %v5840_v0, %v5778_v37 }
 0xec2   : > { %v5883_v41 = vpop.f32.mrb[47].mxu1  ;;  %5898 = vrot.lane.b32.xlu1 %v5878_v26, %s13000_s5  ;;  %v5882_v10 = vadd.f32 %v5881_v39, %v5778_v37 }
 0xec3   : > { %5900 = vrot.lane.b32.xlu0 %v5880_v8, %s13000_s5  ;;  %v5884_v34 = vadd.f32 %v5883_v41, %v5778_v37 }
 0xec6   : > { %5894 = vrot.lane.b32.xlu1 %v5835_v45, %s13000_s5 }
 0xec7   : > { %5896 = vrot.lane.b32.xlu0 %v5837_v12, %s13000_s5 }
 0xeca   : > { %5904 = vrot.lane.b32.xlu1 %v5841_v32, %s13000_s5 }
 0xecb   : > { %5902 = vrot.lane.b32.xlu0 %v5839_v53, %s13000_s5 }
 0xece   : > { %5906 = vrot.lane.b32.xlu1 %v5882_v10, %s13000_s5 }
 0xecf   : > { %5908 = vrot.lane.b32.xlu0 %v5884_v34, %s13000_s5 }
 0xf34   : > { %v5899_v33 = vpop.permute.xlu1 %5898 }
 0xf35   : > { %v5901_v46 = vpop.permute.xlu0 %5900 }
 0xf36   : > { %v5912_v62 = vsel %vm953_vm7, %v5899_v33, %v5901_v46 }
 0xf37   : > { %v5924_v58 = vmax.f32 %v5878_v26, %v5912_v62 }
 0xf38   : > { %v5895_v42 = vpop.permute.xlu1 %5894 }
 0xf39   : > { %5976 = vrot.lane.b32.xlu0 %v5924_v58, %s13000_s5  ;;  %v5897_v48 = vpop.permute.xlu0 %5896  ;;  %5982 = vrot.lane.b32.xlu1 %v5924_v58, %s12999_s7 }
 0xf3a   : > { %v5910_v28 = vsel %vm953_vm7, %v5895_v42, %v5897_v48  ;;  %v5911_v16 = vsel %vm953_vm7, %v5897_v48, %v5899_v33 }
 0xf3b   : > { %v5922_v24 = vmax.f32 %v5835_v45, %v5910_v28  ;;  %v5923_v52 = vmax.f32 %v5837_v12, %v5911_v16 }
 0xf3c   : > { %v5905_v49 = vpop.permute.xlu1 %5904 }
 0xf3d   : > { %5988 = vrot.lane.b32.xlu0 %v5924_v58, %s8704_s4  ;;  %v5903_v38 = vpop.permute.xlu0 %5902  ;;  %5930 = vrot.lane.b32.xlu1 %v5922_v24, %s13000_s5 }
 0xf3e   : > { %v5913_v40 = vsel %vm953_vm7, %v5903_v38, %v5905_v49 }
 0xf3f   : > { %v5925_v27 = vmax.f32 %v5839_v53, %v5913_v40  ;;  %v12315_v53 = vld [vmem:[#allocation2 + $0x10] sm:$0xff] }
 0xf40   : > { %v5907_v56 = vpop.permute.xlu1 %5906  ;;  %v12318_v33 = vrot.slane %v12315_v53, 6  ;;  %v6153_v48 = vrot.slane %v12315_v53, 4 }
 0xf41   : > { %v5909_v15 = vpop.permute.xlu0 %5908  ;;  %5936 = vrot.lane.b32.xlu0 %v5922_v24, %s12999_s7  ;;  %5942 = vrot.lane.b32.xlu1 %v5922_v24, %s8704_s4  ;;  %v5914_v29 = vsel %vm953_vm7, %v5905_v49, %v5907_v56 }
 0xf42   : > { %v5915_v23 = vsel %vm953_vm7, %v5907_v56, %v5909_v15  ;;  %v5926_v43 = vmax.f32 %v5841_v32, %v5914_v29 }
 0xf43   : > { %v5927_v6 = vmax.f32 %v5882_v10, %v5915_v23 }
 0xf45   : > { %5962 = vrot.lane.b32.xlu0 %v5923_v52, %s12997_s27  ;;  %5950 = vrot.lane.b32.xlu1 %v5923_v52, %s13029_s28 }
 0xf49   : > { %5956 = vrot.lane.b32.xlu1 %v5923_v52, %s13030_s0  ;;  %5978 = vrot.lane.b32.xlu0 %v5927_v6, %s13000_s5 }
 0xf4d   : > { %5968 = vrot.lane.b32.xlu1 %v5923_v52, %s12998_s8  ;;  %5984 = vrot.lane.b32.xlu0 %v5927_v6, %s12999_s7 }
 0xf51   : > { %5944 = vrot.lane.b32.xlu1 %v5925_v27, %s8704_s4  ;;  %5932 = vrot.lane.b32.xlu0 %v5925_v27, %s13000_s5 }
 0xf55   : > { %5938 = vrot.lane.b32.xlu0 %v5925_v27, %s12999_s7  ;;  %5958 = vrot.lane.b32.xlu1 %v5926_v43, %s13030_s0 }
 0xf59   : > { %5964 = vrot.lane.b32.xlu1 %v5926_v43, %s12997_s27  ;;  %5952 = vrot.lane.b32.xlu0 %v5926_v43, %s13029_s28 }
 0xf5d   : > { %5970 = vrot.lane.b32.xlu1 %v5926_v43, %s12998_s8  ;;  %5990 = vrot.lane.b32.xlu0 %v5927_v6, %s8704_s4 }
 0xfab   : > { %v5977_v5 = vpop.permute.xlu0 %5976  ;;  %v5983_v55 = vpop.permute.xlu1 %5982 }
 0xfac   : > { %v6008_v2 = vsel %vm1297_vm6, %v5924_v58, %v5977_v5  ;;  %v12349_v5 = vld [vmem:[#allocation2 + $0x80] sm:$0x3] }
 0xfad   : > { %v6010_v20 = vsel %vm1242_vm13, %v6008_v2, %v5983_v55 }
 0xfaf   : > { %v5989_v36 = vpop.permute.xlu0 %5988  ;;  %v5931_v31 = vpop.permute.xlu1 %5930 }
 0xfb0   : > { %v6012_v1 = vsel %vm1187_vm12, %v6010_v20, %v5989_v36  ;;  %v5994_v54 = vsel %vm1297_vm6, %v5922_v24, %v5931_v31  ;;  %v6176_v36 = vrot.slane %v12315_v53, 2 }
 0xfb1   : > { %6015 = vst.msk [vmem:[%s12284_s6 + $0x8] sm:$0xff] %vm824_vm2, %v6012_v1  ;;  %6028 = vrot.lane.b32.xlu0 %v6012_v1, %s13029_s28 }
 0xfb3   : > { %v5937_v3 = vpop.permute.xlu0 %5936  ;;  %v5943_v57 = vpop.permute.xlu1 %5942 }
 0xfb4   : > { %v5996_v63 = vsel %vm1242_vm13, %v5994_v54, %v5937_v3  ;;  %v6131_v3 = vrot.slane %v12349_v5, 6 }
 0xfb5   : > { %v5998_v30 = vsel %vm1187_vm12, %v5996_v63, %v5943_v57 }
 0xfb7   : > { %v5963_v4 = vpop.permute.xlu0 %5962  ;;  %v5951_v17 = vpop.permute.xlu1 %5950 }
 0xfb8   : > { %v6000_v13 = vsel %vm824_vm2, %v5998_v30, %v5951_v17 }
 0xfbb   : > { %v5979_v18 = vpop.permute.xlu0 %5978  ;;  %v5957_v14 = vpop.permute.xlu1 %5956 }
 0xfbc   : > { %v6002_v19 = vsel %vm1057_vm10, %v6000_v13, %v5957_v14  ;;  %v6009_v8 = vsel %vm1297_vm6, %v5927_v6, %v5979_v18 }
 0xfbd   : > { %v6004_v60 = vsel %vm1005_vm8, %v6002_v19, %v5963_v4 }
 0xfbf   : > { %v5985_v50 = vpop.permute.xlu0 %5984  ;;  %v5969_v22 = vpop.permute.xlu1 %5968 }
 0xfc0   : > { %v6006_v7 = vsel %vm953_vm7, %v6004_v60, %v5969_v22  ;;  %v6011_v41 = vsel %vm1242_vm13, %v6009_v8, %v5985_v50  ;;  %v6177_v60 = vrot.slane %v12349_v5, 2 }
 0xfc1   : > { %6014 = vst [vmem:[%s12284_s6] sm:$0xff] %v6006_v7  ;;  %6026 = vrot.lane.b32.xlu1 %v6006_v7, %s13029_s28 }
 0xfc3   : > { %v5933_v21 = vpop.permute.xlu0 %5932  ;;  %v5945_v59 = vpop.permute.xlu1 %5944 }
 0xfc4   : > { %v5995_v61 = vsel %vm1297_vm6, %v5925_v27, %v5933_v21 }
 0xfc7   : > { %v5939_v9 = vpop.permute.xlu0 %5938  ;;  %v5959_v35 = vpop.permute.xlu1 %5958 }
 0xfc8   : > { %v5997_v47 = vsel %vm1242_vm13, %v5995_v61, %v5939_v9 }
 0xfc9   : > { %v5999_v51 = vsel %vm1187_vm12, %v5997_v47, %v5945_v59  ;;  %v6154_v59 = vrot.slane %v12349_v5, 4 }
 0xfcb   : > { %v5953_v25 = vpop.permute.xlu0 %5952  ;;  %v5965_v26 = vpop.permute.xlu1 %5964  ;;  %v6155_v47 = vsel %vm1483_vm14, %v6153_v48, %v6154_v59 }
 0xfcc   : > { %v6001_v0 = vsel %vm824_vm2, %v5999_v51, %v5953_v25 }
 0xfcd   : > { %v6003_v44 = vsel %vm1057_vm10, %v6001_v0, %v5959_v35  ;;  %v6240_v0 = vld [vmem:[%s12831_s14 + $0x8] sm:$0x3] }
 0xfce   : > { %v6005_v39 = vsel %vm1005_vm8, %v6003_v44, %v5965_v26  ;;  %v6239_v44 = vld [vmem:[%s12831_s14] sm:$0xff] }
 0xfcf   : > { %v5991_v45 = vpop.permute.xlu0 %5990  ;;  %v5971_v12 = vpop.permute.xlu1 %5970 }
 0xfd0   : > { %v6013_v37 = vsel %vm1187_vm12, %v6011_v41, %v5991_v45  ;;  %v6007_v32 = vsel %vm953_vm7, %v6005_v39, %v5971_v12 }
 0xfd1   : > { %6017 = vst.msk [vmem:[%s12284_s6 + $0x18] sm:$0x3] %vm13031_vm5, %v6013_v37  ;;  %6016 = vst [vmem:[%s12284_s6 + $0x10] sm:$0x3] %v6007_v32  ;;  %6032 = vrot.lane.b32.xlu0 %v6013_v37, %s13029_s28  ;;  %6030 = vrot.lane.b32.xlu1 %v6007_v32, %s13029_s28 }
0x1023   : > { %v6029_v10 = vpop.permute.xlu0 %6028 }
0x1033   : > { %v6027_v34 = vpop.permute.xlu1 %6026 }
0x1034   : > { %v12321_v46 = vsel %vm824_vm2, %v6027_v34, %v6029_v10  ;;  %6040 = vst.msk [vmem:[#allocation2] sm:$0xff] %vm13032_vm3, %v6027_v34 }
0x1035   : > { %6041 = vst [vmem:[#allocation2 + $0x8] sm:$0xff] %v12321_v46  ;;  %v6055_v62 = vrot.slane %v12321_v46, 6  ;;  %v6075_v42 = vrot.slane %v12321_v46, 4  ;;  %v6095_v27 = vrot.slane %v12321_v46, 2 }
0x1036   : > { %6314 = vst.msk [vmem:[#allocation2 + $0x8] sm:$0xff] %vm13033_vm15, %v12958_v11 }
0x1037   : > { %v8556_v58 = vpack.i.bf16 %v12318_v33, %v6055_v62  ;;  %v8561_v24 = vpack.i.bf16 %v6153_v48, %v6075_v42  ;;  %v8596_v17 = vpack.i.bf16 %v6176_v36, %v6095_v27 }
0x1039   : > { %8557 = vrot.lane.b32.xlu0 %v8556_v58, %s13030_s0 }
0x103b   : > { %v12332_v28 = vld [vmem:[#allocation2] sm:$0xff] }
0x103c   : > { %v8536_v49 = vpack.i.bf16 %v12321_v46, %v12332_v28  ;;  %6312 = vst.msk [vmem:[#allocation2] sm:$0xff] %vm1297_vm6, %v12958_v11  ;;  %v6054_v38 = vrot.slane %v12332_v28, 6  ;;  %v6074_v56 = vrot.slane %v12332_v28, 4  ;;  %v6094_v40 = vrot.slane %v12332_v28, 2 }
0x103d   : > { %8562 = vrot.lane.b32.xlu0 %v8561_v24, %s12997_s27 }
0x103e   : > { %8537 = vrot.lane.b32.xlu1 %v8536_v49, %s13029_s28  ;;  %v8541_v16 = vpack.i.bf16 %v6055_v62, %v6054_v38  ;;  %v8546_v6 = vpack.i.bf16 %v6075_v42, %v6074_v56  ;;  %v8551_v29 = vpack.i.bf16 %v6095_v27, %v6094_v40 }
0x1042   : > { %8542 = vrot.lane.b32.xlu1 %v8541_v16, %s13000_s5 }
0x1043   : > { %v6033_v15 = vpop.permute.xlu0 %6032  ;;  %v6031_v52 = vpop.permute.xlu1 %6030 }
0x1044   : > { %v6035_v23 = vsel %vm824_vm2, %v6031_v52, %v6033_v15  ;;  %6042 = vst.msk [vmem:[#allocation2 + $0x70] sm:$0x3] %vm13034_vm11, %v6031_v52 }
0x1045   : > { %6043 = vst [vmem:[#allocation2 + $0x78] sm:$0x3] %v6035_v23 }
0x1046   : > { %8547 = vrot.lane.b32.xlu1 %v8546_v6, %s12999_s7 }
0x104a   : > { %8552 = vrot.lane.b32.xlu1 %v8551_v29, %s8704_s4 }
0x104b   : > { %v6046_v43 = vld [vmem:[#allocation2 + $0x70] sm:$0x3] }
0x104c   : > { %v12351_v55 = vld [vmem:[#allocation2 + $0x78] sm:$0x3]  ;;  %6313 = vst.msk [vmem:[#allocation2 + $0x70] sm:$0x3] %vm1953_vm4, %v12958_v11  ;;  %v6056_v2 = vrot.slane %v6046_v43, 6  ;;  %v6076_v63 = vrot.slane %v6046_v43, 4 }
0x104d   : > { %v8566_v20 = vpack.i.bf16 %v12351_v55, %v6046_v43  ;;  %6315 = vst.msk [vmem:[#allocation2 + $0x78] sm:$0x3] %vm13035_vm1, %v12958_v11  ;;  %v6058_v31 = vrot.slane %v12351_v55, 6  ;;  %v6078_v4 = vrot.slane %v12351_v55, 4  ;;  %v6132_v11 = vsel %vm1455_vm9, %v12318_v33, %v6131_v3 }
0x104e   : > { %v6057_v1 = vsel %vm1455_vm9, %v6054_v38, %v6056_v2  ;;  %v6077_v13 = vsel %vm1483_vm14, %v6074_v56, %v6076_v63  ;;  %v6096_v14 = vrot.slane %v6046_v43, 2  ;;  %v6098_v19 = vrot.slane %v12351_v55, 2 }
0x104f   : > { %8567 = vrot.lane.b32.xlu1 %v8566_v20, %s13029_s28  ;;  %v8571_v57 = vpack.i.bf16 %v6057_v1, %v6054_v38  ;;  %v6059_v54 = vsel %vm1455_vm9, %v6055_v62, %v6058_v31  ;;  %v6079_v18 = vsel %vm1483_vm14, %v6075_v42, %v6078_v4  ;;  %vm13036_vm4 = vcmask 1045504  }
0x1050   : > { %v8576_v30 = vpack.i.bf16 %v6059_v54, %v6057_v1  ;;  %v8601_v50 = vpack.i.bf16 %v6132_v11, %v6059_v54  ;;  %v8581_v22 = vpack.i.bf16 %v6079_v18, %v6077_v13  ;;  %v6097_v7 = vsel %vm13036_vm4, %v6094_v40, %v6096_v14  ;;  %vm13037_vm0 = vmmov %vm13036_vm4 }
0x1051   : > { %8572 = vrot.lane.b32.xlu0 %v8571_v57, %s13030_s0  ;;  %v6099_v21 = vsel %vm13037_vm0, %v6095_v27, %v6098_v19  ;;  %v8606_v61 = vpack.i.bf16 %v6079_v18, %v6074_v56  ;;  %vm13038_vm5 = vmmov %vm13037_vm0  ;;  %v8591_v51 = vpack.i.bf16 %v6077_v13, %v6155_v47  ;;  %vm13043_vm4 = vcmask 818176  }
0x1052   : > { %v6178_v9 = vsel %vm13038_vm5, %v6176_v36, %v6177_v60  ;;  %v8586_v35 = vpack.i.bf16 %v6099_v21, %v6097_v7  ;;  %v8616_v26 = vpack.i.bf16 %v6099_v21, %v6094_v40  ;;  %vm13039_vm3 = vmmov %vm13037_vm0  ;;  %vm13045_vm5 = vcmask 1041536  }
0x1053   : > { %8597 = vrot.lane.b32.xlu1 %v8596_v17, %s12998_s8  ;;  %v8611_v25 = vpack.i.bf16 %v6097_v7, %v6178_v9  ;;  %vm13040_vm15 = vmmov %vm13037_vm0 }
0x1054   : > { %vm13041_vm11 = vmmov %vm13037_vm0 }
0x1055   : > { %8577 = vrot.lane.b32.xlu0 %v8576_v30, %s13000_s5  ;;  %vm13042_vm1 = vmmov %vm13037_vm0  ;;  %vm13044_vm0 = vcmask 1047680  }
0x1057   : > { %8602 = vrot.lane.b32.xlu1 %v8601_v50, %s13030_s0 }
0x1059   : > { %8582 = vrot.lane.b32.xlu0 %v8581_v22, %s12999_s7 }
0x105b   : > { %8607 = vrot.lane.b32.xlu1 %v8606_v61, %s12997_s27 }
0x105d   : > { %8587 = vrot.lane.b32.xlu0 %v8586_v35, %s8704_s4 }
0x105f   : > { %8612 = vrot.lane.b32.xlu1 %v8611_v25, %s12998_s8 }
0x1061   : > { %8592 = vrot.lane.b32.xlu0 %v8591_v51, %s12997_s27 }
0x1063   : > { %6201 = vrot.lane.b32.xlu1 %v6132_v11, %s13000_s5 }
0x1065   : > { %8617 = vrot.lane.b32.xlu0 %v8616_v26, %s12998_s8 }
0x1067   : > { %6248 = vperm.xlu1 %7905, %v6240_v0  }
0x1069   : > { %6199 = vrot.lane.b32.xlu0 %v12318_v33, %s13000_s5 }
0x106d   : > { %6243 = vperm.xlu0 %7904, %v6239_v44  }
0x10ab   : > { %v8558_v33 = vpop.permute.xlu0 %8557 }
0x10ac   : > { %v8560_v27 = vunpack.i.h.bf16 %v8558_v33 }
0x10af   : > { %v8563_v42 = vpop.permute.xlu0 %8562 }
0x10b0   : > { %v12395_v8 = vpop.permute.xlu1 %8537  ;;  %v8565_v29 = vunpack.i.h.bf16 %v8563_v42  ;;  %v8564_v2 = vunpack.i.l.bf16 %v8563_v42 }
0x10b1   : > { %v8539_v1 = vunpack.i.l.bf16 %v12395_v8 }
0x10b2   : > { %v6169_v25 = vsel %vm1242_vm13, %v8564_v2, %v8565_v29 }
0x10b4   : > { %v8543_v39 = vpop.permute.xlu1 %8542 }
0x10b5   : > { %v12397_v41 = vunpack.i.h.bf16 %v8543_v39  ;;  %v8544_v45 = vunpack.i.l.bf16 %v8543_v39 }
0x10b7   : > { %v6068_v12 = vsel %vm953_vm7, %v8544_v45, %v12397_v41  ;;  %v6210_v37 = vsel %vm1455_vm9, %v12351_v55, %v12397_v41 }
0x10b8   : > { %v8548_v32 = vpop.permute.xlu1 %8547  ;;  %v6224_v10 = vpack.c.bf16 %v6210_v37, %v12321_v46  ;;  %v6209_v34 = vsel %vm1455_vm9, %v6046_v43, %v6068_v12  ;;  %v8540_v43 = vunpack.i.h.bf16 %v12395_v8 }
0x10b9   : > { %v6223_v62 = vpack.c.bf16 %v6209_v34, %v12332_v28  ;;  %v8550_v15 = vunpack.i.h.bf16 %v8548_v32  ;;  %v8549_v52 = vunpack.i.l.bf16 %v8548_v32  ;;  %v8559_v28 = vunpack.i.l.bf16 %v8558_v33 }
0x10ba   : > { %6265 = vmatprep.subr.bf16.mxu0 %v6224_v10  ;;  %v6122_v47 = vsel %vm824_vm2, %v8539_v1, %v8540_v43 }
0x10bb   : > { %6266 = vmatpush1.bf16.msra.mxu0 %v6223_v62  ;;  %v6088_v63 = vsel %vm1005_vm8, %v8549_v52, %v8550_v15  ;;  %v6146_v59 = vsel %vm1187_vm12, %v8559_v28, %v8560_v27 }
0x10bc   : > { %v8553_v58 = vpop.permute.xlu1 %8552 }
0x10bd   : > { %v8555_v23 = vunpack.i.h.bf16 %v8553_v58  ;;  %v8554_v6 = vunpack.i.l.bf16 %v8553_v58 }
0x10bf   : > { %v6108_v4 = vsel %vm1057_vm10, %v8554_v6, %v8555_v23 }
0x10c1   : > { %v12407_v48 = vpop.permute.xlu1 %8567 }
0x10c2   : > { %v8570_v17 = vunpack.i.h.bf16 %v12407_v48  ;;  %v8569_v51 = vunpack.i.l.bf16 %v12407_v48 }
0x10c3   : > { %v8573_v24 = vpop.permute.xlu0 %8572 }
0x10c4   : > { %v8574_v11 = vunpack.i.l.bf16 %v8573_v24  ;;  %v8575_v26 = vunpack.i.h.bf16 %v8573_v24  ;;  %v6216_v32 = vsel %vm1455_vm9, %v8570_v17, %v6146_v59 }
0x10c5   : > { %v12409_v49 = vpop.permute.xlu1 %8597 }
0x10c6   : > { %v6145_v45 = vsel %vm1187_vm12, %v8574_v11, %v8559_v28  ;;  %v8600_v10 = vunpack.i.h.bf16 %v12409_v49  ;;  %v8599_v34 = vunpack.i.l.bf16 %v12409_v49 }
0x10c7   : > { %v8578_v38 = vpop.permute.xlu0 %8577 }
0x10c8   : > { %v12411_v16 = vunpack.i.h.bf16 %v8578_v38  ;;  %v8579_v56 = vunpack.i.l.bf16 %v8578_v38  ;;  %v6192_v29 = vsel %vm1297_vm6, %v8599_v34, %v8600_v10 }
0x10c9   : > { %v8603_v40 = vpop.permute.xlu1 %8602 }
0x10ca   : > { %v8605_v20 = vunpack.i.h.bf16 %v8603_v40  ;;  %v8604_v36 = vunpack.i.l.bf16 %v8603_v40  ;;  %v6069_v3 = vsel %vm953_vm7, %v8579_v56, %v12411_v16  ;;  %v6212_v14 = vsel %vm1483_vm14, %v12411_v16, %v8550_v15 }
0x10cb   : > { %v8583_v31 = vpop.permute.xlu0 %8582  ;;  %v6211_v7 = vsel %vm1483_vm14, %v6069_v3, %v6088_v63  ;;  %v6123_v56 = vsel %vm824_vm2, %v8569_v51, %v8570_v17 }
0x10cc   : > { %v8585_v57 = vunpack.i.h.bf16 %v8583_v31  ;;  %v8584_v54 = vunpack.i.l.bf16 %v8583_v31  ;;  %v6148_v50 = vsel %vm1187_vm12, %v8604_v36, %v8605_v20  ;;  %v6147_v33 = vsel %vm1187_vm12, %v8575_v26, %v8604_v36 }
0x10cd   : > { %v8608_v30 = vpop.permute.xlu1 %8607  ;;  %v6218_v39 = vsel %vm1483_vm14, %v6148_v50, %v6169_v25  ;;  %v6215_v49 = vsel %vm1455_vm9, %v6123_v56, %v6145_v45 }
0x10ce   : > { %v6089_v13 = vsel %vm1005_vm8, %v8584_v54, %v8585_v57  ;;  %v8609_v18 = vunpack.i.l.bf16 %v8608_v30  ;;  %v6214_v19 = vsel %vm13039_vm3, %v8585_v57, %v8555_v23  ;;  %v8610_v42 = vunpack.i.h.bf16 %v8608_v30 }
0x10cf   : > { %v8588_v60 = vpop.permute.xlu0 %8587  ;;  %v6226_v22 = vpack.c.bf16 %v6214_v19, %v6212_v14  ;;  %v6213_v21 = vsel %vm13040_vm15, %v6089_v13, %v6108_v4  ;;  %v6230_v24 = vpack.c.bf16 %v6218_v39, %v6216_v32  ;;  %vm13046_vm3 = vcmask 648192  }
0x10d0   : > { %v8590_v61 = vunpack.i.h.bf16 %v8588_v60  ;;  %v8589_v9 = vunpack.i.l.bf16 %v8588_v60  ;;  %v6225_v35 = vpack.c.bf16 %v6213_v21, %v6211_v7  ;;  %v6168_v0 = vsel %vm1242_vm13, %v8609_v18, %v8564_v2 }
0x10d1   : > { %6267 = vmatprep.subr.bf16.mxu0 %v6226_v22  ;;  %v8613_v62 = vpop.permute.xlu1 %8612  ;;  %v6217_v38 = vsel %vm1483_vm14, %v6147_v33, %v6168_v0  ;;  %vm13047_vm15 = vcmask 1046528  }
0x10d2   : > { %v6109_v44 = vsel %vm1057_vm10, %v8589_v9, %v8590_v61  ;;  %v6228_v8 = vpack.c.bf16 %v8540_v43, %v8590_v61  ;;  %6268 = vmatpush1.bf16.msra.mxu0 %v6225_v35  ;;  %v8615_v15 = vunpack.i.h.bf16 %v8613_v62  ;;  %v8614_v6 = vunpack.i.l.bf16 %v8613_v62 }
0x10d3   : > { %v6227_v12 = vpack.c.bf16 %v6122_v47, %v6109_v44  ;;  %v8593_v37 = vpop.permute.xlu0 %8592  ;;  %v6229_v28 = vpack.c.bf16 %v6217_v38, %v6215_v49  ;;  %v6396_v49 = vld [vmem:[%s12833_s16] sm:$0xff] }
0x10d4   : > { %v8594_v58 = vunpack.i.l.bf16 %v8593_v37  ;;  %6269 = vmatprep.subr.bf16.mxu0 %v6228_v8  ;;  %v8595_v48 = vunpack.i.h.bf16 %v8593_v37 }
0x10d5   : > { %v6202_v1 = vpop.permute.xlu1 %6201 }
0x10d6   : > { %6270 = vmatpush1.bf16.msra.mxu0 %v6227_v12  ;;  %v6171_v52 = vsel %vm1242_vm13, %v8610_v42, %v8594_v58  ;;  %v6170_v43 = vsel %vm1242_vm13, %v8595_v48, %v8610_v42  ;;  %v6204_v13 = vsel %vm953_vm7, %v12411_v16, %v6202_v1  ;;  %v6236_v18 = vpack.c.bf16 %v6202_v1, %v6202_v1 }
0x10d7   : > { %v8618_v23 = vpop.permute.xlu0 %8617  ;;  %6271 = vmatprep.subr.bf16.mxu0 %v6230_v24  ;;  %v6220_v31 = vsel %vm13041_vm11, %v6171_v52, %v6192_v29  ;;  %v6235_v19 = vpack.c.bf16 %v6204_v13, %v6204_v13  ;;  %vm13048_vm11 = vmmov %vm13047_vm15 }
0x10d8   : > { %v8620_v40 = vunpack.i.h.bf16 %v8618_v23  ;;  %v8619_v27 = vunpack.i.l.bf16 %v8618_v23 }
0x10da   : > { %v6191_v2 = vsel %vm1297_vm6, %v8619_v27, %v8599_v34  ;;  %v6193_v20 = vsel %vm1297_vm6, %v8615_v15, %v8620_v40  ;;  %6272 = vmatpush1.bf16.msra.mxu0 %v6229_v28  ;;  %v6194_v36 = vsel %vm1297_vm6, %v8620_v40, %v8614_v6  ;;  %v6397_v27 = vld [vmem:[%s12833_s16 + $0x8] sm:$0x3] }
0x10db   : > { %v6219_v3 = vsel %vm13042_vm1, %v6170_v43, %v6191_v2  ;;  %v6200_v57 = vpop.permute.xlu0 %6199  ;;  %v6232_v54 = vpack.c.bf16 %v6194_v36, %v6220_v31  ;;  %vm13049_vm1 = vcmask 244736  }
0x10dc   : > { %v6231_v63 = vpack.c.bf16 %v6193_v20, %v6219_v3  ;;  %v6203_v4 = vsel %vm953_vm7, %v12397_v41, %v6200_v57  ;;  %v6222_v17 = vsel %vm1455_vm9, %v12349_v5, %v6200_v57  ;;  %v6260_v5 = vsel %vm1455_vm9, %v6235_v19, 0 }
0x10dd   : > { %v6221_v11 = vsel %vm1455_vm9, %v12351_v55, %v6203_v4  ;;  %v6234_v30 = vpack.c.bf16 %v6222_v17, %v12315_v53  ;;  %6273 = vmatprep.subr.bf16.mxu0 %v6232_v54  ;;  %v8672_v55 = vld [vmem:[%s12830_s13] sm:$0x1f]  }
0x10de   : > { %6274 = vmatpush1.bf16.msra.mxu0 %v6231_v63  ;;  %v6233_v14 = vpack.c.bf16 %v6221_v11, %v12321_v46 }
0x10df   : > { %6275 = vmatprep.subr.bf16.mxu0 %v6234_v30 }
0x10e2   : > { %6276 = vmatpush1.bf16.msra.mxu0 %v6233_v14 }
0x10e3   : > { %7456 = vmatprep.subr.msk.bf16.mxu0 %vm1455_vm9, %v6236_v18 }
0x10e6   : > { %6278 = vmatpush1.bf16.msra.mxu0 %v6260_v5  ;;  %v6249_v60 = vpop.permute.xlu1 %6248 }
0x10e9   : > { %7457 = vmatmul.mubr.msk.bf16.vlgmr.msra.gmra.mrb[56].mxu0 %vm13043_vm4, %v8672_v55 }
0x10ec   : > { %v6244_v53 = vpop.permute.xlu0 %6243 }
0x11bc   : > { %v6299_v41 = vpop.f32.mrb[56].mxu0 }
0x11bd   : > { %v6300_v16 = vadd.f32 %v6299_v41, %v6244_v53  ;;  %v6301_v50 = vpop.f32.mrb[57].mxu0 }
0x11be   : > { %v6302_v22 = vadd.f32 %v6301_v50, %v6244_v53  ;;  %v6303_v46 = vpop.f32.mrb[58].mxu0  ;;  %v8673_v50 = vld [vmem:[%s12832_s15] sm:$0x1f]  }
0x11bf   : > { %v6308_v7 = vmax.f32 %v6300_v16, 0.0  ;;  %v6304_v21 = vadd.f32 %v6303_v46, %v6249_v60  ;;  %v6305_v59 = vpop.f32.mrb[59].mxu0 }
0x11c0   : > { %v6309_v61 = vmax.f32 %v6302_v22, 0.0  ;;  %v6306_v9 = vadd.f32 %v6305_v59, %v6249_v60 }
0x11c1   : > { %6320 = vrot.lane.b32.xlu0 %v6308_v7, %s12998_s8  ;;  %v6310_v35 = vmax.f32 %v6304_v21, 0.0 }
0x11c2   : > { %6322 = vrot.lane.b32.xlu1 %v6309_v61, %s12998_s8  ;;  %v6311_v47 = vmax.f32 %v6306_v9, 0.0 }
0x11c5   : > { %6324 = vrot.lane.b32.xlu0 %v6310_v35, %s12998_s8 }
0x11c6   : > { %6326 = vrot.lane.b32.xlu1 %v6311_v47, %s12998_s8  ;;  %s7499_s8 = sshll.u32 %s13056_s2, 4 }
0x11c7   : > { %s804_s1 = scalar_lea.vmem %s12841_s24, %s7499_s8 }
0x1233   : > { %v6321_v25 = vpop.permute.xlu0 %6320 }
0x1234   : > { %6334 = vst.msk [vmem:[#allocation2] sm:$0xff] %vm13044_vm0, %v6321_v25  ;;  %v6323_v51 = vpop.permute.xlu1 %6322 }
0x1235   : > { %v6328_v26 = vsel %vm1297_vm6, %v6321_v25, %v6323_v51 }
0x1236   : > { %6335 = vst.msk [vmem:[#allocation2 + $0x8] sm:$0xff] %vm1057_vm10, %v6328_v26 }
0x1237   : > { %v6325_v0 = vpop.permute.xlu0 %6324 }
0x1238   : > { %6336 = vst.msk [vmem:[#allocation2 + $0x70] sm:$0x3] %vm13045_vm5, %v6325_v0  ;;  %v6327_v44 = vpop.permute.xlu1 %6326 }
0x1239   : > { %v6329_v8 = vsel %vm1297_vm6, %v6325_v0, %v6327_v44 }
0x123a   : > { %6337 = vst.msk [vmem:[#allocation2 + $0x78] sm:$0x3] %vm13046_vm3, %v6329_v8 }
0x123b   : > { %v6338_v39 = vld [vmem:[#allocation2] sm:$0xff] }
0x123c   : > { %v6346_v12 = vrot.slane %v6338_v39, 6  ;;  %v6366_v58 = vrot.slane %v6338_v39, 4 }
0x123d   : > { %v6339_v45 = vld [vmem:[#allocation2 + $0x8] sm:$0xff] }
0x123e   : > { %v6347_v37 = vrot.slane %v6339_v45, 6  ;;  %v6367_v34 = vrot.slane %v6339_v45, 4 }
0x123f   : > { %v6340_v32 = vld [vmem:[#allocation2 + $0x70] sm:$0x3] }
0x1240   : > { %v8621_v10 = vpack.i.bf16 %v6347_v37, %v6346_v12  ;;  %v6348_v33 = vrot.slane %v6340_v32, 6  ;;  %v8626_v24 = vpack.i.bf16 %v6367_v34, %v6366_v58  ;;  %v6368_v15 = vrot.slane %v6340_v32, 4 }
0x1241   : > { %v6341_v62 = vld [vmem:[#allocation2 + $0x78] sm:$0x3] }
0x1242   : > { %8622 = vrot.lane.b32.xlu0 %v8621_v10, %s13000_s5  ;;  %v6350_v42 = vrot.slane %v6341_v62, 6  ;;  %v6370_v48 = vrot.slane %v6341_v62, 4  ;;  %v6349_v38 = vsel %vm1455_vm9, %v6346_v12, %v6348_v33  ;;  %v6369_v6 = vsel %vm1483_vm14, %v6366_v58, %v6368_v15 }
0x1244   : > { %v6351_v56 = vsel %vm1455_vm9, %v6347_v37, %v6350_v42  ;;  %v6371_v23 = vsel %vm1483_vm14, %v6367_v34, %v6370_v48 }
0x1245   : > { %v8631_v52 = vpack.i.bf16 %v6351_v56, %v6349_v38  ;;  %v8636_v40 = vpack.i.bf16 %v6371_v23, %v6369_v6 }
0x1246   : > { %8627 = vrot.lane.b32.xlu0 %v8626_v24, %s12999_s7 }
0x1247   : > { %8632 = vrot.lane.b32.xlu1 %v8631_v52, %s13000_s5 }
0x124a   : > { %6400 = vperm.xlu0 %7904, %v6396_v49  }
0x124b   : > { %8637 = vrot.lane.b32.xlu1 %v8636_v40, %s12999_s7 }
0x124f   : > { %6405 = vperm.xlu1 %7905, %v6397_v27  }
0x12b4   : > { %v8623_v28 = vpop.permute.xlu0 %8622 }
0x12b5   : > { %v8625_v29 = vunpack.i.h.bf16 %v8623_v28  ;;  %v8624_v43 = vunpack.i.l.bf16 %v8623_v28 }
0x12b7   : > { %v6360_v2 = vsel %vm953_vm7, %v8624_v43, %v8625_v29  ;;  %v6387_v20 = vsel %vm1455_vm9, %v6341_v62, %v8625_v29 }
0x12b8   : > { %v8628_v36 = vpop.permute.xlu0 %8627  ;;  %v6391_v31 = vpack.c.bf16 %v6387_v20, %v6339_v45  ;;  %v6386_v1 = vsel %vm1455_vm9, %v6340_v32, %v6360_v2 }
0x12b9   : > { %v8630_v3 = vunpack.i.h.bf16 %v8628_v36  ;;  %v8629_v57 = vunpack.i.l.bf16 %v8628_v36  ;;  %v8633_v54 = vpop.permute.xlu1 %8632  ;;  %v6390_v63 = vpack.c.bf16 %v6386_v1, %v6338_v39 }
0x12ba   : > { %v8635_v4 = vunpack.i.h.bf16 %v8633_v54  ;;  %v8634_v17 = vunpack.i.l.bf16 %v8633_v54  ;;  %6422 = vmatprep.subr.bf16.mxu1 %v6391_v31 }
0x12bb   : > { %6423 = vmatpush1.bf16.msra.mxu1 %v6390_v63  ;;  %v6380_v11 = vsel %vm1005_vm8, %v8629_v57, %v8630_v3 }
0x12bc   : > { %v6361_v30 = vsel %vm953_vm7, %v8634_v17, %v8635_v4  ;;  %v6389_v19 = vsel %vm1483_vm14, %v8635_v4, %v8630_v3 }
0x12bd   : > { %v8638_v13 = vpop.permute.xlu1 %8637  ;;  %v6388_v53 = vsel %vm1483_vm14, %v6361_v30, %v6380_v11  ;;  %v6630_v30 = vld [vmem:[%s12835_s18 + $0x80] sm:$0xff] }
0x12be   : > { %v8640_v18 = vunpack.i.h.bf16 %v8638_v13  ;;  %v8639_v14 = vunpack.i.l.bf16 %v8638_v13  ;;  %v8674_v13 = vld [vmem:[%s12834_s17] sm:$0xff]  }
0x12c0   : > { %v6381_v5 = vsel %vm1005_vm8, %v8639_v14, %v8640_v18  ;;  %v6393_v55 = vpack.c.bf16 %v8640_v18, %v6389_v19  ;;  %v6614_v18 = vld [vmem:[%s12835_s18] sm:$0xff]  ;;  %v6631_v14 = vld [vmem:[%s12835_s18 + $0x88] sm:$0xff]  ;;  %v6632_v19 = vld [vmem:[%s12835_s18 + $0x90] sm:$0xff] }
0x12c1   : > { %v6392_v41 = vpack.c.bf16 %v6381_v5, %v6388_v53  ;;  %v6615_v5 = vld [vmem:[%s12835_s18 + $0x8] sm:$0xff]  ;;  %v6633_v53 = vld [vmem:[%s12835_s18 + $0x98] sm:$0xff] }
0x12c2   : > { %7459 = vmatprep.subr.msk.bf16.mxu1 %vm13047_vm15, %v6393_v55  ;;  %v6616_v55 = vld [vmem:[%s12835_s18 + $0x10] sm:$0xff] }
0x12c3   : > { %v6417_v16 = vsel %vm13048_vm11, %v6392_v41, 0  ;;  %v6634_v41 = vld [vmem:[%s12835_s18 + $0xa0] sm:$0xff] }
0x12c4   : > { %6425 = vmatpush1.bf16.msra.mxu1 %v6417_v16  ;;  %v6617_v16 = vld [vmem:[%s12835_s18 + $0x18] sm:$0xff] }
0x12c7   : > { %7460 = vmatmul.mubr.msk.bf16.vlgmr.msra.gmra.mrb[48].mxu1 %vm13049_vm1, %v8673_v50  ;;  %v6618_v50 = vld [vmem:[%s12835_s18 + $0x20] sm:$0xff] }
0x12c9   : > { %v6401_v60 = vpop.permute.xlu0 %6400 }
0x12ce   : > { %v6406_v9 = vpop.permute.xlu1 %6405 }
0x139a   : > { %v6456_v22 = vpop.f32.mrb[48].mxu1 }
0x139b   : > { %v6457_v46 = vadd.f32 %v6456_v22, %v6401_v60  ;;  %v6458_v7 = vpop.f32.mrb[49].mxu1  ;;  %v6636_v22 = vld [vmem:[%s12835_s18 + $0xb0] sm:$0xff] }
0x139c   : > { %v6459_v21 = vadd.f32 %v6458_v7, %v6401_v60  ;;  %v6460_v59 = vpop.f32.mrb[50].mxu1  ;;  %v6635_v60 = vld [vmem:[%s12835_s18 + $0xa8] sm:$0xff]  ;;  %v6620_v7 = vld [vmem:[%s12835_s18 + $0x30] sm:$0xff] }
0x139d   : > { %v6462_v61 = vpop.f32.mrb[51].mxu1  ;;  %6469 = vrot.lane.b32.xlu0 %v6457_v46, %s13000_s5  ;;  %v6461_v35 = vadd.f32 %v6460_v59, %v6406_v9  ;;  %v6638_v59 = vld [vmem:[%s12835_s18 + $0xc0] sm:$0xff] }
0x139e   : > { %6471 = vrot.lane.b32.xlu1 %v6459_v21, %s13000_s5  ;;  %v6463_v47 = vadd.f32 %v6462_v61, %v6406_v9  ;;  %v6621_v61 = vld [vmem:[%s12835_s18 + $0x38] sm:$0xff]  ;;  %v6622_v9 = vld [vmem:[%s12835_s18 + $0x40] sm:$0xff] }
0x13a1   : > { %6473 = vrot.lane.b32.xlu0 %v6461_v35, %s13000_s5 }
0x13a2   : > { %6475 = vrot.lane.b32.xlu1 %v6463_v47, %s13000_s5 }
0x140f   : > { %v6470_v25 = vpop.permute.xlu0 %6469 }
0x1410   : > { %v6472_v51 = vpop.permute.xlu1 %6471 }
0x1411   : > { %v6477_v26 = vsel %vm953_vm7, %v6470_v25, %v6472_v51  ;;  %v6484_v0 = vmax.f32 %v6459_v21, %v6472_v51  ;;  %v6637_v21 = vld [vmem:[%s12835_s18 + $0xb8] sm:$0xff]  ;;  %v6623_v25 = vld [vmem:[%s12835_s18 + $0x48] sm:$0xff]  ;;  %v6624_v51 = vld [vmem:[%s12835_s18 + $0x50] sm:$0xff] }
0x1412   : > { %v6483_v44 = vmax.f32 %v6457_v46, %v6477_v26  ;;  %v6619_v46 = vld [vmem:[%s12835_s18 + $0x28] sm:$0xff]  ;;  %v6641_v26 = vld [vmem:[%s12835_s18 + $0xd8] sm:$0xff] }
0x1413   : > { %6509 = vrot.lane.b32.xlu0 %v6484_v0, %s13029_s28  ;;  %v6474_v8 = vpop.permute.xlu0 %6473 }
0x1414   : > { %v6476_v39 = vpop.permute.xlu1 %6475  ;;  %6495 = vrot.lane.b32.xlu1 %v6483_v44, %s12999_s7 }
0x1415   : > { %v6478_v45 = vsel %vm953_vm7, %v6474_v8, %v6476_v39  ;;  %v6486_v37 = vmax.f32 %v6463_v47, %v6476_v39  ;;  %vm6886_vm7 = vcmask 490496   ;;  %v6640_v47 = vld [vmem:[%s12835_s18 + $0xd0] sm:$0xff]  ;;  %v6626_v8 = vld [vmem:[%s12835_s18 + $0x60] sm:$0xff]  ;;  %v6643_v39 = vld [vmem:[%s12835_s18 + $0xe8] sm:$0xff] }
0x1416   : > { %v6485_v12 = vmax.f32 %v6461_v35, %v6478_v45  ;;  %7606 = vmatprep.mubr.msk.bf16.mxu1 %vm6886_vm7, %v8674_v13  ;;  %v6639_v35 = vld [vmem:[%s12835_s18 + $0xc8] sm:$0xff]  ;;  %v6644_v45 = vld [vmem:[%s12835_s18 + $0xf0] sm:$0xff]  ;;  %v8682_v13 = vld [vmem:[%s12834_s17 + $0x40] sm:$0xff]  }
0x1417   : > { %6515 = vrot.lane.b32.xlu0 %v6484_v0, %s13030_s0  ;;  %v6642_v0 = vld [vmem:[%s12835_s18 + $0xe0] sm:$0xff] }
0x1418   : > { %6491 = vrot.lane.b32.xlu1 %v6485_v12, %s13000_s5 }
0x141b   : > { %6489 = vrot.lane.b32.xlu0 %v6483_v44, %s13000_s5 }
0x141c   : > { %6497 = vrot.lane.b32.xlu1 %v6485_v12, %s12999_s7 }
0x141f   : > { %6501 = vrot.lane.b32.xlu0 %v6483_v44, %s8704_s4 }
0x1420   : > { %6503 = vrot.lane.b32.xlu1 %v6485_v12, %s8704_s4 }
0x1423   : > { %6511 = vrot.lane.b32.xlu0 %v6486_v37, %s13029_s28 }
0x1424   : > { %6517 = vrot.lane.b32.xlu1 %v6486_v37, %s13030_s0  ;;  %v6628_v37 = vld [vmem:[%s12835_s18 + $0x70] sm:$0xff] }
0x1485   : > { %v6510_v32 = vpop.permute.xlu0 %6509 }
0x1486   : > { %v6496_v10 = vpop.permute.xlu1 %6495 }
0x1489   : > { %v6516_v34 = vpop.permute.xlu0 %6515 }
0x148a   : > { %v6492_v33 = vpop.permute.xlu1 %6491 }
0x148b   : > { %v6522_v15 = vsel %vm1297_vm6, %v6485_v12, %v6492_v33  ;;  %v6627_v12 = vld [vmem:[%s12835_s18 + $0x68] sm:$0xff] }
0x148d   : > { %v6490_v62 = vpop.permute.xlu0 %6489 }
0x148e   : > { %v6521_v58 = vsel %vm1297_vm6, %v6483_v44, %v6490_v62  ;;  %v6498_v42 = vpop.permute.xlu1 %6497  ;;  %vm13050_vm6 = vcmask 779264   ;;  %v6625_v44 = vld [vmem:[%s12835_s18 + $0x58] sm:$0xff] }
0x148f   : > { %v6523_v48 = vsel %vm1242_vm13, %v6521_v58, %v6496_v10  ;;  %v6524_v23 = vsel %vm1242_vm13, %v6522_v15, %v6498_v42  ;;  %v7148_v10 = vld [vmem:[%s12837_s20] sm:$0x7f] }
0x1491   : > { %v6502_v24 = vpop.permute.xlu0 %6501 }
0x1492   : > { %v6525_v38 = vsel %vm1187_vm12, %v6523_v48, %v6502_v24  ;;  %v6504_v56 = vpop.permute.xlu1 %6503 }
0x1493   : > { %v6527_v52 = vsel %vm824_vm2, %v6525_v38, %v6510_v32  ;;  %v6526_v6 = vsel %vm1187_vm12, %v6524_v23, %v6504_v56  ;;  %v6645_v32 = vld [vmem:[%s12835_s18 + $0xf8] sm:$0xff] }
0x1494   : > { %v12531_v49 = vsel %vm1057_vm10, %v6527_v52, %v6516_v34  ;;  %v6629_v34 = vld [vmem:[%s12835_s18 + $0x78] sm:$0xff] }
0x1495   : > { %v6512_v40 = vpop.permute.xlu0 %6511  ;;  %6531 = vst.msk [vmem:[%s804_s1] sm:$0xff] %vm1005_vm8, %v12531_v49  ;;  %v6544_v43 = vrot.slane %v12531_v49, 4  ;;  %v6535_v31 = vrot.slane %v12531_v49, 6  ;;  %v6553_v57 = vrot.slane %v12531_v49, 2 }
0x1496   : > { %v6528_v27 = vsel %vm824_vm2, %v6526_v6, %v6512_v40  ;;  %v6518_v28 = vpop.permute.xlu1 %6517  ;;  %vm13051_vm2 = vcmask 1045504  }
0x1497   : > { %v12538_v29 = vsel %vm1057_vm10, %v6528_v27, %v6518_v28  ;;  %vm13052_vm8 = vmmov %vm13051_vm2 }
0x1498   : > { %6532 = vst.msk [vmem:[%s804_s1 + $0x8] sm:$0x3] %vm13050_vm6, %v12538_v29  ;;  %v6536_v2 = vrot.slane %v12538_v29, 6  ;;  %v6545_v20 = vrot.slane %v12538_v29, 4  ;;  %v6554_v36 = vrot.slane %v12538_v29, 2  ;;  %v8656_v17 = vpack.i.bf16 %v12538_v29, %v12531_v49  ;;  %vm13053_vm10 = vmmov %vm13051_vm2 }
0x1499   : > { %vm13054_vm12 = vmmov %vm13051_vm2 }
0x149a   : > { %v6546_v1 = vsel %vm1483_vm14, %v6544_v43, %v6545_v20  ;;  %v6537_v3 = vsel %vm1455_vm9, %v6535_v31, %v6536_v2  ;;  %v6555_v4 = vsel %vm13051_vm2, %v6553_v57, %v6554_v36 }
0x149b   : > { %v8646_v54 = vpack.i.bf16 %v6546_v1, %v6544_v43  ;;  %v8641_v63 = vpack.i.bf16 %v6537_v3, %v6535_v31  ;;  %v8651_v11 = vpack.i.bf16 %v6555_v4, %v6553_v57  ;;  %v8675_v57 = vld [vmem:[%s12834_s17 + $0x8] sm:$0xff]   ;;  %v8678_v4 = vld [vmem:[%s12834_s17 + $0x20] sm:$0xff]  }
0x149d   : > { %8647 = vrot.lane.b32.xlu1 %v8646_v54, %s12999_s7  ;;  %8642 = vrot.lane.b32.xlu0 %v8641_v63, %s13000_s5  ;;  %v8676_v54 = vld [vmem:[%s12834_s17 + $0x10] sm:$0xff]  }
0x14a1   : > { %8657 = vrot.lane.b32.xlu1 %v8656_v17, %s13029_s28  ;;  %8652 = vrot.lane.b32.xlu0 %v8651_v11, %s8704_s4  ;;  %v8679_v17 = vld [vmem:[%s12834_s17 + $0x28] sm:$0xff]   ;;  %v8680_v11 = vld [vmem:[%s12834_s17 + $0x30] sm:$0xff]  }
0x14a5   : > { %6728 = vperm.xlu1 %7905, %v6630_v30   ;;  %8662 = vrot.lane.b32.xlu0 %v8641_v63, %s13030_s0  ;;  %v8677_v63 = vld [vmem:[%s12834_s17 + $0x18] sm:$0xff]   ;;  %s7400_s0 = sshll.u32 %s13056_s2, 3 }
0x14a6   : > { %v8681_v30 = vld [vmem:[%s12834_s17 + $0x38] sm:$0xff]   ;;  %s808_s7 = scalar_lea.vmem %s12842_s25, %s7400_s0 }
0x14a9   : > { %6648 = vperm.xlu1 %7905, %v6614_v18   ;;  %6733 = vperm.xlu0 %7904, %v6631_v14   ;;  %v8683_v18 = vld [vmem:[%s12834_s17 + $0x48] sm:$0xff]   ;;  %v8684_v14 = vld [vmem:[%s12834_s17 + $0x50] sm:$0xff]  }
0x14ad   : > { %6738 = vperm.xlu1 %7905, %v6632_v19   ;;  %6653 = vperm.xlu0 %7904, %v6615_v5   ;;  %v8685_v19 = vld [vmem:[%s12834_s17 + $0x58] sm:$0xff]   ;;  %v8686_v5 = vld [vmem:[%s12834_s17 + $0x60] sm:$0xff]  }
0x14b1   : > { %6658 = vperm.xlu1 %7905, %v6616_v55   ;;  %6743 = vperm.xlu0 %7904, %v6633_v53   ;;  %v8687_v55 = vld [vmem:[%s12834_s17 + $0x68] sm:$0xff]   ;;  %v8688_v53 = vld [vmem:[%s12834_s17 + $0x70] sm:$0xff]  }
0x14b5   : > { %6748 = vperm.xlu1 %7905, %v6634_v41   ;;  %6663 = vperm.xlu0 %7904, %v6617_v16   ;;  %v8689_v41 = vld [vmem:[%s12834_s17 + $0x78] sm:$0xff]  }
0x14b9   : > { %6668 = vperm.xlu1 %7905, %v6618_v50   ;;  %6753 = vperm.xlu0 %7904, %v6635_v60  }
0x14bd   : > { %6758 = vperm.xlu1 %7905, %v6636_v22   ;;  %6673 = vperm.xlu0 %7904, %v6619_v46   ;;  %v12736_v46 = vld [vmem:[%s12836_s19] sm:$0xff] }
0x14c1   : > { %6678 = vperm.xlu1 %7905, %v6620_v7   ;;  %6763 = vperm.xlu0 %7904, %v6637_v21   ;;  %v7494_v7 = vcombine.high %v12736_v46, %v12736_v46 }
0x14c3   : > { %7193 = vmatprep.mubr.bf16.mxu0 %v7494_v7 }
0x14c5   : > { %6768 = vperm.xlu1 %7905, %v6638_v59   ;;  %6683 = vperm.xlu0 %7904, %v6621_v61  }
0x14c9   : > { %6688 = vperm.xlu1 %7905, %v6622_v9   ;;  %6773 = vperm.xlu0 %7904, %v6639_v35  }
0x14cd   : > { %6778 = vperm.xlu1 %7905, %v6640_v47   ;;  %6693 = vperm.xlu0 %7904, %v6623_v25  }
0x14d1   : > { %6698 = vperm.xlu1 %7905, %v6624_v51   ;;  %6783 = vperm.xlu0 %7904, %v6641_v26  }
0x14d5   : > { %6788 = vperm.xlu1 %7905, %v6642_v0   ;;  %6703 = vperm.xlu0 %7904, %v6625_v44  }
0x14d9   : > { %6708 = vperm.xlu1 %7905, %v6626_v8   ;;  %6793 = vperm.xlu0 %7904, %v6643_v39  }
0x14dd   : > { %6798 = vperm.xlu1 %7905, %v6644_v45   ;;  %6713 = vperm.xlu0 %7904, %v6627_v12  }
0x14e1   : > { %6718 = vperm.xlu1 %7905, %v6628_v37   ;;  %6803 = vperm.xlu0 %7904, %v6645_v32  }
0x14e5   : > { %7151 = vperm.xlu1 %7905, %v7148_v10   ;;  %6723 = vperm.xlu0 %7904, %v6629_v34  }
0x150f   : > { %v8648_v33 = vpop.permute.xlu1 %8647  ;;  %v8643_v62 = vpop.permute.xlu0 %8642 }
0x1510   : > { %v8644_v58 = vunpack.i.l.bf16 %v8643_v62  ;;  %v8649_v42 = vunpack.i.l.bf16 %v8648_v33  ;;  %v8645_v48 = vunpack.i.h.bf16 %v8643_v62  ;;  %v8650_v52 = vunpack.i.h.bf16 %v8648_v33 }
0x1512   : > { %v6574_v24 = vsel %vm1455_vm9, %v12538_v29, %v8644_v58  ;;  %v6575_v27 = vsel %vm1483_vm14, %v8645_v48, %v8649_v42 }
0x1513   : > { %v8658_v38 = vpop.permute.xlu1 %8657  ;;  %v8653_v56 = vpop.permute.xlu0 %8652  ;;  %v6610_v15 = vpack.c.bf16 %v6574_v24, %v12531_v49 }
0x1514   : > { %v8654_v23 = vunpack.i.l.bf16 %v8653_v56  ;;  %v8659_v6 = vunpack.i.l.bf16 %v8658_v38  ;;  %v8655_v40 = vunpack.i.h.bf16 %v8653_v56  ;;  %v8660_v20 = vunpack.i.h.bf16 %v8658_v38 }
0x1515   : > { %7598 = vmatprep.subr.bf16.mxu1 %v6610_v15 }
0x1516   : > { %7599 = vmatpush3.bf16.msra.mxu1 %v6610_v15  ;;  %v6576_v28 = vsel %vm13052_vm8, %v8650_v52, %v8654_v23  ;;  %v6612_v31 = vpack.c.bf16 %v8659_v6, %v8655_v40 }
0x1517   : > { %v8663_v43 = vpop.permute.xlu0 %8662  ;;  %v6611_v2 = vpack.c.bf16 %v6576_v28, %v6575_v27 }
0x1518   : > { %v8664_v36 = vunpack.i.l.bf16 %v8663_v43  ;;  %v8665_v29 = vunpack.i.h.bf16 %v8663_v43 }
0x1519   : > { %7600 = vmatprep.subr.bf16.mxu1 %v6611_v2 }
0x151a   : > { %v6577_v1 = vsel %vm1455_vm9, %v8660_v20, %v8664_v36  ;;  %7601 = vmatpush3.bf16.msra.mxu1 %v6611_v2  ;;  %vm7201_vm9 = vcmask 129024  }
0x151b   : > { %7602 = vmatprep.subr.bf16.mxu1 %v6612_v31  ;;  %v6613_v49 = vpack.c.bf16 %v8665_v29, %v6577_v1 }
0x151d   : > { %v6936_v3 = vsel %vm13054_vm12, %v6613_v49, 0 }
0x151e   : > { %7603 = vmatpush3.bf16.msra.mxu1 %v6612_v31 }
0x151f   : > { %7638 = vmatprep.subr.msk.bf16.mxu1 %vm13053_vm10, %v6613_v49 }
0x1522   : > { %7605 = vmatpush3.bf16.msra.mxu1 %v6936_v3 }
0x1524   : > { %v12729_v16 = vpop.permute.xlu1 %6728 }
0x1525   : > { %7607 = vmatmul.mubr.msk.bf16.vlgmr.msra.gmra.mrb[52].mxu1 %vm6886_vm7, %v8675_v57 }
0x1526   : > { %7610 = vmatprep.mubr.msk.bf16.mxu1 %vm6886_vm7, %v8676_v54 }
0x1528   : > { %v12731_v50 = vpop.permute.xlu0 %6733  ;;  %v6649_v60 = vpop.permute.xlu1 %6648 }
0x152c   : > { %v6654_v22 = vpop.permute.xlu0 %6653  ;;  %v12740_v21 = vpop.permute.xlu1 %6738 }
0x152d   : > { %7611 = vmatmul.mubr.msk.bf16.gmra.mrb[56].mxu1 %vm6886_vm7, %v8677_v63 }
0x152e   : > { %7614 = vmatprep.mubr.msk.bf16.mxu1 %vm6886_vm7, %v8678_v4 }
0x1530   : > { %v12742_v59 = vpop.permute.xlu0 %6743  ;;  %v6659_v61 = vpop.permute.xlu1 %6658 }
0x1534   : > { %v6664_v9 = vpop.permute.xlu0 %6663  ;;  %v12744_v35 = vpop.permute.xlu1 %6748 }
0x1535   : > { %7615 = vmatmul.mubr.msk.bf16.gmra.mrb[60].mxu1 %vm6886_vm7, %v8679_v17 }
0x1536   : > { %7618 = vmatprep.mubr.msk.bf16.mxu1 %vm6886_vm7, %v8680_v11 }
0x1538   : > { %v12746_v47 = vpop.permute.xlu0 %6753  ;;  %v6669_v25 = vpop.permute.xlu1 %6668 }
0x153c   : > { %v6674_v51 = vpop.permute.xlu0 %6673  ;;  %v12748_v26 = vpop.permute.xlu1 %6758 }
0x153d   : > { %7619 = vmatmul.mubr.msk.bf16.gmra.mrb[64].mxu1 %vm6886_vm7, %v8681_v30 }
0x153e   : > { %7622 = vmatprep.mubr.msk.bf16.mxu1 %vm6886_vm7, %v8682_v13 }
0x1540   : > { %v12750_v0 = vpop.permute.xlu0 %6763  ;;  %v6679_v44 = vpop.permute.xlu1 %6678 }
0x1544   : > { %v6684_v8 = vpop.permute.xlu0 %6683  ;;  %v12752_v39 = vpop.permute.xlu1 %6768 }
0x1545   : > { %7623 = vmatmul.mubr.msk.bf16.gmra.mrb[68].mxu1 %vm6886_vm7, %v8683_v18 }
0x1546   : > { %7626 = vmatprep.mubr.msk.bf16.mxu1 %vm6886_vm7, %v8684_v14 }
0x1548   : > { %v12754_v45 = vpop.permute.xlu0 %6773  ;;  %v6689_v12 = vpop.permute.xlu1 %6688 }
0x154c   : > { %v6694_v37 = vpop.permute.xlu0 %6693  ;;  %v12756_v32 = vpop.permute.xlu1 %6778 }
0x154d   : > { %7627 = vmatmul.mubr.msk.bf16.gmra.mrb[72].mxu1 %vm6886_vm7, %v8685_v19 }
0x154e   : > { %7630 = vmatprep.mubr.msk.bf16.mxu1 %vm6886_vm7, %v8686_v5 }
0x1550   : > { %v12758_v10 = vpop.permute.xlu0 %6783  ;;  %v6699_v34 = vpop.permute.xlu1 %6698 }
0x1554   : > { %v6704_v42 = vpop.permute.xlu0 %6703  ;;  %v12760_v6 = vpop.permute.xlu1 %6788 }
0x1555   : > { %7631 = vmatmul.mubr.msk.bf16.gmra.mrb[76].mxu1 %vm6886_vm7, %v8687_v55 }
0x1556   : > { %7634 = vmatprep.mubr.msk.bf16.mxu1 %vm6886_vm7, %v8688_v53 }
0x1558   : > { %v12764_v43 = vpop.permute.xlu0 %6793  ;;  %v6709_v57 = vpop.permute.xlu1 %6708 }
0x155c   : > { %v6714_v17 = vpop.permute.xlu0 %6713  ;;  %v12772_v55 = vpop.permute.xlu1 %6798 }
0x155d   : > { %7635 = vmatmul.mubr.msk.bf16.gmra.mrb[80].mxu1 %vm6886_vm7, %v8689_v41 }
0x1560   : > { %v12774_v7 = vpop.permute.xlu0 %6803 }
0x15f8   : > { %v7608_v33 = vpop.f32.mrb[52].mxu1 }
0x15f9   : > { %v6981_v62 = vadd.f32 %v7608_v33, %v6659_v61  ;;  %v6972_v58 = vpop.f32.mrb[53].mxu1  ;;  %v6719_v33 = vpop.permute.xlu1 %6718 }
0x15fa   : > { %v6973_v48 = vadd.f32 %v6972_v58, %v6649_v60  ;;  %v7609_v24 = vpop.f32.mrb[54].mxu1 }
0x15fb   : > { %v6984_v38 = vadd.f32 %v7609_v24, %v6664_v9  ;;  %v6975_v56 = vpop.f32.mrb[55].mxu1  ;;  %v7101_v52 = vmax.f32 %v6981_v62, 0.0  ;;  %v6724_v24 = vpop.permute.xlu0 %6723 }
0x15fc   : > { %v6976_v15 = vadd.f32 %v6975_v56, %v6654_v22  ;;  %v7099_v40 = vmax.f32 %v6973_v48, 0.0 }
0x15fd   : > { %v7102_v23 = vmax.f32 %v6984_v38, 0.0 }
0x15fe   : > { %v7100_v27 = vmax.f32 %v6976_v15, 0.0 }
0x15ff   : > { %v12762_v28 = vpack.c.bf16 %v7102_v23, %v7101_v52 }
0x1600   : > { %v12766_v2 = vpack.c.bf16 %v7100_v27, %v7099_v40  ;;  %v7612_v20 = vpop.f32.mrb[56].mxu1 }
0x1601   : > { %v6997_v36 = vadd.f32 %v7612_v20, %v6679_v44  ;;  %v6988_v31 = vpop.f32.mrb[57].mxu1 }
0x1602   : > { %v6989_v29 = vadd.f32 %v6988_v31, %v6669_v25  ;;  %v7613_v1 = vpop.f32.mrb[58].mxu1 }
0x1603   : > { %v7000_v49 = vadd.f32 %v7613_v1, %v6684_v8  ;;  %v6991_v3 = vpop.f32.mrb[59].mxu1  ;;  %v7105_v63 = vmax.f32 %v6997_v36, 0.0 }
0x1604   : > { %v6992_v54 = vadd.f32 %v6991_v3, %v6674_v51  ;;  %v7103_v11 = vmax.f32 %v6989_v29, 0.0 }
0x1605   : > { %v7106_v4 = vmax.f32 %v7000_v49, 0.0 }
0x1606   : > { %v7104_v30 = vmax.f32 %v6992_v54, 0.0 }
0x1607   : > { %v12768_v13 = vpack.c.bf16 %v7106_v4, %v7105_v63 }
0x1608   : > { %v12770_v18 = vpack.c.bf16 %v7104_v30, %v7103_v11  ;;  %v7616_v14 = vpop.f32.mrb[60].mxu1 }
0x1609   : > { %v7013_v19 = vadd.f32 %v7616_v14, %v6699_v34  ;;  %v7004_v5 = vpop.f32.mrb[61].mxu1 }
0x160a   : > { %v7005_v53 = vadd.f32 %v7004_v5, %v6689_v12  ;;  %v7617_v41 = vpop.f32.mrb[62].mxu1 }
0x160b   : > { %v7016_v60 = vadd.f32 %v7617_v41, %v6704_v42  ;;  %v7007_v22 = vpop.f32.mrb[63].mxu1  ;;  %v7109_v9 = vmax.f32 %v7013_v19, 0.0 }
0x160c   : > { %v7008_v61 = vadd.f32 %v7007_v22, %v6694_v37  ;;  %v7107_v51 = vmax.f32 %v7005_v53, 0.0 }
0x160d   : > { %v7110_v25 = vmax.f32 %v7016_v60, 0.0 }
0x160e   : > { %v7108_v44 = vmax.f32 %v7008_v61, 0.0 }
0x160f   : > { %v12776_v8 = vpack.c.bf16 %v7110_v25, %v7109_v9 }
0x1610   : > { %v12778_v62 = vpack.c.bf16 %v7108_v44, %v7107_v51  ;;  %v7620_v34 = vpop.f32.mrb[64].mxu1 }
0x1611   : > { %v7029_v58 = vadd.f32 %v7620_v34, %v6719_v33  ;;  %v7020_v48 = vpop.f32.mrb[65].mxu1 }
0x1612   : > { %v7021_v12 = vadd.f32 %v7020_v48, %v6709_v57  ;;  %v7621_v38 = vpop.f32.mrb[66].mxu1 }
0x1613   : > { %v7032_v42 = vadd.f32 %v7621_v38, %v6724_v24  ;;  %v7023_v56 = vpop.f32.mrb[67].mxu1  ;;  %v7113_v52 = vmax.f32 %v7029_v58, 0.0 }
0x1614   : > { %v7024_v15 = vadd.f32 %v7023_v56, %v6714_v17  ;;  %v7111_v23 = vmax.f32 %v7021_v12, 0.0 }
0x1615   : > { %v7114_v37 = vmax.f32 %v7032_v42, 0.0 }
0x1616   : > { %v7112_v40 = vmax.f32 %v7024_v15, 0.0 }
0x1617   : > { %v12780_v27 = vpack.c.bf16 %v7114_v37, %v7113_v52 }
0x1618   : > { %v12782_v20 = vpack.c.bf16 %v7112_v40, %v7111_v23  ;;  %v7624_v36 = vpop.f32.mrb[68].mxu1 }
0x1619   : > { %v7045_v31 = vadd.f32 %v7624_v36, %v12740_v21  ;;  %v7036_v29 = vpop.f32.mrb[69].mxu1 }
0x161a   : > { %v7037_v1 = vadd.f32 %v7036_v29, %v12729_v16  ;;  %v7625_v49 = vpop.f32.mrb[70].mxu1 }
0x161b   : > { %v7048_v3 = vadd.f32 %v7625_v49, %v12742_v59  ;;  %v7039_v57 = vpop.f32.mrb[71].mxu1  ;;  %v7117_v63 = vmax.f32 %v7045_v31, 0.0  ;;  %v7152_v31 = vpop.permute.xlu1 %7151 }
0x161c   : > { %v7040_v54 = vadd.f32 %v7039_v57, %v12731_v50  ;;  %v7115_v17 = vmax.f32 %v7037_v1, 0.0 }
0x161d   : > { %v7118_v4 = vmax.f32 %v7048_v3, 0.0 }
0x161e   : > { %v7116_v11 = vmax.f32 %v7040_v54, 0.0 }
0x161f   : > { %v7141_v30 = vpack.c.bf16 %v7118_v4, %v7117_v63 }
0x1620   : > { %v7140_v14 = vpack.c.bf16 %v7116_v11, %v7115_v17  ;;  %v7628_v19 = vpop.f32.mrb[72].mxu1 }
0x1621   : > { %v7061_v5 = vadd.f32 %v7628_v19, %v12748_v26  ;;  %v7052_v53 = vpop.f32.mrb[73].mxu1 }
0x1622   : > { %v7053_v21 = vadd.f32 %v7052_v53, %v12744_v35  ;;  %v7629_v41 = vpop.f32.mrb[74].mxu1  ;;  %7536 = vmatprep.subr.bf16.mxu0 %v7140_v14 }
0x1623   : > { %v7064_v16 = vadd.f32 %v7629_v41, %v12750_v0  ;;  %v7055_v59 = vpop.f32.mrb[75].mxu1  ;;  %7537 = vmatpush3.bf16.msra.mxu0 %v12766_v2  ;;  %v7121_v60 = vmax.f32 %v7061_v5, 0.0 }
0x1624   : > { %v7056_v50 = vadd.f32 %v7055_v59, %v12746_v47  ;;  %7538 = vmatprep.subr.bf16.mxu0 %v7141_v30  ;;  %v7119_v61 = vmax.f32 %v7053_v21, 0.0 }
0x1625   : > { %v7122_v22 = vmax.f32 %v7064_v16, 0.0 }
0x1626   : > { %v7120_v9 = vmax.f32 %v7056_v50, 0.0 }
0x1627   : > { %v7143_v25 = vpack.c.bf16 %v7122_v22, %v7121_v60  ;;  %7539 = vmatpush3.bf16.msra.mxu0 %v12762_v28 }
0x1628   : > { %v7142_v26 = vpack.c.bf16 %v7120_v9, %v7119_v61  ;;  %v7632_v51 = vpop.f32.mrb[76].mxu1 }
0x1629   : > { %v7077_v35 = vadd.f32 %v7632_v51, %v12756_v32  ;;  %v7068_v44 = vpop.f32.mrb[77].mxu1 }
0x162a   : > { %v7069_v0 = vadd.f32 %v7068_v44, %v12752_v39  ;;  %v7633_v33 = vpop.f32.mrb[78].mxu1  ;;  %7540 = vmatprep.subr.bf16.mxu0 %v7142_v26 }
0x162b   : > { %v7080_v2 = vadd.f32 %v7633_v33, %v12758_v10  ;;  %v7071_v47 = vpop.f32.mrb[79].mxu1  ;;  %7541 = vmatpush3.bf16.msra.mxu0 %v12770_v18  ;;  %v7125_v58 = vmax.f32 %v7077_v35, 0.0 }
0x162c   : > { %v7072_v34 = vadd.f32 %v7071_v47, %v12754_v45  ;;  %7542 = vmatprep.subr.bf16.mxu0 %v7143_v25  ;;  %v7123_v28 = vmax.f32 %v7069_v0, 0.0 }
0x162d   : > { %v7126_v48 = vmax.f32 %v7080_v2, 0.0 }
0x162e   : > { %v7124_v24 = vmax.f32 %v7072_v34, 0.0 }
0x162f   : > { %v7145_v12 = vpack.c.bf16 %v7126_v48, %v7125_v58  ;;  %7543 = vmatpush3.bf16.msra.mxu0 %v12768_v13 }
0x1630   : > { %v7144_v32 = vpack.c.bf16 %v7124_v24, %v7123_v28  ;;  %v7636_v38 = vpop.f32.mrb[80].mxu1 }
0x1631   : > { %v7093_v39 = vadd.f32 %v7636_v38, %v12772_v55  ;;  %v7084_v42 = vpop.f32.mrb[81].mxu1 }
0x1632   : > { %v7085_v10 = vadd.f32 %v7084_v42, %v12760_v6  ;;  %v7637_v56 = vpop.f32.mrb[82].mxu1  ;;  %7544 = vmatprep.subr.bf16.mxu0 %v7144_v32  ;;  %v7493_v6 = vcombine.low %v12736_v46, %v12736_v46 }
0x1633   : > { %v7096_v18 = vadd.f32 %v7637_v56, %v12774_v7  ;;  %v7087_v45 = vpop.f32.mrb[83].mxu1  ;;  %7545 = vmatpush3.bf16.msra.mxu0 %v12778_v62  ;;  %v7129_v52 = vmax.f32 %v7093_v39, 0.0 }
0x1634   : > { %v7088_v15 = vadd.f32 %v7087_v45, %v12764_v43  ;;  %7546 = vmatprep.subr.bf16.mxu0 %v7145_v12  ;;  %v7127_v37 = vmax.f32 %v7085_v10, 0.0 }
0x1635   : > { %v7130_v13 = vmax.f32 %v7096_v18, 0.0 }
0x1636   : > { %v7128_v23 = vmax.f32 %v7088_v15, 0.0 }
0x1637   : > { %v7147_v40 = vpack.c.bf16 %v7130_v13, %v7129_v52  ;;  %7547 = vmatpush3.bf16.msra.mxu0 %v12776_v8 }
0x1638   : > { %v7146_v55 = vpack.c.bf16 %v7128_v23, %v7127_v37 }
0x163a   : > { %7548 = vmatprep.subr.bf16.mxu0 %v7146_v55 }
0x163b   : > { %7549 = vmatpush3.bf16.msra.mxu0 %v12782_v20 }
0x163c   : > { %7550 = vmatprep.subr.bf16.mxu0 %v7147_v40 }
0x163f   : > { %7551 = vmatpush3.bf16.msra.mxu0 %v12780_v27 }
0x1642   : > { %7194 = vmatmul.mubr.bf16.vlgmr.msra.gmra.mrb[60].mxu0 %v7493_v6 }
0x1715   : > { %v7552_v43 = vpop.f32.mrb[60].mxu0 }
0x1716   : > { %v7553_v7 = vpop.f32.mrb[61].mxu0 }
0x1717   : > { %v7554_v62 = vadd.f32 %v7553_v7, %v7552_v43  ;;  %v7555_v36 = vpop.f32.mrb[62].mxu0 }
0x1718   : > { %v7556_v8 = vpop.f32.mrb[63].mxu0 }
0x1719   : > { %v7196_v20 = vadd.f32 %v7554_v62, %v7152_v31 }
0x171b   : > { %7202 = vst.msk [vmem:[%s808_s7] sm:$0x7f] %vm7201_vm9, %v7196_v20 }
0x171c PF: > { %s36_s29 = sadd.s32 1, %s8698_s29  }
0x171d   : > { %p33_p4 = scmp.ge.s32.totalorder %s36_s29, 4  }
0x171f   :  { %35 = sbr.rel (!%p33_p4) target bundleno = 11 (0xb), region = 185 }

</bundles_post_ra>
